<compile_context>
chip_gen: v7x
topology: tpu7x:2x2x1
jax: 0.10.0
libtpu: 0.0.40
codegen_flags: <defaults>
</compile_context>

<pallas_src>
import math
import functools

import jax
import jax.numpy as jnp
from jax import lax
from jax.experimental import pallas as pl
from jax.experimental.pallas import tpu as pltpu

LANE = 128


def _round_up(x, m):
    return ((x + m - 1) // m) * m


# ----------------------------------------------------------------------------
# Fused Pallas kernel (one grid step == one batch element, full spatial extent)
# ----------------------------------------------------------------------------
def _sa_convlstm_kernel(H, W, kh, kw, Dm, Chp, Dmp,
                        xh_ref, c_ref, m_ref,
                        wc_ref, bc_ref, wh_ref, bh_ref,
                        wm_ref, bm_ref, wz_ref, bz_ref,
                        wo_ref, bo_ref,
                        h_out_ref, c_out_ref, m_out_ref,
                        pad2_ref):
    f32 = jnp.float32
    bf16 = jnp.bfloat16
    L = H * W
    ph, pw = kh // 2, kw // 2

    # ---------- stage 1: 3x3 gate conv as kh*kw accumulated matmuls ---------
    # xh_ref holds the spatially zero-padded, channel-padded concat([x, h]).
    xh = xh_ref[0].astype(f32)                              # (H+2ph, W+2pw, Cxhp)
    acc = jnp.zeros((L, 4 * Chp), f32)
    for t, (dy, dx) in enumerate((dy, dx) for dy in range(kh) for dx in range(kw)):
        patch = xh[dy:dy + H, dx:dx + W, :].reshape(L, -1).astype(bf16)
        acc = acc + jnp.dot(patch, wc_ref[t], preferred_element_type=f32)
    gates = acc + bc_ref[...]                               # (L, 4*Chp)

    i = jax.nn.sigmoid(gates[:, 0 * Chp:1 * Chp])
    f = jax.nn.sigmoid(gates[:, 1 * Chp:2 * Chp])
    o = jax.nn.sigmoid(gates[:, 2 * Chp:3 * Chp])
    g = jnp.tanh(gates[:, 3 * Chp:4 * Chp])

    c_prev = c_ref[0]                                       # (L, Chp)
    c_next = f * c_prev + i * g
    h_mid = o * jnp.tanh(c_next)

    # ---------- self-attention memory module (1x1 conv projections) ---------
    hqkv = jnp.dot(h_mid.astype(bf16), wh_ref[...],
                   preferred_element_type=f32) + bh_ref[...]        # (L, 3*Dmp)
    hq = hqkv[:, 0 * Dmp:1 * Dmp]
    hk = hqkv[:, 1 * Dmp:2 * Dmp]
    hv = hqkv[:, 2 * Dmp:3 * Dmp]

    m_prev = m_ref[0]                                       # (L, Chp)
    mkv = jnp.dot(m_prev.astype(bf16), wm_ref[...],
                  preferred_element_type=f32) + bm_ref[...]         # (L, 2*Dmp)
    mk = mkv[:, 0 * Dmp:1 * Dmp]
    mv = mkv[:, 1 * Dmp:2 * Dmp]

    scale = 1.0 / math.sqrt(Dm)                             # real (unpadded) Dm

    # TODO(synk): for large H*W, tile the query rows and stream K/V flash-style
    # with an online softmax; the full (L, L) score matrix here is sized for
    # small spatial extents only (fits easily in VMEM at L = 64).
    def softmax_rows(q, k):
        s = lax.dot_general(q.astype(bf16), k.astype(bf16),
                            (((1,), (1,)), ((), ())),
                            preferred_element_type=f32) * scale     # (L, L)
        s = s - jnp.max(s, axis=-1, keepdims=True)
        e = jnp.exp(s)
        return e * pl.reciprocal(jnp.sum(e, axis=-1, keepdims=True), approx=True)

    p_h = softmax_rows(hq, hk)                              # (L, L)
    p_m = softmax_rows(hq, mk)                              # (L, L)

    # conv_z (1x1) folded into the value path:
    #   Z = P_h @ (hv @ Wz_top) + P_m @ (mv @ Wz_bot) + bz
    hv_z = jnp.dot(hv.astype(bf16), wz_ref[0:Dmp, :], preferred_element_type=f32)
    mv_z = jnp.dot(mv.astype(bf16), wz_ref[Dmp:2 * Dmp, :], preferred_element_type=f32)
    p_cat = jnp.concatenate([p_h, p_m], axis=-1).astype(bf16)       # (L, 2L)
    v_cat = jnp.concatenate([hv_z, mv_z], axis=0).astype(bf16)      # (2L, Dmp)
    z = jnp.dot(p_cat, v_cat, preferred_element_type=f32) + bz_ref[...]   # (L, Dmp)

    # ---------- stage 2: conv_output 3x3 on cat([Z, h_mid]) in VMEM ---------
    pad2_ref[...] = jnp.zeros_like(pad2_ref)                # zero border
    pad2_ref[ph:ph + H, pw:pw + W, 0:Dmp] = z.reshape(H, W, Dmp)
    pad2_ref[ph:ph + H, pw:pw + W, Dmp:Dmp + Chp] = h_mid.reshape(H, W, Chp)
    zh_img = pad2_ref[...]                                  # (H+2ph, W+2pw, Dmp+Chp)

    acc2 = jnp.zeros((L, 3 * Chp), f32)
    for t, (dy, dx) in enumerate((dy, dx) for dy in range(kh) for dx in range(kw)):
        patch = zh_img[dy:dy + H, dx:dx + W, :].reshape(L, -1).astype(bf16)
        acc2 = acc2 + jnp.dot(patch, wo_ref[t], preferred_element_type=f32)
    conv2 = acc2 + bo_ref[...]                              # (L, 3*Chp)

    i2 = jax.nn.sigmoid(conv2[:, 0 * Chp:1 * Chp])
    g2 = jnp.tanh(conv2[:, 1 * Chp:2 * Chp])
    o2 = jax.nn.sigmoid(conv2[:, 2 * Chp:3 * Chp])

    m_next = i2 * g2 + (1.0 - i2) * m_prev
    h_next = o2 * m_next

    h_out_ref[0] = h_next
    c_out_ref[0] = c_next
    m_out_ref[0] = m_next


# ----------------------------------------------------------------------------
# Weight / bias re-layout helpers (lane-padded, per-tap matrices)
# ----------------------------------------------------------------------------
def _conv_w_to_tap_mats(w_oihw, in_blocks, out_real, out_pad):
    """torch (Cout, Cin, kh, kw) -> (kh*kw, K_pad, n_out*out_pad).

    in_blocks: list of (real_rows, padded_rows) describing how the kernel lays
    out / zero-pads the input channels.  Output channels are grouped into
    gates of width `out_real`, each padded to `out_pad` lanes.
    """
    co, _, kh, kw = w_oihw.shape
    n_out = co // out_real
    taps = []
    for dy in range(kh):
        for dx in range(kw):
            m = jnp.transpose(w_oihw[:, :, dy, dx], (1, 0))         # (Cin, Cout)
            parts, off = [], 0
            for real, padded in in_blocks:
                parts.append(jnp.pad(m[off:off + real], ((0, padded - real), (0, 0))))
                off += real
            m = jnp.concatenate(parts, axis=0)                      # (K_pad, Cout)
            m = m.reshape(m.shape[0], n_out, out_real)
            m = jnp.pad(m, ((0, 0), (0, 0), (0, out_pad - out_real)))
            taps.append(m.reshape(m.shape[0], n_out * out_pad))
    return jnp.stack(taps, axis=0)


def _pad_bias_blocks(b, real, padded):
    nb = b.shape[0] // real
    return jnp.pad(b.reshape(nb, real), ((0, 0), (0, padded - real))).reshape(1, nb * padded)


def init_params(key, input_dim, hidden_dim, d_attn, kernel_size):
    kh, kw = kernel_size
    Cin, Ch, Dm = input_dim, hidden_dim, d_attn
    keys = jax.random.split(key, 10)

    def u(k, shape, fan_in):
        bound = 1.0 / math.sqrt(fan_in)
        return jax.random.uniform(k, shape, jnp.float32, -bound, bound)

    return dict(
        conv_w=u(keys[0], (4 * Ch, Cin + Ch, kh, kw), (Cin + Ch) * kh * kw),
        conv_b=u(keys[1], (4 * Ch,), (Cin + Ch) * kh * kw),
        convh_w=u(keys[2], (3 * Dm, Ch, 1, 1), Ch),
        convh_b=u(keys[3], (3 * Dm,), Ch),
        convm_w=u(keys[4], (2 * Dm, Ch, 1, 1), Ch),
        convm_b=u(keys[5], (2 * Dm,), Ch),
        convz_w=u(keys[6], (Dm, 2 * Dm, 1, 1), 2 * Dm),
        convz_b=u(keys[7], (Dm,), 2 * Dm),
        convo_w=u(keys[8], (3 * Ch, Ch + Dm, kh, kw), (Ch + Dm) * kh * kw),
        convo_b=u(keys[9], (3 * Ch,), (Ch + Dm) * kh * kw),
    )


# ----------------------------------------------------------------------------
# Public wrapper: NCHW in / NCHW out (matches the PyTorch module)
# ----------------------------------------------------------------------------
def sa_convlstm_cell_forward(params, x_nchw, h_nchw, c_nchw, m_nchw,
                             input_dim, hidden_dim, d_attn, kernel_size):
    N, Cin, H, W = x_nchw.shape
    Ch, Dm = hidden_dim, d_attn
    kh, kw = kernel_size
    ph, pw = kh // 2, kw // 2
    L = H * W

    Chp = _round_up(Ch, LANE)
    Dmp = _round_up(Dm, LANE)
    Cxh = Cin + Ch
    Cxhp = _round_up(Cxh, LANE)
    Hp, Wp = H + 2 * ph, W + 2 * pw

    to_nhwc = lambda t: jnp.transpose(t, (0, 2, 3, 1))
    x, h, c, m = (to_nhwc(t) for t in (x_nchw, h_nchw, c_nchw, m_nchw))

    # Spatially + channel zero-padded conv input, stored bf16 (halves HBM DMA).
    xh = jnp.concatenate([x, h], axis=-1)
    xh = jnp.pad(xh, ((0, 0), (ph, ph), (pw, pw), (0, Cxhp - Cxh))).astype(jnp.bfloat16)

    c_flat = jnp.pad(c.reshape(N, L, Ch), ((0, 0), (0, 0), (0, Chp - Ch)))
    m_flat = jnp.pad(m.reshape(N, L, Ch), ((0, 0), (0, 0), (0, Chp - Ch)))

    bf = lambda t: t.astype(jnp.bfloat16)
    wc = bf(_conv_w_to_tap_mats(params['conv_w'], [(Cxh, Cxhp)], Ch, Chp))          # (kh*kw, Cxhp, 4*Chp)
    wh = bf(_conv_w_to_tap_mats(params['convh_w'], [(Ch, Chp)], Dm, Dmp)[0])        # (Chp, 3*Dmp)
    wm = bf(_conv_w_to_tap_mats(params['convm_w'], [(Ch, Chp)], Dm, Dmp)[0])        # (Chp, 2*Dmp)
    wz = bf(_conv_w_to_tap_mats(params['convz_w'], [(Dm, Dmp), (Dm, Dmp)], Dm, Dmp)[0])   # (2*Dmp, Dmp)
    wo = bf(_conv_w_to_tap_mats(params['convo_w'], [(Dm, Dmp), (Ch, Chp)], Ch, Chp))      # (kh*kw, Dmp+Chp, 3*Chp)

    bc = _pad_bias_blocks(params['conv_b'], Ch, Chp)
    bh = _pad_bias_blocks(params['convh_b'], Dm, Dmp)
    bm = _pad_bias_blocks(params['convm_b'], Dm, Dmp)
    bz = _pad_bias_blocks(params['convz_b'], Dm, Dmp)
    bo = _pad_bias_blocks(params['convo_b'], Ch, Chp)

    def per_n(shape):
        nd = len(shape)
        return pl.BlockSpec((1,) + shape, lambda n: (n,) + (0,) * nd)

    def full(shape):
        return pl.BlockSpec(shape, lambda n: (0,) * len(shape))

    kernel = functools.partial(_sa_convlstm_kernel, H, W, kh, kw, Dm, Chp, Dmp)

    h_flat, c_flat_out, m_flat_out = pl.pallas_call(
        kernel,
        out_shape=(jax.ShapeDtypeStruct((N, L, Chp), jnp.float32),
                   jax.ShapeDtypeStruct((N, L, Chp), jnp.float32),
                   jax.ShapeDtypeStruct((N, L, Chp), jnp.float32)),
        grid_spec=pltpu.PrefetchScalarGridSpec(
            num_scalar_prefetch=0,
            grid=(N,),
            in_specs=[per_n((Hp, Wp, Cxhp)), per_n((L, Chp)), per_n((L, Chp)),
                      full(wc.shape), full(bc.shape),
                      full(wh.shape), full(bh.shape),
                      full(wm.shape), full(bm.shape),
                      full(wz.shape), full(bz.shape),
                      full(wo.shape), full(bo.shape)],
            out_specs=[per_n((L, Chp)), per_n((L, Chp)), per_n((L, Chp))],
            scratch_shapes=[pltpu.VMEM((Hp, Wp, Dmp + Chp), jnp.float32)],
        ),
        compiler_params=pltpu.CompilerParams(
            dimension_semantics=("parallel",),
            vmem_limit_bytes=32 * 1024 * 1024),
    )(xh, c_flat, m_flat, wc, bc, wh, bh, wm, bm, wz, bz, wo, bo)

    def to_nchw(t):
        return jnp.transpose(t[..., :Ch].reshape(N, H, W, Ch), (0, 3, 1, 2))

    return to_nchw(h_flat), to_nchw(c_flat_out), to_nchw(m_flat_out)


# ----------------------------------------------------------------------------
# Pure-JAX reference (mirrors the PyTorch code, NCHW / OIHW) for verification
# ----------------------------------------------------------------------------
def _conv2d_nchw(x, w, b, pad):
    out = lax.conv_general_dilated(
        x, w, window_strides=(1, 1),
        padding=((pad[0], pad[0]), (pad[1], pad[1])),
        dimension_numbers=('NCHW', 'OIHW', 'NCHW'))
    return out + b[None, :, None, None]


def _attn_ref(q, k, v):
    scores = jnp.einsum('ncl,ncm->nlm', q, k) / math.sqrt(q.shape[1])
    p = jax.nn.softmax(scores, axis=-1)
    return jnp.einsum('nlm,ncm->ncl', p, v)


def ref_forward(params, x, h, c, m, hidden_dim, d_attn, kernel_size):
    Ch, Dm = hidden_dim, d_attn
    pad = (kernel_size[0] // 2, kernel_size[1] // 2)
    cc = _conv2d_nchw(jnp.concatenate([x, h], axis=1),
                      params['conv_w'], params['conv_b'], pad)
    cc_i, cc_f, cc_o, cc_g = jnp.split(cc, 4, axis=1)
    i, f, o, g = (jax.nn.sigmoid(cc_i), jax.nn.sigmoid(cc_f),
                  jax.nn.sigmoid(cc_o), jnp.tanh(cc_g))
    c_next = f * c + i * g
    h_mid = o * jnp.tanh(c_next)

    N, _, H, W = h_mid.shape
    hq, hk, hv = jnp.split(_conv2d_nchw(h_mid, params['convh_w'],
                                        params['convh_b'], (0, 0)), 3, axis=1)
    mk, mv = jnp.split(_conv2d_nchw(m, params['convm_w'],
                                    params['convm_b'], (0, 0)), 2, axis=1)
    rs = lambda t: t.reshape(N, Dm, H * W)
    zh = _attn_ref(rs(hq), rs(hk), rs(hv)).reshape(N, Dm, H, W)
    zm = _attn_ref(rs(hq), rs(mk), rs(mv)).reshape(N, Dm, H, W)
    z = _conv2d_nchw(jnp.concatenate([zh, zm], axis=1),
                     params['convz_w'], params['convz_b'], (0, 0))
    co = _conv2d_nchw(jnp.concatenate([z, h_mid], axis=1),
                      params['convo_w'], params['convo_b'], pad)
    ii, gg, oo = jnp.split(co, 3, axis=1)
    ii, gg = jax.nn.sigmoid(ii), jnp.tanh(gg)
    m_next = ii * gg + (1 - ii) * m
    h_next = jax.nn.sigmoid(oo) * m_next
    return h_next, c_next, m_next


# ----------------------------------------------------------------------------
if __name__ == "__main__":
    input_dim, hidden_dim, d_attn = 4, 8, 4
    kernel_size = (3, 3)
    N, H, W = 2, 8, 8

    key = jax.random.PRNGKey(0)
    pkey, xkey = jax.random.split(key)
    params = init_params(pkey, input_dim, hidden_dim, d_attn, kernel_size)

    x = jax.random.normal(xkey, (N, input_dim, H, W), jnp.float32)
    # first_step=True -> zero-initialized hidden / cell / memory states
    h0 = jnp.zeros((N, hidden_dim, H, W), jnp.float32)
    c0 = jnp.zeros_like(h0)
    m0 = jnp.zeros_like(h0)

    h_next, c_next, m_next = sa_convlstm_cell_forward(
        params, x, h0, c0, m0, input_dim, hidden_dim, d_attn, kernel_size)
    jax.block_until_ready((h_next, c_next, m_next))

    h_ref, c_ref, m_ref = ref_forward(params, x, h0, c0, m0,
                                      hidden_dim, d_attn, kernel_size)
    # bf16 MXU operands + approx reciprocal -> slightly looser tolerance than f32.
    assert jnp.allclose(h_next, h_ref, atol=2e-2, rtol=2e-2), "hidden mismatch"
    assert jnp.allclose(c_next, c_ref, atol=2e-2, rtol=2e-2), "cell mismatch"
    assert jnp.allclose(m_next, m_ref, atol=2e-2, rtol=2e-2), "memory mismatch"

    print("KERNEL_OK")
</pallas_src>

<mosaic_0001>
module attributes {stable_mosaic.version = 11 : i64} {
  func.func @_sa_convlstm_kernel(%arg0: i32, %arg1: memref<1x10x10x128xbf16, #tpu.memory_space<vmem>>, %arg2: memref<1x64x128xf32, #tpu.memory_space<vmem>>, %arg3: memref<1x64x128xf32, #tpu.memory_space<vmem>>, %arg4: memref<9x128x512xbf16, #tpu.memory_space<vmem>>, %arg5: memref<1x512xf32, #tpu.memory_space<vmem>>, %arg6: memref<128x384xbf16, #tpu.memory_space<vmem>>, %arg7: memref<1x384xf32, #tpu.memory_space<vmem>>, %arg8: memref<128x256xbf16, #tpu.memory_space<vmem>>, %arg9: memref<1x256xf32, #tpu.memory_space<vmem>>, %arg10: memref<256x128xbf16, #tpu.memory_space<vmem>>, %arg11: memref<1x128xf32, #tpu.memory_space<vmem>>, %arg12: memref<9x256x384xbf16, #tpu.memory_space<vmem>>, %arg13: memref<1x384xf32, #tpu.memory_space<vmem>>, %arg14: memref<1x64x128xf32, #tpu.memory_space<vmem>>, %arg15: memref<1x64x128xf32, #tpu.memory_space<vmem>>, %arg16: memref<1x64x128xf32, #tpu.memory_space<vmem>>, %arg17: memref<10x10x256xf32, #tpu.memory_space<vmem>>) attributes {dimension_semantics = [#tpu.dimension_semantics<parallel>], iteration_bounds = array<i64: 2>, scalar_prefetch = 0 : i64, scratch_operands = 1 : i64, tpu.core_type = #tpu.core_type<tc>, window_params = [{transform_indices = @transform_0, window_bounds = array<i64: 1, 10, 10, 128>}, {transform_indices = @transform_1, window_bounds = array<i64: 1, 64, 128>}, {transform_indices = @transform_2, window_bounds = array<i64: 1, 64, 128>}, {pipeline_mode = #tpu.pipeline_mode<synchronous>, transform_indices = @transform_3, window_bounds = array<i64: 9, 128, 512>}, {pipeline_mode = #tpu.pipeline_mode<synchronous>, transform_indices = @transform_4, window_bounds = array<i64: 1, 512>}, {pipeline_mode = #tpu.pipeline_mode<synchronous>, transform_indices = @transform_5, window_bounds = array<i64: 128, 384>}, {pipeline_mode = #tpu.pipeline_mode<synchronous>, transform_indices = @transform_6, window_bounds = array<i64: 1, 384>}, {pipeline_mode = #tpu.pipeline_mode<synchronous>, transform_indices = @transform_7, window_bounds = array<i64: 128, 256>}, {pipeline_mode = #tpu.pipeline_mode<synchronous>, transform_indices = @transform_8, window_bounds = array<i64: 1, 256>}, {pipeline_mode = #tpu.pipeline_mode<synchronous>, transform_indices = @transform_9, window_bounds = array<i64: 256, 128>}, {pipeline_mode = #tpu.pipeline_mode<synchronous>, transform_indices = @transform_10, window_bounds = array<i64: 1, 128>}, {pipeline_mode = #tpu.pipeline_mode<synchronous>, transform_indices = @transform_11, window_bounds = array<i64: 9, 256, 384>}, {pipeline_mode = #tpu.pipeline_mode<synchronous>, transform_indices = @transform_12, window_bounds = array<i64: 1, 384>}, {transform_indices = @transform_13, window_bounds = array<i64: 1, 64, 128>}, {transform_indices = @transform_14, window_bounds = array<i64: 1, 64, 128>}, {transform_indices = @transform_15, window_bounds = array<i64: 1, 64, 128>}]} {
    %c0 = arith.constant 0 : index
    %c0_0 = arith.constant 0 : index
    %c0_1 = arith.constant 0 : index
    %c0_2 = arith.constant 0 : index
    %0 = vector.load %arg1[%c0, %c0_0, %c0_1, %c0_2] : memref<1x10x10x128xbf16, #tpu.memory_space<vmem>>, vector<1x10x10x128xbf16>
    %1 = vector.shape_cast %0 : vector<1x10x10x128xbf16> to vector<10x10x128xbf16>
    %2 = arith.extf %1 : vector<10x10x128xbf16> to vector<10x10x128xf32>
    %cst = arith.constant 0.000000e+00 : f32
    %3 = vector.broadcast %cst : f32 to vector<64x512xf32>
    %4 = vector.extract_strided_slice %2 {offsets = [0, 0, 0], sizes = [8, 8, 128], strides = [1, 1, 1]} : vector<10x10x128xf32> to vector<8x8x128xf32>
    %5 = vector.shape_cast %4 : vector<8x8x128xf32> to vector<64x128xf32>
    %6 = arith.truncf %5 : vector<64x128xf32> to vector<64x128xbf16>
    %c0_3 = arith.constant 0 : index
    %c0_4 = arith.constant 0 : index
    %c0_5 = arith.constant 0 : index
    %7 = vector.load %arg4[%c0_3, %c0_4, %c0_5] : memref<9x128x512xbf16, #tpu.memory_space<vmem>>, vector<1x128x512xbf16>
    %8 = vector.shape_cast %7 : vector<1x128x512xbf16> to vector<128x512xbf16>
    %cst_6 = arith.constant dense<0.000000e+00> : vector<64x512xf32>
    %9 = tpu.matmul %6, %8, %cst_6 {dimension_numbers = #tpu.dot_dimension_numbers<[1], [0], [0], [1], [0, 0, 1, 1], [], []>} : vector<64x128xbf16>, vector<128x512xbf16>, vector<64x512xf32> -> vector<64x512xf32>
    %10 = arith.addf %3, %9 : vector<64x512xf32>
    %11 = vector.extract_strided_slice %2 {offsets = [0, 1, 0], sizes = [8, 8, 128], strides = [1, 1, 1]} : vector<10x10x128xf32> to vector<8x8x128xf32>
    %12 = vector.shape_cast %11 : vector<8x8x128xf32> to vector<64x128xf32>
    %13 = arith.truncf %12 : vector<64x128xf32> to vector<64x128xbf16>
    %c1 = arith.constant 1 : index
    %c0_7 = arith.constant 0 : index
    %c0_8 = arith.constant 0 : index
    %14 = vector.load %arg4[%c1, %c0_7, %c0_8] : memref<9x128x512xbf16, #tpu.memory_space<vmem>>, vector<1x128x512xbf16>
    %15 = vector.shape_cast %14 : vector<1x128x512xbf16> to vector<128x512xbf16>
    %cst_9 = arith.constant dense<0.000000e+00> : vector<64x512xf32>
    %16 = tpu.matmul %13, %15, %cst_9 {dimension_numbers = #tpu.dot_dimension_numbers<[1], [0], [0], [1], [0, 0, 1, 1], [], []>} : vector<64x128xbf16>, vector<128x512xbf16>, vector<64x512xf32> -> vector<64x512xf32>
    %17 = arith.addf %10, %16 : vector<64x512xf32>
    %18 = vector.extract_strided_slice %2 {offsets = [0, 2, 0], sizes = [8, 8, 128], strides = [1, 1, 1]} : vector<10x10x128xf32> to vector<8x8x128xf32>
    %19 = vector.shape_cast %18 : vector<8x8x128xf32> to vector<64x128xf32>
    %20 = arith.truncf %19 : vector<64x128xf32> to vector<64x128xbf16>
    %c2 = arith.constant 2 : index
    %c0_10 = arith.constant 0 : index
    %c0_11 = arith.constant 0 : index
    %21 = vector.load %arg4[%c2, %c0_10, %c0_11] : memref<9x128x512xbf16, #tpu.memory_space<vmem>>, vector<1x128x512xbf16>
    %22 = vector.shape_cast %21 : vector<1x128x512xbf16> to vector<128x512xbf16>
    %cst_12 = arith.constant dense<0.000000e+00> : vector<64x512xf32>
    %23 = tpu.matmul %20, %22, %cst_12 {dimension_numbers = #tpu.dot_dimension_numbers<[1], [0], [0], [1], [0, 0, 1, 1], [], []>} : vector<64x128xbf16>, vector<128x512xbf16>, vector<64x512xf32> -> vector<64x512xf32>
    %24 = arith.addf %17, %23 : vector<64x512xf32>
    %25 = vector.extract_strided_slice %2 {offsets = [1, 0, 0], sizes = [8, 8, 128], strides = [1, 1, 1]} : vector<10x10x128xf32> to vector<8x8x128xf32>
    %26 = vector.shape_cast %25 : vector<8x8x128xf32> to vector<64x128xf32>
    %27 = arith.truncf %26 : vector<64x128xf32> to vector<64x128xbf16>
    %c3 = arith.constant 3 : index
    %c0_13 = arith.constant 0 : index
    %c0_14 = arith.constant 0 : index
    %28 = vector.load %arg4[%c3, %c0_13, %c0_14] : memref<9x128x512xbf16, #tpu.memory_space<vmem>>, vector<1x128x512xbf16>
    %29 = vector.shape_cast %28 : vector<1x128x512xbf16> to vector<128x512xbf16>
    %cst_15 = arith.constant dense<0.000000e+00> : vector<64x512xf32>
    %30 = tpu.matmul %27, %29, %cst_15 {dimension_numbers = #tpu.dot_dimension_numbers<[1], [0], [0], [1], [0, 0, 1, 1], [], []>} : vector<64x128xbf16>, vector<128x512xbf16>, vector<64x512xf32> -> vector<64x512xf32>
    %31 = arith.addf %24, %30 : vector<64x512xf32>
    %32 = vector.extract_strided_slice %2 {offsets = [1, 1, 0], sizes = [8, 8, 128], strides = [1, 1, 1]} : vector<10x10x128xf32> to vector<8x8x128xf32>
    %33 = vector.shape_cast %32 : vector<8x8x128xf32> to vector<64x128xf32>
    %34 = arith.truncf %33 : vector<64x128xf32> to vector<64x128xbf16>
    %c4 = arith.constant 4 : index
    %c0_16 = arith.constant 0 : index
    %c0_17 = arith.constant 0 : index
    %35 = vector.load %arg4[%c4, %c0_16, %c0_17] : memref<9x128x512xbf16, #tpu.memory_space<vmem>>, vector<1x128x512xbf16>
    %36 = vector.shape_cast %35 : vector<1x128x512xbf16> to vector<128x512xbf16>
    %cst_18 = arith.constant dense<0.000000e+00> : vector<64x512xf32>
    %37 = tpu.matmul %34, %36, %cst_18 {dimension_numbers = #tpu.dot_dimension_numbers<[1], [0], [0], [1], [0, 0, 1, 1], [], []>} : vector<64x128xbf16>, vector<128x512xbf16>, vector<64x512xf32> -> vector<64x512xf32>
    %38 = arith.addf %31, %37 : vector<64x512xf32>
    %39 = vector.extract_strided_slice %2 {offsets = [1, 2, 0], sizes = [8, 8, 128], strides = [1, 1, 1]} : vector<10x10x128xf32> to vector<8x8x128xf32>
    %40 = vector.shape_cast %39 : vector<8x8x128xf32> to vector<64x128xf32>
    %41 = arith.truncf %40 : vector<64x128xf32> to vector<64x128xbf16>
    %c5 = arith.constant 5 : index
    %c0_19 = arith.constant 0 : index
    %c0_20 = arith.constant 0 : index
    %42 = vector.load %arg4[%c5, %c0_19, %c0_20] : memref<9x128x512xbf16, #tpu.memory_space<vmem>>, vector<1x128x512xbf16>
    %43 = vector.shape_cast %42 : vector<1x128x512xbf16> to vector<128x512xbf16>
    %cst_21 = arith.constant dense<0.000000e+00> : vector<64x512xf32>
    %44 = tpu.matmul %41, %43, %cst_21 {dimension_numbers = #tpu.dot_dimension_numbers<[1], [0], [0], [1], [0, 0, 1, 1], [], []>} : vector<64x128xbf16>, vector<128x512xbf16>, vector<64x512xf32> -> vector<64x512xf32>
    %45 = arith.addf %38, %44 : vector<64x512xf32>
    %46 = vector.extract_strided_slice %2 {offsets = [2, 0, 0], sizes = [8, 8, 128], strides = [1, 1, 1]} : vector<10x10x128xf32> to vector<8x8x128xf32>
    %47 = vector.shape_cast %46 : vector<8x8x128xf32> to vector<64x128xf32>
    %48 = arith.truncf %47 : vector<64x128xf32> to vector<64x128xbf16>
    %c6 = arith.constant 6 : index
    %c0_22 = arith.constant 0 : index
    %c0_23 = arith.constant 0 : index
    %49 = vector.load %arg4[%c6, %c0_22, %c0_23] : memref<9x128x512xbf16, #tpu.memory_space<vmem>>, vector<1x128x512xbf16>
    %50 = vector.shape_cast %49 : vector<1x128x512xbf16> to vector<128x512xbf16>
    %cst_24 = arith.constant dense<0.000000e+00> : vector<64x512xf32>
    %51 = tpu.matmul %48, %50, %cst_24 {dimension_numbers = #tpu.dot_dimension_numbers<[1], [0], [0], [1], [0, 0, 1, 1], [], []>} : vector<64x128xbf16>, vector<128x512xbf16>, vector<64x512xf32> -> vector<64x512xf32>
    %52 = arith.addf %45, %51 : vector<64x512xf32>
    %53 = vector.extract_strided_slice %2 {offsets = [2, 1, 0], sizes = [8, 8, 128], strides = [1, 1, 1]} : vector<10x10x128xf32> to vector<8x8x128xf32>
    %54 = vector.shape_cast %53 : vector<8x8x128xf32> to vector<64x128xf32>
    %55 = arith.truncf %54 : vector<64x128xf32> to vector<64x128xbf16>
    %c7 = arith.constant 7 : index
    %c0_25 = arith.constant 0 : index
    %c0_26 = arith.constant 0 : index
    %56 = vector.load %arg4[%c7, %c0_25, %c0_26] : memref<9x128x512xbf16, #tpu.memory_space<vmem>>, vector<1x128x512xbf16>
    %57 = vector.shape_cast %56 : vector<1x128x512xbf16> to vector<128x512xbf16>
    %cst_27 = arith.constant dense<0.000000e+00> : vector<64x512xf32>
    %58 = tpu.matmul %55, %57, %cst_27 {dimension_numbers = #tpu.dot_dimension_numbers<[1], [0], [0], [1], [0, 0, 1, 1], [], []>} : vector<64x128xbf16>, vector<128x512xbf16>, vector<64x512xf32> -> vector<64x512xf32>
    %59 = arith.addf %52, %58 : vector<64x512xf32>
    %60 = vector.extract_strided_slice %2 {offsets = [2, 2, 0], sizes = [8, 8, 128], strides = [1, 1, 1]} : vector<10x10x128xf32> to vector<8x8x128xf32>
    %61 = vector.shape_cast %60 : vector<8x8x128xf32> to vector<64x128xf32>
    %62 = arith.truncf %61 : vector<64x128xf32> to vector<64x128xbf16>
    %c8 = arith.constant 8 : index
    %c0_28 = arith.constant 0 : index
    %c0_29 = arith.constant 0 : index
    %63 = vector.load %arg4[%c8, %c0_28, %c0_29] : memref<9x128x512xbf16, #tpu.memory_space<vmem>>, vector<1x128x512xbf16>
    %64 = vector.shape_cast %63 : vector<1x128x512xbf16> to vector<128x512xbf16>
    %cst_30 = arith.constant dense<0.000000e+00> : vector<64x512xf32>
    %65 = tpu.matmul %62, %64, %cst_30 {dimension_numbers = #tpu.dot_dimension_numbers<[1], [0], [0], [1], [0, 0, 1, 1], [], []>} : vector<64x128xbf16>, vector<128x512xbf16>, vector<64x512xf32> -> vector<64x512xf32>
    %66 = arith.addf %59, %65 : vector<64x512xf32>
    %c0_31 = arith.constant 0 : index
    %c0_32 = arith.constant 0 : index
    %67 = vector.load %arg5[%c0_31, %c0_32] : memref<1x512xf32, #tpu.memory_space<vmem>>, vector<1x512xf32>
    %68 = vector.broadcast %67 : vector<1x512xf32> to vector<64x512xf32>
    %69 = arith.addf %66, %68 : vector<64x512xf32>
    %70 = vector.extract_strided_slice %69 {offsets = [0, 0], sizes = [64, 128], strides = [1, 1]} : vector<64x512xf32> to vector<64x128xf32>
    %71 = arith.negf %70 : vector<64x128xf32>
    %72 = math.exp %71 : vector<64x128xf32>
    %cst_33 = arith.constant 1.000000e+00 : f32
    %73 = vector.broadcast %cst_33 : f32 to vector<64x128xf32>
    %74 = arith.addf %73, %72 : vector<64x128xf32>
    %75 = arith.divf %73, %74 : vector<64x128xf32>
    %76 = vector.extract_strided_slice %69 {offsets = [0, 128], sizes = [64, 128], strides = [1, 1]} : vector<64x512xf32> to vector<64x128xf32>
    %77 = arith.negf %76 : vector<64x128xf32>
    %78 = math.exp %77 : vector<64x128xf32>
    %cst_34 = arith.constant 1.000000e+00 : f32
    %79 = vector.broadcast %cst_34 : f32 to vector<64x128xf32>
    %80 = arith.addf %79, %78 : vector<64x128xf32>
    %81 = arith.divf %79, %80 : vector<64x128xf32>
    %82 = vector.extract_strided_slice %69 {offsets = [0, 256], sizes = [64, 128], strides = [1, 1]} : vector<64x512xf32> to vector<64x128xf32>
    %83 = arith.negf %82 : vector<64x128xf32>
    %84 = math.exp %83 : vector<64x128xf32>
    %cst_35 = arith.constant 1.000000e+00 : f32
    %85 = vector.broadcast %cst_35 : f32 to vector<64x128xf32>
    %86 = arith.addf %85, %84 : vector<64x128xf32>
    %87 = arith.divf %85, %86 : vector<64x128xf32>
    %88 = vector.extract_strided_slice %69 {offsets = [0, 384], sizes = [64, 128], strides = [1, 1]} : vector<64x512xf32> to vector<64x128xf32>
    %89 = math.tanh %88 : vector<64x128xf32>
    %c0_36 = arith.constant 0 : index
    %c0_37 = arith.constant 0 : index
    %c0_38 = arith.constant 0 : index
    %90 = vector.load %arg2[%c0_36, %c0_37, %c0_38] : memref<1x64x128xf32, #tpu.memory_space<vmem>>, vector<1x64x128xf32>
    %91 = vector.shape_cast %90 : vector<1x64x128xf32> to vector<64x128xf32>
    %92 = arith.mulf %81, %91 : vector<64x128xf32>
    %93 = arith.mulf %75, %89 : vector<64x128xf32>
    %94 = arith.addf %92, %93 : vector<64x128xf32>
    %95 = math.tanh %94 : vector<64x128xf32>
    %96 = arith.mulf %87, %95 : vector<64x128xf32>
    %97 = arith.truncf %96 : vector<64x128xf32> to vector<64x128xbf16>
    %c0_39 = arith.constant 0 : index
    %c0_40 = arith.constant 0 : index
    %98 = vector.load %arg6[%c0_39, %c0_40] : memref<128x384xbf16, #tpu.memory_space<vmem>>, vector<128x384xbf16>
    %cst_41 = arith.constant dense<0.000000e+00> : vector<64x384xf32>
    %99 = tpu.matmul %97, %98, %cst_41 {dimension_numbers = #tpu.dot_dimension_numbers<[1], [0], [0], [1], [0, 0, 1, 1], [], []>} : vector<64x128xbf16>, vector<128x384xbf16>, vector<64x384xf32> -> vector<64x384xf32>
    %c0_42 = arith.constant 0 : index
    %c0_43 = arith.constant 0 : index
    %100 = vector.load %arg7[%c0_42, %c0_43] : memref<1x384xf32, #tpu.memory_space<vmem>>, vector<1x384xf32>
    %101 = vector.broadcast %100 : vector<1x384xf32> to vector<64x384xf32>
    %102 = arith.addf %99, %101 : vector<64x384xf32>
    %103 = vector.extract_strided_slice %102 {offsets = [0, 0], sizes = [64, 128], strides = [1, 1]} : vector<64x384xf32> to vector<64x128xf32>
    %104 = vector.extract_strided_slice %102 {offsets = [0, 128], sizes = [64, 128], strides = [1, 1]} : vector<64x384xf32> to vector<64x128xf32>
    %105 = vector.extract_strided_slice %102 {offsets = [0, 256], sizes = [64, 128], strides = [1, 1]} : vector<64x384xf32> to vector<64x128xf32>
    %c0_44 = arith.constant 0 : index
    %c0_45 = arith.constant 0 : index
    %c0_46 = arith.constant 0 : index
    %106 = vector.load %arg3[%c0_44, %c0_45, %c0_46] : memref<1x64x128xf32, #tpu.memory_space<vmem>>, vector<1x64x128xf32>
    %107 = vector.shape_cast %106 : vector<1x64x128xf32> to vector<64x128xf32>
    %108 = arith.truncf %107 : vector<64x128xf32> to vector<64x128xbf16>
    %c0_47 = arith.constant 0 : index
    %c0_48 = arith.constant 0 : index
    %109 = vector.load %arg8[%c0_47, %c0_48] : memref<128x256xbf16, #tpu.memory_space<vmem>>, vector<128x256xbf16>
    %cst_49 = arith.constant dense<0.000000e+00> : vector<64x256xf32>
    %110 = tpu.matmul %108, %109, %cst_49 {dimension_numbers = #tpu.dot_dimension_numbers<[1], [0], [0], [1], [0, 0, 1, 1], [], []>} : vector<64x128xbf16>, vector<128x256xbf16>, vector<64x256xf32> -> vector<64x256xf32>
    %c0_50 = arith.constant 0 : index
    %c0_51 = arith.constant 0 : index
    %111 = vector.load %arg9[%c0_50, %c0_51] : memref<1x256xf32, #tpu.memory_space<vmem>>, vector<1x256xf32>
    %112 = vector.broadcast %111 : vector<1x256xf32> to vector<64x256xf32>
    %113 = arith.addf %110, %112 : vector<64x256xf32>
    %114 = vector.extract_strided_slice %113 {offsets = [0, 0], sizes = [64, 128], strides = [1, 1]} : vector<64x256xf32> to vector<64x128xf32>
    %115 = vector.extract_strided_slice %113 {offsets = [0, 128], sizes = [64, 128], strides = [1, 1]} : vector<64x256xf32> to vector<64x128xf32>
    %116 = arith.truncf %103 : vector<64x128xf32> to vector<64x128xbf16>
    %117 = arith.truncf %104 : vector<64x128xf32> to vector<64x128xbf16>
    %cst_52 = arith.constant dense<0.000000e+00> : vector<64x64xf32>
    %118 = tpu.matmul %116, %117, %cst_52 {dimension_numbers = #tpu.dot_dimension_numbers<[1], [1], [0], [0], [0, 0, 1, 0], [], []>} : vector<64x128xbf16>, vector<64x128xbf16>, vector<64x64xf32> -> vector<64x64xf32>
    %cst_53 = arith.constant 5.000000e-01 : f32
    %119 = vector.broadcast %cst_53 : f32 to vector<64x64xf32>
    %120 = arith.mulf %118, %119 : vector<64x64xf32>
    %cst_54 = arith.constant dense<0xFF800000> : vector<64xf32>
    %121 = vector.multi_reduction <maximumf>, %120, %cst_54 [1] : vector<64x64xf32> to vector<64xf32>
    %122 = vector.shape_cast %121 : vector<64xf32> to vector<64x1xf32>
    %123 = vector.broadcast %122 : vector<64x1xf32> to vector<64x64xf32>
    %124 = arith.subf %120, %123 : vector<64x64xf32>
    %125 = math.exp %124 : vector<64x64xf32>
    %cst_55 = arith.constant dense<0.000000e+00> : vector<64xf32>
    %126 = vector.multi_reduction <add>, %125, %cst_55 [1] : vector<64x64xf32> to vector<64xf32>
    %127 = vector.shape_cast %126 : vector<64xf32> to vector<64x1xf32>
    %128 = tpu.reciprocal %127 {approx = true} : vector<64x1xf32> -> vector<64x1xf32>
    %129 = vector.broadcast %128 : vector<64x1xf32> to vector<64x64xf32>
    %130 = arith.mulf %125, %129 : vector<64x64xf32>
    %131 = arith.truncf %103 : vector<64x128xf32> to vector<64x128xbf16>
    %132 = arith.truncf %114 : vector<64x128xf32> to vector<64x128xbf16>
    %cst_56 = arith.constant dense<0.000000e+00> : vector<64x64xf32>
    %133 = tpu.matmul %131, %132, %cst_56 {dimension_numbers = #tpu.dot_dimension_numbers<[1], [1], [0], [0], [0, 0, 1, 0], [], []>} : vector<64x128xbf16>, vector<64x128xbf16>, vector<64x64xf32> -> vector<64x64xf32>
    %cst_57 = arith.constant 5.000000e-01 : f32
    %134 = vector.broadcast %cst_57 : f32 to vector<64x64xf32>
    %135 = arith.mulf %133, %134 : vector<64x64xf32>
    %cst_58 = arith.constant dense<0xFF800000> : vector<64xf32>
    %136 = vector.multi_reduction <maximumf>, %135, %cst_58 [1] : vector<64x64xf32> to vector<64xf32>
    %137 = vector.shape_cast %136 : vector<64xf32> to vector<64x1xf32>
    %138 = vector.broadcast %137 : vector<64x1xf32> to vector<64x64xf32>
    %139 = arith.subf %135, %138 : vector<64x64xf32>
    %140 = math.exp %139 : vector<64x64xf32>
    %cst_59 = arith.constant dense<0.000000e+00> : vector<64xf32>
    %141 = vector.multi_reduction <add>, %140, %cst_59 [1] : vector<64x64xf32> to vector<64xf32>
    %142 = vector.shape_cast %141 : vector<64xf32> to vector<64x1xf32>
    %143 = tpu.reciprocal %142 {approx = true} : vector<64x1xf32> -> vector<64x1xf32>
    %144 = vector.broadcast %143 : vector<64x1xf32> to vector<64x64xf32>
    %145 = arith.mulf %140, %144 : vector<64x64xf32>
    %146 = arith.truncf %105 : vector<64x128xf32> to vector<64x128xbf16>
    %c0_60 = arith.constant 0 : index
    %c0_61 = arith.constant 0 : index
    %147 = vector.load %arg10[%c0_60, %c0_61] : memref<256x128xbf16, #tpu.memory_space<vmem>>, vector<128x128xbf16>
    %cst_62 = arith.constant dense<0.000000e+00> : vector<64x128xf32>
    %148 = tpu.matmul %146, %147, %cst_62 {dimension_numbers = #tpu.dot_dimension_numbers<[1], [0], [0], [1], [0, 0, 1, 1], [], []>} : vector<64x128xbf16>, vector<128x128xbf16>, vector<64x128xf32> -> vector<64x128xf32>
    %149 = arith.truncf %115 : vector<64x128xf32> to vector<64x128xbf16>
    %c128 = arith.constant 128 : index
    %c0_63 = arith.constant 0 : index
    %150 = vector.load %arg10[%c128, %c0_63] : memref<256x128xbf16, #tpu.memory_space<vmem>>, vector<128x128xbf16>
    %cst_64 = arith.constant dense<0.000000e+00> : vector<64x128xf32>
    %151 = tpu.matmul %149, %150, %cst_64 {dimension_numbers = #tpu.dot_dimension_numbers<[1], [0], [0], [1], [0, 0, 1, 1], [], []>} : vector<64x128xbf16>, vector<128x128xbf16>, vector<64x128xf32> -> vector<64x128xf32>
    %152 = tpu.concatenate %130, %145 in 1 : vector<64x64xf32>, vector<64x64xf32> -> vector<64x128xf32>
    %153 = arith.truncf %152 : vector<64x128xf32> to vector<64x128xbf16>
    %154 = tpu.concatenate %148, %151 in 0 : vector<64x128xf32>, vector<64x128xf32> -> vector<128x128xf32>
    %155 = arith.truncf %154 : vector<128x128xf32> to vector<128x128xbf16>
    %cst_65 = arith.constant dense<0.000000e+00> : vector<64x128xf32>
    %156 = tpu.matmul %153, %155, %cst_65 {dimension_numbers = #tpu.dot_dimension_numbers<[1], [0], [0], [1], [0, 0, 1, 1], [], []>} : vector<64x128xbf16>, vector<128x128xbf16>, vector<64x128xf32> -> vector<64x128xf32>
    %c0_66 = arith.constant 0 : index
    %c0_67 = arith.constant 0 : index
    %157 = vector.load %arg11[%c0_66, %c0_67] : memref<1x128xf32, #tpu.memory_space<vmem>>, vector<1x128xf32>
    %158 = vector.broadcast %157 : vector<1x128xf32> to vector<64x128xf32>
    %159 = arith.addf %156, %158 : vector<64x128xf32>
    %cst_68 = arith.constant 0.000000e+00 : f32
    %160 = vector.broadcast %cst_68 : f32 to vector<10x10x256xf32>
    %c0_69 = arith.constant 0 : index
    %c0_70 = arith.constant 0 : index
    %c0_71 = arith.constant 0 : index
    %161 = vector.load %arg17[%c0_69, %c0_70, %c0_71] : memref<10x10x256xf32, #tpu.memory_space<vmem>>, vector<10x10x256xf32>
    tpu.vector_store %arg17[%c0_69, %c0_70, %c0_71], %160 {strides = array<i32>} : memref<10x10x256xf32, #tpu.memory_space<vmem>>, vector<10x10x256xf32>,
    %162 = vector.shape_cast %159 : vector<64x128xf32> to vector<8x8x128xf32>
    %c1_72 = arith.constant 1 : index
    %c1_73 = arith.constant 1 : index
    %c0_74 = arith.constant 0 : index
    %163 = vector.load %arg17[%c1_72, %c1_73, %c0_74] : memref<10x10x256xf32, #tpu.memory_space<vmem>>, vector<8x8x128xf32>
    tpu.vector_store %arg17[%c1_72, %c1_73, %c0_74], %162 {strides = array<i32>} : memref<10x10x256xf32, #tpu.memory_space<vmem>>, vector<8x8x128xf32>,
    %164 = vector.shape_cast %96 : vector<64x128xf32> to vector<8x8x128xf32>
    %c1_75 = arith.constant 1 : index
    %c1_76 = arith.constant 1 : index
    %c128_77 = arith.constant 128 : index
    %165 = vector.load %arg17[%c1_75, %c1_76, %c128_77] : memref<10x10x256xf32, #tpu.memory_space<vmem>>, vector<8x8x128xf32>
    tpu.vector_store %arg17[%c1_75, %c1_76, %c128_77], %164 {strides = array<i32>} : memref<10x10x256xf32, #tpu.memory_space<vmem>>, vector<8x8x128xf32>,
    %c0_78 = arith.constant 0 : index
    %c0_79 = arith.constant 0 : index
    %c0_80 = arith.constant 0 : index
    %166 = vector.load %arg17[%c0_78, %c0_79, %c0_80] : memref<10x10x256xf32, #tpu.memory_space<vmem>>, vector<10x10x256xf32>
    %cst_81 = arith.constant 0.000000e+00 : f32
    %167 = vector.broadcast %cst_81 : f32 to vector<64x384xf32>
    %168 = vector.extract_strided_slice %166 {offsets = [0, 0, 0], sizes = [8, 8, 256], strides = [1, 1, 1]} : vector<10x10x256xf32> to vector<8x8x256xf32>
    %169 = vector.shape_cast %168 : vector<8x8x256xf32> to vector<64x256xf32>
    %170 = arith.truncf %169 : vector<64x256xf32> to vector<64x256xbf16>
    %c0_82 = arith.constant 0 : index
    %c0_83 = arith.constant 0 : index
    %c0_84 = arith.constant 0 : index
    %171 = vector.load %arg12[%c0_82, %c0_83, %c0_84] : memref<9x256x384xbf16, #tpu.memory_space<vmem>>, vector<1x256x384xbf16>
    %172 = vector.shape_cast %171 : vector<1x256x384xbf16> to vector<256x384xbf16>
    %cst_85 = arith.constant dense<0.000000e+00> : vector<64x384xf32>
    %173 = tpu.matmul %170, %172, %cst_85 {dimension_numbers = #tpu.dot_dimension_numbers<[1], [0], [0], [1], [0, 0, 1, 1], [], []>} : vector<64x256xbf16>, vector<256x384xbf16>, vector<64x384xf32> -> vector<64x384xf32>
    %174 = arith.addf %167, %173 : vector<64x384xf32>
    %175 = vector.extract_strided_slice %166 {offsets = [0, 1, 0], sizes = [8, 8, 256], strides = [1, 1, 1]} : vector<10x10x256xf32> to vector<8x8x256xf32>
    %176 = vector.shape_cast %175 : vector<8x8x256xf32> to vector<64x256xf32>
    %177 = arith.truncf %176 : vector<64x256xf32> to vector<64x256xbf16>
    %c1_86 = arith.constant 1 : index
    %c0_87 = arith.constant 0 : index
    %c0_88 = arith.constant 0 : index
    %178 = vector.load %arg12[%c1_86, %c0_87, %c0_88] : memref<9x256x384xbf16, #tpu.memory_space<vmem>>, vector<1x256x384xbf16>
    %179 = vector.shape_cast %178 : vector<1x256x384xbf16> to vector<256x384xbf16>
    %cst_89 = arith.constant dense<0.000000e+00> : vector<64x384xf32>
    %180 = tpu.matmul %177, %179, %cst_89 {dimension_numbers = #tpu.dot_dimension_numbers<[1], [0], [0], [1], [0, 0, 1, 1], [], []>} : vector<64x256xbf16>, vector<256x384xbf16>, vector<64x384xf32> -> vector<64x384xf32>
    %181 = arith.addf %174, %180 : vector<64x384xf32>
    %182 = vector.extract_strided_slice %166 {offsets = [0, 2, 0], sizes = [8, 8, 256], strides = [1, 1, 1]} : vector<10x10x256xf32> to vector<8x8x256xf32>
    %183 = vector.shape_cast %182 : vector<8x8x256xf32> to vector<64x256xf32>
    %184 = arith.truncf %183 : vector<64x256xf32> to vector<64x256xbf16>
    %c2_90 = arith.constant 2 : index
    %c0_91 = arith.constant 0 : index
    %c0_92 = arith.constant 0 : index
    %185 = vector.load %arg12[%c2_90, %c0_91, %c0_92] : memref<9x256x384xbf16, #tpu.memory_space<vmem>>, vector<1x256x384xbf16>
    %186 = vector.shape_cast %185 : vector<1x256x384xbf16> to vector<256x384xbf16>
    %cst_93 = arith.constant dense<0.000000e+00> : vector<64x384xf32>
    %187 = tpu.matmul %184, %186, %cst_93 {dimension_numbers = #tpu.dot_dimension_numbers<[1], [0], [0], [1], [0, 0, 1, 1], [], []>} : vector<64x256xbf16>, vector<256x384xbf16>, vector<64x384xf32> -> vector<64x384xf32>
    %188 = arith.addf %181, %187 : vector<64x384xf32>
    %189 = vector.extract_strided_slice %166 {offsets = [1, 0, 0], sizes = [8, 8, 256], strides = [1, 1, 1]} : vector<10x10x256xf32> to vector<8x8x256xf32>
    %190 = vector.shape_cast %189 : vector<8x8x256xf32> to vector<64x256xf32>
    %191 = arith.truncf %190 : vector<64x256xf32> to vector<64x256xbf16>
    %c3_94 = arith.constant 3 : index
    %c0_95 = arith.constant 0 : index
    %c0_96 = arith.constant 0 : index
    %192 = vector.load %arg12[%c3_94, %c0_95, %c0_96] : memref<9x256x384xbf16, #tpu.memory_space<vmem>>, vector<1x256x384xbf16>
    %193 = vector.shape_cast %192 : vector<1x256x384xbf16> to vector<256x384xbf16>
    %cst_97 = arith.constant dense<0.000000e+00> : vector<64x384xf32>
    %194 = tpu.matmul %191, %193, %cst_97 {dimension_numbers = #tpu.dot_dimension_numbers<[1], [0], [0], [1], [0, 0, 1, 1], [], []>} : vector<64x256xbf16>, vector<256x384xbf16>, vector<64x384xf32> -> vector<64x384xf32>
    %195 = arith.addf %188, %194 : vector<64x384xf32>
    %196 = vector.extract_strided_slice %166 {offsets = [1, 1, 0], sizes = [8, 8, 256], strides = [1, 1, 1]} : vector<10x10x256xf32> to vector<8x8x256xf32>
    %197 = vector.shape_cast %196 : vector<8x8x256xf32> to vector<64x256xf32>
    %198 = arith.truncf %197 : vector<64x256xf32> to vector<64x256xbf16>
    %c4_98 = arith.constant 4 : index
    %c0_99 = arith.constant 0 : index
    %c0_100 = arith.constant 0 : index
    %199 = vector.load %arg12[%c4_98, %c0_99, %c0_100] : memref<9x256x384xbf16, #tpu.memory_space<vmem>>, vector<1x256x384xbf16>
    %200 = vector.shape_cast %199 : vector<1x256x384xbf16> to vector<256x384xbf16>
    %cst_101 = arith.constant dense<0.000000e+00> : vector<64x384xf32>
    %201 = tpu.matmul %198, %200, %cst_101 {dimension_numbers = #tpu.dot_dimension_numbers<[1], [0], [0], [1], [0, 0, 1, 1], [], []>} : vector<64x256xbf16>, vector<256x384xbf16>, vector<64x384xf32> -> vector<64x384xf32>
    %202 = arith.addf %195, %201 : vector<64x384xf32>
    %203 = vector.extract_strided_slice %166 {offsets = [1, 2, 0], sizes = [8, 8, 256], strides = [1, 1, 1]} : vector<10x10x256xf32> to vector<8x8x256xf32>
    %204 = vector.shape_cast %203 : vector<8x8x256xf32> to vector<64x256xf32>
    %205 = arith.truncf %204 : vector<64x256xf32> to vector<64x256xbf16>
    %c5_102 = arith.constant 5 : index
    %c0_103 = arith.constant 0 : index
    %c0_104 = arith.constant 0 : index
    %206 = vector.load %arg12[%c5_102, %c0_103, %c0_104] : memref<9x256x384xbf16, #tpu.memory_space<vmem>>, vector<1x256x384xbf16>
    %207 = vector.shape_cast %206 : vector<1x256x384xbf16> to vector<256x384xbf16>
    %cst_105 = arith.constant dense<0.000000e+00> : vector<64x384xf32>
    %208 = tpu.matmul %205, %207, %cst_105 {dimension_numbers = #tpu.dot_dimension_numbers<[1], [0], [0], [1], [0, 0, 1, 1], [], []>} : vector<64x256xbf16>, vector<256x384xbf16>, vector<64x384xf32> -> vector<64x384xf32>
    %209 = arith.addf %202, %208 : vector<64x384xf32>
    %210 = vector.extract_strided_slice %166 {offsets = [2, 0, 0], sizes = [8, 8, 256], strides = [1, 1, 1]} : vector<10x10x256xf32> to vector<8x8x256xf32>
    %211 = vector.shape_cast %210 : vector<8x8x256xf32> to vector<64x256xf32>
    %212 = arith.truncf %211 : vector<64x256xf32> to vector<64x256xbf16>
    %c6_106 = arith.constant 6 : index
    %c0_107 = arith.constant 0 : index
    %c0_108 = arith.constant 0 : index
    %213 = vector.load %arg12[%c6_106, %c0_107, %c0_108] : memref<9x256x384xbf16, #tpu.memory_space<vmem>>, vector<1x256x384xbf16>
    %214 = vector.shape_cast %213 : vector<1x256x384xbf16> to vector<256x384xbf16>
    %cst_109 = arith.constant dense<0.000000e+00> : vector<64x384xf32>
    %215 = tpu.matmul %212, %214, %cst_109 {dimension_numbers = #tpu.dot_dimension_numbers<[1], [0], [0], [1], [0, 0, 1, 1], [], []>} : vector<64x256xbf16>, vector<256x384xbf16>, vector<64x384xf32> -> vector<64x384xf32>
    %216 = arith.addf %209, %215 : vector<64x384xf32>
    %217 = vector.extract_strided_slice %166 {offsets = [2, 1, 0], sizes = [8, 8, 256], strides = [1, 1, 1]} : vector<10x10x256xf32> to vector<8x8x256xf32>
    %218 = vector.shape_cast %217 : vector<8x8x256xf32> to vector<64x256xf32>
    %219 = arith.truncf %218 : vector<64x256xf32> to vector<64x256xbf16>
    %c7_110 = arith.constant 7 : index
    %c0_111 = arith.constant 0 : index
    %c0_112 = arith.constant 0 : index
    %220 = vector.load %arg12[%c7_110, %c0_111, %c0_112] : memref<9x256x384xbf16, #tpu.memory_space<vmem>>, vector<1x256x384xbf16>
    %221 = vector.shape_cast %220 : vector<1x256x384xbf16> to vector<256x384xbf16>
    %cst_113 = arith.constant dense<0.000000e+00> : vector<64x384xf32>
    %222 = tpu.matmul %219, %221, %cst_113 {dimension_numbers = #tpu.dot_dimension_numbers<[1], [0], [0], [1], [0, 0, 1, 1], [], []>} : vector<64x256xbf16>, vector<256x384xbf16>, vector<64x384xf32> -> vector<64x384xf32>
    %223 = arith.addf %216, %222 : vector<64x384xf32>
    %224 = vector.extract_strided_slice %166 {offsets = [2, 2, 0], sizes = [8, 8, 256], strides = [1, 1, 1]} : vector<10x10x256xf32> to vector<8x8x256xf32>
    %225 = vector.shape_cast %224 : vector<8x8x256xf32> to vector<64x256xf32>
    %226 = arith.truncf %225 : vector<64x256xf32> to vector<64x256xbf16>
    %c8_114 = arith.constant 8 : index
    %c0_115 = arith.constant 0 : index
    %c0_116 = arith.constant 0 : index
    %227 = vector.load %arg12[%c8_114, %c0_115, %c0_116] : memref<9x256x384xbf16, #tpu.memory_space<vmem>>, vector<1x256x384xbf16>
    %228 = vector.shape_cast %227 : vector<1x256x384xbf16> to vector<256x384xbf16>
    %cst_117 = arith.constant dense<0.000000e+00> : vector<64x384xf32>
    %229 = tpu.matmul %226, %228, %cst_117 {dimension_numbers = #tpu.dot_dimension_numbers<[1], [0], [0], [1], [0, 0, 1, 1], [], []>} : vector<64x256xbf16>, vector<256x384xbf16>, vector<64x384xf32> -> vector<64x384xf32>
    %230 = arith.addf %223, %229 : vector<64x384xf32>
    %c0_118 = arith.constant 0 : index
    %c0_119 = arith.constant 0 : index
    %231 = vector.load %arg13[%c0_118, %c0_119] : memref<1x384xf32, #tpu.memory_space<vmem>>, vector<1x384xf32>
    %232 = vector.broadcast %231 : vector<1x384xf32> to vector<64x384xf32>
    %233 = arith.addf %230, %232 : vector<64x384xf32>
    %234 = vector.extract_strided_slice %233 {offsets = [0, 0], sizes = [64, 128], strides = [1, 1]} : vector<64x384xf32> to vector<64x128xf32>
    %235 = arith.negf %234 : vector<64x128xf32>
    %236 = math.exp %235 : vector<64x128xf32>
    %cst_120 = arith.constant 1.000000e+00 : f32
    %237 = vector.broadcast %cst_120 : f32 to vector<64x128xf32>
    %238 = arith.addf %237, %236 : vector<64x128xf32>
    %239 = arith.divf %237, %238 : vector<64x128xf32>
    %240 = vector.extract_strided_slice %233 {offsets = [0, 128], sizes = [64, 128], strides = [1, 1]} : vector<64x384xf32> to vector<64x128xf32>
    %241 = math.tanh %240 : vector<64x128xf32>
    %242 = vector.extract_strided_slice %233 {offsets = [0, 256], sizes = [64, 128], strides = [1, 1]} : vector<64x384xf32> to vector<64x128xf32>
    %243 = arith.negf %242 : vector<64x128xf32>
    %244 = math.exp %243 : vector<64x128xf32>
    %cst_121 = arith.constant 1.000000e+00 : f32
    %245 = vector.broadcast %cst_121 : f32 to vector<64x128xf32>
    %246 = arith.addf %245, %244 : vector<64x128xf32>
    %247 = arith.divf %245, %246 : vector<64x128xf32>
    %248 = arith.mulf %239, %241 : vector<64x128xf32>
    %cst_122 = arith.constant 1.000000e+00 : f32
    %249 = vector.broadcast %cst_122 : f32 to vector<64x128xf32>
    %250 = arith.subf %249, %239 : vector<64x128xf32>
    %251 = arith.mulf %250, %107 : vector<64x128xf32>
    %252 = arith.addf %248, %251 : vector<64x128xf32>
    %253 = arith.mulf %247, %252 : vector<64x128xf32>
    %c0_123 = arith.constant 0 : index
    %c0_124 = arith.constant 0 : index
    %c0_125 = arith.constant 0 : index
    %254 = vector.load %arg14[%c0_123, %c0_124, %c0_125] : memref<1x64x128xf32, #tpu.memory_space<vmem>>, vector<1x64x128xf32>
    %255 = vector.shape_cast %254 : vector<1x64x128xf32> to vector<64x128xf32>
    %256 = vector.shape_cast %253 : vector<64x128xf32> to vector<1x64x128xf32>
    tpu.vector_store %arg14[%c0_123, %c0_124, %c0_125], %256 {strides = array<i32>} : memref<1x64x128xf32, #tpu.memory_space<vmem>>, vector<1x64x128xf32>,
    %c0_126 = arith.constant 0 : index
    %c0_127 = arith.constant 0 : index
    %c0_128 = arith.constant 0 : index
    %257 = vector.load %arg15[%c0_126, %c0_127, %c0_128] : memref<1x64x128xf32, #tpu.memory_space<vmem>>, vector<1x64x128xf32>
    %258 = vector.shape_cast %257 : vector<1x64x128xf32> to vector<64x128xf32>
    %259 = vector.shape_cast %94 : vector<64x128xf32> to vector<1x64x128xf32>
    tpu.vector_store %arg15[%c0_126, %c0_127, %c0_128], %259 {strides = array<i32>} : memref<1x64x128xf32, #tpu.memory_space<vmem>>, vector<1x64x128xf32>,
    %c0_129 = arith.constant 0 : index
    %c0_130 = arith.constant 0 : index
    %c0_131 = arith.constant 0 : index
    %260 = vector.load %arg16[%c0_129, %c0_130, %c0_131] : memref<1x64x128xf32, #tpu.memory_space<vmem>>, vector<1x64x128xf32>
    %261 = vector.shape_cast %260 : vector<1x64x128xf32> to vector<64x128xf32>
    %262 = vector.shape_cast %252 : vector<64x128xf32> to vector<1x64x128xf32>
    tpu.vector_store %arg16[%c0_129, %c0_130, %c0_131], %262 {strides = array<i32>} : memref<1x64x128xf32, #tpu.memory_space<vmem>>, vector<1x64x128xf32>,
    return
  }
  func.func @transform_0(%arg0: i32) -> (i32, i32, i32, i32) {
    %c0_i32 = arith.constant 0 : i32
    %c0_i32_0 = arith.constant 0 : i32
    %c0_i32_1 = arith.constant 0 : i32
    %c0_i32_2 = arith.constant 0 : i32
    return %arg0, %c0_i32, %c0_i32_0, %c0_i32_1 : i32, i32, i32, i32
  }
  func.func @transform_1(%arg0: i32) -> (i32, i32, i32) {
    %c0_i32 = arith.constant 0 : i32
    %c0_i32_0 = arith.constant 0 : i32
    %c0_i32_1 = arith.constant 0 : i32
    return %arg0, %c0_i32, %c0_i32_0 : i32, i32, i32
  }
  func.func @transform_2(%arg0: i32) -> (i32, i32, i32) {
    %c0_i32 = arith.constant 0 : i32
    %c0_i32_0 = arith.constant 0 : i32
    %c0_i32_1 = arith.constant 0 : i32
    return %arg0, %c0_i32, %c0_i32_0 : i32, i32, i32
  }
  func.func @transform_3(%arg0: i32) -> (i32, i32, i32) {
    %c0_i32 = arith.constant 0 : i32
    %c0_i32_0 = arith.constant 0 : i32
    %c0_i32_1 = arith.constant 0 : i32
    %c0_i32_2 = arith.constant 0 : i32
    return %c0_i32, %c0_i32_0, %c0_i32_1 : i32, i32, i32
  }
  func.func @transform_4(%arg0: i32) -> (i32, i32) {
    %c0_i32 = arith.constant 0 : i32
    %c0_i32_0 = arith.constant 0 : i32
    %c0_i32_1 = arith.constant 0 : i32
    return %c0_i32, %c0_i32_0 : i32, i32
  }
  func.func @transform_5(%arg0: i32) -> (i32, i32) {
    %c0_i32 = arith.constant 0 : i32
    %c0_i32_0 = arith.constant 0 : i32
    %c0_i32_1 = arith.constant 0 : i32
    return %c0_i32, %c0_i32_0 : i32, i32
  }
  func.func @transform_6(%arg0: i32) -> (i32, i32) {
    %c0_i32 = arith.constant 0 : i32
    %c0_i32_0 = arith.constant 0 : i32
    %c0_i32_1 = arith.constant 0 : i32
    return %c0_i32, %c0_i32_0 : i32, i32
  }
  func.func @transform_7(%arg0: i32) -> (i32, i32) {
    %c0_i32 = arith.constant 0 : i32
    %c0_i32_0 = arith.constant 0 : i32
    %c0_i32_1 = arith.constant 0 : i32
    return %c0_i32, %c0_i32_0 : i32, i32
  }
  func.func @transform_8(%arg0: i32) -> (i32, i32) {
    %c0_i32 = arith.constant 0 : i32
    %c0_i32_0 = arith.constant 0 : i32
    %c0_i32_1 = arith.constant 0 : i32
    return %c0_i32, %c0_i32_0 : i32, i32
  }
  func.func @transform_9(%arg0: i32) -> (i32, i32) {
    %c0_i32 = arith.constant 0 : i32
    %c0_i32_0 = arith.constant 0 : i32
    %c0_i32_1 = arith.constant 0 : i32
    return %c0_i32, %c0_i32_0 : i32, i32
  }
  func.func @transform_10(%arg0: i32) -> (i32, i32) {
    %c0_i32 = arith.constant 0 : i32
    %c0_i32_0 = arith.constant 0 : i32
    %c0_i32_1 = arith.constant 0 : i32
    return %c0_i32, %c0_i32_0 : i32, i32
  }
  func.func @transform_11(%arg0: i32) -> (i32, i32, i32) {
    %c0_i32 = arith.constant 0 : i32
    %c0_i32_0 = arith.constant 0 : i32
    %c0_i32_1 = arith.constant 0 : i32
    %c0_i32_2 = arith.constant 0 : i32
    return %c0_i32, %c0_i32_0, %c0_i32_1 : i32, i32, i32
  }
  func.func @transform_12(%arg0: i32) -> (i32, i32) {
    %c0_i32 = arith.constant 0 : i32
    %c0_i32_0 = arith.constant 0 : i32
    %c0_i32_1 = arith.constant 0 : i32
    return %c0_i32, %c0_i32_0 : i32, i32
  }
  func.func @transform_13(%arg0: i32) -> (i32, i32, i32) {
    %c0_i32 = arith.constant 0 : i32
    %c0_i32_0 = arith.constant 0 : i32
    %c0_i32_1 = arith.constant 0 : i32
    return %arg0, %c0_i32, %c0_i32_0 : i32, i32, i32
  }
  func.func @transform_14(%arg0: i32) -> (i32, i32, i32) {
    %c0_i32 = arith.constant 0 : i32
    %c0_i32_0 = arith.constant 0 : i32
    %c0_i32_1 = arith.constant 0 : i32
    return %arg0, %c0_i32, %c0_i32_0 : i32, i32, i32
  }
  func.func @transform_15(%arg0: i32) -> (i32, i32, i32) {
    %c0_i32 = arith.constant 0 : i32
    %c0_i32_0 = arith.constant 0 : i32
    %c0_i32_1 = arith.constant 0 : i32
    return %arg0, %c0_i32, %c0_i32_0 : i32, i32, i32
  }
}

</mosaic_0001>

<bundles_post_ra>
// kernel: tpu_custom_call.1
= control target key start
LH: loop header
LB: loop body
LE: loop exit
PB: predicated region body
PF: predicated region fallthrough
CT: control target
= control target key end

     0   :  { %s16894_s0 = inlined_call_operand.vmem [shape: bf16[2,10,10,128], index: 0, kind: input, shape index: {}]   ;;  %s16895_s1 = inlined_call_operand.hbm [shape: f32[2,64,128], index: 1, kind: input, shape index: {}]   ;;  %s16896_s2 = inlined_call_operand.hbm [shape: f32[2,64,128], index: 2, kind: input, shape index: {}]   ;;  %s16897_s3 = inlined_call_operand.hbm [shape: bf16[9,128,512], index: 3, kind: input, shape index: {}]   ;;  %s16898_s4 = inlined_call_operand.hbm [shape: f32[1,512], index: 4, kind: input, shape index: {}]   ;;  %s16899_s5 = inlined_call_operand.hbm [shape: bf16[128,384], index: 5, kind: input, shape index: {}]   ;;  %s16900_s6 = inlined_call_operand.hbm [shape: f32[1,384], index: 6, kind: input, shape index: {}]   ;;  %s16901_s7 = inlined_call_operand.hbm [shape: bf16[128,256], index: 7, kind: input, shape index: {}]   ;;  %s16902_s8 = inlined_call_operand.hbm [shape: f32[1,256], index: 8, kind: input, shape index: {}]   ;;  %s16903_s9 = inlined_call_operand.hbm [shape: bf16[256,128], index: 9, kind: input, shape index: {}]   ;;  %s16904_s10 = inlined_call_operand.hbm [shape: f32[1,128], index: 10, kind: input, shape index: {}]   ;;  %s16905_s11 = inlined_call_operand.hbm [shape: bf16[9,256,384], index: 11, kind: input, shape index: {}]   ;;  %s16906_s12 = inlined_call_operand.hbm [shape: f32[1,384], index: 12, kind: input, shape index: {}]   ;;  %s16907_s13 = inlined_call_operand.hbm [shape: f32[2,64,128], index: 13, kind: output, shape index: {0}]   ;;  %s16908_s14 = inlined_call_operand.hbm [shape: f32[2,64,128], index: 14, kind: output, shape index: {1}]   ;;  %s16909_s15 = inlined_call_operand.hbm [shape: f32[2,64,128], index: 15, kind: output, shape index: {2}]  }
   0x1   :  { %16941 = sst [smem:[#allocation46_spill]] %s16894_s0 }
   0x2   :  { %16942 = sst [smem:[#allocation47_spill]] %s16895_s1 }
   0x3   :  { %16943 = sst [smem:[#allocation48_spill]] %s16896_s2 }
   0x4   :  { %16944 = sst [smem:[#allocation49_spill]] %s16897_s3 }
   0x5   :  { %16945 = sst [smem:[#allocation50_spill]] %s16898_s4 }
   0x6   :  { %16946 = sst [smem:[#allocation51_spill]] %s16899_s5 }
   0x7   :  { %16947 = sst [smem:[#allocation52_spill]] %s16900_s6 }
   0x8   :  { %16948 = sst [smem:[#allocation53_spill]] %s16901_s7 }
   0x9   :  { %16949 = sst [smem:[#allocation54_spill]] %s16902_s8 }
   0xa   :  { %16950 = sst [smem:[#allocation55_spill]] %s16903_s9 }
   0xb   :  { %16951 = sst [smem:[#allocation56_spill]] %s16907_s13 }
   0xc   :  { %16952 = sst [smem:[#allocation57_spill]] %s16908_s14 }
   0xd   :  { %16953 = sst [smem:[#allocation58_spill]] %s16909_s15 }
   0xe   :  { %21 = vsyncpa [#allocation4], 0 }
   0xf   :  { %23 = vsyncpa [#allocation4 + $0x1], 0 }
  0x10   :  { %24 = vsyncpa [#allocation7], 0 }
  0x11   :  { %26 = vsyncpa [#allocation7 + $0x1], 0 }
  0x12   :  { %27 = vsyncpa [#allocation10], 0 }
  0x13   :  { %28 = vsyncpa [#allocation13], 0 }
  0x14   :  { %29 = vsyncpa [#allocation16], 0 }
  0x15   :  { %30 = vsyncpa [#allocation19], 0 }
  0x16   :  { %31 = vsyncpa [#allocation22], 0 }
  0x17   :  { %32 = vsyncpa [#allocation5], 0 }
  0x18   :  { %34 = vsyncpa [#allocation5 + $0x1], 0 }
  0x19   :  { %35 = vsyncpa [#allocation25], 0 }
  0x1a   :  { %37 = vsyncpa [#allocation25 + $0x1], 0  ;;  %s14899_s18 = smov 0   ;;  %s14901_s19 = smov 0  }
  0x1b   :  { %s14903_s20 = smov 0   ;;  %s14905_s21 = smov 0  }
  0x1c LB: > { %s14791_s22 = smov [#allocation8]   ;;  %s14920_s24 = sadd.s32 4294967295, %s14789_s21   ;;  %s14789_s21 = sphi %s14905_s21, %s17025_s21   ;;  %s14785_s20 = sphi %s14903_s20, %s17024_s20   ;;  %s14781_s19 = sphi %s14901_s19, %s17023_s19   ;;  %s14777_s18 = sphi %s14899_s18, %s17022_s18  }
  0x1d   : > { %s426_s23 = sshll.u32 %s14791_s22, 4  ;;  %p10904_p0 = scmp.ge.s32.totalorder %s14789_s21, 1  ;;  %s14925_s23 = int_to_ptr.vmem [resolvable:$true] %s426_s23 }
  0x1e   : > { %p16916_p1 = scmp.eq.s32.totalorder %s14920_s24, 0  ;;  %p414_p2 = scmp.lt.s32.totalorder %s14789_s21, 3 }
  0x1f   : > { %s14792_s26 = smov [#allocation9]   ;;  %s14793_s29 = smov [#allocation12]  }
  0x20   : > { %p14927_p3 = pnand %p10904_p0, %p414_p2  ;;  %s440_s27 = sshll.u32 %s14792_s26, 4  ;;  %s14940_s27 = int_to_ptr.vmem [resolvable:$true] %s440_s27 }
  0x21   : > { %s464_s30 = sshll.u32 %s14793_s29, 4  ;;  %s16957_s3 = sld [smem:[#allocation49_spill]]  ;;  %s14942_s30 = int_to_ptr.vmem [resolvable:$true] %s464_s30 }
  0x22   : > { %s16954_s25 = scalar_select %p14927_p3, 1, 0 }
  0x23   : > { %p12768_p5 = pneg %p14927_p3 }
  0x24   : > { %16955 = sst [smem:[#allocation37_spill]] %s16954_s25 }
  0x25   : > { %p14936_p6 = pnand %p12768_p5, %p16916_p1 }
  0x27   : > { %s14295_s22 = scalar_lea.hbm %s16957_s3, 36864  ;;  %p14952_p8 = pneg %p14936_p6 }
  0x28   : > { %p14296_p7 = scmp.ne.s32.totalorder %s16957_s3, %s14295_s22  ;;  %p14302_p11 = scmp.lt.u32.totalorder %s14295_s22, %s16957_s3 }
  0x2a   : > { %p14298_p9 = pnand %p14952_p8, %p14296_p7 }
  0x2c   : > { %p14299_p10 = pneg %p14298_p9 }
  0x2e   : > { %p14304_p12 = pnand %p14302_p11, %p14299_p10 }
  0x30   : > { %14307 = shalt.err (!%p14304_p12)
}
  0x31   : > { %s14308_s13 = scalar_lea.vmem %s14925_s23, 36864  ;;  %p14316_p5 = scmp.lt.s32.totalorder %s14925_s23, %s14925_s23 }
  0x32   : > { %p14309_p13 = scmp.ne.s32.totalorder %s14925_s23, %s14308_s13  ;;  %p14317_p4 = scmp.lt.s32.totalorder %s14308_s13, %s14308_s13 }
  0x34   : > { %p14311_p0 = pnand %p14309_p13, %p14952_p8  ;;  %p14318_p7 = por %p14317_p4, %p14316_p5 }
  0x36   : > { %p14312_p2 = pneg %p14311_p0 }
  0x38   : > { %p14319_p9 = pnand %p14318_p7, %p14312_p2 }
  0x3a   : > { %14322 = shalt.err (!%p14319_p9)
}
  0x3b   : > { %s14794_s15 = smov 256   ;;  %s14795_s14 = smov 16  }
  0x3c   : > { %12771 = dma.hbm_to_vmem [thread:$0]  (!%p14936_p6), %s16957_s3, 36864, %s14925_s23, [#allocation7], %s14794_s15, %s14794_s15, %s14795_s14  }
  0x3d   : > { %s16959_s4 = sld [smem:[#allocation50_spill]] }
  0x43   : > { %s14323_s0 = scalar_lea.hbm %s16959_s4, 64 }
  0x44   : > { %p14324_p4 = scmp.ne.s32.totalorder %s16959_s4, %s14323_s0  ;;  %p14330_p12 = scmp.lt.u32.totalorder %s14323_s0, %s16959_s4 }
  0x46   : > { %p14326_p10 = pnand %p14324_p4, %p14952_p8 }
  0x48   : > { %p14327_p11 = pneg %p14326_p10 }
  0x4a   : > { %p14332_p13 = pnand %p14330_p12, %p14327_p11 }
  0x4c   : > { %14335 = shalt.err (!%p14332_p13)
}
  0x4d   : > { %s14336_s23 = scalar_lea.vmem %s14940_s27, 64  ;;  %p14344_p7 = scmp.lt.s32.totalorder %s14940_s27, %s14940_s27 }
  0x4e   : > { %p14337_p0 = scmp.ne.s32.totalorder %s14940_s27, %s14336_s23  ;;  %p14345_p9 = scmp.lt.s32.totalorder %s14336_s23, %s14336_s23 }
  0x50   : > { %p14339_p2 = pnand %p14337_p0, %p14952_p8  ;;  %p14346_p4 = por %p14345_p9, %p14344_p7 }
  0x52   : > { %p14340_p5 = pneg %p14339_p2 }
  0x54   : > { %p14347_p10 = pnand %p14346_p4, %p14340_p5 }
  0x56   : > { %14350 = shalt.err (!%p14347_p10)
}
  0x57   : > { %12774 = dma.hbm_to_vmem [thread:$0]  (!%p14936_p6), %s16959_s4, 64, %s14940_s27, [#allocation10]  }
  0x58   : > { %s16960_s6 = sld [smem:[#allocation52_spill]] }
  0x5e   : > { %s14351_s15 = scalar_lea.hbm %s16960_s6, 48 }
  0x5f   : > { %p14352_p11 = scmp.ne.s32.totalorder %s16960_s6, %s14351_s15  ;;  %p14358_p0 = scmp.lt.u32.totalorder %s14351_s15, %s16960_s6 }
  0x61   : > { %p14354_p12 = pnand %p14352_p11, %p14952_p8 }
  0x63   : > { %p14355_p13 = pneg %p14354_p12 }
  0x65   : > { %p14360_p2 = pnand %p14358_p0, %p14355_p13 }
  0x67   : > { %14363 = shalt.err (!%p14360_p2)
}
  0x68   : > { %s14364_s27 = scalar_lea.vmem %s14942_s30, 48  ;;  %s14371_s29 = scalar_lea.vmem %s14942_s30, 64 }
  0x69   : > { %p14365_p5 = scmp.ne.s32.totalorder %s14942_s30, %s14364_s27  ;;  %p14372_p4 = scmp.lt.s32.totalorder %s14942_s30, %s14942_s30 }
  0x6a   : > { %p14373_p10 = scmp.lt.s32.totalorder %s14371_s29, %s14364_s27 }
  0x6b   : > { %p14367_p7 = pnand %p14365_p5, %p14952_p8 }
  0x6c   : > { %p14374_p11 = por %p14373_p10, %p14372_p4 }
  0x6d   : > { %p14368_p9 = pneg %p14367_p7 }
  0x6f   : > { %p14375_p12 = pnand %p14374_p11, %p14368_p9 }
  0x71   : > { %14378 = shalt.err (!%p14375_p12)
}
  0x72   : > { %12780 = dma.hbm_to_vmem [thread:$0]  (!%p14936_p6), %s16960_s6, 48, %s14942_s30, [#allocation13]  }
  0x73   : > { %s14796_s0 = smov [#allocation15]   ;;  %s14797_s2 = smov [#allocation18]  }
  0x74   : > { %s488_s1 = sshll.u32 %s14796_s0, 4  ;;  %s512_s25 = sshll.u32 %s14797_s2, 4  ;;  %s489_s1 = int_to_ptr.vmem [resolvable:$true] %s488_s1  ;;  %s513_s25 = int_to_ptr.vmem [resolvable:$true] %s512_s25 }
  0x75   : > { %s16961_s8 = sld [smem:[#allocation54_spill]] }
  0x7b   : > { %s14379_s16 = scalar_lea.hbm %s16961_s8, 32 }
  0x7c   : > { %p14380_p13 = scmp.ne.s32.totalorder %s16961_s8, %s14379_s16  ;;  %p14386_p5 = scmp.lt.u32.totalorder %s14379_s16, %s16961_s8 }
  0x7e   : > { %p14382_p0 = pnand %p14380_p13, %p14952_p8 }
  0x80   : > { %p14383_p2 = pneg %p14382_p0 }
  0x82   : > { %p14388_p7 = pnand %p14386_p5, %p14383_p2 }
  0x84   : > { %14391 = shalt.err (!%p14388_p7)
}
  0x85   : > { %s14392_s30 = scalar_lea.vmem %s489_s1, 32  ;;  %p14400_p11 = scmp.lt.s32.totalorder %s489_s1, %s489_s1 }
  0x86   : > { %p14393_p9 = scmp.ne.s32.totalorder %s489_s1, %s14392_s30  ;;  %p14401_p12 = scmp.lt.s32.totalorder %s14392_s30, %s14392_s30 }
  0x88   : > { %p14395_p4 = pnand %p14393_p9, %p14952_p8  ;;  %p14402_p1 = por %p14401_p12, %p14400_p11 }
  0x8a   : > { %p14396_p10 = pneg %p14395_p4 }
  0x8c   : > { %p14403_p3 = pnand %p14402_p1, %p14396_p10 }
  0x8e   : > { %14406 = shalt.err (!%p14403_p3)
}
  0x8f   : > { %12786 = dma.hbm_to_vmem [thread:$0]  (!%p14936_p6), %s16961_s8, 32, %s489_s1, [#allocation16]  }
  0x90   : > { %s14407_s15 = scalar_lea.hbm %s16904_s10, 16 }
  0x91   : > { %p14408_p13 = scmp.ne.s32.totalorder %s16904_s10, %s14407_s15  ;;  %p14414_p3 = scmp.lt.u32.totalorder %s14407_s15, %s16904_s10 }
  0x93   : > { %p14410_p0 = pnand %p14408_p13, %p14952_p8 }
  0x95   : > { %p14411_p1 = pneg %p14410_p0 }
  0x97   : > { %p14416_p2 = pnand %p14414_p3, %p14411_p1 }
  0x99   : > { %14419 = shalt.err (!%p14416_p2)
}
  0x9a   : > { %s14420_s27 = scalar_lea.vmem %s513_s25, 16  ;;  %s14427_s1 = scalar_lea.vmem %s513_s25, 32 }
  0x9b   : > { %p14421_p5 = scmp.ne.s32.totalorder %s513_s25, %s14420_s27  ;;  %p14428_p4 = scmp.lt.s32.totalorder %s513_s25, %s513_s25 }
  0x9c   : > { %p14429_p10 = scmp.lt.s32.totalorder %s14427_s1, %s14420_s27 }
  0x9d   : > { %p14423_p7 = pnand %p14421_p5, %p14952_p8 }
  0x9e   : > { %p14430_p11 = por %p14429_p10, %p14428_p4 }
  0x9f   : > { %p14424_p9 = pneg %p14423_p7 }
  0xa1   : > { %p14431_p12 = pnand %p14430_p11, %p14424_p9 }
  0xa3   : > { %14434 = shalt.err (!%p14431_p12)
}
  0xa4   : > { %12792 = dma.hbm_to_vmem [thread:$0]  (!%p14936_p6), %s16904_s10, 16, %s513_s25, [#allocation19]  }
  0xa5   : > { %s14798_s13 = smov [#allocation11]   ;;  %s16962_s5 = sld [smem:[#allocation51_spill]] }
  0xa6   : > { %s450_s23 = sshll.u32 %s14798_s13, 4  ;;  %s451_s23 = int_to_ptr.vmem [resolvable:$true] %s450_s23 }
  0xab   : > { %s14435_s15 = scalar_lea.hbm %s16962_s5, 3072 }
  0xac   : > { %p14436_p13 = scmp.ne.s32.totalorder %s16962_s5, %s14435_s15  ;;  %p14442_p3 = scmp.lt.u32.totalorder %s14435_s15, %s16962_s5 }
  0xae   : > { %p14438_p0 = pnand %p14436_p13, %p14952_p8 }
  0xb0   : > { %p14439_p1 = pneg %p14438_p0 }
  0xb2   : > { %p14444_p2 = pnand %p14442_p3, %p14439_p1 }
  0xb4   : > { %14447 = shalt.err (!%p14444_p2)
}
  0xb5   : > { %s14448_s25 = scalar_lea.vmem %s451_s23, 3072  ;;  %p14456_p4 = scmp.lt.s32.totalorder %s451_s23, %s451_s23 }
  0xb6   : > { %p14449_p5 = scmp.ne.s32.totalorder %s451_s23, %s14448_s25  ;;  %p14457_p10 = scmp.lt.s32.totalorder %s14448_s25, %s14448_s25 }
  0xb8   : > { %p14451_p7 = pnand %p14449_p5, %p14952_p8  ;;  %p14458_p11 = por %p14457_p10, %p14456_p4 }
  0xba   : > { %p14452_p9 = pneg %p14451_p7 }
  0xbc   : > { %p14459_p12 = pnand %p14458_p11, %p14452_p9 }
  0xbe   : > { %14462 = shalt.err (!%p14459_p12)
}
  0xbf   : > { %s16918_s27 = smov 192   ;;  %s16919_s1 = smov 12  }
  0xc0   : > { %12777 = dma.hbm_to_vmem [thread:$0]  (!%p14936_p6), %s16962_s5, 3072, %s451_s23, [#allocation10], %s16918_s27, %s16918_s27, %s16919_s1  }
  0xc1   : > { %s14801_s13 = smov [#allocation14]   ;;  %s16963_s7 = sld [smem:[#allocation53_spill]] }
  0xc2   : > { %s474_s0 = sshll.u32 %s14801_s13, 4  ;;  %s475_s0 = int_to_ptr.vmem [resolvable:$true] %s474_s0 }
  0xc7   : > { %s14463_s14 = scalar_lea.hbm %s16963_s7, 2048 }
  0xc8   : > { %p14464_p13 = scmp.ne.s32.totalorder %s16963_s7, %s14463_s14  ;;  %p14470_p3 = scmp.lt.u32.totalorder %s14463_s14, %s16963_s7 }
  0xca   : > { %p14466_p0 = pnand %p14464_p13, %p14952_p8 }
  0xcc   : > { %p14467_p1 = pneg %p14466_p0 }
  0xce   : > { %p14472_p2 = pnand %p14470_p3, %p14467_p1 }
  0xd0   : > { %14475 = shalt.err (!%p14472_p2)
}
  0xd1   : > { %s14476_s23 = scalar_lea.vmem %s475_s0, 2048  ;;  %p14484_p4 = scmp.lt.s32.totalorder %s475_s0, %s475_s0 }
  0xd2   : > { %p14477_p5 = scmp.ne.s32.totalorder %s475_s0, %s14476_s23  ;;  %p14485_p10 = scmp.lt.s32.totalorder %s14476_s23, %s14476_s23 }
  0xd4   : > { %p14479_p7 = pnand %p14477_p5, %p14952_p8  ;;  %p14486_p11 = por %p14485_p10, %p14484_p4 }
  0xd6   : > { %p14480_p9 = pneg %p14479_p7 }
  0xd8   : > { %p14487_p12 = pnand %p14486_p11, %p14480_p9 }
  0xda   : > { %14490 = shalt.err (!%p14487_p12)
}
  0xdb   : > { %s16920_s29 = smov 128   ;;  %s16922_s30 = smov 8  }
  0xdc   : > { %12783 = dma.hbm_to_vmem [thread:$0]  (!%p14936_p6), %s16963_s7, 2048, %s475_s0, [#allocation13], %s16920_s29, %s16920_s29, %s16922_s30  }
  0xdd   : > { %s14804_s15 = smov [#allocation17]   ;;  %s16964_s9 = sld [smem:[#allocation55_spill]] }
  0xde   : > { %s498_s14 = sshll.u32 %s14804_s15, 4  ;;  %s499_s14 = int_to_ptr.vmem [resolvable:$true] %s498_s14 }
  0xe3   : > { %s14491_s22 = scalar_lea.hbm %s16964_s9, 2048 }
  0xe4   : > { %p14492_p13 = scmp.ne.s32.totalorder %s16964_s9, %s14491_s22  ;;  %p14498_p3 = scmp.lt.u32.totalorder %s14491_s22, %s16964_s9 }
  0xe6   : > { %p14494_p0 = pnand %p14492_p13, %p14952_p8 }
  0xe8   : > { %p14495_p1 = pneg %p14494_p0 }
  0xea   : > { %p14500_p2 = pnand %p14498_p3, %p14495_p1 }
  0xec   : > { %14503 = shalt.err (!%p14500_p2)
}
  0xed   : > { %s14504_s0 = scalar_lea.vmem %s499_s14, 2048  ;;  %p14512_p4 = scmp.lt.s32.totalorder %s499_s14, %s499_s14 }
  0xee   : > { %p14505_p5 = scmp.ne.s32.totalorder %s499_s14, %s14504_s0  ;;  %p14513_p10 = scmp.lt.s32.totalorder %s14504_s0, %s14504_s0 }
  0xf0   : > { %p14507_p7 = pnand %p14505_p5, %p14952_p8  ;;  %p14514_p11 = por %p14513_p10, %p14512_p4 }
  0xf2   : > { %p14508_p9 = pneg %p14507_p7 }
  0xf4   : > { %p14515_p12 = pnand %p14514_p11, %p14508_p9 }
  0xf6   : > { %14518 = shalt.err (!%p14515_p12)
}
  0xf7   : > { %s14805_s13 = smov 64   ;;  %s14806_s2 = smov 4  }
  0xf8   : > { %12789 = dma.hbm_to_vmem [thread:$0]  (!%p14936_p6), %s16964_s9, 2048, %s499_s14, [#allocation16], %s14805_s13, %s14805_s13, %s14806_s2  }
  0xf9   : > { %s14807_s15 = smov [#allocation20]   ;;  %s14808_s17 = smov [#allocation21]  }
  0xfa   : > { %s522_s16 = sshll.u32 %s14807_s15, 4  ;;  %s536_s22 = sshll.u32 %s14808_s17, 4  ;;  %s523_s16 = int_to_ptr.vmem [resolvable:$true] %s522_s16  ;;  %s15116_s22 = int_to_ptr.vmem [resolvable:$true] %s536_s22 }
  0xfb   : > { %s14519_s0 = scalar_lea.hbm %s16905_s11, 55296 }
  0xfc   : > { %p14520_p13 = scmp.ne.s32.totalorder %s16905_s11, %s14519_s0  ;;  %p14526_p3 = scmp.lt.u32.totalorder %s14519_s0, %s16905_s11 }
  0xfe   : > { %p14522_p0 = pnand %p14520_p13, %p14952_p8 }
 0x100   : > { %p14523_p1 = pneg %p14522_p0 }
 0x102   : > { %p14528_p2 = pnand %p14526_p3, %p14523_p1 }
 0x104   : > { %14531 = shalt.err (!%p14528_p2)
}
 0x105   : > { %s14532_s13 = scalar_lea.vmem %s523_s16, 55296  ;;  %p14540_p4 = scmp.lt.s32.totalorder %s523_s16, %s523_s16 }
 0x106   : > { %p14533_p5 = scmp.ne.s32.totalorder %s523_s16, %s14532_s13  ;;  %p14541_p10 = scmp.lt.s32.totalorder %s14532_s13, %s14532_s13 }
 0x108   : > { %p14535_p7 = pnand %p14533_p5, %p14952_p8  ;;  %p14542_p11 = por %p14541_p10, %p14540_p4 }
 0x10a   : > { %p14536_p9 = pneg %p14535_p7 }
 0x10c   : > { %p14543_p12 = pnand %p14542_p11, %p14536_p9 }
 0x10e   : > { %14546 = shalt.err (!%p14543_p12)
}
 0x10f   : > { %s16965_s29 = smov 12   ;;  %s16966_s30 = smov 192  }
 0x110   : > { %12795 = dma.hbm_to_vmem [thread:$0]  (!%p14936_p6), %s16905_s11, 55296, %s523_s16, [#allocation19], %s16966_s30, %s16966_s30, %s16965_s29  }
 0x111   : > { %s14547_s25 = scalar_lea.hbm %s16906_s12, 48 }
 0x112   : > { %p14548_p13 = scmp.ne.s32.totalorder %s16906_s12, %s14547_s25  ;;  %p14554_p3 = scmp.lt.u32.totalorder %s14547_s25, %s16906_s12 }
 0x114   : > { %p14550_p0 = pnand %p14548_p13, %p14952_p8 }
 0x116   : > { %p14551_p1 = pneg %p14550_p0 }
 0x118   : > { %p14556_p2 = pnand %p14554_p3, %p14551_p1 }
 0x11a   : > { %14559 = shalt.err (!%p14556_p2)
}
 0x11b   : > { %s14560_s16 = scalar_lea.vmem %s15116_s22, 48  ;;  %s14567_s13 = scalar_lea.vmem %s15116_s22, 64 }
 0x11c   : > { %p14561_p5 = scmp.ne.s32.totalorder %s15116_s22, %s14560_s16  ;;  %p14568_p4 = scmp.lt.s32.totalorder %s15116_s22, %s15116_s22 }
 0x11d   : > { %p14569_p10 = scmp.lt.s32.totalorder %s14567_s13, %s14560_s16 }
 0x11e   : > { %p14563_p7 = pnand %p14561_p5, %p14952_p8 }
 0x11f   : > { %p14570_p11 = por %p14569_p10, %p14568_p4 }
 0x120   : > { %p14564_p9 = pneg %p14563_p7 }
 0x122   : > { %p14571_p12 = pnand %p14570_p11, %p14564_p9 }
 0x124   : > { %14574 = shalt.err (!%p14571_p12)
}
 0x125   : > { %12798 = dma.hbm_to_vmem [thread:$0]  (!%p14936_p6), %s16906_s12, 48, %s15116_s22, [#allocation22]  }
 0x126   : > { %s16924_s28 = sadd.s32 4294967294, %s14789_s21   ;;  %s15165_s26 = sadd.s32 1, %s14789_s21  }
 0x127   : > { %s73_s2 = ssub.s32 %s14789_s21, %s15165_s26  ;;  %s76_s1 = sadd.s32 1, %s14785_s20 }
 0x128   : > { %p74_p8 = scmp.eq.s32.totalorder %s73_s2, 0  ;;  %p83_p13 = scmp.ne.s32.totalorder %s14785_s20, %s14781_s19 }
 0x129   : > { %p84_p0 = scmp.eq.s32.totalorder %s14789_s21, 0  ;;  %p89_p1 = scmp.ne.s32.totalorder %s14781_s19, %s14777_s18 }
 0x12a   : > { %s15176_s15 = scalar_select %p74_p8, %s14785_s20, %s76_s1  }
 0x12b   : > { %p15178_p3 = por %p84_p0, %p83_p13  ;;  %p16968_p2 = scmp.eq.s32.totalorder %s14920_s24, 0 }
 0x12c   : > { %p349_p5 = scmp.eq.s32.totalorder %s14920_s24, 1  ;;  %p355_p7 = scmp.eq.s32.totalorder %s16924_s28, 1 }
 0x12d   : > { %p15184_p6 = por %p16968_p2, %p89_p1  ;;  %p12826_p9 = scmp.lt.s32.totalorder %s14789_s21, 2 }
 0x12e   : > { %s555_s25 = sand.u32 1, %s14785_s20   ;;  %p15193_p4 = por %p349_p5, %p83_p13 }
 0x12f   : > { %p15197_p10 = por %p355_p7, %p89_p1  ;;  %s10916_s27 = sshll.u32 %s555_s25, 6 }
 0x130   : > { %s16970_s23 = scalar_select %p15193_p4, 1, 0 }
 0x131   : > { %s16971_s0 = scalar_select %p15197_p10, 1, 0 }
 0x132   : > { %s11776_s14 = sshll.u32 %s14789_s21, 10  ;;  %s16972_s29 = sld [smem:[#allocation47_spill]] }
 0x133   : > { %s559_s2 = scalar_lea.vmem [#allocation3], %s10916_s27  ;;  %p15211_p11 = pnand %p12826_p9, %p15178_p3 }
 0x134   : > { %s566_s1 = sshll.u32 %s559_s2, 4  ;;  %s16974_s5 = sld [smem:[#allocation48_spill]]  ;;  %s15207_s1 = int_to_ptr.vmem [resolvable:$true] %s566_s1 }
 0x135   : > { %s580_s13 = scalar_lea.vmem [#allocation6], %s10916_s27  ;;  %s15222_s7 = scalar_lea.sflag [#allocation4], %s555_s25 }
 0x136   : > { %s15220_s6 = sshll.u32 %s580_s13, 4  ;;  %p14577_p8 = pneg %p15211_p11  ;;  %s15254_s6 = int_to_ptr.vmem [resolvable:$true] %s15220_s6 }
 0x138   : > { %s15205_s30 = scalar_lea.hbm %s16972_s29, %s11776_s14  ;;  %s14580_s3 = scalar_lea.hbm %s16972_s29, 2048 }
 0x139   : > { %s14575_s2 = scalar_lea.hbm %s15205_s30, 1024  ;;  %p14581_p1 = scmp.lt.u32.totalorder %s15205_s30, %s16972_s29 }
 0x13a   : > { %s15218_s16 = scalar_lea.hbm %s16974_s5, %s11776_s14  ;;  %p14576_p12 = scmp.ne.s32.totalorder %s15205_s30, %s14575_s2 }
 0x13b   : > { %p14582_p3 = scmp.lt.u32.totalorder %s14580_s3, %s14575_s2  ;;  %p14584_p5 = scmp.lt.u32.totalorder %s14575_s2, %s15205_s30 }
 0x13c   : > { %p14578_p13 = pnand %p14577_p8, %p14576_p12 }
 0x13d   : > { %p14583_p2 = por %p14582_p3, %p14581_p1 }
 0x13e   : > { %p14579_p0 = pneg %p14578_p13 }
 0x13f   : > { %p14585_p7 = por %p14584_p5, %p14583_p2 }
 0x141   : > { %p14586_p9 = pnand %p14585_p7, %p14579_p0 }
 0x143   : > { %14589 = shalt.err (!%p14586_p9)
}
 0x144   : > { %s14590_s25 = scalar_lea.vmem %s15207_s1, 1024  ;;  %s14809_s8 = smov [#allocation3]  }
 0x145   : > { %p14591_p12 = scmp.ne.s32.totalorder %s15207_s1, %s14590_s25  ;;  %s14595_s27 = sshll.u32 %s14809_s8, 4  ;;  %s14596_s27 = int_to_ptr.vmem [resolvable:$false] %s14595_s27 }
 0x146   : > { %s14597_s13 = scalar_lea.vmem %s14596_s27, 2048  ;;  %p14598_p4 = scmp.lt.s32.totalorder %s15207_s1, %s14596_s27 }
 0x147   : > { %p14593_p13 = pnand %p14591_p12, %p14577_p8  ;;  %p14599_p1 = scmp.lt.s32.totalorder %s14597_s13, %s14590_s25 }
 0x149   : > { %p14594_p10 = pneg %p14593_p13  ;;  %p14600_p3 = por %p14599_p1, %p14598_p4 }
 0x14b   : > { %p14601_p2 = pnand %p14600_p3, %p14594_p10 }
 0x14d   : > { %14604 = shalt.err (!%p14601_p2)
}
 0x14e   : > { %s16975_s2 = smov 8   ;;  %s16976_s17 = smov 128  }
 0x14f   : > { %12802 = dma.hbm_to_vmem [thread:$0]  (!%p15211_p11), %s15205_s30, 1024, %s15207_s1, %s15222_s7, %s16976_s17, %s16976_s17, %s16975_s2  }
 0x150   : > { %s576_s3 = sand.u32 1, %s14789_s21   ;;  %s14605_s14 = scalar_lea.hbm %s15218_s16, 1024 }
 0x151   : > { %s15257_s4 = scalar_lea.sflag [#allocation7], %s576_s3  ;;  %p14606_p4 = scmp.ne.s32.totalorder %s15218_s16, %s14605_s14 }
 0x152   : > { %s14610_s27 = scalar_lea.hbm %s16974_s5, 2048  ;;  %p14611_p5 = scmp.lt.u32.totalorder %s15218_s16, %s16974_s5 }
 0x153   : > { %p14608_p10 = pnand %p14606_p4, %p14577_p8  ;;  %p14612_p7 = scmp.lt.u32.totalorder %s14610_s27, %s14605_s14 }
 0x154   : > { %p14614_p12 = scmp.lt.u32.totalorder %s14605_s14, %s15218_s16 }
 0x155   : > { %p14609_p0 = pneg %p14608_p10  ;;  %p14613_p9 = por %p14612_p7, %p14611_p5 }
 0x157   : > { %p14615_p13 = por %p14614_p12, %p14613_p9 }
 0x159   : > { %p14616_p1 = pnand %p14615_p13, %p14609_p0 }
 0x15b   : > { %14619 = shalt.err (!%p14616_p1)
}
 0x15c   : > { %s14620_s7 = scalar_lea.vmem %s15254_s6, 1024  ;;  %s14810_s30 = smov [#allocation6]  }
 0x15d   : > { %p14621_p3 = scmp.ne.s32.totalorder %s15254_s6, %s14620_s7  ;;  %s14625_s1 = sshll.u32 %s14810_s30, 4  ;;  %s14626_s1 = int_to_ptr.vmem [resolvable:$false] %s14625_s1 }
 0x15e   : > { %s14627_s9 = scalar_lea.vmem %s14626_s1, 2048  ;;  %p14628_p10 = scmp.lt.s32.totalorder %s15254_s6, %s14626_s1 }
 0x15f   : > { %p14623_p2 = pnand %p14621_p3, %p14577_p8  ;;  %p14629_p5 = scmp.lt.s32.totalorder %s14627_s9, %s14620_s7 }
 0x161   : > { %p14624_p4 = pneg %p14623_p2  ;;  %p14630_p7 = por %p14629_p5, %p14628_p10 }
 0x163   : > { %p14631_p9 = pnand %p14630_p7, %p14624_p4 }
 0x165   : > { %14634 = shalt.err (!%p14631_p9)
}
 0x166   : > { %12805 = dma.hbm_to_vmem [thread:$0]  (!%p15211_p11), %s15218_s16, 1024, %s15254_s6, %s15257_s4, %s16976_s17, %s16976_s17, %s16975_s2  }
 0x167   : > { %s16977_s3 = sld [smem:[#allocation37_spill]] }
 0x16d   : > { %p16978_p8 = scmp.ne.s32.totalorder %s16977_s3, 0 }
 0x16f   : > { %599 = sbr.rel (%p16978_p8) target bundleno = 2975 (0xb9f), region = 72 }
 0x176   : > { %s15289_s14 = sand.u32 1, %s14781_s19  }
 0x177   : > { %s15292_s25 = sshll.u32 %s15289_s14, 6  ;;  %s602_s28 = scalar_lea.sflag [#allocation4], %s15289_s14 }
 0x178   : > { %s15296_s8 = scalar_lea.vmem [#allocation3], %s15292_s25 }
 0x179   : > { %14736 = dma.done.wait (%p15184_p6), %s602_s28, 1024  }
 0x17a   : > { %14738 = vsyncadd (%p15184_p6), %s602_s28, 4294966272  ;;  %s610_s6 = sand.u32 1, %s14920_s24   ;;  %s15306_s2 = scalar_lea.vmem [#allocation6], %s15292_s25 }
 0x17b   : > { %s611_s16 = scalar_lea.sflag [#allocation7], %s610_s6 }
 0x17c   : > { %14740 = dma.done.wait (%p15184_p6), %s611_s16, 1024  }
 0x17d   : > { %14742 = vsyncadd (%p15184_p6), %s611_s16, 4294966272  ;;  %p16979_p11 = scmp.eq.s32.totalorder %s14920_s24, 0 }
 0x17f   : > { %14744 = dma.done.wait (%p16979_p11), [#allocation7], 36864   ;;  %p16980_p0 = pmov %p16979_p11 }
 0x181   : > { %14746 = vsyncadd (%p16980_p0), [#allocation7], 4294930432  ;;  %p16981_p12 = pmov %p16980_p0 }
 0x182   : > { %p16982_p13 = pmov %p16980_p0 }
 0x183   : > { %14748 = dma.done.wait (%p16981_p12), [#allocation10], 3136  }
 0x184   : > { %14750 = vsyncadd (%p16982_p13), [#allocation10], 4294964160  ;;  %p16983_p1 = pmov %p16980_p0 }
 0x185   : > { %p16984_p3 = pmov %p16980_p0 }
 0x186   : > { %14752 = dma.done.wait (%p16983_p1), [#allocation13], 2096  }
 0x187   : > { %14754 = vsyncadd (%p16984_p3), [#allocation13], 4294965200  ;;  %p16985_p6 = pmov %p16980_p0 }
 0x188   : > { %p16986_p2 = pmov %p16980_p0 }
 0x189   : > { %14756 = dma.done.wait (%p16985_p6), [#allocation16], 2080  }
 0x18a   : > { %14758 = vsyncadd (%p16986_p2), [#allocation16], 4294965216  ;;  %p16987_p4 = pmov %p16980_p0 }
 0x18b   : > { %p16988_p10 = pmov %p16980_p0 }
 0x18c   : > { %14760 = dma.done.wait (%p16987_p4), [#allocation19], 55312  }
 0x18d   : > { %14762 = vsyncadd (%p16988_p10), [#allocation19], 4294911984  ;;  %p16989_p5 = pmov %p16980_p0 }
 0x18e   : > { %p16990_p7 = pmov %p16980_p0 }
 0x18f   : > { %14764 = dma.done.wait (%p16989_p5), [#allocation22], 48  }
 0x190   : > { %14766 = vsyncadd (%p16990_p7), [#allocation22], 4294967248  ;;  %v14811_v0 = vmov 0   ;;  %v12913_v1 = vld [vmem:[#allocation8 + $0x104] ss:$16 sps:$4 sm:$0xff]   ;;  %p721_p9 = scmp.lt.s32.totalorder %s14920_s24, 1 }
 0x191   : > { %1081 = vmatprep.mubr.bf16.mxu0 %v14811_v0  ;;  %1154 = vmatprep.mubr.bf16.mxu1 %v14811_v0  ;;  %v12915_v2 = vld [vmem:[#allocation8 + $0x10c] ss:$16 sps:$4 sm:$0xff]   ;;  %v12917_v3 = vld [vmem:[#allocation8 + $0x100] ss:$16 sps:$4 sm:$0xff]   ;;  %v12918_v4 = vld [vmem:[#allocation8 + $0x108] ss:$16 sps:$4 sm:$0xff]  }
 0x192   : > { %1049 = vmatprep.subr.bf16.mxu0 %v12913_v1  ;;  %1122 = vmatprep.subr.bf16.mxu1 %v12915_v2  ;;  %v12919_v5 = vld [vmem:[#allocation8 + $0x124] ss:$16 sps:$4 sm:$0xff]   ;;  %v12921_v6 = vld [vmem:[#allocation8 + $0x12c] ss:$16 sps:$4 sm:$0xff]   ;;  %v12923_v7 = vld [vmem:[#allocation8 + $0x120] ss:$16 sps:$4 sm:$0xff]  }
 0x193   : > { %1050 = vmatpush1.bf16.msra.mxu0 %v12917_v3  ;;  %1123 = vmatpush1.bf16.msra.mxu1 %v12918_v4  ;;  %v12924_v8 = vld [vmem:[#allocation8 + $0x128] ss:$16 sps:$4 sm:$0xff]   ;;  %v12925_v9 = vld [vmem:[#allocation8 + $0x144] ss:$16 sps:$4 sm:$0xff]   ;;  %v12927_v10 = vld [vmem:[#allocation8 + $0x14c] ss:$16 sps:$4 sm:$0xff]  }
 0x194   : > { %1051 = vmatprep.subr.bf16.mxu0 %v12919_v5  ;;  %1124 = vmatprep.subr.bf16.mxu1 %v12921_v6  ;;  %v12929_v11 = vld [vmem:[#allocation8 + $0x140] ss:$16 sps:$4 sm:$0xff]   ;;  %v12930_v12 = vld [vmem:[#allocation8 + $0x148] ss:$16 sps:$4 sm:$0xff]   ;;  %v12931_v13 = vld [vmem:[#allocation8 + $0x164] ss:$16 sps:$4 sm:$0xff]  }
 0x195   : > { %v12933_v14 = vld [vmem:[#allocation8 + $0x16c] ss:$16 sps:$4 sm:$0xff]   ;;  %s722_s22 = scalar_select %p721_p9, %s14920_s24, 1  ;;  %v12935_v15 = vld [vmem:[#allocation8 + $0x160] ss:$16 sps:$4 sm:$0xff]   ;;  %vm819_vm0 = vcmask 1046528  }
 0x196   : > { %v12936_v16 = vld [vmem:[#allocation8 + $0x168] ss:$16 sps:$4 sm:$0xff]   ;;  %v12937_v17 = vld [vmem:[#allocation8 + $0x184] ss:$16 sps:$4 sm:$0xff]   ;;  %v12939_v18 = vld [vmem:[#allocation8 + $0x18c] ss:$16 sps:$4 sm:$0xff]  }
 0x197   : > { %1052 = vmatpush1.bf16.msra.mxu0 %v12923_v7  ;;  %1125 = vmatpush1.bf16.msra.mxu1 %v12924_v8  ;;  %s12717_s17 = smul.u32 80, %s722_s22  ;;  %v12941_v19 = vld [vmem:[#allocation8 + $0x180] ss:$16 sps:$4 sm:$0xff]   ;;  %v12942_v20 = vld [vmem:[#allocation8 + $0x188] ss:$16 sps:$4 sm:$0xff]   ;;  %s16991_s13 = sld [smem:[#allocation46_spill]] }
 0x198   : > { %1053 = vmatprep.subr.bf16.mxu0 %v12925_v9  ;;  %1126 = vmatprep.subr.bf16.mxu1 %v12927_v10  ;;  %v12943_v21 = vld [vmem:[#allocation8 + $0x1a4] ss:$16 sps:$4 sm:$0xff]   ;;  %v12945_v22 = vld [vmem:[#allocation8 + $0x1ac] ss:$16 sps:$4 sm:$0xff]   ;;  %v12947_v23 = vld [vmem:[#allocation8 + $0x1a0] ss:$16 sps:$4 sm:$0xff]  }
 0x199   : > { %v12948_v24 = vld [vmem:[#allocation8 + $0x1a8] ss:$16 sps:$4 sm:$0xff]   ;;  %v12949_v25 = vld [vmem:[#allocation8 + $0x1c4] ss:$16 sps:$4 sm:$0xff]   ;;  %v12951_v26 = vld [vmem:[#allocation8 + $0x1cc] ss:$16 sps:$4 sm:$0xff]  }
 0x19a   : > { %v12953_v29 = vld [vmem:[#allocation8 + $0x1c0] ss:$16 sps:$4 sm:$0xff]   ;;  %v12954_v30 = vld [vmem:[#allocation8 + $0x1c8] ss:$16 sps:$4 sm:$0xff]   ;;  %vm1501_vm1 = vcmask 1045504   ;;  %s15746_s30 = scalar_lea.vmem [#allocation24], %s15292_s25 }
 0x19b   : > { %1054 = vmatpush1.bf16.msra.mxu0 %v12929_v11  ;;  %1127 = vmatpush1.bf16.msra.mxu1 %v12930_v12  ;;  %v12955_v40 = vld [vmem:[#allocation8 + $0x1e4] ss:$16 sps:$4 sm:$0xff]   ;;  %v12957_v45 = vld [vmem:[#allocation8 + $0x1ec] ss:$16 sps:$4 sm:$0xff]   ;;  %v12959_v57 = vld [vmem:[#allocation8 + $0x1e0] ss:$16 sps:$4 sm:$0xff]  }
 0x19c   : > { %1055 = vmatprep.subr.bf16.mxu0 %v12931_v13  ;;  %1128 = vmatprep.subr.bf16.mxu1 %v12933_v14  ;;  %v12960_v58 = vld [vmem:[#allocation8 + $0x1e8] ss:$16 sps:$4 sm:$0xff]   ;;  %v12963_v63 = vld [vmem:[#allocation8 + $0x4] ss:$16 sps:$4 sm:$0xff]   ;;  %v12966_v1 = vld [vmem:[#allocation8 + $0xc] ss:$16 sps:$4 sm:$0xff]  }
 0x19d   : > { %s15343_s7 = scalar_lea.vmem %s16991_s13, %s12717_s17  ;;  %v12961_v9 = vld [vmem:[#allocation8] ss:$16 sps:$4 sm:$0xff]   ;;  %v12964_v10 = vld [vmem:[#allocation8 + $0x8] ss:$16 sps:$4 sm:$0xff]   ;;  %v12969_v13 = vld [vmem:[#allocation8 + $0x24] ss:$16 sps:$4 sm:$0xff]  }
 0x19e   : > { %v15346_v27 = vld [vmem:[%s15343_s7] sm:$0xf]  ;;  %v728_v28 = vld [vmem:[%s15343_s7 + $0x4] sm:$0x1]  ;;  %v15350_v31 = vld [vmem:[%s15343_s7 + $0x8] sm:$0xf] }
 0x19f   : > { %1056 = vmatpush1.bf16.msra.mxu0 %v12935_v15  ;;  %1129 = vmatpush1.bf16.msra.mxu1 %v12936_v16  ;;  %v730_v32 = vld [vmem:[%s15343_s7 + $0xc] sm:$0x1]  ;;  %v15354_v33 = vld [vmem:[%s15343_s7 + $0x10] sm:$0xf]  ;;  %v747_v34 = vunpack.c.l.bf16 %v15346_v27  ;;  %v748_v35 = vunpack.c.l.bf16 %v728_v28  ;;  %v732_v36 = vld [vmem:[%s15343_s7 + $0x14] sm:$0x1]  ;;  %v749_v37 = vunpack.c.l.bf16 %v15350_v31 }
 0x1a0   : > { %1057 = vmatprep.subr.bf16.mxu0 %v12937_v17  ;;  %1130 = vmatprep.subr.bf16.mxu1 %v12939_v18  ;;  %v750_v38 = vunpack.c.l.bf16 %v730_v32  ;;  %v751_v39 = vunpack.c.l.bf16 %v15354_v33  ;;  %v752_v41 = vunpack.c.l.bf16 %v732_v36  ;;  %v15371_v4 = vld [vmem:[%s15343_s7 + $0x18] sm:$0xf]  ;;  %v734_v5 = vld [vmem:[%s15343_s7 + $0x1c] sm:$0x1]  ;;  %v15378_v7 = vcombine.low %v15350_v31, %v15354_v33  ;;  %v12967_v17 = vld [vmem:[#allocation8 + $0x20] ss:$16 sps:$4 sm:$0xff]  }
 0x1a1   : > { %v820_v42 = vrot.slane %v747_v34, 1  ;;  %v821_v43 = vrot.slane %v748_v35, 1  ;;  %v1502_v44 = vrot.slane %v747_v34, 2  ;;  %v823_v46 = vrot.slane %v749_v37, 1  ;;  %v12972_v14 = vld [vmem:[#allocation8 + $0x2c] ss:$16 sps:$4 sm:$0xff]  }
 0x1a2   : > { %v824_v47 = vrot.slane %v750_v38, 1  ;;  %v826_v48 = vrot.slane %v751_v39, 1  ;;  %v1503_v49 = vrot.slane %v748_v35, 2  ;;  %v827_v50 = vrot.slane %v752_v41, 1  ;;  %v12970_v18 = vld [vmem:[#allocation8 + $0x28] ss:$16 sps:$4 sm:$0xff]  }
 0x1a3   : > { %1058 = vmatpush1.bf16.msra.mxu0 %v12941_v19  ;;  %1131 = vmatpush1.bf16.msra.mxu1 %v12942_v20  ;;  %v1505_v51 = vrot.slane %v749_v37, 2  ;;  %v1506_v52 = vrot.slane %v750_v38, 2  ;;  %v822_v53 = vsel %vm819_vm0, %v820_v42, %v821_v43  ;;  %v1508_v55 = vrot.slane %v751_v39, 2  ;;  %v12975_v20 = vld [vmem:[#allocation8 + $0x44] ss:$16 sps:$4 sm:$0xff]   ;;  %s14813_s1 = smov 64  }
 0x1a4   : > { %1059 = vmatprep.subr.bf16.mxu0 %v12943_v21  ;;  %1132 = vmatprep.subr.bf16.mxu1 %v12945_v22  ;;  %v1504_v54 = vsel %vm1501_vm1, %v1502_v44, %v1503_v49  ;;  %v1509_v56 = vrot.slane %v752_v41, 2  ;;  %v825_v59 = vsel %vm819_vm0, %v823_v46, %v824_v47  ;;  %v828_v60 = vsel %vm819_vm0, %v826_v48, %v827_v50  ;;  %v12978_v21 = vld [vmem:[#allocation8 + $0x4c] ss:$16 sps:$4 sm:$0xff]   ;;  %v12973_v34 = vld [vmem:[#allocation8 + $0x40] ss:$16 sps:$4 sm:$0xff]   ;;  %s16648_s9 = sshll.u32 %s14920_s24, 10 }
 0x1a5   : > { %v1507_v61 = vsel %vm1501_vm1, %v1505_v51, %v1506_v52  ;;  %v15365_v62 = vpack.c.bf16 %v828_v60, %v825_v59  ;;  %v852_v8 = vpack.c.bf16 %v825_v59, %v822_v53  ;;  %v753_v11 = vunpack.c.l.bf16 %v15371_v4  ;;  %v738_v28 = vld [vmem:[%s15343_s7 + $0x2c] sm:$0x1]  ;;  %v12976_v39 = vld [vmem:[#allocation8 + $0x48] ss:$16 sps:$4 sm:$0xff]   ;;  %v12981_v46 = vld [vmem:[#allocation8 + $0x64] ss:$16 sps:$4 sm:$0xff]  }
 0x1a6   : > { %v15367_v2 = vpack.c.bf16 %v1507_v61, %v1504_v54  ;;  %v1510_v3 = vsel %vm1501_vm1, %v1508_v55, %v1509_v56  ;;  %v754_v12 = vunpack.c.l.bf16 %v734_v5  ;;  %v758_v35 = vunpack.c.l.bf16 %v738_v28  ;;  %v12984_v47 = vld [vmem:[#allocation8 + $0x6c] ss:$16 sps:$4 sm:$0xff]   ;;  %v12979_v50 = vld [vmem:[#allocation8 + $0x60] ss:$16 sps:$4 sm:$0xff]   ;;  %v12982_v51 = vld [vmem:[#allocation8 + $0x68] ss:$16 sps:$4 sm:$0xff]  }
 0x1a7   : > { %1060 = vmatpush1.bf16.msra.mxu0 %v12947_v23  ;;  %1133 = vmatpush1.bf16.msra.mxu1 %v12948_v24  ;;  %v15374_v6 = vpack.c.bf16 %v1510_v3, %v1507_v61  ;;  %v829_v15 = vrot.slane %v753_v11, 1  ;;  %v1511_v19 = vrot.slane %v753_v11, 2  ;;  %v15383_v24 = vld [vmem:[%s15343_s7 + $0x20] sm:$0xf]  ;;  %v15412_v54 = vld [vmem:[%s15343_s7 + $0x30] sm:$0xf] }
 0x1a8   : > { %1061 = vmatprep.subr.bf16.mxu0 %v12949_v25  ;;  %1134 = vmatprep.subr.bf16.mxu1 %v12951_v26  ;;  %v830_v16 = vrot.slane %v754_v12, 1  ;;  %v1512_v22 = vrot.slane %v754_v12, 2  ;;  %v736_v25 = vld [vmem:[%s15343_s7 + $0x24] sm:$0x1]  ;;  %v15387_v26 = vld [vmem:[%s15343_s7 + $0x28] sm:$0xf]  ;;  %v15399_v37 = vcombine.low %v15371_v4, %v15383_v24 }
 0x1a9   : > { %v757_v32 = vunpack.c.l.bf16 %v15387_v26  ;;  %v836_v44 = vrot.slane %v758_v35, 1  ;;  %v740_v55 = vld [vmem:[%s15343_s7 + $0x34] sm:$0x1]  ;;  %v15416_v56 = vld [vmem:[%s15343_s7 + $0x38] sm:$0xf]  ;;  %vm5017_vm2 = vcmask 523264  }
 0x1aa   : > { %v831_v23 = vsel %vm819_vm0, %v829_v15, %v830_v16  ;;  %v15395_v36 = vsel %vm1501_vm1, %v1511_v19, %v1512_v22  ;;  %v742_v59 = vld [vmem:[%s15343_s7 + $0x3c] sm:$0x1]  ;;  %v760_v61 = vunpack.c.l.bf16 %v740_v55  ;;  %v12993_v22 = vld [vmem:[#allocation8 + $0xa4] ss:$16 sps:$4 sm:$0xff]   ;;  %v13010_v55 = vld [vmem:[#allocation8 + $0x200] ss:$16 sps:$4 sm:$0xff]  }
 0x1ab   : > { %1062 = vmatpush1.bf16.msra.mxu0 %v12953_v29  ;;  %1135 = vmatpush1.bf16.msra.mxu1 %v12954_v30  ;;  %v755_v29 = vunpack.c.l.bf16 %v15383_v24  ;;  %v756_v30 = vunpack.c.l.bf16 %v736_v25  ;;  %v15401_v38 = vpack.c.bf16 %v831_v23, %v828_v60  ;;  %v15404_v42 = vpack.c.bf16 %v15395_v36, %v1510_v3  ;;  %v12990_v3 = vld [vmem:[#allocation8 + $0x8c] ss:$16 sps:$4 sm:$0xff]   ;;  %s10623_s22 = sshll.u32 %s15746_s30, 4  ;;  %s16661_s17 = scalar_lea.sflag [#allocation25], %s610_s6  ;;  %s16657_s22 = int_to_ptr.vmem [resolvable:$true] %s10623_s22 }
 0x1ac   : > { %1063 = vmatprep.subr.bf16.mxu0 %v12955_v40  ;;  %1136 = vmatprep.subr.bf16.mxu1 %v12957_v45  ;;  %v835_v43 = vrot.slane %v757_v32, 1  ;;  %v1517_v52 = vrot.slane %v757_v32, 2  ;;  %v759_v60 = vunpack.c.l.bf16 %v15412_v54  ;;  %v762_v5 = vunpack.c.l.bf16 %v742_v59  ;;  %v12991_v32 = vld [vmem:[#allocation8 + $0xa0] ss:$16 sps:$4 sm:$0xff]   ;;  %v13018_v59 = vld [vmem:[#allocation8 + $0x224] ss:$16 sps:$4 sm:$0xff]  }
 0x1ad   : > { %v832_v40 = vrot.slane %v755_v29, 1  ;;  %v833_v41 = vrot.slane %v756_v30, 1  ;;  %v1514_v45 = vrot.slane %v755_v29, 2  ;;  %v1515_v49 = vrot.slane %v756_v30, 2  ;;  %s14635_s4 = scalar_lea.vmem %s16657_s22, 1024  ;;  %p17011_p11 = scmp.ne.s32.totalorder %s16970_s23, 0 }
 0x1ae   : > { %v839_v11 = vrot.slane %v760_v61, 1  ;;  %v1520_v16 = vrot.slane %v759_v60, 2  ;;  %v842_v19 = vrot.slane %v762_v5, 1  ;;  %v1524_v30 = vrot.slane %v762_v5, 2  ;;  %v13026_v5 = vld [vmem:[#allocation8 + $0x248] ss:$16 sps:$4 sm:$0xff]   ;;  %p14636_p8 = scmp.ne.s32.totalorder %s16657_s22, %s14635_s4 }
 0x1af   : > { %1064 = vmatpush1.bf16.msra.mxu0 %v12959_v57  ;;  %1137 = vmatpush1.bf16.msra.mxu1 %v12960_v58  ;;  %v834_v48 = vsel %vm819_vm0, %v832_v40, %v833_v41  ;;  %v15419_v57 = vsel %vm1501_vm1, %v1514_v45, %v1515_v49  ;;  %v837_v58 = vsel %vm819_vm0, %v835_v43, %v836_v44  ;;  %v12999_v40 = vld [vmem:[#allocation8 + $0xc4] ss:$16 sps:$4 sm:$0xff]   ;;  %v13002_v41 = vld [vmem:[#allocation8 + $0xcc] ss:$16 sps:$4 sm:$0xff]   ;;  %v12997_v44 = vld [vmem:[#allocation8 + $0xc0] ss:$16 sps:$4 sm:$0xff]  }
 0x1b0   : > { %1355 = vmatprep.subr.bf16.mxu0 %v12963_v63  ;;  %1428 = vmatprep.subr.bf16.mxu1 %v12966_v1  ;;  %v15407_v53 = vpack.c.bf16 %v834_v48, %v831_v23  ;;  %v761_v63 = vunpack.c.l.bf16 %v15416_v56  ;;  %v12987_v1 = vld [vmem:[#allocation8 + $0x84] ss:$16 sps:$4 sm:$0xff]   ;;  %v15431_v12 = vpack.c.bf16 %v837_v58, %v834_v48  ;;  %v12996_v23 = vld [vmem:[#allocation8 + $0xac] ss:$16 sps:$4 sm:$0xff]   ;;  %v13000_v45 = vld [vmem:[#allocation8 + $0xc8] ss:$16 sps:$4 sm:$0xff]   ;;  %p14637_p0 = pnand %p14636_p8, %p17011_p11 }
 0x1b1   : > { %v13003_v48 = vld [vmem:[#allocation8 + $0xe0] ss:$16 sps:$4 sm:$0xff]   ;;  %v13006_v49 = vld [vmem:[#allocation8 + $0xe8] ss:$16 sps:$4 sm:$0xff]   ;;  %s14814_s27 = smov [#allocation24]  }
 0x1b2   : > { %1082 = vmatmul.mubr.bf16.vlgmr.msra.gmra.mrb[0].mxu0 %v852_v8  ;;  %1155 = vmatmul.mubr.bf16.vlgmr.msra.gmra.mrb[0].mxu1 %v852_v8  ;;  %v1518_v8 = vrot.slane %v758_v35, 2  ;;  %v1523_v25 = vrot.slane %v761_v63, 2  ;;  %p14638_p12 = pneg %p14637_p0  ;;  %s14639_s13 = sshll.u32 %s14814_s27, 4  ;;  %s14640_s13 = int_to_ptr.vmem [resolvable:$false] %s14639_s13 }
 0x1b3   : > { %1356 = vmatpush1.bf16.msra.mxu0 %v12961_v9  ;;  %1429 = vmatpush1.bf16.msra.mxu1 %v12964_v10  ;;  %v15427_v9 = vcombine.low %v15387_v26, %v15412_v54  ;;  %v838_v10 = vrot.slane %v759_v60, 1  ;;  %v13021_v60 = vld [vmem:[#allocation8 + $0x22c] ss:$16 sps:$4 sm:$0xff]   ;;  %p14642_p13 = scmp.lt.s32.totalorder %s16657_s22, %s14640_s13 }
 0x1b4   : > { %1357 = vmatprep.subr.bf16.mxu0 %v12969_v13  ;;  %1430 = vmatprep.subr.bf16.mxu1 %v12972_v14  ;;  %v12985_v13 = vld [vmem:[#allocation8 + $0x80] ss:$16 sps:$4 sm:$0xff]   ;;  %v841_v14 = vrot.slane %v761_v63, 1  ;;  %v15434_v15 = vsel %vm1501_vm1, %v1517_v52, %v1518_v8  ;;  %v10939_v52 = vcombine.low %v15346_v27, %v15350_v31  ;;  %v13019_v63 = vld [vmem:[#allocation8 + $0x228] ss:$16 sps:$4 sm:$0xff]   ;;  %v15469_v27 = vcombine.low %v15354_v33, %v15371_v4 }
 0x1b5   : > { %1091 = vmatprep.mubr.bf16.mxu0 %v14811_v0  ;;  %1164 = vmatprep.mubr.bf16.mxu1 %v14811_v0  ;;  %v13023_v31 = vld [vmem:[#allocation8 + $0x240] ss:$16 sps:$4 sm:$0xff]   ;;  %v15473_v8 = vpack.c.bf16 %v15419_v57, %v15395_v36  ;;  %v13032_v4 = vld [vmem:[#allocation8 + $0x268] ss:$16 sps:$4 sm:$0xff]   ;;  %v15481_v36 = vcombine.low %v15383_v24, %v15387_v26 }
 0x1b6   : > { %v15449_v35 = vsel %vm819_vm0, %v841_v14, %v842_v19  ;;  %v13029_v33 = vld [vmem:[#allocation8 + $0x260] ss:$16 sps:$4 sm:$0xff]   ;;  %v13041_v14 = vld [vmem:[#allocation8 + $0x28c] ss:$16 sps:$4 sm:$0xff]   ;;  %v13045_v26 = vld [vmem:[#allocation8 + $0x2a8] ss:$16 sps:$4 sm:$0xff]  }
 0x1b7   : > { %1358 = vmatpush1.bf16.msra.mxu0 %v12967_v17  ;;  %1431 = vmatpush1.bf16.msra.mxu1 %v12970_v18  ;;  %v12988_v17 = vld [vmem:[#allocation8 + $0x88] ss:$16 sps:$4 sm:$0xff]   ;;  %v840_v18 = vsel %vm819_vm0, %v838_v10, %v839_v11  ;;  %v13031_v10 = vld [vmem:[#allocation8 + $0x264] ss:$16 sps:$4 sm:$0xff]   ;;  %v13034_v11 = vld [vmem:[#allocation8 + $0x26c] ss:$16 sps:$4 sm:$0xff]  }
 0x1b8   : > { %1359 = vmatprep.subr.bf16.mxu0 %v12975_v20  ;;  %1432 = vmatprep.subr.bf16.mxu1 %v12978_v21  ;;  %v15439_v20 = vpack.c.bf16 %v15434_v15, %v15419_v57  ;;  %v1521_v21 = vrot.slane %v760_v61, 2  ;;  %v15441_v28 = vpack.c.bf16 %v840_v18, %v837_v58  ;;  %v15457_v43 = vpack.c.bf16 %v15449_v35, %v840_v18  ;;  %v13013_v58 = vld [vmem:[#allocation8 + $0x208] ss:$16 sps:$4 sm:$0xff]   ;;  %v13016_v61 = vld [vmem:[#allocation8 + $0x220] ss:$16 sps:$4 sm:$0xff]  }
 0x1b9   : > { %v13036_v57 = vld [vmem:[#allocation8 + $0x280] ss:$16 sps:$4 sm:$0xff]   ;;  %v13044_v18 = vld [vmem:[#allocation8 + $0x2a4] ss:$16 sps:$4 sm:$0xff]   ;;  %v13047_v19 = vld [vmem:[#allocation8 + $0x2ac] ss:$16 sps:$4 sm:$0xff]  }
 0x1ba   : > { %1092 = vmatmul.mubr.bf16.gmra.mrb[4].mxu0 %v15401_v38  ;;  %1165 = vmatmul.mubr.bf16.gmra.mrb[4].mxu1 %v15401_v38  ;;  %v15444_v29 = vsel %vm1501_vm1, %v1520_v16, %v1521_v21  ;;  %v13039_v16 = vld [vmem:[#allocation8 + $0x288] ss:$16 sps:$4 sm:$0xff]   ;;  %v13042_v24 = vld [vmem:[#allocation8 + $0x2a0] ss:$16 sps:$4 sm:$0xff]   ;;  %v13051_v21 = vld [vmem:[#allocation8 + $0x2c4] ss:$16 sps:$4 sm:$0xff]  }
 0x1bb   : > { %1360 = vmatpush1.bf16.msra.mxu0 %v12973_v34  ;;  %1433 = vmatpush1.bf16.msra.mxu1 %v12976_v39  ;;  %v12994_v34 = vld [vmem:[#allocation8 + $0xa8] ss:$16 sps:$4 sm:$0xff]   ;;  %v15452_v39 = vsel %vm1501_vm1, %v1523_v25, %v1524_v30  ;;  %v13057_v30 = vld [vmem:[#allocation8 + $0x2e4] ss:$16 sps:$4 sm:$0xff]  }
 0x1bc   : > { %1361 = vmatprep.subr.bf16.mxu0 %v12981_v46  ;;  %1434 = vmatprep.subr.bf16.mxu1 %v12984_v47  ;;  %v13005_v46 = vld [vmem:[#allocation8 + $0xe4] ss:$16 sps:$4 sm:$0xff]   ;;  %v13008_v47 = vld [vmem:[#allocation8 + $0xec] ss:$16 sps:$4 sm:$0xff]   ;;  %v13052_v25 = vld [vmem:[#allocation8 + $0x2c8] ss:$16 sps:$4 sm:$0xff]  }
 0x1bd   : > { %1101 = vmatprep.mubr.bf16.mxu0 %v14811_v0  ;;  %1174 = vmatprep.mubr.bf16.mxu1 %v14811_v0 }
 0x1bf   : > { %1362 = vmatpush1.bf16.msra.mxu0 %v12979_v50  ;;  %1435 = vmatpush1.bf16.msra.mxu1 %v12982_v51  ;;  %v13012_v50 = vld [vmem:[#allocation8 + $0x204] ss:$16 sps:$4 sm:$0xff]   ;;  %v13015_v51 = vld [vmem:[#allocation8 + $0x20c] ss:$16 sps:$4 sm:$0xff]  }
 0x1c0   : > { %1363 = vmatprep.subr.bf16.mxu0 %v12987_v1  ;;  %1436 = vmatprep.subr.bf16.mxu1 %v12990_v3  ;;  %v13025_v1 = vld [vmem:[#allocation8 + $0x244] ss:$16 sps:$4 sm:$0xff]   ;;  %v13028_v3 = vld [vmem:[#allocation8 + $0x24c] ss:$16 sps:$4 sm:$0xff]  }
 0x1c2   : > { %1102 = vmatmul.mubr.bf16.gmra.mrb[8].mxu0 %v15431_v12  ;;  %1175 = vmatmul.mubr.bf16.gmra.mrb[8].mxu1 %v15431_v12 }
 0x1c3   : > { %1364 = vmatpush1.bf16.msra.mxu0 %v12985_v13  ;;  %1437 = vmatpush1.bf16.msra.mxu1 %v12988_v17  ;;  %v13038_v13 = vld [vmem:[#allocation8 + $0x284] ss:$16 sps:$4 sm:$0xff]   ;;  %v15485_v17 = vpack.c.bf16 %v15444_v29, %v15434_v15  ;;  %v15493_v15 = vcombine.low %v15412_v54, %v15416_v56 }
 0x1c4   : > { %1365 = vmatprep.subr.bf16.mxu0 %v12993_v22  ;;  %1438 = vmatprep.subr.bf16.mxu1 %v12996_v23  ;;  %v13054_v22 = vld [vmem:[#allocation8 + $0x2cc] ss:$16 sps:$4 sm:$0xff]   ;;  %v13049_v23 = vld [vmem:[#allocation8 + $0x2c0] ss:$16 sps:$4 sm:$0xff]   ;;  %v13063_v54 = vld [vmem:[#allocation8 + $0x304] ss:$16 sps:$4 sm:$0xff]  }
 0x1c5   : > { %1111 = vmatprep.mubr.bf16.mxu0 %v14811_v0  ;;  %1184 = vmatprep.mubr.bf16.mxu1 %v14811_v0 }
 0x1c7   : > { %1366 = vmatpush1.bf16.msra.mxu0 %v12991_v32  ;;  %1439 = vmatpush1.bf16.msra.mxu1 %v12994_v34  ;;  %v13060_v32 = vld [vmem:[#allocation8 + $0x2ec] ss:$16 sps:$4 sm:$0xff]   ;;  %v13055_v34 = vld [vmem:[#allocation8 + $0x2e0] ss:$16 sps:$4 sm:$0xff]  }
 0x1c8   : > { %1367 = vmatprep.subr.bf16.mxu0 %v12999_v40  ;;  %1440 = vmatprep.subr.bf16.mxu1 %v13002_v41  ;;  %v13058_v40 = vld [vmem:[#allocation8 + $0x2e8] ss:$16 sps:$4 sm:$0xff]   ;;  %v13066_v41 = vld [vmem:[#allocation8 + $0x30c] ss:$16 sps:$4 sm:$0xff]  }
 0x1ca   : > { %1112 = vmatmul.mubr.bf16.gmra.mrb[12].mxu0 %v15457_v43  ;;  %1185 = vmatmul.mubr.bf16.gmra.mrb[12].mxu1 %v15457_v43 }
 0x1cb   : > { %1368 = vmatpush1.bf16.msra.mxu0 %v12997_v44  ;;  %1441 = vmatpush1.bf16.msra.mxu1 %v13000_v45  ;;  %v13061_v44 = vld [vmem:[#allocation8 + $0x300] ss:$16 sps:$4 sm:$0xff]   ;;  %v13064_v45 = vld [vmem:[#allocation8 + $0x308] ss:$16 sps:$4 sm:$0xff]  }
 0x1cc   : > { %1369 = vmatprep.subr.bf16.mxu0 %v13005_v46  ;;  %1442 = vmatprep.subr.bf16.mxu1 %v13008_v47  ;;  %v13069_v46 = vld [vmem:[#allocation8 + $0x324] ss:$16 sps:$4 sm:$0xff]   ;;  %v13072_v47 = vld [vmem:[#allocation8 + $0x32c] ss:$16 sps:$4 sm:$0xff]  }
 0x1cd   : > { %1387 = vmatprep.mubr.bf16.mxu0 %v14811_v0  ;;  %1460 = vmatprep.mubr.bf16.mxu1 %v14811_v0 }
 0x1cf   : > { %1370 = vmatpush1.bf16.msra.mxu0 %v13003_v48  ;;  %1443 = vmatpush1.bf16.msra.mxu1 %v13006_v49  ;;  %v13067_v48 = vld [vmem:[#allocation8 + $0x320] ss:$16 sps:$4 sm:$0xff]   ;;  %v13070_v49 = vld [vmem:[#allocation8 + $0x328] ss:$16 sps:$4 sm:$0xff]  }
 0x1d0   : > { %1731 = vmatprep.subr.bf16.mxu0 %v13012_v50  ;;  %1804 = vmatprep.subr.bf16.mxu1 %v13015_v51  ;;  %v13075_v50 = vld [vmem:[#allocation8 + $0x344] ss:$16 sps:$4 sm:$0xff]   ;;  %v13078_v51 = vld [vmem:[#allocation8 + $0x34c] ss:$16 sps:$4 sm:$0xff]  }
 0x1d2   : > { %1388 = vmatmul.mubr.bf16.vlgmr.msra.gmra.mrb[0].mxu0 %v10939_v52  ;;  %1461 = vmatmul.mubr.bf16.vlgmr.msra.gmra.mrb[0].mxu1 %v10939_v52  ;;  %v13073_v52 = vld [vmem:[#allocation8 + $0x340] ss:$16 sps:$4 sm:$0xff]  }
 0x1d3   : > { %1732 = vmatpush1.bf16.msra.mxu0 %v13010_v55  ;;  %1805 = vmatpush1.bf16.msra.mxu1 %v13013_v58  ;;  %v13076_v55 = vld [vmem:[#allocation8 + $0x348] ss:$16 sps:$4 sm:$0xff]   ;;  %v13081_v58 = vld [vmem:[#allocation8 + $0x364] ss:$16 sps:$4 sm:$0xff]  }
 0x1d4   : > { %1733 = vmatprep.subr.bf16.mxu0 %v13018_v59  ;;  %1806 = vmatprep.subr.bf16.mxu1 %v13021_v60  ;;  %v13079_v59 = vld [vmem:[#allocation8 + $0x360] ss:$16 sps:$4 sm:$0xff]   ;;  %v13082_v60 = vld [vmem:[#allocation8 + $0x368] ss:$16 sps:$4 sm:$0xff]  }
 0x1d5   : > { %1397 = vmatprep.mubr.bf16.mxu0 %v14811_v0  ;;  %1470 = vmatprep.mubr.bf16.mxu1 %v14811_v0 }
 0x1d7   : > { %1734 = vmatpush1.bf16.msra.mxu0 %v13016_v61  ;;  %1807 = vmatpush1.bf16.msra.mxu1 %v13019_v63  ;;  %v13087_v61 = vld [vmem:[#allocation8 + $0x384] ss:$16 sps:$4 sm:$0xff]   ;;  %v13090_v63 = vld [vmem:[#allocation8 + $0x38c] ss:$16 sps:$4 sm:$0xff]  }
 0x1d8   : > { %1735 = vmatprep.subr.bf16.mxu0 %v13025_v1  ;;  %1808 = vmatprep.subr.bf16.mxu1 %v13028_v3  ;;  %v13085_v1 = vld [vmem:[#allocation8 + $0x380] ss:$16 sps:$4 sm:$0xff]   ;;  %v13088_v3 = vld [vmem:[#allocation8 + $0x388] ss:$16 sps:$4 sm:$0xff]  }
 0x1da   : > { %1398 = vmatmul.mubr.bf16.gmra.mrb[4].mxu0 %v15469_v27  ;;  %1471 = vmatmul.mubr.bf16.gmra.mrb[4].mxu1 %v15469_v27 }
 0x1db   : > { %1736 = vmatpush1.bf16.msra.mxu0 %v13023_v31  ;;  %1809 = vmatpush1.bf16.msra.mxu1 %v13026_v5  ;;  %v13093_v31 = vld [vmem:[#allocation8 + $0x3a4] ss:$16 sps:$4 sm:$0xff]   ;;  %v13096_v5 = vld [vmem:[#allocation8 + $0x3ac] ss:$16 sps:$4 sm:$0xff]  }
 0x1dc   : > { %1737 = vmatprep.subr.bf16.mxu0 %v13031_v10  ;;  %1810 = vmatprep.subr.bf16.mxu1 %v13034_v11  ;;  %v13091_v10 = vld [vmem:[#allocation8 + $0x3a0] ss:$16 sps:$4 sm:$0xff]   ;;  %v13094_v11 = vld [vmem:[#allocation8 + $0x3a8] ss:$16 sps:$4 sm:$0xff]  }
 0x1dd   : > { %1407 = vmatprep.mubr.bf16.mxu0 %v14811_v0  ;;  %1480 = vmatprep.mubr.bf16.mxu1 %v14811_v0 }
 0x1df   : > { %1738 = vmatpush1.bf16.msra.mxu0 %v13029_v33  ;;  %1811 = vmatpush1.bf16.msra.mxu1 %v13032_v4  ;;  %v13099_v33 = vld [vmem:[#allocation8 + $0x3c4] ss:$16 sps:$4 sm:$0xff]   ;;  %v13102_v4 = vld [vmem:[#allocation8 + $0x3cc] ss:$16 sps:$4 sm:$0xff]  }
 0x1e0   : > { %1739 = vmatprep.subr.bf16.mxu0 %v13038_v13  ;;  %1812 = vmatprep.subr.bf16.mxu1 %v13041_v14  ;;  %v15513_v13 = vpack.c.bf16 %v15452_v39, %v15444_v29  ;;  %v13097_v14 = vld [vmem:[#allocation8 + $0x3c0] ss:$16 sps:$4 sm:$0xff]   ;;  %v13115_v29 = vld [vmem:[#allocation8 + $0x40c] ss:$16 sps:$4 sm:$0xff]  }
 0x1e2   : > { %1408 = vmatmul.mubr.bf16.gmra.mrb[8].mxu0 %v15481_v36  ;;  %1481 = vmatmul.mubr.bf16.gmra.mrb[8].mxu1 %v15481_v36 }
 0x1e3   : > { %1740 = vmatpush1.bf16.msra.mxu0 %v13036_v57  ;;  %1813 = vmatpush1.bf16.msra.mxu1 %v13039_v16  ;;  %v13100_v57 = vld [vmem:[#allocation8 + $0x3c8] ss:$16 sps:$4 sm:$0xff]   ;;  %v13105_v16 = vld [vmem:[#allocation8 + $0x3e4] ss:$16 sps:$4 sm:$0xff]  }
 0x1e4   : > { %1741 = vmatprep.subr.bf16.mxu0 %v13044_v18  ;;  %1814 = vmatprep.subr.bf16.mxu1 %v13047_v19  ;;  %v13108_v18 = vld [vmem:[#allocation8 + $0x3ec] ss:$16 sps:$4 sm:$0xff]   ;;  %v13103_v19 = vld [vmem:[#allocation8 + $0x3e0] ss:$16 sps:$4 sm:$0xff]  }
 0x1e5   : > { %1417 = vmatprep.mubr.bf16.mxu0 %v14811_v0  ;;  %1490 = vmatprep.mubr.bf16.mxu1 %v14811_v0 }
 0x1e7   : > { %1742 = vmatpush1.bf16.msra.mxu0 %v13042_v24  ;;  %1815 = vmatpush1.bf16.msra.mxu1 %v13045_v26  ;;  %v13106_v24 = vld [vmem:[#allocation8 + $0x3e8] ss:$16 sps:$4 sm:$0xff]   ;;  %v13112_v26 = vld [vmem:[#allocation8 + $0x404] ss:$16 sps:$4 sm:$0xff]  }
 0x1e8   : > { %1743 = vmatprep.subr.bf16.mxu0 %v13051_v21  ;;  %1816 = vmatprep.subr.bf16.mxu1 %v13054_v22  ;;  %v13110_v21 = vld [vmem:[#allocation8 + $0x400] ss:$16 sps:$4 sm:$0xff]   ;;  %v13113_v22 = vld [vmem:[#allocation8 + $0x408] ss:$16 sps:$4 sm:$0xff]  }
 0x1ea   : > { %1418 = vmatmul.mubr.bf16.gmra.mrb[12].mxu0 %v15493_v15  ;;  %1491 = vmatmul.mubr.bf16.gmra.mrb[12].mxu1 %v15493_v15 }
 0x1eb   : > { %1744 = vmatpush1.bf16.msra.mxu0 %v13049_v23  ;;  %1817 = vmatpush1.bf16.msra.mxu1 %v13052_v25  ;;  %v13118_v23 = vld [vmem:[#allocation8 + $0x424] ss:$16 sps:$4 sm:$0xff]   ;;  %v13121_v25 = vld [vmem:[#allocation8 + $0x42c] ss:$16 sps:$4 sm:$0xff]  }
 0x1ec   : > { %1745 = vmatprep.subr.bf16.mxu0 %v13057_v30  ;;  %1818 = vmatprep.subr.bf16.mxu1 %v13060_v32  ;;  %v13116_v30 = vld [vmem:[#allocation8 + $0x420] ss:$16 sps:$4 sm:$0xff]   ;;  %v13119_v32 = vld [vmem:[#allocation8 + $0x428] ss:$16 sps:$4 sm:$0xff]  }
 0x1ed   : > { %1763 = vmatprep.mubr.bf16.mxu0 %v14811_v0  ;;  %1836 = vmatprep.mubr.bf16.mxu1 %v14811_v0 }
 0x1ef   : > { %1746 = vmatpush1.bf16.msra.mxu0 %v13055_v34  ;;  %1819 = vmatpush1.bf16.msra.mxu1 %v13058_v40  ;;  %v13125_v34 = vld [vmem:[#allocation8 + $0x444] ss:$16 sps:$4 sm:$0xff]   ;;  %v13128_v40 = vld [vmem:[#allocation8 + $0x44c] ss:$16 sps:$4 sm:$0xff]  }
 0x1f0   : > { %2106 = vmatprep.subr.bf16.mxu0 %v13063_v54  ;;  %2179 = vmatprep.subr.bf16.mxu1 %v13066_v41  ;;  %v13123_v54 = vld [vmem:[#allocation8 + $0x440] ss:$16 sps:$4 sm:$0xff]   ;;  %v13126_v41 = vld [vmem:[#allocation8 + $0x448] ss:$16 sps:$4 sm:$0xff]  }
 0x1f2   : > { %1764 = vmatmul.mubr.bf16.vlgmr.msra.gmra.mrb[0].mxu0 %v15367_v2  ;;  %1837 = vmatmul.mubr.bf16.vlgmr.msra.gmra.mrb[0].mxu1 %v15367_v2  ;;  %v13084_v2 = vld [vmem:[#allocation8 + $0x36c] ss:$16 sps:$4 sm:$0xff]  }
 0x1f3   : > { %2107 = vmatpush1.bf16.msra.mxu0 %v13061_v44  ;;  %2180 = vmatpush1.bf16.msra.mxu1 %v13064_v45  ;;  %v13131_v44 = vld [vmem:[#allocation8 + $0x464] ss:$16 sps:$4 sm:$0xff]   ;;  %v13129_v45 = vld [vmem:[#allocation8 + $0x460] ss:$16 sps:$4 sm:$0xff]  }
 0x1f4   : > { %2108 = vmatprep.subr.bf16.mxu0 %v13069_v46  ;;  %2181 = vmatprep.subr.bf16.mxu1 %v13072_v47  ;;  %v13132_v46 = vld [vmem:[#allocation8 + $0x468] ss:$16 sps:$4 sm:$0xff]   ;;  %v13138_v47 = vld [vmem:[#allocation8 + $0x484] ss:$16 sps:$4 sm:$0xff]  }
 0x1f5   : > { %1773 = vmatprep.mubr.bf16.mxu0 %v14811_v0  ;;  %1846 = vmatprep.mubr.bf16.mxu1 %v14811_v0 }
 0x1f7   : > { %2109 = vmatpush1.bf16.msra.mxu0 %v13067_v48  ;;  %2182 = vmatpush1.bf16.msra.mxu1 %v13070_v49  ;;  %v13141_v48 = vld [vmem:[#allocation8 + $0x48c] ss:$16 sps:$4 sm:$0xff]   ;;  %v13136_v49 = vld [vmem:[#allocation8 + $0x480] ss:$16 sps:$4 sm:$0xff]  }
 0x1f8   : > { %2110 = vmatprep.subr.bf16.mxu0 %v13075_v50  ;;  %2183 = vmatprep.subr.bf16.mxu1 %v13078_v51  ;;  %v13139_v50 = vld [vmem:[#allocation8 + $0x488] ss:$16 sps:$4 sm:$0xff]   ;;  %v13144_v51 = vld [vmem:[#allocation8 + $0x4a4] ss:$16 sps:$4 sm:$0xff]  }
 0x1fa   : > { %1774 = vmatmul.mubr.bf16.gmra.mrb[4].mxu0 %v15404_v42  ;;  %1847 = vmatmul.mubr.bf16.gmra.mrb[4].mxu1 %v15404_v42 }
 0x1fb   : > { %2111 = vmatpush1.bf16.msra.mxu0 %v13073_v52  ;;  %2184 = vmatpush1.bf16.msra.mxu1 %v13076_v55  ;;  %v13142_v52 = vld [vmem:[#allocation8 + $0x4a0] ss:$16 sps:$4 sm:$0xff]   ;;  %v13145_v55 = vld [vmem:[#allocation8 + $0x4a8] ss:$16 sps:$4 sm:$0xff]  }
 0x1fc   : > { %2112 = vmatprep.subr.bf16.mxu0 %v13081_v58  ;;  %2185 = vmatprep.subr.bf16.mxu1 %v13084_v2  ;;  %v15530_v58 = vld [vmem:[%s15343_s7 + $0x40] sm:$0xf]  ;;  %v13151_v2 = vld [vmem:[#allocation8 + $0x4c4] ss:$16 sps:$4 sm:$0xff]  }
 0x1fd   : > { %1783 = vmatprep.mubr.bf16.mxu0 %v14811_v0  ;;  %1856 = vmatprep.mubr.bf16.mxu1 %v14811_v0 }
 0x1ff   : > { %2113 = vmatpush1.bf16.msra.mxu0 %v13079_v59  ;;  %2186 = vmatpush1.bf16.msra.mxu1 %v13082_v60  ;;  %v13154_v59 = vld [vmem:[#allocation8 + $0x4cc] ss:$16 sps:$4 sm:$0xff]   ;;  %v11042_v60 = vcombine.low %v15416_v56, %v15530_v58  ;;  %v13161_v56 = vld [vmem:[#allocation8 + $0x500] ss:$16 sps:$4 sm:$0xff]  }
 0x200   : > { %2114 = vmatprep.subr.bf16.mxu0 %v13087_v61  ;;  %2187 = vmatprep.subr.bf16.mxu1 %v13090_v63  ;;  %v13149_v61 = vld [vmem:[#allocation8 + $0x4c0] ss:$16 sps:$4 sm:$0xff]   ;;  %v13152_v63 = vld [vmem:[#allocation8 + $0x4c8] ss:$16 sps:$4 sm:$0xff]  }
 0x202   : > { %1784 = vmatmul.mubr.bf16.gmra.mrb[8].mxu0 %v15439_v20  ;;  %1857 = vmatmul.mubr.bf16.gmra.mrb[8].mxu1 %v15439_v20 }
 0x203   : > { %2115 = vmatpush1.bf16.msra.mxu0 %v13085_v1  ;;  %2188 = vmatpush1.bf16.msra.mxu1 %v13088_v3  ;;  %v13160_v1 = vld [vmem:[#allocation8 + $0x4ec] ss:$16 sps:$4 sm:$0xff]   ;;  %v13155_v3 = vld [vmem:[#allocation8 + $0x4e0] ss:$16 sps:$4 sm:$0xff]  }
 0x204   : > { %2116 = vmatprep.subr.bf16.mxu0 %v13093_v31  ;;  %2189 = vmatprep.subr.bf16.mxu1 %v13096_v5  ;;  %v13158_v31 = vld [vmem:[#allocation8 + $0x4e8] ss:$16 sps:$4 sm:$0xff]   ;;  %v13163_v5 = vld [vmem:[#allocation8 + $0x504] ss:$16 sps:$4 sm:$0xff]  }
 0x205   : > { %1793 = vmatprep.mubr.bf16.mxu0 %v14811_v0  ;;  %1866 = vmatprep.mubr.bf16.mxu1 %v14811_v0 }
 0x207   : > { %2117 = vmatpush1.bf16.msra.mxu0 %v13091_v10  ;;  %2190 = vmatpush1.bf16.msra.mxu1 %v13094_v11  ;;  %v13166_v10 = vld [vmem:[#allocation8 + $0x50c] ss:$16 sps:$4 sm:$0xff]   ;;  %v13164_v11 = vld [vmem:[#allocation8 + $0x508] ss:$16 sps:$4 sm:$0xff]  }
 0x208   : > { %2118 = vmatprep.subr.bf16.mxu0 %v13099_v33  ;;  %2191 = vmatprep.subr.bf16.mxu1 %v13102_v4  ;;  %v13169_v33 = vld [vmem:[#allocation8 + $0x524] ss:$16 sps:$4 sm:$0xff]   ;;  %v13172_v4 = vld [vmem:[#allocation8 + $0x52c] ss:$16 sps:$4 sm:$0xff]  }
 0x20a   : > { %1794 = vmatmul.mubr.bf16.gmra.mrb[12].mxu0 %v15513_v13  ;;  %1867 = vmatmul.mubr.bf16.gmra.mrb[12].mxu1 %v15513_v13 }
 0x20b   : > { %2119 = vmatpush1.bf16.msra.mxu0 %v13097_v14  ;;  %2192 = vmatpush1.bf16.msra.mxu1 %v13100_v57  ;;  %v13167_v14 = vld [vmem:[#allocation8 + $0x520] ss:$16 sps:$4 sm:$0xff]   ;;  %v13170_v57 = vld [vmem:[#allocation8 + $0x528] ss:$16 sps:$4 sm:$0xff]  }
 0x20c   : > { %2120 = vmatprep.subr.bf16.mxu0 %v13105_v16  ;;  %2193 = vmatprep.subr.bf16.mxu1 %v13108_v18  ;;  %v13175_v16 = vld [vmem:[#allocation8 + $0x544] ss:$16 sps:$4 sm:$0xff]   ;;  %v13178_v18 = vld [vmem:[#allocation8 + $0x54c] ss:$16 sps:$4 sm:$0xff]  }
 0x20d   : > { %2138 = vmatprep.mubr.bf16.mxu0 %v14811_v0  ;;  %2211 = vmatprep.mubr.bf16.mxu1 %v14811_v0 }
 0x20f   : > { %2121 = vmatpush1.bf16.msra.mxu0 %v13103_v19  ;;  %2194 = vmatpush1.bf16.msra.mxu1 %v13106_v24  ;;  %v13173_v19 = vld [vmem:[#allocation8 + $0x540] ss:$16 sps:$4 sm:$0xff]   ;;  %v13176_v24 = vld [vmem:[#allocation8 + $0x548] ss:$16 sps:$4 sm:$0xff]  }
 0x210   : > { %2487 = vmatprep.subr.bf16.mxu0 %v13112_v26  ;;  %2560 = vmatprep.subr.bf16.mxu1 %v13115_v29  ;;  %v13181_v26 = vld [vmem:[#allocation8 + $0x564] ss:$16 sps:$4 sm:$0xff]   ;;  %v13184_v29 = vld [vmem:[#allocation8 + $0x56c] ss:$16 sps:$4 sm:$0xff]  }
 0x212   : > { %2139 = vmatmul.mubr.bf16.vlgmr.msra.gmra.mrb[0].mxu0 %v15378_v7  ;;  %2212 = vmatmul.mubr.bf16.vlgmr.msra.gmra.mrb[0].mxu1 %v15378_v7  ;;  %v13134_v7 = vld [vmem:[#allocation8 + $0x46c] ss:$16 sps:$4 sm:$0xff]  }
 0x213   : > { %2488 = vmatpush1.bf16.msra.mxu0 %v13110_v21  ;;  %2561 = vmatpush1.bf16.msra.mxu1 %v13113_v22  ;;  %v13179_v21 = vld [vmem:[#allocation8 + $0x560] ss:$16 sps:$4 sm:$0xff]   ;;  %v763_v22 = vunpack.c.l.bf16 %v15530_v58 }
 0x214   : > { %2489 = vmatprep.subr.bf16.mxu0 %v13118_v23  ;;  %2562 = vmatprep.subr.bf16.mxu1 %v13121_v25  ;;  %v13182_v23 = vld [vmem:[#allocation8 + $0x568] ss:$16 sps:$4 sm:$0xff]  }
 0x215   : > { %2148 = vmatprep.mubr.bf16.mxu0 %v14811_v0  ;;  %2221 = vmatprep.mubr.bf16.mxu1 %v14811_v0 }
 0x217   : > { %2490 = vmatpush1.bf16.msra.mxu0 %v13116_v30  ;;  %2563 = vmatpush1.bf16.msra.mxu1 %v13119_v32  ;;  %v13187_v30 = vld [vmem:[#allocation8 + $0x584] ss:$16 sps:$4 sm:$0xff]   ;;  %v13190_v32 = vld [vmem:[#allocation8 + $0x58c] ss:$16 sps:$4 sm:$0xff]  }
 0x218   : > { %2491 = vmatprep.subr.bf16.mxu0 %v13125_v34  ;;  %2564 = vmatprep.subr.bf16.mxu1 %v13128_v40  ;;  %v13185_v34 = vld [vmem:[#allocation8 + $0x580] ss:$16 sps:$4 sm:$0xff]   ;;  %v2286_v40 = vrot.slane %v763_v22, 1 }
 0x21a   : > { %2149 = vmatmul.mubr.bf16.gmra.mrb[4].mxu0 %v15399_v37  ;;  %2222 = vmatmul.mubr.bf16.gmra.mrb[4].mxu1 %v15399_v37  ;;  %v13147_v37 = vld [vmem:[#allocation8 + $0x4ac] ss:$16 sps:$4 sm:$0xff]  }
 0x21b   : > { %2492 = vmatpush1.bf16.msra.mxu0 %v13123_v54  ;;  %2565 = vmatpush1.bf16.msra.mxu1 %v13126_v41  ;;  %v13193_v41 = vld [vmem:[#allocation8 + $0x5a4] ss:$16 sps:$4 sm:$0xff]  }
 0x21c   : > { %2493 = vmatprep.subr.bf16.mxu0 %v13131_v44  ;;  %2566 = vmatprep.subr.bf16.mxu1 %v13134_v7  ;;  %v13196_v44 = vld [vmem:[#allocation8 + $0x5ac] ss:$16 sps:$4 sm:$0xff]   ;;  %v13191_v7 = vld [vmem:[#allocation8 + $0x5a0] ss:$16 sps:$4 sm:$0xff]  }
 0x21d   : > { %2158 = vmatprep.mubr.bf16.mxu0 %v14811_v0  ;;  %2231 = vmatprep.mubr.bf16.mxu1 %v14811_v0 }
 0x21f   : > { %2494 = vmatpush1.bf16.msra.mxu0 %v13129_v45  ;;  %2567 = vmatpush1.bf16.msra.mxu1 %v13132_v46  ;;  %v13194_v45 = vld [vmem:[#allocation8 + $0x5a8] ss:$16 sps:$4 sm:$0xff]  }
 0x220   : > { %2495 = vmatprep.subr.bf16.mxu0 %v13138_v47  ;;  %2568 = vmatprep.subr.bf16.mxu1 %v13141_v48  ;;  %v13199_v47 = vld [vmem:[#allocation8 + $0x5c4] ss:$16 sps:$4 sm:$0xff]   ;;  %v13202_v48 = vld [vmem:[#allocation8 + $0x5cc] ss:$16 sps:$4 sm:$0xff]  }
 0x222   : > { %2159 = vmatmul.mubr.bf16.gmra.mrb[8].mxu0 %v15427_v9  ;;  %2232 = vmatmul.mubr.bf16.gmra.mrb[8].mxu1 %v15427_v9  ;;  %v13157_v9 = vld [vmem:[#allocation8 + $0x4e4] ss:$16 sps:$4 sm:$0xff]  }
 0x223   : > { %2496 = vmatpush1.bf16.msra.mxu0 %v13136_v49  ;;  %2569 = vmatpush1.bf16.msra.mxu1 %v13139_v50  ;;  %v13197_v50 = vld [vmem:[#allocation8 + $0x5c0] ss:$16 sps:$4 sm:$0xff]  }
 0x224   : > { %2497 = vmatprep.subr.bf16.mxu0 %v13144_v51  ;;  %2570 = vmatprep.subr.bf16.mxu1 %v13147_v37  ;;  %v13205_v51 = vld [vmem:[#allocation8 + $0x5e4] ss:$16 sps:$4 sm:$0xff]   ;;  %v13208_v37 = vld [vmem:[#allocation8 + $0x5ec] ss:$16 sps:$4 sm:$0xff]  }
 0x225   : > { %2168 = vmatprep.mubr.bf16.mxu0 %v14811_v0  ;;  %2241 = vmatprep.mubr.bf16.mxu1 %v14811_v0 }
 0x227   : > { %2498 = vmatpush1.bf16.msra.mxu0 %v13142_v52  ;;  %2571 = vmatpush1.bf16.msra.mxu1 %v13145_v55  ;;  %v13203_v52 = vld [vmem:[#allocation8 + $0x5e0] ss:$16 sps:$4 sm:$0xff]   ;;  %v13206_v55 = vld [vmem:[#allocation8 + $0x5e8] ss:$16 sps:$4 sm:$0xff]  }
 0x228   : > { %2499 = vmatprep.subr.bf16.mxu0 %v13151_v2  ;;  %2572 = vmatprep.subr.bf16.mxu1 %v13154_v59  ;;  %v13211_v2 = vld [vmem:[#allocation8 + $0x604] ss:$16 sps:$4 sm:$0xff]   ;;  %v13214_v59 = vld [vmem:[#allocation8 + $0x60c] ss:$16 sps:$4 sm:$0xff]  }
 0x22a   : > { %2169 = vmatmul.mubr.bf16.gmra.mrb[12].mxu0 %v11042_v60  ;;  %2242 = vmatmul.mubr.bf16.gmra.mrb[12].mxu1 %v11042_v60  ;;  %v13212_v60 = vld [vmem:[#allocation8 + $0x608] ss:$16 sps:$4 sm:$0xff]  }
 0x22b   : > { %2500 = vmatpush1.bf16.msra.mxu0 %v13149_v61  ;;  %2573 = vmatpush1.bf16.msra.mxu1 %v13152_v63  ;;  %v13217_v61 = vld [vmem:[#allocation8 + $0x624] ss:$16 sps:$4 sm:$0xff]   ;;  %v13220_v63 = vld [vmem:[#allocation8 + $0x62c] ss:$16 sps:$4 sm:$0xff]  }
 0x22c   : > { %2501 = vmatprep.subr.bf16.mxu0 %v13157_v9  ;;  %2574 = vmatprep.subr.bf16.mxu1 %v13160_v1  ;;  %v13215_v9 = vld [vmem:[#allocation8 + $0x620] ss:$16 sps:$4 sm:$0xff]   ;;  %v13218_v1 = vld [vmem:[#allocation8 + $0x628] ss:$16 sps:$4 sm:$0xff]  }
 0x22d   : > { %2519 = vmatprep.mubr.bf16.mxu0 %v14811_v0  ;;  %2592 = vmatprep.mubr.bf16.mxu1 %v14811_v0 }
 0x22f   : > { %2502 = vmatpush1.bf16.msra.mxu0 %v13155_v3  ;;  %2575 = vmatpush1.bf16.msra.mxu1 %v13158_v31  ;;  %v13223_v3 = vld [vmem:[#allocation8 + $0x644] ss:$16 sps:$4 sm:$0xff]   ;;  %v13226_v31 = vld [vmem:[#allocation8 + $0x64c] ss:$16 sps:$4 sm:$0xff]  }
 0x230   : > { %2866 = vmatprep.subr.bf16.mxu0 %v13163_v5  ;;  %2939 = vmatprep.subr.bf16.mxu1 %v13166_v10  ;;  %v13221_v5 = vld [vmem:[#allocation8 + $0x640] ss:$16 sps:$4 sm:$0xff]   ;;  %v13224_v10 = vld [vmem:[#allocation8 + $0x648] ss:$16 sps:$4 sm:$0xff]  }
 0x232   : > { %2520 = vmatmul.mubr.bf16.vlgmr.msra.gmra.mrb[0].mxu0 %v15365_v62  ;;  %2593 = vmatmul.mubr.bf16.vlgmr.msra.gmra.mrb[0].mxu1 %v15365_v62  ;;  %v15543_v62 = vld [vmem:[%s15343_s7 + $0x44] sm:$0x1] }
 0x233   : > { %2867 = vmatpush1.bf16.msra.mxu0 %v13161_v56  ;;  %2940 = vmatpush1.bf16.msra.mxu1 %v13164_v11  ;;  %v764_v25 = vunpack.c.l.bf16 %v15543_v62  ;;  %v13229_v56 = vld [vmem:[#allocation8 + $0x664] ss:$16 sps:$4 sm:$0xff]   ;;  %v13232_v11 = vld [vmem:[#allocation8 + $0x66c] ss:$16 sps:$4 sm:$0xff]   ;;  %v13245_v62 = vld [vmem:[#allocation8 + $0x6c0] ss:$16 sps:$4 sm:$0xff]  }
 0x234   : > { %2868 = vmatprep.subr.bf16.mxu0 %v13169_v33  ;;  %2941 = vmatprep.subr.bf16.mxu1 %v13172_v4  ;;  %v13230_v33 = vld [vmem:[#allocation8 + $0x668] ss:$16 sps:$4 sm:$0xff]   ;;  %v13235_v4 = vld [vmem:[#allocation8 + $0x684] ss:$16 sps:$4 sm:$0xff]  }
 0x235   : > { %2529 = vmatprep.mubr.bf16.mxu0 %v14811_v0  ;;  %2602 = vmatprep.mubr.bf16.mxu1 %v14811_v0  ;;  %v2287_v54 = vrot.slane %v764_v25, 1 }
 0x237   : > { %2869 = vmatpush1.bf16.msra.mxu0 %v13167_v14  ;;  %2942 = vmatpush1.bf16.msra.mxu1 %v13170_v57  ;;  %v15558_v46 = vsel %vm819_vm0, %v2286_v40, %v2287_v54  ;;  %v13238_v14 = vld [vmem:[#allocation8 + $0x68c] ss:$16 sps:$4 sm:$0xff]   ;;  %v13233_v57 = vld [vmem:[#allocation8 + $0x680] ss:$16 sps:$4 sm:$0xff]   ;;  %v13259_v40 = vld [vmem:[#allocation8 + $0x704] ss:$16 sps:$4 sm:$0xff]  }
 0x238   : > { %2870 = vmatprep.subr.bf16.mxu0 %v13175_v16  ;;  %2943 = vmatprep.subr.bf16.mxu1 %v13178_v18  ;;  %v2293_v49 = vpack.c.bf16 %v15558_v46, %v15449_v35  ;;  %v13209_v35 = vld [vmem:[#allocation8 + $0x600] ss:$16 sps:$4 sm:$0xff]   ;;  %v13236_v16 = vld [vmem:[#allocation8 + $0x688] ss:$16 sps:$4 sm:$0xff]   ;;  %v13241_v18 = vld [vmem:[#allocation8 + $0x6a4] ss:$16 sps:$4 sm:$0xff]  }
 0x239   : > { %v13262_v54 = vld [vmem:[#allocation8 + $0x70c] ss:$16 sps:$4 sm:$0xff]  }
 0x23a   : > { %2530 = vmatmul.mubr.bf16.gmra.mrb[4].mxu0 %v15407_v53  ;;  %2603 = vmatmul.mubr.bf16.gmra.mrb[4].mxu1 %v15407_v53  ;;  %v13188_v53 = vld [vmem:[#allocation8 + $0x588] ss:$16 sps:$4 sm:$0xff]  }
 0x23b   : > { %2871 = vmatpush1.bf16.msra.mxu0 %v13173_v19  ;;  %2944 = vmatpush1.bf16.msra.mxu1 %v13176_v24  ;;  %v13244_v19 = vld [vmem:[#allocation8 + $0x6ac] ss:$16 sps:$4 sm:$0xff]   ;;  %v2665_v24 = vrot.slane %v763_v22, 2  ;;  %v13248_v22 = vld [vmem:[#allocation8 + $0x6c8] ss:$16 sps:$4 sm:$0xff]  }
 0x23c   : > { %2872 = vmatprep.subr.bf16.mxu0 %v13181_v26  ;;  %2945 = vmatprep.subr.bf16.mxu1 %v13184_v29  ;;  %v13239_v26 = vld [vmem:[#allocation8 + $0x6a0] ss:$16 sps:$4 sm:$0xff]   ;;  %v13242_v29 = vld [vmem:[#allocation8 + $0x6a8] ss:$16 sps:$4 sm:$0xff]  }
 0x23d   : > { %2539 = vmatprep.mubr.bf16.mxu0 %v14811_v0  ;;  %2612 = vmatprep.mubr.bf16.mxu1 %v14811_v0 }
 0x23f   : > { %2873 = vmatpush1.bf16.msra.mxu0 %v13179_v21  ;;  %2946 = vmatpush1.bf16.msra.mxu1 %v13182_v23  ;;  %v13247_v21 = vld [vmem:[#allocation8 + $0x6c4] ss:$16 sps:$4 sm:$0xff]   ;;  %v13250_v23 = vld [vmem:[#allocation8 + $0x6cc] ss:$16 sps:$4 sm:$0xff]  }
 0x240   : > { %2874 = vmatprep.subr.bf16.mxu0 %v13187_v30  ;;  %2947 = vmatprep.subr.bf16.mxu1 %v13190_v32  ;;  %v13253_v32 = vld [vmem:[#allocation8 + $0x6e4] ss:$16 sps:$4 sm:$0xff]  }
 0x242   : > { %2540 = vmatmul.mubr.bf16.gmra.mrb[8].mxu0 %v15441_v28  ;;  %2613 = vmatmul.mubr.bf16.gmra.mrb[8].mxu1 %v15441_v28  ;;  %v13200_v28 = vld [vmem:[#allocation8 + $0x5c8] ss:$16 sps:$4 sm:$0xff]  }
 0x243   : > { %2875 = vmatpush1.bf16.msra.mxu0 %v13185_v34  ;;  %2948 = vmatpush1.bf16.msra.mxu1 %v13188_v53  ;;  %v13251_v34 = vld [vmem:[#allocation8 + $0x6e0] ss:$16 sps:$4 sm:$0xff]   ;;  %v13254_v53 = vld [vmem:[#allocation8 + $0x6e8] ss:$16 sps:$4 sm:$0xff]  }
 0x244   : > { %2876 = vmatprep.subr.bf16.mxu0 %v13193_v41  ;;  %2949 = vmatprep.subr.bf16.mxu1 %v13196_v44  ;;  %v13260_v41 = vld [vmem:[#allocation8 + $0x708] ss:$16 sps:$4 sm:$0xff]   ;;  %v13265_v44 = vld [vmem:[#allocation8 + $0x724] ss:$16 sps:$4 sm:$0xff]  }
 0x245   : > { %2549 = vmatprep.mubr.bf16.mxu0 %v14811_v0  ;;  %2622 = vmatprep.mubr.bf16.mxu1 %v14811_v0 }
 0x247   : > { %2877 = vmatpush1.bf16.msra.mxu0 %v13191_v7  ;;  %2950 = vmatpush1.bf16.msra.mxu1 %v13194_v45  ;;  %v13268_v7 = vld [vmem:[#allocation8 + $0x72c] ss:$16 sps:$4 sm:$0xff]   ;;  %v13263_v45 = vld [vmem:[#allocation8 + $0x720] ss:$16 sps:$4 sm:$0xff]  }
 0x248   : > { %2878 = vmatprep.subr.bf16.mxu0 %v13199_v47  ;;  %2951 = vmatprep.subr.bf16.mxu1 %v13202_v48  ;;  %v13266_v47 = vld [vmem:[#allocation8 + $0x728] ss:$16 sps:$4 sm:$0xff]   ;;  %v13271_v48 = vld [vmem:[#allocation8 + $0x744] ss:$16 sps:$4 sm:$0xff]  }
 0x24a   : > { %2550 = vmatmul.mubr.bf16.gmra.mrb[12].mxu0 %v2293_v49  ;;  %2623 = vmatmul.mubr.bf16.gmra.mrb[12].mxu1 %v2293_v49  ;;  %v13274_v49 = vld [vmem:[#allocation8 + $0x74c] ss:$16 sps:$4 sm:$0xff]  }
 0x24b   : > { %2879 = vmatpush1.bf16.msra.mxu0 %v13197_v50  ;;  %2952 = vmatpush1.bf16.msra.mxu1 %v13200_v28  ;;  %v13269_v50 = vld [vmem:[#allocation8 + $0x740] ss:$16 sps:$4 sm:$0xff]   ;;  %v13272_v28 = vld [vmem:[#allocation8 + $0x748] ss:$16 sps:$4 sm:$0xff]  }
 0x24c   : > { %2880 = vmatprep.subr.bf16.mxu0 %v13205_v51  ;;  %2953 = vmatprep.subr.bf16.mxu1 %v13208_v37  ;;  %v13277_v51 = vld [vmem:[#allocation8 + $0x764] ss:$16 sps:$4 sm:$0xff]   ;;  %v13280_v37 = vld [vmem:[#allocation8 + $0x76c] ss:$16 sps:$4 sm:$0xff]  }
 0x24d   : > { %2898 = vmatprep.mubr.bf16.mxu0 %v14811_v0  ;;  %2971 = vmatprep.mubr.bf16.mxu1 %v14811_v0 }
 0x24f   : > { %2881 = vmatpush1.bf16.msra.mxu0 %v13203_v52  ;;  %2954 = vmatpush1.bf16.msra.mxu1 %v13206_v55  ;;  %v13275_v52 = vld [vmem:[#allocation8 + $0x760] ss:$16 sps:$4 sm:$0xff]   ;;  %v13283_v55 = vld [vmem:[#allocation8 + $0x784] ss:$16 sps:$4 sm:$0xff]  }
 0x250   : > { %3238 = vmatprep.subr.bf16.mxu0 %v13211_v2  ;;  %3311 = vmatprep.subr.bf16.mxu1 %v13214_v59  ;;  %v13286_v2 = vld [vmem:[#allocation8 + $0x78c] ss:$16 sps:$4 sm:$0xff]   ;;  %v13281_v59 = vld [vmem:[#allocation8 + $0x780] ss:$16 sps:$4 sm:$0xff]  }
 0x252   : > { %2899 = vmatmul.mubr.bf16.vlgmr.msra.gmra.mrb[0].mxu0 %v15374_v6  ;;  %2972 = vmatmul.mubr.bf16.vlgmr.msra.gmra.mrb[0].mxu1 %v15374_v6  ;;  %v13227_v6 = vld [vmem:[#allocation8 + $0x660] ss:$16 sps:$4 sm:$0xff]  }
 0x253   : > { %3239 = vmatpush1.bf16.msra.mxu0 %v13209_v35  ;;  %3312 = vmatpush1.bf16.msra.mxu1 %v13212_v60  ;;  %v13284_v35 = vld [vmem:[#allocation8 + $0x788] ss:$16 sps:$4 sm:$0xff]   ;;  %v13289_v60 = vld [vmem:[#allocation8 + $0x7a4] ss:$16 sps:$4 sm:$0xff]  }
 0x254   : > { %3240 = vmatprep.subr.bf16.mxu0 %v13217_v61  ;;  %3313 = vmatprep.subr.bf16.mxu1 %v13220_v63  ;;  %v13292_v61 = vld [vmem:[#allocation8 + $0x7ac] ss:$16 sps:$4 sm:$0xff]   ;;  %v13290_v63 = vld [vmem:[#allocation8 + $0x7a8] ss:$16 sps:$4 sm:$0xff]  }
 0x255   : > { %2908 = vmatprep.mubr.bf16.mxu0 %v14811_v0  ;;  %2981 = vmatprep.mubr.bf16.mxu1 %v14811_v0 }
 0x257   : > { %3241 = vmatpush1.bf16.msra.mxu0 %v13215_v9  ;;  %3314 = vmatpush1.bf16.msra.mxu1 %v13218_v1  ;;  %v15598_v9 = vld [vmem:[%s15343_s7 + $0x48] sm:$0xf]  ;;  %v13296_v1 = vld [vmem:[#allocation8 + $0x7c4] ss:$16 sps:$4 sm:$0xff]  }
 0x258   : > { %3242 = vmatprep.subr.bf16.mxu0 %v13223_v3  ;;  %3315 = vmatprep.subr.bf16.mxu1 %v13226_v31  ;;  %v13299_v3 = vld [vmem:[#allocation8 + $0x7cc] ss:$16 sps:$4 sm:$0xff]   ;;  %v13294_v31 = vld [vmem:[#allocation8 + $0x7c0] ss:$16 sps:$4 sm:$0xff]  }
 0x25a   : > { %2909 = vmatmul.mubr.bf16.gmra.mrb[4].mxu0 %v15473_v8  ;;  %2982 = vmatmul.mubr.bf16.gmra.mrb[4].mxu1 %v15473_v8  ;;  %v2666_v8 = vrot.slane %v764_v25, 2 }
 0x25b   : > { %3243 = vmatpush1.bf16.msra.mxu0 %v13221_v5  ;;  %3316 = vmatpush1.bf16.msra.mxu1 %v13224_v10  ;;  %v13297_v5 = vld [vmem:[#allocation8 + $0x7c8] ss:$16 sps:$4 sm:$0xff]   ;;  %v11139_v10 = vcombine.low %v15530_v58, %v15598_v9  ;;  %v13306_v58 = vld [vmem:[#allocation8 + $0x800] ss:$16 sps:$4 sm:$0xff]  }
 0x25c   : > { %3244 = vmatprep.subr.bf16.mxu0 %v13229_v56  ;;  %3317 = vmatprep.subr.bf16.mxu1 %v13232_v11  ;;  %v15581_v30 = vsel %vm1501_vm1, %v2665_v24, %v2666_v8  ;;  %v13302_v56 = vld [vmem:[#allocation8 + $0x7e4] ss:$16 sps:$4 sm:$0xff]   ;;  %v13305_v11 = vld [vmem:[#allocation8 + $0x7ec] ss:$16 sps:$4 sm:$0xff]  }
 0x25d   : > { %2918 = vmatprep.mubr.bf16.mxu0 %v14811_v0  ;;  %2991 = vmatprep.mubr.bf16.mxu1 %v14811_v0  ;;  %v2672_v25 = vpack.c.bf16 %v15581_v30, %v15452_v39  ;;  %v13257_v39 = vld [vmem:[#allocation8 + $0x700] ss:$16 sps:$4 sm:$0xff]   ;;  %v13320_v24 = vld [vmem:[#allocation8 + $0x844] ss:$16 sps:$4 sm:$0xff]   ;;  %v13323_v8 = vld [vmem:[#allocation8 + $0x84c] ss:$16 sps:$4 sm:$0xff]  }
 0x25f   : > { %3245 = vmatpush1.bf16.msra.mxu0 %v13227_v6  ;;  %3318 = vmatpush1.bf16.msra.mxu1 %v13230_v33  ;;  %v13303_v6 = vld [vmem:[#allocation8 + $0x7e8] ss:$16 sps:$4 sm:$0xff]   ;;  %v13308_v33 = vld [vmem:[#allocation8 + $0x804] ss:$16 sps:$4 sm:$0xff]  }
 0x260   : > { %3246 = vmatprep.subr.bf16.mxu0 %v13235_v4  ;;  %3319 = vmatprep.subr.bf16.mxu1 %v13238_v14  ;;  %v13311_v4 = vld [vmem:[#allocation8 + $0x80c] ss:$16 sps:$4 sm:$0xff]   ;;  %v13309_v14 = vld [vmem:[#allocation8 + $0x808] ss:$16 sps:$4 sm:$0xff]  }
 0x262   : > { %2919 = vmatmul.mubr.bf16.gmra.mrb[8].mxu0 %v15485_v17  ;;  %2992 = vmatmul.mubr.bf16.gmra.mrb[8].mxu1 %v15485_v17  ;;  %v13256_v17 = vld [vmem:[#allocation8 + $0x6ec] ss:$16 sps:$4 sm:$0xff]  }
 0x263   : > { %3247 = vmatpush1.bf16.msra.mxu0 %v13233_v57  ;;  %3320 = vmatpush1.bf16.msra.mxu1 %v13236_v16  ;;  %v13314_v57 = vld [vmem:[#allocation8 + $0x824] ss:$16 sps:$4 sm:$0xff]   ;;  %v13317_v16 = vld [vmem:[#allocation8 + $0x82c] ss:$16 sps:$4 sm:$0xff]  }
 0x264   : > { %3248 = vmatprep.subr.bf16.mxu0 %v13241_v18  ;;  %3321 = vmatprep.subr.bf16.mxu1 %v13244_v19  ;;  %v13312_v18 = vld [vmem:[#allocation8 + $0x820] ss:$16 sps:$4 sm:$0xff]   ;;  %v13315_v19 = vld [vmem:[#allocation8 + $0x828] ss:$16 sps:$4 sm:$0xff]  }
 0x265   : > { %2928 = vmatprep.mubr.bf16.mxu0 %v14811_v0  ;;  %3001 = vmatprep.mubr.bf16.mxu1 %v14811_v0 }
 0x267   : > { %3249 = vmatpush1.bf16.msra.mxu0 %v13239_v26  ;;  %3322 = vmatpush1.bf16.msra.mxu1 %v13242_v29  ;;  %v13318_v26 = vld [vmem:[#allocation8 + $0x840] ss:$16 sps:$4 sm:$0xff]   ;;  %v13321_v29 = vld [vmem:[#allocation8 + $0x848] ss:$16 sps:$4 sm:$0xff]  }
 0x268   : > { %3250 = vmatprep.subr.bf16.mxu0 %v13247_v21  ;;  %3323 = vmatprep.subr.bf16.mxu1 %v13250_v23  ;;  %v13326_v21 = vld [vmem:[#allocation8 + $0x864] ss:$16 sps:$4 sm:$0xff]   ;;  %v13329_v23 = vld [vmem:[#allocation8 + $0x86c] ss:$16 sps:$4 sm:$0xff]  }
 0x26a   : > { %2929 = vmatmul.mubr.bf16.gmra.mrb[12].mxu0 %v2672_v25  ;;  %3002 = vmatmul.mubr.bf16.gmra.mrb[12].mxu1 %v2672_v25  ;;  %v13332_v25 = vld [vmem:[#allocation8 + $0x884] ss:$16 sps:$4 sm:$0xff]  }
 0x26b   : > { %3251 = vmatpush1.bf16.msra.mxu0 %v13245_v62  ;;  %3324 = vmatpush1.bf16.msra.mxu1 %v13248_v22  ;;  %v15613_v62 = vld [vmem:[%s15343_s7 + $0x4c] sm:$0x1]  ;;  %v13327_v22 = vld [vmem:[#allocation8 + $0x868] ss:$16 sps:$4 sm:$0xff]   ;;  %s14641_s7 = scalar_lea.vmem %s14640_s13, 2048 }
 0x26c   : > { %3252 = vmatprep.subr.bf16.mxu0 %v13253_v32  ;;  %3325 = vmatprep.subr.bf16.mxu1 %v13256_v17  ;;  %v13335_v32 = vld [vmem:[#allocation8 + $0x88c] ss:$16 sps:$4 sm:$0xff]   ;;  %v765_v17 = vunpack.c.l.bf16 %v15598_v9  ;;  %v13370_v9 = vld [vmem:[#allocation11 + $0x64] ss:$12 sps:$4 sm:$0xff]   ;;  %p14643_p1 = scmp.lt.s32.totalorder %s14641_s7, %s14635_s4 }
 0x26d   : > { %3270 = vmatprep.mubr.bf16.mxu0 %v14811_v0  ;;  %3343 = vmatprep.mubr.bf16.mxu1 %v14811_v0 }
 0x26e   : > { %p14644_p3 = por %p14643_p1, %p14642_p13 }
 0x26f   : > { %3253 = vmatpush1.bf16.msra.mxu0 %v13251_v34  ;;  %3326 = vmatpush1.bf16.msra.mxu1 %v13254_v53  ;;  %v766_v34 = vunpack.c.l.bf16 %v15613_v62  ;;  %v13330_v53 = vld [vmem:[#allocation8 + $0x880] ss:$16 sps:$4 sm:$0xff]  }
 0x270   : > { %3616 = vmatprep.subr.bf16.mxu0 %v13259_v40  ;;  %3689 = vmatprep.subr.bf16.mxu1 %v13262_v54  ;;  %v13333_v40 = vld [vmem:[#allocation8 + $0x888] ss:$16 sps:$4 sm:$0xff]   ;;  %v13338_v54 = vld [vmem:[#allocation8 + $0x8a4] ss:$16 sps:$4 sm:$0xff]   ;;  %p14645_p6 = pnand %p14644_p3, %p14638_p12 }
 0x272   : > { %3271 = vmatmul.mubr.bf16.vlgmr.msra.gmra.mrb[0].mxu0 %v15469_v27  ;;  %3344 = vmatmul.mubr.bf16.vlgmr.msra.gmra.mrb[0].mxu1 %v15469_v27  ;;  %v13278_v27 = vld [vmem:[#allocation8 + $0x768] ss:$16 sps:$4 sm:$0xff]  }
 0x273   : > { %3617 = vmatpush1.bf16.msra.mxu0 %v13257_v39  ;;  %3690 = vmatpush1.bf16.msra.mxu1 %v13260_v41  ;;  %v13341_v39 = vld [vmem:[#allocation8 + $0x8ac] ss:$16 sps:$4 sm:$0xff]   ;;  %v3418_v41 = vrot.slane %v765_v17, 1 }
 0x274   : > { %3618 = vmatprep.subr.bf16.mxu0 %v13265_v44  ;;  %3691 = vmatprep.subr.bf16.mxu1 %v13268_v7  ;;  %v13336_v44 = vld [vmem:[#allocation8 + $0x8a0] ss:$16 sps:$4 sm:$0xff]   ;;  %v13339_v7 = vld [vmem:[#allocation8 + $0x8a8] ss:$16 sps:$4 sm:$0xff]  }
 0x275   : > { %3280 = vmatprep.mubr.bf16.mxu0 %v14811_v0  ;;  %3353 = vmatprep.mubr.bf16.mxu1 %v14811_v0 }
 0x277   : > { %3619 = vmatpush1.bf16.msra.mxu0 %v13263_v45  ;;  %3692 = vmatpush1.bf16.msra.mxu1 %v13266_v47  ;;  %v13344_v45 = vld [vmem:[#allocation8 + $0x8c4] ss:$16 sps:$4 sm:$0xff]   ;;  %v13347_v47 = vld [vmem:[#allocation8 + $0x8cc] ss:$16 sps:$4 sm:$0xff]  }
 0x278   : > { %3620 = vmatprep.subr.bf16.mxu0 %v13271_v48  ;;  %3693 = vmatprep.subr.bf16.mxu1 %v13274_v49  ;;  %v13342_v49 = vld [vmem:[#allocation8 + $0x8c0] ss:$16 sps:$4 sm:$0xff]  }
 0x27a   : > { %3281 = vmatmul.mubr.bf16.gmra.mrb[4].mxu0 %v15481_v36  ;;  %3354 = vmatmul.mubr.bf16.gmra.mrb[4].mxu1 %v15481_v36  ;;  %v13287_v36 = vld [vmem:[#allocation8 + $0x7a0] ss:$16 sps:$4 sm:$0xff]  }
 0x27b   : > { %3621 = vmatpush1.bf16.msra.mxu0 %v13269_v50  ;;  %3694 = vmatpush1.bf16.msra.mxu1 %v13272_v28  ;;  %v13345_v50 = vld [vmem:[#allocation8 + $0x8c8] ss:$16 sps:$4 sm:$0xff]  }
 0x27c   : > { %3622 = vmatprep.subr.bf16.mxu0 %v13277_v51  ;;  %3695 = vmatprep.subr.bf16.mxu1 %v13280_v37  ;;  %v13350_v51 = vld [vmem:[#allocation8 + $0x8e4] ss:$16 sps:$4 sm:$0xff]   ;;  %v13353_v37 = vld [vmem:[#allocation8 + $0x8ec] ss:$16 sps:$4 sm:$0xff]  }
 0x27d   : > { %3290 = vmatprep.mubr.bf16.mxu0 %v14811_v0  ;;  %3363 = vmatprep.mubr.bf16.mxu1 %v14811_v0 }
 0x27f   : > { %3623 = vmatpush1.bf16.msra.mxu0 %v13275_v52  ;;  %3696 = vmatpush1.bf16.msra.mxu1 %v13278_v27  ;;  %v13351_v52 = vld [vmem:[#allocation8 + $0x8e8] ss:$16 sps:$4 sm:$0xff]   ;;  %v3795_v27 = vrot.slane %v766_v34, 2 }
 0x280   : > { %3624 = vmatprep.subr.bf16.mxu0 %v13283_v55  ;;  %3697 = vmatprep.subr.bf16.mxu1 %v13286_v2  ;;  %v13354_v2 = vld [vmem:[#allocation11] ss:$12 sps:$4 sm:$0xff]  }
 0x282   : > { %3291 = vmatmul.mubr.bf16.gmra.mrb[8].mxu0 %v15493_v15  ;;  %3364 = vmatmul.mubr.bf16.gmra.mrb[8].mxu1 %v15493_v15  ;;  %v13300_v15 = vld [vmem:[#allocation8 + $0x7e0] ss:$16 sps:$4 sm:$0xff]  }
 0x283   : > { %3625 = vmatpush1.bf16.msra.mxu0 %v13281_v59  ;;  %3698 = vmatpush1.bf16.msra.mxu1 %v13284_v35  ;;  %v13359_v59 = vld [vmem:[#allocation11 + $0x1c] ss:$12 sps:$4 sm:$0xff]   ;;  %v13357_v35 = vld [vmem:[#allocation11 + $0x18] ss:$12 sps:$4 sm:$0xff]  }
 0x284   : > { %3626 = vmatprep.subr.bf16.mxu0 %v13289_v60  ;;  %3699 = vmatprep.subr.bf16.mxu1 %v13292_v61  ;;  %v13363_v60 = vld [vmem:[#allocation11 + $0x8] ss:$12 sps:$4 sm:$0xff]   ;;  %v13360_v61 = vld [vmem:[#allocation11 + $0x30] ss:$12 sps:$4 sm:$0xff]  }
 0x285   : > { %3300 = vmatprep.mubr.bf16.mxu0 %v14811_v0  ;;  %3373 = vmatprep.mubr.bf16.mxu1 %v14811_v0 }
 0x287   : > { %3627 = vmatpush1.bf16.msra.mxu0 %v13287_v36  ;;  %3700 = vmatpush1.bf16.msra.mxu1 %v13290_v63  ;;  %v13367_v36 = vld [vmem:[#allocation11 + $0x20] ss:$12 sps:$4 sm:$0xff]   ;;  %v13364_v63 = vld [vmem:[#allocation11 + $0x48] ss:$12 sps:$4 sm:$0xff]  }
 0x288   : > { %3628 = vmatprep.subr.bf16.mxu0 %v13296_v1  ;;  %3701 = vmatprep.subr.bf16.mxu1 %v13299_v3  ;;  %v13371_v1 = vld [vmem:[#allocation11 + $0x38] ss:$12 sps:$4 sm:$0xff]   ;;  %v13368_v3 = vld [vmem:[#allocation11 + $0x60] ss:$12 sps:$4 sm:$0xff]  }
 0x28a   : > { %3301 = vmatmul.mubr.bf16.gmra.mrb[12].mxu0 %v11139_v10  ;;  %3374 = vmatmul.mubr.bf16.gmra.mrb[12].mxu1 %v11139_v10  ;;  %v13372_v10 = vld [vmem:[#allocation11 + $0x78] ss:$12 sps:$4 sm:$0xff]  }
 0x28b   : > { %3629 = vmatpush1.bf16.msra.mxu0 %v13294_v31  ;;  %3702 = vmatpush1.bf16.msra.mxu1 %v13297_v5  ;;  %v13374_v31 = vld [vmem:[#allocation11 + $0x7c] ss:$12 sps:$4 sm:$0xff]  }
 0x28c   : > { %3630 = vmatprep.subr.bf16.mxu0 %v13302_v56  ;;  %3703 = vmatprep.subr.bf16.mxu1 %v13305_v11  ;;  %v13375_v5 = vld [vmem:[#allocation11 + $0x50] ss:$12 sps:$4 sm:$0xff]   ;;  %v13378_v56 = vld [vmem:[#allocation11 + $0x94] ss:$12 sps:$4 sm:$0xff]  }
 0x28d   : > { %3648 = vmatprep.mubr.bf16.mxu0 %v14811_v0  ;;  %3721 = vmatprep.mubr.bf16.mxu1 %v14811_v0  ;;  %v13379_v11 = vld [vmem:[#allocation11 + $0x68] ss:$12 sps:$4 sm:$0xff]  }
 0x28f   : > { %3631 = vmatpush1.bf16.msra.mxu0 %v13300_v15  ;;  %3704 = vmatpush1.bf16.msra.mxu1 %v13303_v6  ;;  %v13376_v15 = vld [vmem:[#allocation11 + $0x90] ss:$12 sps:$4 sm:$0xff]   ;;  %v13382_v6 = vld [vmem:[#allocation11 + $0xac] ss:$12 sps:$4 sm:$0xff]  }
 0x290   : > { %3992 = vmatprep.subr.bf16.mxu0 %v13308_v33  ;;  %4065 = vmatprep.subr.bf16.mxu1 %v13311_v4  ;;  %v13383_v33 = vld [vmem:[#allocation11 + $0x80] ss:$12 sps:$4 sm:$0xff]   ;;  %v13380_v4 = vld [vmem:[#allocation11 + $0xa8] ss:$12 sps:$4 sm:$0xff]  }
 0x292   : > { %3649 = vmatmul.mubr.bf16.vlgmr.msra.gmra.mrb[0].mxu0 %v15401_v38  ;;  %3722 = vmatmul.mubr.bf16.vlgmr.msra.gmra.mrb[0].mxu1 %v15401_v38  ;;  %v13324_v38 = vld [vmem:[#allocation8 + $0x860] ss:$16 sps:$4 sm:$0xff]  }
 0x293   : > { %3993 = vmatpush1.bf16.msra.mxu0 %v13306_v58  ;;  %4066 = vmatpush1.bf16.msra.mxu1 %v13309_v14  ;;  %v14812_v58 = vmov 0.0   ;;  %v13384_v14 = vld [vmem:[#allocation11 + $0x98] ss:$12 sps:$4 sm:$0xff]  }
 0x294   : > { %3994 = vmatprep.subr.bf16.mxu0 %v13314_v57  ;;  %4067 = vmatprep.subr.bf16.mxu1 %v13317_v16  ;;  %5666 = vst [vmem:[#allocation2 + $0x28] sm:$0xff] %v14812_v58  ;;  %5668 = vst [vmem:[#allocation2 + $0x38] sm:$0x3] %v14812_v58  ;;  %v13387_v57 = vld [vmem:[#allocation14 + $0x4] ss:$8 sps:$4 sm:$0xff]  }
 0x295   : > { %3658 = vmatprep.mubr.bf16.mxu0 %v14811_v0  ;;  %3731 = vmatprep.mubr.bf16.mxu1 %v14811_v0  ;;  %5670 = vst [vmem:[#allocation2 + $0x48] sm:$0xff] %v14812_v58  ;;  %5672 = vst [vmem:[#allocation2 + $0x58] sm:$0x3] %v14812_v58  ;;  %v13388_v16 = vld [vmem:[#allocation11 + $0xb0] ss:$12 sps:$4 sm:$0xff]  }
 0x296   : > { %5661 = vst [vmem:[#allocation2] sm:$0xff] %v14812_v58  ;;  %5663 = vst [vmem:[#allocation2 + $0x10] sm:$0x3] %v14812_v58 }
 0x297   : > { %3995 = vmatpush1.bf16.msra.mxu0 %v13312_v18  ;;  %4068 = vmatpush1.bf16.msra.mxu1 %v13315_v19  ;;  %5664 = vst [vmem:[#allocation2 + $0x18] sm:$0x3] %v14812_v58  ;;  %5665 = vst [vmem:[#allocation2 + $0x20] sm:$0xff] %v14812_v58  ;;  %v4172_v18 = vlaneseq }
 0x298   : > { %3996 = vmatprep.subr.bf16.mxu0 %v13320_v24  ;;  %4069 = vmatprep.subr.bf16.mxu1 %v13323_v8  ;;  %5667 = vst [vmem:[#allocation2 + $0x30] sm:$0x3] %v14812_v58  ;;  %5669 = vst [vmem:[#allocation2 + $0x40] sm:$0xff] %v14812_v58  ;;  %v4170_v8 = vld [vmem:[#allocation9] sm:$0xf] }
 0x299   : > { %5671 = vst [vmem:[#allocation2 + $0x50] sm:$0x3] %v14812_v58  ;;  %5673 = vst [vmem:[#allocation2 + $0x60] sm:$0xff] %v14812_v58  ;;  %v4173_v19 = vshrl.u32 %v4172_v18, 7 }
 0x29a   : > { %3659 = vmatmul.mubr.bf16.gmra.mrb[4].mxu0 %v15431_v12  ;;  %3732 = vmatmul.mubr.bf16.gmra.mrb[4].mxu1 %v15431_v12  ;;  %v3419_v12 = vrot.slane %v766_v34, 1  ;;  %5674 = vst [vmem:[#allocation2 + $0x68] sm:$0xff] %v14812_v58  ;;  %5675 = vst [vmem:[#allocation2 + $0x70] sm:$0x3] %v14812_v58 }
 0x29b   : > { %3997 = vmatpush1.bf16.msra.mxu0 %v13318_v26  ;;  %4070 = vmatpush1.bf16.msra.mxu1 %v13321_v29  ;;  %5676 = vst [vmem:[#allocation2 + $0x78] sm:$0x3] %v14812_v58  ;;  %5677 = vst [vmem:[#allocation2 + $0x80] sm:$0xff] %v14812_v58  ;;  %v15681_v24 = vsub.s32 0, %v4173_v19  ;;  %v15683_v26 = vsub.s32 1, %v4173_v19  ;;  %v15685_v29 = vsub.s32 2, %v4173_v19 }
 0x29c   : > { %3998 = vmatprep.subr.bf16.mxu0 %v13326_v21  ;;  %4071 = vmatprep.subr.bf16.mxu1 %v13329_v23  ;;  %v3420_v48 = vsel %vm819_vm0, %v3418_v41, %v3419_v12  ;;  %5678 = vst [vmem:[#allocation2 + $0x88] sm:$0xff] %v14812_v58  ;;  %5679 = vst [vmem:[#allocation2 + $0x90] sm:$0x3] %v14812_v58  ;;  %v4186_v62 = vsub.s32 3, %v4173_v19 }
 0x29d   : > { %3668 = vmatprep.mubr.bf16.mxu0 %v14811_v0  ;;  %3741 = vmatprep.mubr.bf16.mxu1 %v14811_v0  ;;  %v3422_v28 = vpack.c.bf16 %v3420_v48, %v15558_v46  ;;  %v3794_v46 = vrot.slane %v765_v17, 2  ;;  %5680 = vst [vmem:[#allocation2 + $0x98] sm:$0x3] %v14812_v58  ;;  %5681 = vst [vmem:[#allocation2 + $0xa0] sm:$0xff] %v14812_v58  ;;  %v15688_v21 = vrot.slane %v4170_v8, %v15681_v24 }
 0x29e   : > { %5682 = vst [vmem:[#allocation2 + $0xa8] sm:$0xff] %v14812_v58  ;;  %5683 = vst [vmem:[#allocation2 + $0xb0] sm:$0x3] %v14812_v58  ;;  %v15691_v23 = vrot.slane %v4170_v8, %v15683_v26  ;;  %v15698_v41 = vrot.slane %v4170_v8, %v4186_v62 }
 0x29f   : > { %3999 = vmatpush1.bf16.msra.mxu0 %v13324_v38  ;;  %4072 = vmatpush1.bf16.msra.mxu1 %v13327_v22  ;;  %5684 = vst [vmem:[#allocation2 + $0xb8] sm:$0x3] %v14812_v58  ;;  %5685 = vst [vmem:[#allocation2 + $0xc0] sm:$0xff] %v14812_v58 }
 0x2a0   : > { %4000 = vmatprep.subr.bf16.mxu0 %v13332_v25  ;;  %4073 = vmatprep.subr.bf16.mxu1 %v13335_v32  ;;  %5686 = vst [vmem:[#allocation2 + $0xc8] sm:$0xff] %v14812_v58  ;;  %5687 = vst [vmem:[#allocation2 + $0xd0] sm:$0x3] %v14812_v58  ;;  %v15694_v25 = vrot.slane %v4170_v8, %v15685_v29 }
 0x2a1   : > { %5688 = vst [vmem:[#allocation2 + $0xd8] sm:$0x3] %v14812_v58  ;;  %5689 = vst [vmem:[#allocation2 + $0xe0] sm:$0xff] %v14812_v58 }
 0x2a2   : > { %3669 = vmatmul.mubr.bf16.gmra.mrb[8].mxu0 %v15457_v43  ;;  %3742 = vmatmul.mubr.bf16.gmra.mrb[8].mxu1 %v15457_v43  ;;  %v13348_v43 = vld [vmem:[#allocation8 + $0x8e0] ss:$16 sps:$4 sm:$0xff]   ;;  %5690 = vst [vmem:[#allocation2 + $0xe8] sm:$0xff] %v14812_v58  ;;  %5691 = vst [vmem:[#allocation2 + $0xf0] sm:$0x3] %v14812_v58 }
 0x2a3   : > { %4001 = vmatpush1.bf16.msra.mxu0 %v13330_v53  ;;  %4074 = vmatpush1.bf16.msra.mxu1 %v13333_v40  ;;  %5692 = vst [vmem:[#allocation2 + $0xf8] sm:$0x3] %v14812_v58  ;;  %5693 = vst [vmem:[#allocation2 + $0x100] sm:$0xff] %v14812_v58 }
 0x2a4   : > { %4002 = vmatprep.subr.bf16.mxu0 %v13338_v54  ;;  %4075 = vmatprep.subr.bf16.mxu1 %v13341_v39  ;;  %5694 = vst [vmem:[#allocation2 + $0x108] sm:$0xff] %v14812_v58  ;;  %5695 = vst [vmem:[#allocation2 + $0x110] sm:$0x3] %v14812_v58 }
 0x2a5   : > { %3678 = vmatprep.mubr.bf16.mxu0 %v14811_v0  ;;  %3751 = vmatprep.mubr.bf16.mxu1 %v14811_v0  ;;  %5696 = vst [vmem:[#allocation2 + $0x118] sm:$0x3] %v14812_v58  ;;  %5699 = vst [vmem:[#allocation2 + $0x130] sm:$0x3] %v14812_v58 }
 0x2a6   : > { %5700 = vst [vmem:[#allocation2 + $0x138] sm:$0x3] %v14812_v58  ;;  %16992 = vst [vmem:[#allocation38_spill] sm:$0xff] %v15681_v24 }
 0x2a7   : > { %4003 = vmatpush1.bf16.msra.mxu0 %v13336_v44  ;;  %4076 = vmatpush1.bf16.msra.mxu1 %v13339_v7  ;;  %16993 = vst [vmem:[#allocation39_spill] sm:$0xff] %v15683_v26  ;;  %16994 = vst [vmem:[#allocation40_spill] sm:$0xff] %v15685_v29 }
 0x2a8   : > { %4004 = vmatprep.subr.bf16.mxu0 %v13344_v45  ;;  %4077 = vmatprep.subr.bf16.mxu1 %v13347_v47 }
 0x2aa   : > { %3679 = vmatmul.mubr.bf16.gmra.mrb[12].mxu0 %v3422_v28  ;;  %3752 = vmatmul.mubr.bf16.gmra.mrb[12].mxu1 %v3422_v28 }
 0x2ab   : > { %4005 = vmatpush1.bf16.msra.mxu0 %v13342_v49  ;;  %4078 = vmatpush1.bf16.msra.mxu1 %v13345_v50 }
 0x2ac   : > { %4006 = vmatprep.subr.bf16.mxu0 %v13350_v51  ;;  %4079 = vmatprep.subr.bf16.mxu1 %v13353_v37 }
 0x2ad   : > { %4024 = vmatprep.mubr.bf16.mxu0 %v14811_v0  ;;  %4097 = vmatprep.mubr.bf16.mxu1 %v14811_v0 }
 0x2af   : > { %4007 = vmatpush1.bf16.msra.mxu0 %v13348_v43  ;;  %4080 = vmatpush1.bf16.msra.mxu1 %v13351_v52 }
 0x2b0   : > { %12205 = vmatprep.subr.bf16.mxu1 %v13363_v60 }
 0x2b2   : > { %4025 = vmatmul.mubr.bf16.vlgmr.msra.gmra.mrb[0].mxu0 %v15404_v42  ;;  %4098 = vmatmul.mubr.bf16.vlgmr.msra.gmra.mrb[0].mxu1 %v15404_v42  ;;  %v3796_v42 = vsel %vm1501_vm1, %v3794_v46, %v3795_v27 }
 0x2b3   : > { %4034 = vmatprep.mubr.bf16.mxu0 %v14811_v0  ;;  %4107 = vmatprep.mubr.bf16.mxu1 %v14811_v0  ;;  %v3798_v55 = vpack.c.bf16 %v3796_v42, %v15581_v30  ;;  %v13366_v30 = vld [vmem:[#allocation11 + $0x4c] ss:$12 sps:$4 sm:$0xff]  }
 0x2b4   : > { %12206 = vmatpush3.bf16.msra.mxu1 %v13363_v60 }
 0x2b5   : > { %12207 = vmatprep.subr.bf16.mxu1 %v13367_v36 }
 0x2b8   : > { %12208 = vmatpush3.bf16.msra.mxu1 %v13367_v36 }
 0x2b9   : > { %12209 = vmatprep.subr.bf16.mxu1 %v13371_v1 }
 0x2ba   : > { %4035 = vmatmul.mubr.bf16.gmra.mrb[4].mxu0 %v15439_v20  ;;  %4108 = vmatmul.mubr.bf16.gmra.mrb[4].mxu1 %v15439_v20  ;;  %v13356_v20 = vld [vmem:[#allocation11 + $0x4] ss:$12 sps:$4 sm:$0xff]  }
 0x2bb   : > { %4044 = vmatprep.mubr.bf16.mxu0 %v14811_v0  ;;  %4117 = vmatprep.mubr.bf16.mxu1 %v14811_v0 }
 0x2bc   : > { %4605 = vmatprep.subr.bf16.mxu0 %v13356_v20  ;;  %12210 = vmatpush3.bf16.msra.mxu1 %v13371_v1 }
 0x2bd   : > { %4606 = vmatpush1.bf16.msra.mxu0 %v13354_v2  ;;  %12211 = vmatprep.subr.bf16.mxu1 %v13375_v5 }
 0x2be   : > { %4607 = vmatprep.subr.bf16.mxu0 %v13359_v59 }
 0x2c0   : > { %12212 = vmatpush3.bf16.msra.mxu1 %v13375_v5 }
 0x2c1   : > { %4608 = vmatpush1.bf16.msra.mxu0 %v13357_v35  ;;  %12213 = vmatprep.subr.bf16.mxu1 %v13379_v11 }
 0x2c2   : > { %4045 = vmatmul.mubr.bf16.gmra.mrb[8].mxu0 %v15513_v13  ;;  %4118 = vmatmul.mubr.bf16.gmra.mrb[8].mxu1 %v15513_v13  ;;  %v13362_v13 = vld [vmem:[#allocation11 + $0x34] ss:$12 sps:$4 sm:$0xff]  }
 0x2c3   : > { %4054 = vmatprep.mubr.bf16.mxu0 %v14811_v0  ;;  %4127 = vmatprep.mubr.bf16.mxu1 %v14811_v0 }
 0x2c4   : > { %4609 = vmatprep.subr.bf16.mxu0 %v13362_v13  ;;  %12214 = vmatpush3.bf16.msra.mxu1 %v13379_v11 }
 0x2c5   : > { %4610 = vmatpush1.bf16.msra.mxu0 %v13360_v61  ;;  %12215 = vmatprep.subr.bf16.mxu1 %v13383_v33 }
 0x2c6   : > { %4611 = vmatprep.subr.bf16.mxu0 %v13366_v30 }
 0x2c8   : > { %12216 = vmatpush3.bf16.msra.mxu1 %v13383_v33 }
 0x2c9   : > { %4612 = vmatpush1.bf16.msra.mxu0 %v13364_v63  ;;  %12217 = vmatprep.subr.bf16.mxu1 %v13384_v14 }
 0x2ca   : > { %4055 = vmatmul.mubr.bf16.gmra.mrb[12].mxu0 %v3798_v55  ;;  %4128 = vmatmul.mubr.bf16.gmra.mrb[12].mxu1 %v3798_v55 }
 0x2cb   : > { %4637 = vmatprep.mubr.bf16.mxu0 %v14811_v0  ;;  %4613 = vmatprep.subr.bf16.mxu0 %v13370_v9 }
 0x2cc   : > { %12218 = vmatpush3.bf16.msra.mxu1 %v13384_v14 }
 0x2cd   : > { %4614 = vmatpush1.bf16.msra.mxu0 %v13368_v3  ;;  %12219 = vmatprep.subr.bf16.mxu1 %v13388_v16 }
 0x2ce   : > { %4615 = vmatprep.subr.bf16.mxu0 %v13374_v31 }
 0x2d0   : > { %12220 = vmatpush3.bf16.msra.mxu1 %v13388_v16 }
 0x2d1   : > { %4616 = vmatpush1.bf16.msra.mxu0 %v13372_v10 }
 0x2d2   : > { %4617 = vmatprep.subr.bf16.mxu0 %v13378_v56 }
 0x2d5   : > { %4618 = vmatpush1.bf16.msra.mxu0 %v13376_v15 }
 0x2d6   : > { %4619 = vmatprep.subr.bf16.mxu0 %v13382_v6 }
 0x2d9   : > { %4620 = vmatpush1.bf16.msra.mxu0 %v13380_v4 }
 0x2da   : > { %4863 = vmatprep.subr.bf16.mxu0 %v13387_v57 }
 0x385   : > { %v4026_v38 = vpop.f32.mrb[0].mxu0  ;;  %v4099_v22 = vpop.f32.mrb[0].mxu1 }
 0x386   : > { %v4192_v32 = vadd.f32 %v15688_v21, %v4026_v38  ;;  %v4028_v17 = vpop.f32.mrb[1].mxu0  ;;  %v4101_v34 = vpop.f32.mrb[1].mxu1  ;;  %v4194_v45 = vadd.f32 %v15694_v25, %v4099_v22 }
 0x387   : > { %v4193_v53 = vadd.f32 %v15691_v23, %v4028_v17  ;;  %v4030_v40 = vpop.f32.mrb[2].mxu0  ;;  %v4103_v54 = vpop.f32.mrb[2].mxu1  ;;  %v4195_v51 = vadd.f32 %v15698_v41, %v4101_v34 }
 0x388   : > { %v11236_v39 = vmul.f32 -1.442695, %v4192_v32  ;;  %v4196_v12 = vadd.f32 %v15688_v21, %v4030_v40  ;;  %v4032_v44 = vpop.f32.mrb[3].mxu0  ;;  %v4105_v7 = vpop.f32.mrb[3].mxu1  ;;  %v4198_v50 = vadd.f32 %v15694_v25, %v4103_v54  ;;  %v11252_v37 = vmul.f32 -1.442695, %v4194_v45 }
 0x389   : > { %v11244_v47 = vmul.f32 -1.442695, %v4193_v53  ;;  %v4197_v48 = vadd.f32 %v15691_v23, %v4032_v44  ;;  %v4199_v3 = vadd.f32 %v15698_v41, %v4105_v7 }
 0x38a   : > { %14002 = vpow2.f32 %v11236_v39  ;;  %v11237_v49 = vmul.f32 -1.442695, %v4196_v12  ;;  %v11253_v20 = vmul.f32 -1.442695, %v4198_v50 }
 0x38b   : > { %v11245_v28 = vmul.f32 -1.442695, %v4197_v48  ;;  %14004 = vpow2.f32 %v11244_v47 }
 0x38c   : > { %14006 = vpow2.f32 %v11237_v49 }
 0x38d   : > { %v4036_v43 = vpop.f32.mrb[4].mxu0  ;;  %v4109_v52 = vpop.f32.mrb[4].mxu1  ;;  %14008 = vpow2.f32 %v11245_v28 }
 0x38e   : > { %v4200_v46 = vadd.f32 %v15688_v21, %v4036_v43  ;;  %v4202_v27 = vadd.f32 %v15694_v25, %v4109_v52  ;;  %v4038_v42 = vpop.f32.mrb[5].mxu0  ;;  %v4111_v55 = vpop.f32.mrb[5].mxu1  ;;  %14010 = vtanh.f32 %v4195_v51 }
 0x38f   : > { %v4201_v2 = vadd.f32 %v15691_v23, %v4038_v42  ;;  %v4040_v59 = vpop.f32.mrb[6].mxu0  ;;  %v4113_v35 = vpop.f32.mrb[6].mxu1  ;;  %14012 = vpow2.f32 %v11252_v37  ;;  %v4203_v57 = vadd.f32 %v15698_v41, %v4111_v55 }
 0x390   : > { %v11238_v13 = vmul.f32 -1.442695, %v4200_v46  ;;  %v4204_v60 = vadd.f32 %v15688_v21, %v4040_v59  ;;  %v4042_v61 = vpop.f32.mrb[7].mxu0  ;;  %v4115_v30 = vpop.f32.mrb[7].mxu1  ;;  %v11254_v63 = vmul.f32 -1.442695, %v4202_v27  ;;  %v4206_v15 = vadd.f32 %v15694_v25, %v4113_v35 }
 0x391   : > { %v11246_v36 = vmul.f32 -1.442695, %v4201_v2  ;;  %v4205_v5 = vadd.f32 %v15691_v23, %v4042_v61  ;;  %v4207_v54 = vadd.f32 %v15698_v41, %v4115_v30  ;;  %v4376_v2 = vld [vmem:[%s15296_s8] sm:$0xff] }
 0x392   : > { %14014 = vpow2.f32 %v11238_v13  ;;  %v11239_v9 = vmul.f32 -1.442695, %v4204_v60  ;;  %v11255_v34 = vmul.f32 -1.442695, %v4206_v15 }
 0x393   : > { %14016 = vpow2.f32 %v11253_v20  ;;  %v11247_v38 = vmul.f32 -1.442695, %v4205_v5 }
 0x394   : > { %v14003_v1 = vpop.eup %14002  ;;  %14018 = vpow2.f32 %v11246_v36 }
 0x395   : > { %v4248_v31 = vadd.f32 1.0, %v14003_v1  ;;  %14020 = vpow2.f32 %v11239_v9  ;;  %v4046_v10 = vpop.f32.mrb[8].mxu0  ;;  %v15711_v56 = vpop.f32.mrb[8].mxu1 }
 0x396   : > { %v14005_v11 = vpop.eup %14004  ;;  %14022 = vpow2.f32 %v11254_v63  ;;  %v4048_v6 = vpop.f32.mrb[9].mxu0  ;;  %v4208_v39 = vadd.f32 %v15688_v21, %v4046_v10 }
 0x397   : > { %v15714_v33 = vpop.f32.mrb[9].mxu1  ;;  %v14007_v4 = vpop.eup %14006  ;;  %14024 = vrcp.f32 %v4248_v31  ;;  %v4296_v14 = vadd.f32 1.0, %v14005_v11  ;;  %v4209_v48 = vadd.f32 %v15691_v23, %v4048_v6  ;;  %v4210_v31 = vadd.f32 %v15694_v25, %v15711_v56 }
 0x398   : > { %v4050_v16 = vpop.f32.mrb[10].mxu0  ;;  %v15717_v18 = vpop.f32.mrb[10].mxu1  ;;  %v4249_v19 = vadd.f32 1.0, %v14007_v4  ;;  %14026 = vtanh.f32 %v4199_v3  ;;  %v11240_v42 = vmul.f32 -1.442695, %v4208_v39  ;;  %v4377_v3 = vld [vmem:[%s15296_s8 + $0x8] sm:$0xff] }
 0x399   : > { %v4052_v8 = vpop.f32.mrb[11].mxu0  ;;  %v14009_v62 = vpop.eup %14008  ;;  %14028 = vrcp.f32 %v4296_v14  ;;  %v4212_v35 = vadd.f32 %v15688_v21, %v4050_v16  ;;  %v11248_v30 = vmul.f32 -1.442695, %v4209_v48 }
 0x39a   : > { %v15719_v22 = vpop.f32.mrb[11].mxu1  ;;  %v14011_v32 = vpop.eup %14010  ;;  %14030 = vrcp.f32 %v4249_v19  ;;  %v4297_v17 = vadd.f32 1.0, %v14009_v62  ;;  %v4213_v15 = vadd.f32 %v15691_v23, %v4052_v8  ;;  %v11256_v62 = vmul.f32 -1.442695, %v4210_v31 }
 0x39b   : > { %v14013_v53 = vpop.eup %14012  ;;  %14032 = vtanh.f32 %v4203_v57  ;;  %v11241_v11 = vmul.f32 -1.442695, %v4212_v35 }
 0x39c   : > { %v14015_v40 = vpop.eup %14014  ;;  %14034 = vrcp.f32 %v4297_v17  ;;  %v4344_v51 = vadd.f32 1.0, %v14013_v53  ;;  %v11249_v17 = vmul.f32 -1.442695, %v4213_v15 }
 0x39d   : > { %v14017_v12 = vpop.eup %14016  ;;  %v4250_v44 = vadd.f32 1.0, %v14015_v40  ;;  %14036 = vpow2.f32 %v11247_v38  ;;  %v4056_v7 = vpop.f32.mrb[12].mxu0  ;;  %v4211_v40 = vadd.f32 %v15698_v41, %v15714_v33 }
 0x39e   : > { %v15723_v45 = vpop.f32.mrb[12].mxu1  ;;  %v14019_v47 = vpop.eup %14018  ;;  %14038 = vpow2.f32 %v11255_v34  ;;  %v4345_v59 = vadd.f32 1.0, %v14017_v12  ;;  %v4216_v16 = vadd.f32 %v15688_v21, %v4056_v7 }
 0x39f   : > { %v15726_v49 = vpop.f32.mrb[13].mxu0  ;;  %v15728_v50 = vpop.f32.mrb[13].mxu1  ;;  %14040 = vrcp.f32 %v4250_v44  ;;  %v4298_v37 = vadd.f32 1.0, %v14019_v47 }
 0x3a0   : > { %v14021_v28 = vpop.eup %14020  ;;  %v15730_v43 = vpop.f32.mrb[14].mxu0  ;;  %14042 = vtanh.f32 %v4207_v54  ;;  %v4214_v54 = vadd.f32 %v15694_v25, %v15717_v18  ;;  %v11242_v12 = vmul.f32 -1.442695, %v4216_v16 }
 0x3a1   : > { %v15732_v52 = vpop.f32.mrb[14].mxu1  ;;  %v14023_v46 = vpop.eup %14022  ;;  %v4251_v27 = vadd.f32 1.0, %v14021_v28  ;;  %14044 = vrcp.f32 %v4298_v37  ;;  %v4217_v28 = vadd.f32 %v15691_v23, %v15726_v49 }
 0x3a2   : > { %v15734_v55 = vpop.f32.mrb[15].mxu0  ;;  %v14025_v20 = vpop.eup %14024  ;;  %v4346_v63 = vadd.f32 1.0, %v14023_v46  ;;  %v11257_v33 = vmul.f32 -1.442695, %v4214_v54 }
 0x3a3   : > { %v15738_v13 = vpop.f32.mrb[15].mxu1  ;;  %v14027_v60 = vpop.eup %14026  ;;  %v4392_v61 = vmul.f32 %v14025_v20, %v14011_v32  ;;  %14046 = vrcp.f32 %v4251_v27  ;;  %v4378_v32 = vld [vmem:[%s15296_s8 + $0x10] sm:$0xff]  ;;  %v4220_v20 = vadd.f32 %v15688_v21, %v15730_v43  ;;  %v4219_v43 = vadd.f32 %v15698_v41, %v15728_v50  ;;  %v13391_v50 = vld [vmem:[#allocation14 + $0x14] ss:$8 sps:$4 sm:$0xff]  }
 0x3a4   : > { %v14029_v36 = vpop.eup %14028  ;;  %14048 = vrcp.f32 %v4344_v51 }
 0x3a5   : > { %v14031_v9 = vpop.eup %14030  ;;  %v4384_v1 = vmul.f32 %v14029_v36, %v4376_v2  ;;  %14050 = vpow2.f32 %v11240_v42  ;;  %v4215_v42 = vadd.f32 %v15698_v41, %v15719_v22 }
 0x3a6   : > { %v14033_v5 = vpop.eup %14032  ;;  %14052 = vrcp.f32 %v4345_v59  ;;  %v4393_v10 = vmul.f32 %v14031_v9, %v14027_v60  ;;  %v11250_v59 = vmul.f32 -1.442695, %v4217_v28  ;;  %v4379_v60 = vld [vmem:[%s15296_s8 + $0x18] sm:$0xff] }
 0x3a7   : > { %v14035_v6 = vpop.eup %14034  ;;  %v4400_v4 = vadd.f32 %v4392_v61, %v4384_v1  ;;  %14054 = vpow2.f32 %v11248_v30  ;;  %v11243_v1 = vmul.f32 -1.442695, %v4220_v20 }
 0x3a8   : > { %v14037_v14 = vpop.eup %14036  ;;  %v4385_v57 = vmul.f32 %v14035_v6, %v4377_v3  ;;  %14056 = vrcp.f32 %v4346_v63  ;;  %v4218_v6 = vadd.f32 %v15694_v25, %v15723_v45 }
 0x3a9   : > { %v14039_v19 = vpop.eup %14038  ;;  %14058 = vtanh.f32 %v4400_v4  ;;  %10567 = vst [vmem:[%s15746_s30] sm:$0xff] %v4400_v4  ;;  %v4299_v56 = vadd.f32 1.0, %v14037_v14  ;;  %v13385_v4 = vld [vmem:[#allocation14] ss:$8 sps:$4 sm:$0xff]  }
 0x3aa   : > { %v14041_v38 = vpop.eup %14040  ;;  %v4401_v8 = vadd.f32 %v4393_v10, %v4385_v57  ;;  %14060 = vpow2.f32 %v11241_v11  ;;  %v4347_v30 = vadd.f32 1.0, %v14039_v19 }
 0x3ab   : > { %v14043_v34 = vpop.eup %14042  ;;  %v4394_v53 = vmul.f32 %v14041_v38, %v14033_v5  ;;  %14062 = vrcp.f32 %v4299_v56  ;;  %v4221_v5 = vadd.f32 %v15691_v23, %v15734_v55  ;;  %v15769_v56 = vld [vmem:[#allocation2 + $0x18] sm:$0x3] }
 0x3ac   : > { %v14045_v39 = vpop.eup %14044  ;;  %14064 = vtanh.f32 %v4401_v8  ;;  %10568 = vst [vmem:[%s15746_s30 + $0x8] sm:$0xff] %v4401_v8  ;;  %v15773_v8 = vrot.slane %v14812_v58, 1  ;;  %v5930_v54 = vrot.slane %v15769_v56, 1 }
 0x3ad   : > { %v14047_v44 = vpop.eup %14046  ;;  %v4386_v7 = vmul.f32 %v14045_v39, %v4378_v32  ;;  %14066 = vpow2.f32 %v11256_v62  ;;  %v11251_v45 = vmul.f32 -1.442695, %v4221_v5 }
 0x3ae   : > { %v14049_v47 = vpop.eup %14048  ;;  %v4395_v48 = vmul.f32 %v14047_v44, %v14043_v34  ;;  %14068 = vpow2.f32 %v11249_v17  ;;  %v4380_v17 = vld [vmem:[%s15296_s8 + $0x20] sm:$0xff]  ;;  %v11258_v34 = vmul.f32 -1.442695, %v4218_v6  ;;  %v13394_v44 = vld [vmem:[#allocation14 + $0x24] ss:$8 sps:$4 sm:$0xff]  }
 0x3af   : > { %v14051_v51 = vpop.eup %14050  ;;  %v4402_v37 = vadd.f32 %v4394_v53, %v4386_v7  ;;  %14070 = vtanh.f32 %v4211_v40  ;;  %v13389_v53 = vld [vmem:[#allocation14 + $0x10] ss:$8 sps:$4 sm:$0xff]  }
 0x3b0   : > { %v14053_v18 = vpop.eup %14052  ;;  %v4252_v46 = vadd.f32 1.0, %v14051_v51  ;;  %14072 = vpow2.f32 %v11242_v12 }
 0x3b1   : > { %v14055_v27 = vpop.eup %14054  ;;  %14074 = vtanh.f32 %v4402_v37  ;;  %10569 = vst [vmem:[%s15746_s30 + $0x10] sm:$0xff] %v4402_v37 }
 0x3b2   : > { %v14057_v2 = vpop.eup %14056  ;;  %14076 = vrcp.f32 %v4252_v46  ;;  %v4300_v49 = vadd.f32 1.0, %v14055_v27  ;;  %v4222_v46 = vadd.f32 %v15694_v25, %v15732_v52  ;;  %v13392_v27 = vld [vmem:[#allocation14 + $0x20] ss:$8 sps:$4 sm:$0xff]  }
 0x3b3   : > { %v14059_v35 = vpop.eup %14058  ;;  %14078 = vpow2.f32 %v11257_v33 }
 0x3b4   : > { %v14061_v61 = vpop.eup %14060  ;;  %14080 = vrcp.f32 %v4300_v49  ;;  %v4416_v36 = vmul.f32 %v14059_v35, %v14049_v47  ;;  %v4223_v47 = vadd.f32 %v15698_v41, %v15738_v13  ;;  %v5931_v41 = vsel %vm819_vm0, %v15773_v8, %v5930_v54 }
 0x3b5   : > { %v14063_v63 = vpop.eup %14062  ;;  %v4253_v9 = vadd.f32 1.0, %v14061_v61  ;;  %14082 = vtanh.f32 %v4215_v42 }
 0x3b6   : > { %v14065_v3 = vpop.eup %14064  ;;  %v4387_v22 = vmul.f32 %v14063_v63, %v4379_v60  ;;  %14084 = vpow2.f32 %v11250_v59  ;;  %v5750_v31 = vrot.slane %v4416_v36, 7 }
 0x3b7   : > { %v14067_v21 = vpop.eup %14066  ;;  %14086 = vrcp.f32 %v4253_v9  ;;  %v4417_v10 = vmul.f32 %v14065_v3, %v14053_v18 }
 0x3b8   : > { %v14069_v11 = vpop.eup %14068  ;;  %14088 = vrcp.f32 %v4347_v30  ;;  %v4403_v15 = vadd.f32 %v4395_v48, %v4387_v22  ;;  %5766 = vst [vmem:[#allocation2 + $0x28] sm:$0xfe] %v5750_v31  ;;  %5767 = vst [vmem:[#allocation2 + $0x38] sm:$0x1] %v5750_v31  ;;  %v4348_v55 = vadd.f32 1.0, %v14067_v21  ;;  %v4381_v22 = vld [vmem:[%s15296_s8 + $0x28] sm:$0xff] }
 0x3b9   : > { %v14071_v14 = vpop.eup %14070  ;;  %v4301_v57 = vadd.f32 1.0, %v14069_v11  ;;  %14090 = vpow2.f32 %v11243_v1  ;;  %v4424_v16 = vpack.c.bf16 %v4417_v10, %v4416_v36  ;;  %v5751_v19 = vrot.slane %v4417_v10, 7  ;;  %v13395_v21 = vld [vmem:[#allocation14 + $0x30] ss:$8 sps:$4 sm:$0xff]  }
 0x3ba   : > { %v14073_v23 = vpop.eup %14072  ;;  %14092 = vtanh.f32 %v4403_v15  ;;  %10570 = vst [vmem:[%s15746_s30 + $0x18] sm:$0xff] %v4403_v15 }
 0x3bb   : > { %v14075_v62 = vpop.eup %14074  ;;  %v4254_v38 = vadd.f32 1.0, %v14073_v23  ;;  %14094 = vtanh.f32 %v4219_v43  ;;  %4638 = vmatmul.mubr.bf16.vlgmr.msra.gmra.mrb[16].mxu0 %v4424_v16  ;;  %5768 = vst [vmem:[#allocation2 + $0x48] sm:$0xfe] %v5751_v19  ;;  %5769 = vst [vmem:[#allocation2 + $0x58] sm:$0x1] %v5751_v19  ;;  %12221 = vmatprep.mubr.bf16.mxu1 %v4424_v16 }
 0x3bc   : > { %v14077_v32 = vpop.eup %14076  ;;  %14096 = vrcp.f32 %v4301_v57  ;;  %4864 = vmatpush1.bf16.msra.mxu0 %v13385_v4  ;;  %4647 = vmatprep.mubr.bf16.mxu0 %v14811_v0  ;;  %v15777_v40 = vmul.f32 %v14075_v62, %v14057_v2  ;;  %v13397_v2 = vld [vmem:[#allocation14 + $0x34] ss:$8 sps:$4 sm:$0xff]   ;;  %v11259_v57 = vmul.f32 -1.442695, %v4222_v46  ;;  %v13400_v16 = vld [vmem:[#allocation14 + $0x44] ss:$8 sps:$4 sm:$0xff]  }
 0x3bd   : > { %v14079_v39 = vpop.eup %14078  ;;  %v4396_v12 = vmul.f32 %v14077_v32, %v14071_v14  ;;  %14098 = vrcp.f32 %v4254_v38  ;;  %4865 = vmatprep.subr.bf16.mxu0 %v13391_v50  ;;  %v13406_v46 = vld [vmem:[#allocation14 + $0x64] ss:$8 sps:$4 sm:$0xff]  }
 0x3be   : > { %v14081_v7 = vpop.eup %14080  ;;  %14100 = vrcp.f32 %v4348_v55  ;;  %v5752_v48 = vrot.slane %v15777_v40, 7  ;;  %v4349_v25 = vadd.f32 1.0, %v14079_v39 }
 0x3bf   : > { %v14083_v28 = vpop.eup %14082  ;;  %v4388_v51 = vmul.f32 %v14081_v7, %v4380_v17  ;;  %14102 = vpow2.f32 %v11251_v45  ;;  %v15783_v37 = vld [vmem:[#allocation2 + $0x28] sm:$0xff]  ;;  %v15785_v33 = vld [vmem:[#allocation2 + $0x38] sm:$0x3] }
 0x3c0   : > { %v14085_v18 = vpop.eup %14084  ;;  %14104 = vpow2.f32 %v11258_v34  ;;  %4866 = vmatpush1.bf16.msra.mxu0 %v13389_v53  ;;  %5770 = vst [vmem:[#allocation2 + $0x68] sm:$0xfe] %v5752_v48  ;;  %5771 = vst [vmem:[#allocation2 + $0x78] sm:$0x1] %v5752_v48  ;;  %v5935_v49 = vrot.slane %v15783_v37, 1  ;;  %v5936_v59 = vrot.slane %v15785_v33, 1 }
 0x3c1   : > { %v14087_v13 = vpop.eup %14086  ;;  %v4404_v42 = vadd.f32 %v4396_v12, %v4388_v51  ;;  %v4302_v20 = vadd.f32 1.0, %v14085_v18  ;;  %4867 = vmatprep.subr.bf16.mxu0 %v13394_v44  ;;  %14106 = vtanh.f32 %v4223_v47  ;;  %v6860_v60 = vrot.slane %v15783_v37, 2  ;;  %v13398_v34 = vld [vmem:[#allocation14 + $0x40] ss:$8 sps:$4 sm:$0xff]  }
 0x3c2   : > { %v14089_v35 = vpop.eup %14088  ;;  %v4397_v52 = vmul.f32 %v14087_v13, %v14083_v28  ;;  %v5791_v61 = vld [vmem:[#allocation2 + $0x48] sm:$0xff]  ;;  %v5793_v30 = vld [vmem:[#allocation2 + $0x58] sm:$0x3]  ;;  %v6861_v63 = vrot.slane %v15785_v33, 2  ;;  %v5937_v9 = vsel %vm819_vm0, %v5935_v49, %v5936_v59  ;;  %v4382_v51 = vld [vmem:[%s15296_s8 + $0x30] sm:$0xff] }
 0x3c3   : > { %v14091_v36 = vpop.eup %14090  ;;  %14108 = vtanh.f32 %v4404_v42  ;;  %10571 = vst [vmem:[%s15746_s30 + $0x20] sm:$0xff] %v4404_v42  ;;  %v5941_v1 = vrot.slane %v5791_v61, 1  ;;  %v15798_v43 = vpack.c.bf16 %v5937_v9, %v5931_v41  ;;  %v5942_v5 = vrot.slane %v5793_v30, 1 }
 0x3c4   : > { %v14093_v3 = vpop.eup %14092  ;;  %14110 = vrcp.f32 %v4302_v20  ;;  %v4255_v31 = vadd.f32 1.0, %v14091_v36  ;;  %4868 = vmatpush1.bf16.msra.mxu0 %v13392_v27  ;;  %v6866_v15 = vrot.slane %v5791_v61, 2  ;;  %v6867_v6 = vrot.slane %v5793_v30, 2  ;;  %v13404_v20 = vld [vmem:[#allocation14 + $0x60] ss:$8 sps:$4 sm:$0xff]  }
 0x3c5   : > { %v14095_v10 = vpop.eup %14094  ;;  %v4419_v11 = vmul.f32 %v14093_v3, %v14089_v35  ;;  %4869 = vmatprep.subr.bf16.mxu0 %v13397_v2  ;;  %v15801_v4 = vpack.c.bf16 %v5791_v61, %v15783_v37  ;;  %v15804_v19 = vsel %vm819_vm0, %v5941_v1, %v5942_v5  ;;  %v15813_v39 = vsel %vm1501_vm1, %v6860_v60, %v6861_v63  ;;  %v13401_v37 = vld [vmem:[#allocation14 + $0x50] ss:$8 sps:$4 sm:$0xff]   ;;  %v13409_v63 = vld [vmem:[#allocation14 + $0x74] ss:$8 sps:$4 sm:$0xff]  }
 0x3c6   : > { %v14097_v14 = vpop.eup %14096  ;;  %14112 = vrcp.f32 %v4255_v31  ;;  %v15810_v45 = vsel %vm1501_vm1, %v6866_v15, %v6867_v6  ;;  %v15816_v12 = vpack.c.bf16 %v15804_v19, %v5937_v9  ;;  %v13407_v15 = vld [vmem:[#allocation14 + $0x70] ss:$8 sps:$4 sm:$0xff]  }
 0x3c7   : > { %v14099_v50 = vpop.eup %14098  ;;  %v4389_v23 = vmul.f32 %v14097_v14, %v4381_v22  ;;  %v4425_v55 = vpack.c.bf16 %v4419_v11, %v15777_v40  ;;  %v5753_v62 = vrot.slane %v4419_v11, 7  ;;  %v15807_v38 = vld [vmem:[#allocation2 + $0x68] sm:$0xff]  ;;  %14114 = vrcp.f32 %v4349_v25  ;;  %v13403_v40 = vld [vmem:[#allocation14 + $0x54] ss:$8 sps:$4 sm:$0xff]   ;;  %v5797_v33 = vld [vmem:[#allocation2 + $0x78] sm:$0x3] }
 0x3c8   : > { %v14101_v32 = vpop.eup %14100  ;;  %v4398_v17 = vmul.f32 %v14099_v50, %v14095_v10  ;;  %4870 = vmatpush1.bf16.msra.mxu0 %v13395_v21  ;;  %14116 = vpow2.f32 %v11259_v57  ;;  %v15820_v47 = vpack.c.bf16 %v15807_v38, %v5791_v61  ;;  %v15824_v48 = vpack.c.bf16 %v15810_v45, %v15813_v39  ;;  %v4383_v50 = vld [vmem:[%s15296_s8 + $0x38] sm:$0xff]  ;;  %s17010_s8 = sld [smem:[#allocation57_spill]] }
 0x3c9   : > { %v14103_v53 = vpop.eup %14102  ;;  %v4405_v54 = vadd.f32 %v4397_v52, %v4389_v23  ;;  %4648 = vmatmul.mubr.bf16.gmra.mrb[20].mxu0 %v4425_v55  ;;  %5772 = vst [vmem:[#allocation2 + $0x88] sm:$0xfe] %v5753_v62  ;;  %5773 = vst [vmem:[#allocation2 + $0x98] sm:$0x1] %v5753_v62  ;;  %12222 = vmatmul.mubr.bf16.vlgmr.msra.gmra.mrb[16].mxu1 %v4425_v55  ;;  %v5947_v2 = vrot.slane %v15807_v38, 1  ;;  %v5948_v49 = vrot.slane %v5797_v33, 1 }
 0x3ca   : > { %v14105_v44 = vpop.eup %14104  ;;  %v4303_v7 = vadd.f32 1.0, %v14103_v53  ;;  %4657 = vmatprep.mubr.bf16.mxu0 %v14811_v0  ;;  %4871 = vmatprep.subr.bf16.mxu0 %v13400_v16  ;;  %v6872_v25 = vrot.slane %v15807_v38, 2  ;;  %v6873_v52 = vrot.slane %v5797_v33, 2 }
 0x3cb   : > { %14118 = vtanh.f32 %v4405_v54  ;;  %10572 = vst [vmem:[%s15746_s30 + $0x28] sm:$0xff] %v4405_v54  ;;  %v14107_v28 = vpop.eup %14106  ;;  %v4350_v41 = vadd.f32 1.0, %v14105_v44  ;;  %v15835_v5 = vsel %vm819_vm0, %v5947_v2, %v5948_v49 }
 0x3cc   : > { %4872 = vmatpush1.bf16.msra.mxu0 %v13398_v34  ;;  %14120 = vrcp.f32 %v4303_v7  ;;  %v15841_v6 = vsel %vm1501_vm1, %v6872_v25, %v6873_v52 }
 0x3cd   : > { %v14109_v18 = vpop.eup %14108  ;;  %4873 = vmatprep.subr.bf16.mxu0 %v13403_v40  ;;  %14122 = vrcp.f32 %v4350_v41 }
 0x3ce   : > { %v14111_v27 = vpop.eup %14110  ;;  %v4420_v13 = vmul.f32 %v14109_v18, %v14101_v32  ;;  %s16654_s16 = scalar_lea.hbm %s17010_s8, %s16648_s9 }
 0x3cf   : > { %v4390_v42 = vmul.f32 %v14111_v27, %v4382_v51 }
 0x3d0   : > { %v14113_v59 = vpop.eup %14112  ;;  %v5754_v35 = vrot.slane %v4420_v13, 7  ;;  %4874 = vmatpush1.bf16.msra.mxu0 %v13401_v37  ;;  %v5799_v60 = vld [vmem:[#allocation2 + $0x88] sm:$0xff]  ;;  %v5801_v61 = vld [vmem:[#allocation2 + $0x98] sm:$0x3] }
 0x3d1   : > { %v4406_v30 = vadd.f32 %v4398_v17, %v4390_v42  ;;  %v4399_v36 = vmul.f32 %v14113_v59, %v14107_v28  ;;  %4875 = vmatprep.subr.bf16.mxu0 %v13406_v46  ;;  %v5953_v9 = vrot.slane %v5799_v60, 1  ;;  %v5954_v1 = vrot.slane %v5801_v61, 1  ;;  %v14115_v21 = vpop.eup %14114 }
 0x3d2   : > { %5774 = vst [vmem:[#allocation2 + $0xa8] sm:$0xfe] %v5754_v35  ;;  %5775 = vst [vmem:[#allocation2 + $0xb8] sm:$0x1] %v5754_v35  ;;  %v6878_v3 = vrot.slane %v5799_v60, 2  ;;  %v6879_v22 = vrot.slane %v5801_v61, 2  ;;  %v15831_v31 = vpack.c.bf16 %v5799_v60, %v15807_v38  ;;  %v14117_v11 = vpop.eup %14116 }
 0x3d3   : > { %14124 = vtanh.f32 %v4406_v30  ;;  %10573 = vst [vmem:[%s15746_s30 + $0x30] sm:$0xff] %v4406_v30  ;;  %v15838_v10 = vsel %vm819_vm0, %v5953_v9, %v5954_v1  ;;  %v4351_v38 = vadd.f32 1.0, %v14117_v11  ;;  %v4744_v11 = vld [vmem:[%s15306_s2 + $0x8] sm:$0xff] }
 0x3d4   : > { %4876 = vmatpush1.bf16.msra.mxu0 %v13404_v20  ;;  %v15844_v14 = vsel %vm1501_vm1, %v6878_v3, %v6879_v22  ;;  %v15848_v57 = vpack.c.bf16 %v15838_v10, %v15835_v5 }
 0x3d5   : > { %v14119_v16 = vpop.eup %14118  ;;  %4877 = vmatprep.subr.bf16.mxu0 %v13409_v63  ;;  %v15853_v23 = vpack.c.bf16 %v15844_v14, %v15841_v6  ;;  %14126 = vrcp.f32 %v4351_v38 }
 0x3d6   : > { %v4421_v55 = vmul.f32 %v14119_v16, %v14115_v21  ;;  %v14121_v62 = vpop.eup %14120  ;;  %v4743_v21 = vld [vmem:[%s15306_s2] sm:$0xff] }
 0x3d7   : > { %v4391_v32 = vmul.f32 %v14121_v62, %v4383_v50  ;;  %v14123_v44 = vpop.eup %14122  ;;  %v4751_v16 = vpack.c.bf16 %v4744_v11, %v4743_v21 }
 0x3d8   : > { %v4426_v17 = vpack.c.bf16 %v4421_v55, %v4420_v13  ;;  %v5755_v34 = vrot.slane %v4421_v55, 7  ;;  %4878 = vmatpush1.bf16.msra.mxu0 %v13407_v15  ;;  %v5821_v15 = vld [vmem:[#allocation2 + $0x138] sm:$0x3]  ;;  %v15885_v55 = vrot.slane %v14812_v58, 2 }
 0x3d9   : > { %v5803_v53 = vld [vmem:[#allocation2 + $0xa8] sm:$0xff]  ;;  %v4407_v54 = vadd.f32 %v4399_v36, %v4391_v32  ;;  %v5805_v28 = vld [vmem:[#allocation2 + $0xb8] sm:$0x3]  ;;  %v9885_v62 = vrot.slane %v5821_v15, 2 }
 0x3da   : > { %4658 = vmatmul.mubr.bf16.gmra.mrb[24].mxu0 %v4426_v17  ;;  %5776 = vst [vmem:[#allocation2 + $0xc8] sm:$0xfe] %v5755_v34  ;;  %5777 = vst [vmem:[#allocation2 + $0xd8] sm:$0x1] %v5755_v34  ;;  %12225 = vmatprep.mubr.bf16.mxu1 %v4426_v17  ;;  %v15856_v40 = vpack.c.bf16 %v5803_v53, %v5799_v60  ;;  %v5959_v37 = vrot.slane %v5803_v53, 1  ;;  %v5960_v18 = vrot.slane %v5805_v28, 1 }
 0x3db   : > { %4667 = vmatprep.mubr.bf16.mxu0 %v14811_v0  ;;  %14128 = vtanh.f32 %v4407_v54  ;;  %10574 = vst [vmem:[%s15746_s30 + $0x38] sm:$0xff] %v4407_v54  ;;  %v6884_v46 = vrot.slane %v5803_v53, 2  ;;  %v6885_v27 = vrot.slane %v5805_v28, 2  ;;  %v4745_v54 = vld [vmem:[%s15306_s2 + $0x10] sm:$0xff]  ;;  %v9886_v58 = vsel %vm1501_vm1, %v15885_v55, %v9885_v62 }
 0x3dc   : > { %v15860_v59 = vsel %vm819_vm0, %v5959_v37, %v5960_v18 }
 0x3dd   : > { %v14125_v7 = vpop.eup %14124  ;;  %v15863_v35 = vsel %vm1501_vm1, %v6884_v46, %v6885_v27  ;;  %v4747_v46 = vld [vmem:[%s15306_s2 + $0x20] sm:$0xff]  ;;  %v4748_v27 = vld [vmem:[%s15306_s2 + $0x28] sm:$0xff] }
 0x3de   : > { %v4422_v51 = vmul.f32 %v14125_v7, %v14123_v44  ;;  %v4746_v44 = vld [vmem:[%s15306_s2 + $0x18] sm:$0xff] }
 0x3df   : > { %v14127_v60 = vpop.eup %14126  ;;  %v4752_v37 = vpack.c.bf16 %v4746_v44, %v4745_v54 }
 0x3e0   : > { %v5756_v33 = vrot.slane %v4422_v51, 7 }
 0x3e1   : > { %v5807_v41 = vld [vmem:[#allocation2 + $0xc8] sm:$0xff]  ;;  %v5809_v13 = vld [vmem:[#allocation2 + $0xd8] sm:$0x3] }
 0x3e2   : > { %5778 = vst [vmem:[#allocation2 + $0xe8] sm:$0xfe] %v5756_v33  ;;  %5779 = vst [vmem:[#allocation2 + $0xf8] sm:$0x1] %v5756_v33  ;;  %v5965_v42 = vrot.slane %v5807_v41, 1  ;;  %v5966_v20 = vrot.slane %v5809_v13, 1 }
 0x3e3   : > { %v6890_v2 = vrot.slane %v5807_v41, 2  ;;  %v6891_v49 = vrot.slane %v5809_v13, 2  ;;  %v4749_v13 = vld [vmem:[%s15306_s2 + $0x30] sm:$0xff] }
 0x3e4   : > { %v15866_v25 = vsel %vm819_vm0, %v5965_v42, %v5966_v20  ;;  %v4750_v42 = vld [vmem:[%s15306_s2 + $0x38] sm:$0xff] }
 0x3e5   : > { %v15869_v52 = vsel %vm1501_vm1, %v6890_v2, %v6891_v49  ;;  %v15873_v61 = vpack.c.bf16 %v15866_v25, %v15860_v59  ;;  %v14129_v36 = vpop.eup %14128  ;;  %v4754_v20 = vpack.c.bf16 %v4750_v42, %v4749_v13  ;;  %v4460_v2 = vld [vmem:[#allocation12] sm:$0x7] }
 0x3e6   : > { %v15877_v30 = vpack.c.bf16 %v15869_v52, %v15863_v35  ;;  %v4423_v63 = vmul.f32 %v14129_v36, %v14127_v60  ;;  %v4465_v49 = vrot.slane %v4460_v2, %v15681_v24  ;;  %v15909_v36 = vrot.slane %v4460_v2, %v15683_v26 }
 0x3e8   : > { %v4427_v9 = vpack.c.bf16 %v4423_v63, %v4422_v51  ;;  %v5757_v1 = vrot.slane %v4423_v63, 7 }
 0x3e9   : > { %v5811_v3 = vld [vmem:[#allocation2 + $0xe8] sm:$0xff]  ;;  %v5813_v50 = vld [vmem:[#allocation2 + $0xf8] sm:$0x3] }
 0x3ea   : > { %4668 = vmatmul.mubr.bf16.gmra.mrb[28].mxu0 %v4427_v9  ;;  %5780 = vst [vmem:[#allocation2 + $0x108] sm:$0xfe] %v5757_v1  ;;  %5781 = vst [vmem:[#allocation2 + $0x118] sm:$0x1] %v5757_v1  ;;  %12226 = vmatmul.mubr.bf16.gmra.mrb[20].mxu1 %v4427_v9  ;;  %v15879_v22 = vpack.c.bf16 %v5811_v3, %v5807_v41  ;;  %v6896_v38 = vrot.slane %v5811_v3, 2  ;;  %v6897_v32 = vrot.slane %v5813_v50, 2 }
 0x3eb   : > { %4895 = vmatprep.mubr.bf16.mxu0 %v14811_v0  ;;  %v4753_v41 = vpack.c.bf16 %v4748_v27, %v4747_v46  ;;  %v4473_v50 = vrot.slane %v4460_v2, %v15685_v29 }
 0x3ec   : > { %v15893_v28 = vsel %vm1501_vm1, %v6896_v38, %v6897_v32 }
 0x3f1   : > { %v5815_v17 = vld [vmem:[#allocation2 + $0x108] sm:$0xff]  ;;  %v5817_v34 = vld [vmem:[#allocation2 + $0x118] sm:$0x3] }
 0x3f2   : > { %4896 = vmatmul.mubr.bf16.vlgmr.msra.gmra.mrb[32].mxu0 %v4751_v16  ;;  %v8403_v53 = vrot.slane %v5815_v17, 2  ;;  %v8404_v7 = vrot.slane %v5817_v34, 2 }
 0x3f3   : > { %4905 = vmatprep.mubr.bf16.mxu0 %v14811_v0 }
 0x3f4   : > { %v8405_v51 = vsel %vm1501_vm1, %v8403_v53, %v8404_v7 }
 0x3f5   : > { %v15897_v33 = vpack.c.bf16 %v8405_v51, %v15893_v28  ;;  %v15899_v18 = vpack.c.bf16 %v9886_v58, %v8405_v51 }
 0x3f7   : > { %16995 = vst [vmem:[#allocation41_spill] sm:$0xff] %v15897_v33  ;;  %16996 = vst [vmem:[#allocation42_spill] sm:$0xff] %v15899_v18 }
 0x3fa   : > { %4906 = vmatmul.mubr.bf16.gmra.mrb[36].mxu0 %v4752_v37 }
 0x3fb   : > { %4915 = vmatprep.mubr.bf16.mxu0 %v14811_v0 }
 0x402   : > { %4916 = vmatmul.mubr.bf16.gmra.mrb[40].mxu0 %v4753_v41 }
 0x403   : > { %4925 = vmatprep.mubr.bf16.mxu0 %v14811_v0 }
 0x40a   : > { %4926 = vmatmul.mubr.bf16.gmra.mrb[44].mxu0 %v4754_v20 }
 0x48e   : > { %v4639_v60 = vpop.f32.mrb[16].mxu0 }
 0x48f   : > { %v4641_v63 = vpop.f32.mrb[17].mxu0  ;;  %v4640_v1 = vadd.f32 %v4639_v60, %v4465_v49 }
 0x490   : > { %v4643_v9 = vpop.f32.mrb[18].mxu0  ;;  %v4642_v11 = vadd.f32 %v4641_v63, %v15909_v36 }
 0x491   : > { %v4644_v3 = vadd.f32 %v4643_v9, %v4465_v49  ;;  %v4645_v21 = vpop.f32.mrb[19].mxu0 }
 0x492   : > { %v4646_v0 = vadd.f32 %v4645_v21, %v15909_v36 }
 0x493   : > { %v4936_v15 = vpack.c.bf16 %v4644_v3, %v4640_v1 }
 0x494   : > { %v4940_v16 = vpack.c.bf16 %v4646_v0, %v4642_v11 }
 0x495   : > { %12237 = vmatprep.mubr.bf16.mxu1 %v4936_v15  ;;  %12253 = vmatprep.mubr.bf16.mxu0 %v4936_v15 }
 0x496   : > { %12229 = vmatprep.subr.bf16.mxu1 %v4940_v16 }
 0x497   : > { %12230 = vmatpush3.bf16.xpose.msra.mxu1 %v4940_v16 }
 0x49c   : > { %v4649_v62 = vpop.f32.mrb[20].mxu0  ;;  %v12223_v38 = vpop.f32.mrb[16].mxu1 }
 0x49d   : > { %v4651_v32 = vpop.f32.mrb[21].mxu0  ;;  %v4712_v17 = vpop.f32.mrb[17].mxu1  ;;  %v4650_v54 = vadd.f32 %v4649_v62, %v4465_v49  ;;  %v15914_v44 = vadd.f32 %v12223_v38, %v4473_v50 }
 0x49e   : > { %v4653_v34 = vpop.f32.mrb[22].mxu0  ;;  %v12224_v53 = vpop.f32.mrb[18].mxu1  ;;  %v4652_v46 = vadd.f32 %v4651_v32, %v15909_v36  ;;  %v15919_v27 = vadd.f32 %v4712_v17, %v4473_v50 }
 0x49f   : > { %v4654_v7 = vadd.f32 %v4653_v34, %v4465_v49  ;;  %v15916_v58 = vadd.f32 %v12224_v53, %v4473_v50  ;;  %v4655_v51 = vpop.f32.mrb[23].mxu0  ;;  %v4715_v37 = vpop.f32.mrb[19].mxu1 }
 0x4a0   : > { %v4656_v41 = vadd.f32 %v4655_v51, %v15909_v36  ;;  %v15922_v13 = vadd.f32 %v4715_v37, %v4473_v50 }
 0x4a1   : > { %v15924_v42 = vpack.c.bf16 %v4654_v7, %v4650_v54  ;;  %v5272_v20 = vpack.c.bf16 %v15916_v58, %v15914_v44  ;;  %v13422_v58 = vld [vmem:[#allocation17 + $0x60] sm:$0xff]  }
 0x4a2   : > { %v4941_v2 = vpack.c.bf16 %v4656_v41, %v4652_v46  ;;  %v5271_v60 = vpack.c.bf16 %v15922_v13, %v15919_v27  ;;  %v13415_v13 = vld [vmem:[#allocation17 + $0x28] sm:$0xff]  }
 0x4a4   : > { %12231 = vmatprep.subr.bf16.mxu1 %v4941_v2 }
 0x4a5   : > { %12232 = vmatpush3.bf16.xpose.msra.mxu1 %v4941_v2 }
 0x4ad   : > { %v4659_v63 = vpop.f32.mrb[24].mxu0 }
 0x4ae   : > { %v4661_v9 = vpop.f32.mrb[25].mxu0  ;;  %v4660_v3 = vadd.f32 %v4659_v63, %v4465_v49 }
 0x4af   : > { %v4663_v1 = vpop.f32.mrb[26].mxu0  ;;  %v4662_v0 = vadd.f32 %v4661_v9, %v15909_v36 }
 0x4b0   : > { %v4664_v21 = vadd.f32 %v4663_v1, %v4465_v49  ;;  %v4665_v11 = vpop.f32.mrb[27].mxu0 }
 0x4b1   : > { %v4666_v15 = vadd.f32 %v4665_v11, %v15909_v36 }
 0x4b2   : > { %v15932_v16 = vpack.c.bf16 %v4664_v21, %v4660_v3  ;;  %v4771_v21 = vld [vmem:[#allocation15] sm:$0x3] }
 0x4b3   : > { %v4942_v62 = vpack.c.bf16 %v4666_v15, %v4662_v0 }
 0x4b5   : > { %12233 = vmatprep.subr.bf16.mxu1 %v4942_v62 }
 0x4b6   : > { %12234 = vmatpush3.bf16.xpose.msra.mxu1 %v4942_v62  ;;  %v13410_v62 = vld [vmem:[#allocation17] sm:$0xff]  }
 0x4bd   : > { %v4669_v38 = vpop.f32.mrb[28].mxu0  ;;  %v12227_v32 = vpop.f32.mrb[20].mxu1 }
 0x4be   : > { %v4670_v17 = vadd.f32 %v4669_v38, %v4465_v49  ;;  %v4671_v34 = vpop.f32.mrb[29].mxu0  ;;  %v4728_v53 = vpop.f32.mrb[21].mxu1  ;;  %v15934_v51 = vadd.f32 %v12227_v32, %v4473_v50  ;;  %v15951_v38 = vrot.slane %v4771_v21, %v15681_v24 }
 0x4bf   : > { %v4673_v54 = vpop.f32.mrb[30].mxu0  ;;  %v12228_v7 = vpop.f32.mrb[22].mxu1  ;;  %v4672_v63 = vadd.f32 %v4671_v34, %v15909_v36  ;;  %v15939_v9 = vadd.f32 %v4728_v53, %v4473_v50 }
 0x4c0   : > { %v4674_v37 = vadd.f32 %v4673_v54, %v4465_v49  ;;  %v15936_v46 = vadd.f32 %v12228_v7, %v4473_v50  ;;  %v4675_v41 = vpop.f32.mrb[31].mxu0  ;;  %v4731_v2 = vpop.f32.mrb[23].mxu1 }
 0x4c1   : > { %v4676_v1 = vadd.f32 %v4675_v41, %v15909_v36  ;;  %v15942_v3 = vadd.f32 %v4731_v2, %v4473_v50  ;;  %v15954_v36 = vrot.slane %v4771_v21, %v15683_v26 }
 0x4c2   : > { %v15944_v11 = vpack.c.bf16 %v4674_v37, %v4670_v17 }
 0x4c3   : > { %v4943_v15 = vpack.c.bf16 %v4676_v1, %v4672_v63  ;;  %v13411_v63 = vld [vmem:[#allocation17 + $0x8] sm:$0xff]  }
 0x4c5   : > { %v4897_v32 = vpop.f32.mrb[32].mxu0  ;;  %12235 = vmatprep.subr.bf16.mxu1 %v4943_v15 }
 0x4c6   : > { %v4899_v50 = vpop.f32.mrb[33].mxu0  ;;  %12236 = vmatpush3.bf16.xpose.msra.mxu1 %v4943_v15  ;;  %v4898_v34 = vadd.f32 %v4897_v32, %v15951_v38  ;;  %v13412_v32 = vld [vmem:[#allocation17 + $0x10] sm:$0xff]  }
 0x4c7   : > { %v4901_v17 = vpop.f32.mrb[34].mxu0  ;;  %12261 = vmatprep.subr.bf16.mxu1 %v13410_v62  ;;  %v15959_v7 = vadd.f32 %v4899_v50, %v15954_v36 }
 0x4c8   : > { %v4902_v53 = vadd.f32 %v4901_v17, %v15951_v38  ;;  %v4903_v54 = vpop.f32.mrb[35].mxu0 }
 0x4c9   : > { %v15962_v37 = vadd.f32 %v4903_v54, %v15954_v36 }
 0x4ca   : > { %v5106_v41 = vpack.c.bf16 %v4902_v53, %v4898_v34 }
 0x4cb   : > { %v16999_v44 = vpack.c.bf16 %v15962_v37, %v15959_v7 }
 0x4cc   : > { %12245 = vmatprep.subr.bf16.mxu0 %v5106_v41 }
 0x4cd   : > { %v4907_v1 = vpop.f32.mrb[36].mxu0  ;;  %12238 = vmatmul.mubr.bf16.vlgmr.msra.gmra.mrb[24].mxu1 %v15924_v42  ;;  %12246 = vmatpush3.bf16.xpose.msra.mxu0 %v5106_v41 }
 0x4ce   : > { %v4909_v21 = vpop.f32.mrb[37].mxu0  ;;  %12241 = vmatprep.mubr.bf16.mxu1 %v15932_v16  ;;  %12262 = vmatpush3.bf16.msra.mxu1 %v13410_v62  ;;  %v4908_v50 = vadd.f32 %v4907_v1, %v15951_v38  ;;  %v13413_v62 = vld [vmem:[#allocation17 + $0x18] sm:$0xff]  }
 0x4cf   : > { %v4911_v15 = vpop.f32.mrb[38].mxu0  ;;  %12263 = vmatprep.subr.bf16.mxu1 %v13411_v63  ;;  %v15971_v53 = vadd.f32 %v4909_v21, %v15954_v36 }
 0x4d0   : > { %v4912_v17 = vadd.f32 %v4911_v15, %v15951_v38  ;;  %v4913_v34 = vpop.f32.mrb[39].mxu0  ;;  %v13414_v15 = vld [vmem:[#allocation17 + $0x20] sm:$0xff]  }
 0x4d1   : > { %v15974_v54 = vadd.f32 %v4913_v34, %v15954_v36 }
 0x4d2   : > { %v5107_v2 = vpack.c.bf16 %v4912_v17, %v4908_v50  ;;  %12264 = vmatpush3.bf16.msra.mxu1 %v13411_v63 }
 0x4d3   : > { %12265 = vmatprep.subr.bf16.mxu1 %v13412_v32 }
 0x4d4   : > { %12247 = vmatprep.subr.bf16.mxu0 %v5107_v2 }
 0x4d5   : > { %v4917_v0 = vpop.f32.mrb[40].mxu0  ;;  %12242 = vmatmul.mubr.bf16.gmra.mrb[28].mxu1 %v15944_v11  ;;  %12248 = vmatpush3.bf16.xpose.msra.mxu0 %v5107_v2 }
 0x4d6   : > { %v4919_v1 = vpop.f32.mrb[41].mxu0  ;;  %12266 = vmatpush3.bf16.msra.mxu1 %v13412_v32  ;;  %12277 = vmatprep.mubr.bf16.mxu1 %v5271_v60  ;;  %v4918_v63 = vadd.f32 %v4917_v0, %v15951_v38 }
 0x4d7   : > { %v4921_v21 = vpop.f32.mrb[42].mxu0  ;;  %12267 = vmatprep.subr.bf16.mxu1 %v13413_v62  ;;  %v15985_v34 = vadd.f32 %v4919_v1, %v15954_v36 }
 0x4d8   : > { %v4922_v50 = vadd.f32 %v4921_v21, %v15951_v38  ;;  %v4923_v17 = vpop.f32.mrb[43].mxu0  ;;  %v13416_v21 = vld [vmem:[#allocation17 + $0x30] sm:$0xff]  }
 0x4d9   : > { %v15988_v41 = vadd.f32 %v4923_v17, %v15954_v36 }
 0x4da   : > { %v5108_v2 = vpack.c.bf16 %v4922_v50, %v4918_v63  ;;  %12268 = vmatpush3.bf16.msra.mxu1 %v13413_v62  ;;  %v13418_v50 = vld [vmem:[#allocation17 + $0x40] sm:$0xff]  }
 0x4db   : > { %v5406_v27 = vpack.c.bf16 %v15988_v41, %v15985_v34  ;;  %12269 = vmatprep.subr.bf16.mxu1 %v13414_v15 }
 0x4dc   : > { %12249 = vmatprep.subr.bf16.mxu0 %v5108_v2 }
 0x4dd   : > { %v4927_v60 = vpop.f32.mrb[44].mxu0  ;;  %12250 = vmatpush3.bf16.xpose.msra.mxu0 %v5108_v2  ;;  %v13417_v2 = vld [vmem:[#allocation17 + $0x38] sm:$0xff]  }
 0x4de   : > { %v4929_v0 = vpop.f32.mrb[45].mxu0  ;;  %12270 = vmatpush3.bf16.msra.mxu1 %v13414_v15  ;;  %v4928_v1 = vadd.f32 %v4927_v60, %v15951_v38  ;;  %v13419_v15 = vld [vmem:[#allocation17 + $0x48] sm:$0xff]  }
 0x4df   : > { %v4931_v32 = vpop.f32.mrb[46].mxu0  ;;  %12271 = vmatprep.subr.bf16.mxu1 %v13415_v13  ;;  %v4930_v62 = vadd.f32 %v4929_v0, %v15954_v36 }
 0x4e0   : > { %v4932_v17 = vadd.f32 %v4931_v32, %v15951_v38  ;;  %v4933_v49 = vpop.f32.mrb[47].mxu0  ;;  %v13420_v38 = vld [vmem:[#allocation17 + $0x50] sm:$0xff]  }
 0x4e1   : > { %v4934_v63 = vadd.f32 %v4933_v49, %v15954_v36  ;;  %v16997_v49 = vpack.c.bf16 %v15942_v3, %v15939_v9  ;;  %v13421_v36 = vld [vmem:[#allocation17 + $0x58] sm:$0xff]  }
 0x4e2   : > { %v5109_v41 = vpack.c.bf16 %v4932_v17, %v4928_v1  ;;  %12272 = vmatpush3.bf16.msra.mxu1 %v13415_v13  ;;  %v13425_v9 = vld [vmem:[#allocation17 + $0x78] sm:$0xff]  }
 0x4e3   : > { %v5407_v34 = vpack.c.bf16 %v4934_v63, %v4930_v62  ;;  %12273 = vmatprep.subr.bf16.mxu1 %v13416_v21 }
 0x4e4   : > { %12251 = vmatprep.subr.bf16.mxu0 %v5109_v41 }
 0x4e5   : > { %12252 = vmatpush3.bf16.xpose.msra.mxu0 %v5109_v41 }
 0x4e6   : > { %12274 = vmatpush3.bf16.msra.mxu1 %v13416_v21  ;;  %12285 = vmatprep.subr.bf16.mxu0 %v13418_v50 }
 0x4e7   : > { %12275 = vmatprep.subr.bf16.mxu1 %v13417_v2 }
 0x4ea   : > { %12276 = vmatpush3.bf16.msra.mxu1 %v13417_v2 }
 0x4ec   : > { %12254 = vmatmul.mubr.bf16.vlgmr.msra.gmra.mrb[48].mxu0 %v15924_v42  ;;  %v16998_v42 = vpack.c.bf16 %v15936_v46, %v15934_v51  ;;  %v17000_v51 = vpack.c.bf16 %v15974_v54, %v15971_v53  ;;  %v16014_v46 = vld [vmem:[#allocation2] sm:$0xff] }
 0x4ed   : > { %12257 = vmatprep.mubr.bf16.mxu0 %v15932_v16  ;;  %12278 = vmatmul.mubr.bf16.vlgmr.msra.gmra.mrb[32].mxu1 %v5272_v20  ;;  %v13423_v20 = vld [vmem:[#allocation17 + $0x68] sm:$0xff]   ;;  %v13424_v16 = vld [vmem:[#allocation17 + $0x70] sm:$0xff]   ;;  %v16926_v3 = vrot.slane %v16014_v46, 2 }
 0x4ee   : > { %12286 = vmatpush3.bf16.msra.mxu0 %v13418_v50  ;;  %12281 = vmatprep.mubr.bf16.mxu1 %v16997_v49 }
 0x4ef   : > { %12287 = vmatprep.subr.bf16.mxu0 %v13419_v15 }
 0x4f2   : > { %12288 = vmatpush3.bf16.msra.mxu0 %v13419_v15 }
 0x4f3   : > { %12289 = vmatprep.subr.bf16.mxu0 %v13420_v38 }
 0x4f4   : > { %12258 = vmatmul.mubr.bf16.gmra.mrb[52].mxu0 %v15944_v11  ;;  %v6855_v11 = vrot.slane %v15769_v56, 2 }
 0x4f5   : > { %12282 = vmatmul.mubr.bf16.gmra.mrb[36].mxu1 %v16998_v42  ;;  %12301 = vmatprep.mubr.bf16.mxu0 %v16999_v44 }
 0x4f6   : > { %12290 = vmatpush3.bf16.msra.mxu0 %v13420_v38  ;;  %v6856_v7 = vsel %vm1501_vm1, %v16926_v3, %v6855_v11 }
 0x4f7   : > { %12291 = vmatprep.subr.bf16.mxu0 %v13421_v36  ;;  %v16022_v37 = vpack.c.bf16 %v15813_v39, %v6856_v7 }
 0x4fa   : > { %12292 = vmatpush3.bf16.msra.mxu0 %v13421_v36 }
 0x4fb   : > { %12293 = vmatprep.subr.bf16.mxu0 %v13422_v58 }
 0x4fe   : > { %12294 = vmatpush3.bf16.msra.mxu0 %v13422_v58 }
 0x4ff   : > { %12295 = vmatprep.subr.bf16.mxu0 %v13423_v20 }
 0x502   : > { %12296 = vmatpush3.bf16.msra.mxu0 %v13423_v20 }
 0x503   : > { %12297 = vmatprep.subr.bf16.mxu0 %v13424_v16 }
 0x506   : > { %12298 = vmatpush3.bf16.msra.mxu0 %v13424_v16 }
 0x507   : > { %12299 = vmatprep.subr.bf16.mxu0 %v13425_v9 }
 0x50a   : > { %12300 = vmatpush3.bf16.msra.mxu0 %v13425_v9 }
 0x50d   : > { %12302 = vmatmul.mubr.bf16.vlgmr.msra.gmra.mrb[56].mxu0 %v17000_v51 }
 0x50e   : > { %12305 = vmatprep.mubr.bf16.mxu0 %v5406_v27 }
 0x515   : > { %12306 = vmatmul.mubr.bf16.gmra.mrb[60].mxu0 %v5407_v34 }
 0x516   : > { %7276 = vmatprep.mubr.bf16.mxu0 %v16022_v37 }
 0x5a0   : > { %v12239_v13 = vpop.f32.mrb[24].mxu1 }
 0x5a1   : > { %v4978_v53 = vpop.f32.mrb[25].mxu1 }
 0x5a2   : > { %v16025_v54 = vpop.f32.mrb[26].mxu1 }
 0x5a3   : > { %v4981_v60 = vpop.f32.mrb[27].mxu1 }
 0x5a8   : > { %v16027_v0 = vpop.f32.mrb[28].mxu1 }
 0x5a9   : > { %v16029_v32 = vpop.f32.mrb[29].mxu1 }
 0x5aa   : > { %v16031_v56 = vpop.f32.mrb[30].mxu1 }
 0x5ab   : > { %v16033_v27 = vpop.f32.mrb[31].mxu1 }
 0x5bf   : > { %v12255_v21 = vpop.f32.mrb[48].mxu0 }
 0x5c0   : > { %v16035_v1 = vmul.f32 0.5, %v12255_v21  ;;  %v5144_v39 = vpop.f32.mrb[49].mxu0  ;;  %v12279_v17 = vpop.f32.mrb[32].mxu1 }
 0x5c1   : > { %v16037_v62 = vmul.f32 0.5, %v5144_v39  ;;  %v12256_v63 = vpop.f32.mrb[50].mxu0  ;;  %v5373_v41 = vpop.f32.mrb[33].mxu1 }
 0x5c2   : > { %v16039_v50 = vmul.f32 0.5, %v12256_v63  ;;  %v5147_v34 = vpop.f32.mrb[51].mxu0  ;;  %v12280_v2 = vpop.f32.mrb[34].mxu1  ;;  %v5189_v15 = vsel %vm5017_vm2, %v16035_v1, -inf }
 0x5c3   : > { %v16043_v49 = vmul.f32 0.5, %v5147_v34  ;;  %v5582_v38 = vpack.c.bf16 %v12280_v2, %v12279_v17  ;;  %5190 = vmax.xlane.f32.xlu1 %v5189_v15  ;;  %v5376_v36 = vpop.f32.mrb[35].mxu1  ;;  %v5183_v42 = vsel %vm5017_vm2, %v16037_v62, -inf }
 0x5c4   : > { %v5581_v44 = vpack.c.bf16 %v5376_v36, %v5373_v41  ;;  %5184 = vmax.xlane.f32.xlu0 %v5183_v42  ;;  %v5192_v58 = vsel %vm5017_vm2, %v16039_v50, -inf }
 0x5c5   : > { %v5186_v16 = vsel %vm5017_vm2, %v16043_v49, -inf }
 0x5c6   : > { %12309 = vmatprep.subr.bf16.mxu1 %v5581_v44 }
 0x5c7   : > { %5193 = vmax.xlane.f32.xlu1 %v5192_v58  ;;  %v12259_v20 = vpop.f32.mrb[52].mxu0  ;;  %12310 = vmatpush3.bf16.msra.mxu1 %v5581_v44  ;;  %v16063_v58 = vmul.f32 0.5, %v4978_v53  ;;  %v16076_v53 = vmul.f32 0.5, %v16025_v54 }
 0x5c8   : > { %5187 = vmax.xlane.f32.xlu0 %v5186_v16  ;;  %v5160_v9 = vpop.f32.mrb[53].mxu0  ;;  %v12283_v51 = vpop.f32.mrb[36].mxu1  ;;  %12311 = vmatprep.subr.bf16.mxu1 %v5582_v38  ;;  %v16053_v63 = vmul.f32 0.5, %v12259_v20 }
 0x5c9   : > { %v16051_v11 = vmul.f32 0.5, %v5160_v9  ;;  %v12260_v7 = vpop.f32.mrb[54].mxu0  ;;  %v5389_v21 = vpop.f32.mrb[37].mxu1  ;;  %v16071_v9 = vmul.f32 0.5, %v12239_v13  ;;  %v5027_v13 = vsel %vm5017_vm2, %v16076_v53, -inf }
 0x5ca   : > { %v5163_v39 = vpop.f32.mrb[55].mxu0  ;;  %v12284_v17 = vpop.f32.mrb[38].mxu1  ;;  %v16059_v42 = vmul.f32 0.5, %v12260_v7  ;;  %v5201_v20 = vsel %vm5017_vm2, %v16053_v63, -inf }
 0x5cb   : > { %v16055_v41 = vmul.f32 0.5, %v5163_v39  ;;  %v5584_v34 = vpack.c.bf16 %v12284_v17, %v12283_v51  ;;  %v5392_v2 = vpop.f32.mrb[39].mxu1  ;;  %12312 = vmatpush3.bf16.msra.mxu1 %v5582_v38  ;;  %v5195_v15 = vsel %vm5017_vm2, %v16051_v11, -inf  ;;  %v16067_v38 = vmul.f32 0.5, %v4981_v60 }
 0x5cc   : > { %v5583_v36 = vpack.c.bf16 %v5392_v2, %v5389_v21  ;;  %5196 = vmax.xlane.f32.xlu0 %v5195_v15  ;;  %v5204_v16 = vsel %vm5017_vm2, %v16059_v42, -inf  ;;  %v5018_v51 = vsel %vm5017_vm2, %v16063_v58, -inf  ;;  %v5024_v60 = vsel %vm5017_vm2, %v16071_v9, -inf }
 0x5cd   : > { %v5198_v44 = vsel %vm5017_vm2, %v16055_v41, -inf  ;;  %v5021_v7 = vsel %vm5017_vm2, %v16067_v38, -inf }
 0x5ce   : > { %5199 = vmax.xlane.f32.xlu1 %v5198_v44  ;;  %12313 = vmatprep.subr.bf16.mxu1 %v5583_v36 }
 0x5cf   : > { %12314 = vmatpush3.bf16.msra.mxu1 %v5583_v36 }
 0x5d0   : > { %5202 = vmax.xlane.f32.xlu0 %v5201_v20  ;;  %12315 = vmatprep.subr.bf16.mxu1 %v5584_v34 }
 0x5d2   : > { %5205 = vmax.xlane.f32.xlu1 %v5204_v16 }
 0x5d3   : > { %12316 = vmatpush3.bf16.msra.mxu1 %v5584_v34 }
 0x5d4   : > { %5019 = vmax.xlane.f32.xlu0 %v5018_v51 }
 0x5d6   : > { %5022 = vmax.xlane.f32.xlu1 %v5021_v7 }
 0x5d8   : > { %5025 = vmax.xlane.f32.xlu0 %v5024_v60 }
 0x5da   : > { %5028 = vmax.xlane.f32.xlu1 %v5027_v13 }
 0x5e0   : > { %v12303_v21 = vpop.f32.mrb[56].mxu0 }
 0x5e1   : > { %v5506_v39 = vpop.f32.mrb[57].mxu0 }
 0x5e2   : > { %v12304_v17 = vpop.f32.mrb[58].mxu0 }
 0x5e3   : > { %v5586_v34 = vpack.c.bf16 %v12304_v17, %v12303_v21  ;;  %v5509_v2 = vpop.f32.mrb[59].mxu0 }
 0x5e4   : > { %v5585_v15 = vpack.c.bf16 %v5509_v2, %v5506_v39 }
 0x5e6   : > { %12317 = vmatprep.subr.bf16.mxu1 %v5585_v15 }
 0x5e7   : > { %12318 = vmatpush3.bf16.msra.mxu1 %v5585_v15 }
 0x5e8   : > { %v12307_v54 = vpop.f32.mrb[60].mxu0  ;;  %12319 = vmatprep.subr.bf16.mxu1 %v5586_v34 }
 0x5e9   : > { %v5522_v36 = vpop.f32.mrb[61].mxu0 }
 0x5ea   : > { %v12308_v44 = vpop.f32.mrb[62].mxu0 }
 0x5eb   : > { %v5588_v20 = vpack.c.bf16 %v12308_v44, %v12307_v54  ;;  %v5525_v16 = vpop.f32.mrb[63].mxu0  ;;  %12320 = vmatpush3.bf16.msra.mxu1 %v5586_v34 }
 0x5ec   : > { %v5587_v51 = vpack.c.bf16 %v5525_v16, %v5522_v36 }
 0x5ee   : > { %12321 = vmatprep.subr.bf16.mxu1 %v5587_v51 }
 0x5ef   : > { %12322 = vmatpush3.bf16.msra.mxu1 %v5587_v51 }
 0x5f0   : > { %12323 = vmatprep.subr.bf16.mxu1 %v5588_v20 }
 0x5f3   : > { %12324 = vmatpush3.bf16.msra.mxu1 %v5588_v20 }
 0x650   : > { %v5191_v7 = vpop.xlane.xlu1 %5190 }
 0x651   : > { %v5209_v60 = vsub.f32 %v16035_v1, %v5191_v7  ;;  %v5185_v13 = vpop.xlane.xlu0 %5184 }
 0x652   : > { %v5207_v21 = vsub.f32 %v16037_v62, %v5185_v13 }
 0x653   : > { %v5219_v39 = vmul.f32 1.442695, %v5209_v60 }
 0x654   : > { %v5215_v17 = vmul.f32 1.442695, %v5207_v21  ;;  %v5194_v2 = vpop.xlane.xlu1 %5193 }
 0x655   : > { %v5210_v15 = vsub.f32 %v16039_v50, %v5194_v2  ;;  %v5188_v3 = vpop.xlane.xlu0 %5187 }
 0x656   : > { %14130 = vpow2.f32 %v5215_v17  ;;  %v5208_v34 = vsub.f32 %v16043_v49, %v5188_v3  ;;  %v5013_v17 = vmul.f32 0.5, %v16029_v32 }
 0x657   : > { %14132 = vpow2.f32 %v5219_v39  ;;  %v5221_v54 = vmul.f32 1.442695, %v5210_v15 }
 0x658   : > { %v5217_v36 = vmul.f32 1.442695, %v5208_v34 }
 0x659   : > { %v5197_v44 = vpop.xlane.xlu0 %5196 }
 0x65a   : > { %14134 = vpow2.f32 %v5217_v36 }
 0x65b   : > { %v16088_v20 = vpop.xlane.xlu1 %5199  ;;  %14136 = vpow2.f32 %v5221_v54 }
 0x65d   : > { %v5203_v1 = vpop.xlane.xlu0 %5202 }
 0x65e   : > { %v5213_v49 = vsub.f32 %v16053_v63, %v5203_v1 }
 0x65f   : > { %v16090_v16 = vpop.xlane.xlu1 %5205 }
 0x660   : > { %v16092_v62 = vpop.eup %14130  ;;  %v5227_v36 = vmul.f32 1.442695, %v5213_v49 }
 0x661   : > { %v5020_v51 = vpop.xlane.xlu0 %5019  ;;  %v5231_v50 = vsel %vm5017_vm2, %v16092_v62, 0.0  ;;  %v16096_v7 = vpop.eup %14132 }
 0x662   : > { %v5042_v3 = vsub.f32 %v16063_v58, %v5020_v51  ;;  %5232 = vadd.xlane.f32.xlu0 %v5231_v50  ;;  %v5237_v15 = vsel %vm5017_vm2, %v16096_v7, 0.0  ;;  %v16114_v50 = vmul.f32 0.5, %v16027_v0 }
 0x663   : > { %v5023_v60 = vpop.xlane.xlu1 %5022 }
 0x664   : > { %v16100_v13 = vpop.eup %14134  ;;  %v5050_v21 = vmul.f32 1.442695, %v5042_v3  ;;  %v5043_v39 = vsub.f32 %v16067_v38, %v5023_v60  ;;  %v5211_v38 = vsub.f32 %v16051_v11, %v5197_v44  ;;  %v5014_v3 = vmul.f32 0.5, %v16033_v27 }
 0x665   : > { %v5026_v2 = vpop.xlane.xlu0 %5025  ;;  %v5234_v34 = vsel %vm5017_vm2, %v16100_v13, 0.0  ;;  %v16108_v54 = vpop.eup %14136  ;;  %v16121_v44 = vmul.f32 0.5, %v16031_v56  ;;  %v5036_v0 = vsel %vm5017_vm2, %v16114_v50, -inf }
 0x666   : > { %14138 = vpow2.f32 %v5050_v21  ;;  %v5052_v58 = vmul.f32 1.442695, %v5043_v39  ;;  %v5044_v63 = vsub.f32 %v16071_v9, %v5026_v2  ;;  %5238 = vadd.xlane.f32.xlu0 %v5237_v15  ;;  %5235 = vadd.xlane.f32.xlu1 %v5234_v34  ;;  %v5240_v60 = vsel %vm5017_vm2, %v16108_v54, 0.0 }
 0x667   : > { %v5029_v1 = vpop.xlane.xlu1 %5028  ;;  %v5030_v9 = vsel %vm5017_vm2, %v5013_v17, -inf  ;;  %v5223_v11 = vmul.f32 1.442695, %v5211_v38  ;;  %v5033_v27 = vsel %vm5017_vm2, %v5014_v3, -inf  ;;  %v5039_v39 = vsel %vm5017_vm2, %v16121_v44, -inf }
 0x668   : > { %14140 = vpow2.f32 %v5052_v58  ;;  %v5054_v32 = vmul.f32 1.442695, %v5044_v63  ;;  %v5045_v51 = vsub.f32 %v16076_v53, %v5029_v1 }
 0x66a   : > { %14142 = vpow2.f32 %v5054_v32  ;;  %v5056_v21 = vmul.f32 1.442695, %v5045_v51  ;;  %5241 = vadd.xlane.f32.xlu1 %v5240_v60  ;;  %5031 = vmax.xlane.f32.xlu0 %v5030_v9 }
 0x66b   : > { %14144 = vpow2.f32 %v5227_v36 }
 0x66c   : > { %14146 = vpow2.f32 %v5056_v21  ;;  %v5214_v21 = vsub.f32 %v16059_v42, %v16090_v16 }
 0x66d   : > { %14148 = vpow2.f32 %v5223_v11 }
 0x66e   : > { %5037 = vmax.xlane.f32.xlu0 %v5036_v0  ;;  %5034 = vmax.xlane.f32.xlu1 %v5033_v27 }
 0x670   : > { %v16126_v53 = vpop.eup %14138 }
 0x671   : > { %v5066_v49 = vsel %vm5017_vm2, %v16126_v53, 0.0 }
 0x672   : > { %v16132_v2 = vpop.eup %14140  ;;  %5067 = vadd.xlane.f32.xlu0 %v5066_v49  ;;  %5040 = vmax.xlane.f32.xlu1 %v5039_v39  ;;  %v5212_v49 = vsub.f32 %v16055_v41, %v16088_v20  ;;  %v5229_v39 = vmul.f32 1.442695, %v5214_v21 }
 0x673   : > { %v5069_v58 = vsel %vm5017_vm2, %v16132_v2, 0.0 }
 0x674   : > { %v16134_v56 = vpop.eup %14142 }
 0x675   : > { %v16136_v15 = vpop.eup %14144  ;;  %v5072_v34 = vsel %vm5017_vm2, %v16134_v56, 0.0 }
 0x676   : > { %v16142_v63 = vpop.eup %14146  ;;  %5073 = vadd.xlane.f32.xlu0 %v5072_v34  ;;  %5070 = vadd.xlane.f32.xlu1 %v5069_v58  ;;  %v5249_v36 = vsel %vm5017_vm2, %v16136_v15, 0.0 }
 0x677   : > { %v5075_v1 = vsel %vm5017_vm2, %v16142_v63, 0.0  ;;  %v16148_v38 = vpop.eup %14148 }
 0x678   : > { %v5243_v32 = vsel %vm5017_vm2, %v16148_v38, 0.0 }
 0x67a   : > { %5250 = vadd.xlane.f32.xlu0 %v5249_v36  ;;  %5076 = vadd.xlane.f32.xlu1 %v5075_v1  ;;  %v5225_v1 = vmul.f32 1.442695, %v5212_v49 }
 0x67e   : > { %5244 = vadd.xlane.f32.xlu0 %v5243_v32 }
 0x6ef   : > { %v5233_v51 = vpop.xlane.xlu0 %5232 }
 0x6f3   : > { %v5239_v60 = vpop.xlane.xlu0 %5238  ;;  %v5236_v9 = vpop.xlane.xlu1 %5235 }
 0x6f7   : > { %v5242_v11 = vpop.xlane.xlu1 %5241  ;;  %v5032_v0 = vpop.xlane.xlu0 %5031 }
 0x6f8   : > { %v5046_v27 = vsub.f32 %v5013_v17, %v5032_v0 }
 0x6fa   : > { %v5058_v34 = vmul.f32 1.442695, %v5046_v27 }
 0x6fb   : > { %v5035_v58 = vpop.xlane.xlu1 %5034 }
 0x6fc   : > { %14150 = vpow2.f32 %v5058_v34  ;;  %v5047_v36 = vsub.f32 %v5014_v3, %v5035_v58 }
 0x6fd   : > { %14152 = vpow2.f32 %v5229_v39 }
 0x6fe   : > { %v5060_v32 = vmul.f32 1.442695, %v5047_v36 }
 0x700   : > { %14154 = vpow2.f32 %v5060_v32  ;;  %v5041_v32 = vpop.xlane.xlu1 %5040 }
 0x701   : > { %14156 = vpow2.f32 %v5225_v1 }
 0x702   : > { %14158 = vrcp.f32 %v5242_v11 }
 0x703   : > { %14160 = vrcp.f32 %v5239_v60 }
 0x704   : > { %14162 = vrcp.f32 %v5236_v9 }
 0x705   : > { %14164 = vrcp.f32 %v5233_v51  ;;  %v5038_v51 = vpop.xlane.xlu0 %5037 }
 0x706   : > { %v16156_v26 = vpop.eup %14150  ;;  %v5048_v9 = vsub.f32 %v16114_v50, %v5038_v51 }
 0x707   : > { %v5078_v42 = vsel %vm5017_vm2, %v16156_v26, 0.0  ;;  %v16160_v16 = vpop.eup %14152 }
 0x708   : > { %5079 = vadd.xlane.f32.xlu1 %v5078_v42  ;;  %v5252_v41 = vsel %vm5017_vm2, %v16160_v16, 0.0  ;;  %v5062_v42 = vmul.f32 1.442695, %v5048_v9 }
 0x709   : > { %v5068_v50 = vpop.xlane.xlu0 %5067 }
 0x70a   : > { %v16162_v17 = vpop.eup %14154  ;;  %14166 = vpow2.f32 %v5062_v42 }
 0x70b   : > { %v16166_v20 = vpop.eup %14156  ;;  %v5081_v3 = vsel %vm5017_vm2, %v16162_v17, 0.0 }
 0x70c   : > { %5253 = vadd.xlane.f32.xlu1 %v5252_v41  ;;  %5082 = vadd.xlane.f32.xlu0 %v5081_v3  ;;  %v5246_v21 = vsel %vm5017_vm2, %v16166_v20, 0.0  ;;  %v14159_v0 = vpop.eup %14158 }
 0x70d   : > { %v14161_v27 = vpop.eup %14160  ;;  %v5266_v39 = vmul.f32 %v14159_v0, %v16108_v54  ;;  %v5049_v54 = vsub.f32 %v16121_v44, %v5041_v32  ;;  %v5071_v0 = vpop.xlane.xlu1 %5070 }
 0x70e   : > { %v14163_v49 = vpop.eup %14162  ;;  %v5265_v58 = vmul.f32 %v14161_v27, %v16096_v7 }
 0x70f   : > { %v14165_v34 = vpop.eup %14164  ;;  %v5264_v36 = vmul.f32 %v14163_v49, %v16100_v13  ;;  %v5064_v41 = vmul.f32 1.442695, %v5049_v54 }
 0x710   : > { %5247 = vadd.xlane.f32.xlu1 %v5246_v21  ;;  %v12893_v1 = vpack.i.bf16 %v5266_v39, %v5265_v58  ;;  %v5263_v11 = vmul.f32 %v14165_v34, %v16092_v62  ;;  %v5074_v21 = vpop.xlane.xlu0 %5073 }
 0x711   : > { %14168 = vpow2.f32 %v5064_v41  ;;  %v5077_v27 = vpop.xlane.xlu1 %5076 }
 0x712   : > { %v12898_v60 = vpack.i.bf16 %v5264_v36, %v5263_v11  ;;  %14170 = vrcp.f32 %v5068_v50 }
 0x713   : > { %14172 = vrcp.f32 %v5071_v0 }
 0x714   : > { %v16180_v7 = vpop.eup %14166  ;;  %v5251_v44 = vpop.xlane.xlu0 %5250  ;;  %14174 = vrcp.f32 %v5074_v21 }
 0x715   : > { %v5084_v62 = vsel %vm5017_vm2, %v16180_v7, 0.0  ;;  %14176 = vrcp.f32 %v5077_v27 }
 0x716   : > { %14178 = vrcp.f32 %v5251_v44 }
 0x718   : > { %v5245_v39 = vpop.xlane.xlu0 %5244 }
 0x71b   : > { %v16182_v13 = vpop.eup %14168 }
 0x71c   : > { %v5087_v3 = vsel %vm5017_vm2, %v16182_v13, 0.0  ;;  %v14171_v36 = vpop.eup %14170 }
 0x71d   : > { %v5098_v42 = vmul.f32 %v14171_v36, %v16126_v53 }
 0x721   : > { %12894 = vrot.lane.b32.xlu1 %v12893_v1, %s14813_s1  ;;  %v14173_v1 = vpop.eup %14172 }
 0x722   : > { %12899 = vrot.lane.b32.xlu0 %v12898_v60, %s14813_s1  ;;  %v14175_v60 = vpop.eup %14174  ;;  %v5099_v41 = vmul.f32 %v14173_v1, %v16132_v2 }
 0x723   : > { %v14177_v9 = vpop.eup %14176 }
 0x724   : > { %v14179_v0 = vpop.eup %14178  ;;  %v5101_v44 = vmul.f32 %v14177_v9, %v16142_v63  ;;  %v13429_v63 = vld [vmem:[#allocation20 + $0x300] ss:$12 sps:$4 sm:$0xff]  }
 0x741   : > { %5085 = vadd.xlane.f32.xlu0 %v5084_v62  ;;  %v5100_v62 = vmul.f32 %v14175_v60, %v16134_v56  ;;  %v5269_v56 = vmul.f32 %v14179_v0, %v16136_v15  ;;  %v13432_v15 = vld [vmem:[#allocation20 + $0x198] ss:$12 sps:$4 sm:$0xff]   ;;  %v13440_v0 = vld [vmem:[#allocation20 + $0x1b4] ss:$12 sps:$4 sm:$0xff]  }
 0x745   : > { %5088 = vadd.xlane.f32.xlu1 %v5087_v3 }
 0x795   : > { %v16188_v49 = vpop.xlane.xlu1 %5079 }
 0x799   : > { %v5254_v34 = vpop.xlane.xlu1 %5253  ;;  %v16190_v58 = vpop.xlane.xlu0 %5082 }
 0x79a   : > { %14180 = vrcp.f32 %v5254_v34 }
 0x79b   : > { %14182 = vrcp.f32 %v5245_v39 }
 0x79d   : > { %v5248_v11 = vpop.xlane.xlu1 %5247  ;;  %v12900_v51 = vpop.permute.xlu0 %12899 }
 0x79e   : > { %14184 = vrcp.f32 %v5248_v11  ;;  %v12902_v32 = vunpack.i.h.bf16 %v12900_v51  ;;  %v12901_v54 = vunpack.i.l.bf16 %v12900_v51 }
 0x79f   : > { %14186 = vrcp.f32 %v16188_v49 }
 0x7a0   : > { %v5569_v50 = vsel %vm5017_vm2, %v5098_v42, %v12901_v54  ;;  %v5570_v21 = vsel %vm5017_vm2, %v5099_v41, %v12902_v32  ;;  %v13426_v32 = vld [vmem:[#allocation20 + $0x180] ss:$12 sps:$4 sm:$0xff]   ;;  %v13428_v54 = vld [vmem:[#allocation20 + $0x184] ss:$12 sps:$4 sm:$0xff]   ;;  %v13434_v41 = vld [vmem:[#allocation20 + $0x19c] ss:$12 sps:$4 sm:$0xff]  }
 0x7a1   : > { %v12895_v3 = vpop.permute.xlu1 %12894  ;;  %v5577_v34 = vpack.c.bf16 %v5570_v21, %v5569_v50  ;;  %v13431_v42 = vld [vmem:[#allocation20 + $0x304] ss:$12 sps:$4 sm:$0xff]   ;;  %6319 = vmatprep.subr.bf16.mxu1 %v13428_v54  ;;  %v13437_v50 = vld [vmem:[#allocation20 + $0x31c] ss:$12 sps:$4 sm:$0xff]   ;;  %v13464_v54 = vld [vmem:[#allocation20 + $0x214] ss:$12 sps:$4 sm:$0xff]  }
 0x7a2   : > { %v12897_v27 = vunpack.i.h.bf16 %v12895_v3  ;;  %v12896_v39 = vunpack.i.l.bf16 %v12895_v3  ;;  %7244 = vmatprep.subr.bf16.mxu0 %v13431_v42  ;;  %v13435_v21 = vld [vmem:[#allocation20 + $0x318] ss:$12 sps:$4 sm:$0xff]   ;;  %v13465_v42 = vld [vmem:[#allocation20 + $0x390] ss:$12 sps:$4 sm:$0xff]  }
 0x7a3   : > { %12325 = vmatprep.mubr.bf16.mxu1 %v5577_v34  ;;  %7245 = vmatpush1.bf16.msra.mxu0 %v13429_v63  ;;  %v13444_v34 = vld [vmem:[#allocation20 + $0x1c8] ss:$12 sps:$4 sm:$0xff]  }
 0x7a4   : > { %v14181_v11 = vpop.eup %14180  ;;  %v5572_v51 = vsel %vm5017_vm2, %v5101_v44, %v12897_v27  ;;  %v5571_v53 = vsel %vm5017_vm2, %v5100_v62, %v12896_v39  ;;  %7246 = vmatprep.subr.bf16.mxu0 %v13437_v50  ;;  %v13443_v44 = vld [vmem:[#allocation20 + $0x334] ss:$12 sps:$4 sm:$0xff]   ;;  %v13438_v27 = vld [vmem:[#allocation20 + $0x1b0] ss:$12 sps:$4 sm:$0xff]   ;;  %v13449_v39 = vld [vmem:[#allocation20 + $0x34c] ss:$12 sps:$4 sm:$0xff]  }
 0x7a5   : > { %v5578_v2 = vpack.c.bf16 %v5572_v51, %v5571_v53  ;;  %v5270_v36 = vmul.f32 %v14181_v11, %v16160_v16  ;;  %v14183_v1 = vpop.eup %14182  ;;  %v13447_v11 = vld [vmem:[#allocation20 + $0x348] ss:$12 sps:$4 sm:$0xff]   ;;  %v13452_v51 = vld [vmem:[#allocation20 + $0x1e4] ss:$12 sps:$4 sm:$0xff]  }
 0x7a6   : > { %v5267_v3 = vmul.f32 %v14183_v1, %v16148_v38  ;;  %v13441_v38 = vld [vmem:[#allocation20 + $0x330] ss:$12 sps:$4 sm:$0xff]   ;;  %v13467_v63 = vld [vmem:[#allocation20 + $0x394] ss:$12 sps:$4 sm:$0xff]  }
 0x7a7   : > { %12326 = vmatmul.mubr.bf16.vlgmr.msra.gmra.mrb[40].mxu1 %v5578_v2  ;;  %v12908_v60 = vpack.i.bf16 %v5270_v36, %v5269_v56  ;;  %7247 = vmatpush1.bf16.msra.mxu0 %v13435_v21  ;;  %v13455_v53 = vld [vmem:[#allocation20 + $0x364] ss:$12 sps:$4 sm:$0xff]   ;;  %v13450_v2 = vld [vmem:[#allocation20 + $0x1e0] ss:$12 sps:$4 sm:$0xff]   ;;  %v13458_v36 = vld [vmem:[#allocation20 + $0x1fc] ss:$12 sps:$4 sm:$0xff]  }
 0x7a8   : > { %v14185_v9 = vpop.eup %14184  ;;  %6320 = vmatpush1.bf16.msra.mxu1 %v13426_v32  ;;  %7248 = vmatprep.subr.bf16.mxu0 %v13443_v44  ;;  %v13453_v56 = vld [vmem:[#allocation20 + $0x360] ss:$12 sps:$4 sm:$0xff]   ;;  %v13461_v1 = vld [vmem:[#allocation20 + $0x37c] ss:$12 sps:$4 sm:$0xff]   ;;  %v13459_v32 = vld [vmem:[#allocation20 + $0x378] ss:$12 sps:$4 sm:$0xff]  }
 0x7a9   : > { %12909 = vrot.lane.b32.xlu1 %v12908_v60, %s14813_s1  ;;  %v5268_v62 = vmul.f32 %v14185_v9, %v16166_v20  ;;  %6321 = vmatprep.subr.bf16.mxu1 %v13434_v41  ;;  %v13446_v20 = vld [vmem:[#allocation20 + $0x1cc] ss:$12 sps:$4 sm:$0xff]   ;;  %v13462_v9 = vld [vmem:[#allocation20 + $0x210] ss:$12 sps:$4 sm:$0xff]   ;;  %v13471_v50 = vld [vmem:[#allocation20 + $0x3a8] ss:$12 sps:$4 sm:$0xff]  }
 0x7aa   : > { %v13456_v60 = vld [vmem:[#allocation20 + $0x1f8] ss:$12 sps:$4 sm:$0xff]   ;;  %v13474_v21 = vld [vmem:[#allocation20 + $0x240] ss:$12 sps:$4 sm:$0xff]   ;;  %v13482_v44 = vld [vmem:[#allocation20 + $0x25c] ss:$12 sps:$4 sm:$0xff]  }
 0x7ab   : > { %v12903_v16 = vpack.i.bf16 %v5268_v62, %v5267_v3  ;;  %7249 = vmatpush1.bf16.msra.mxu0 %v13441_v38  ;;  %v13470_v41 = vld [vmem:[#allocation20 + $0x22c] ss:$12 sps:$4 sm:$0xff]   ;;  %v13468_v62 = vld [vmem:[#allocation20 + $0x228] ss:$12 sps:$4 sm:$0xff]  }
 0x7ac   : > { %6322 = vmatpush1.bf16.msra.mxu1 %v13432_v15  ;;  %7250 = vmatprep.subr.bf16.mxu0 %v13449_v39  ;;  %v13473_v3 = vld [vmem:[#allocation20 + $0x3ac] ss:$12 sps:$4 sm:$0xff]   ;;  %v13476_v15 = vld [vmem:[#allocation20 + $0x244] ss:$12 sps:$4 sm:$0xff]   ;;  %v13488_v39 = vld [vmem:[#allocation20 + $0x274] ss:$12 sps:$4 sm:$0xff]  }
 0x7ad   : > { %12904 = vrot.lane.b32.xlu0 %v12903_v16, %s14813_s1  ;;  %6323 = vmatprep.subr.bf16.mxu1 %v13440_v0  ;;  %v13479_v16 = vld [vmem:[#allocation20 + $0x3c4] ss:$12 sps:$4 sm:$0xff]   ;;  %v13477_v0 = vld [vmem:[#allocation20 + $0x3c0] ss:$12 sps:$4 sm:$0xff]  }
 0x7ae   : > { %v13480_v38 = vld [vmem:[#allocation20 + $0x258] ss:$12 sps:$4 sm:$0xff]  }
 0x7af   : > { %7251 = vmatpush1.bf16.msra.mxu0 %v13447_v11  ;;  %v13486_v11 = vld [vmem:[#allocation20 + $0x270] ss:$12 sps:$4 sm:$0xff]  }
 0x7b0   : > { %6324 = vmatpush1.bf16.msra.mxu1 %v13438_v27  ;;  %7252 = vmatprep.subr.bf16.mxu0 %v13455_v53  ;;  %v13485_v27 = vld [vmem:[#allocation20 + $0x3dc] ss:$12 sps:$4 sm:$0xff]   ;;  %v13494_v53 = vld [vmem:[#allocation20 + $0x28c] ss:$12 sps:$4 sm:$0xff]  }
 0x7b1   : > { %6325 = vmatprep.subr.bf16.mxu1 %v13446_v20  ;;  %v13483_v20 = vld [vmem:[#allocation20 + $0x3d8] ss:$12 sps:$4 sm:$0xff]  }
 0x7b3   : > { %7253 = vmatpush1.bf16.msra.mxu0 %v13453_v56  ;;  %v13492_v56 = vld [vmem:[#allocation20 + $0x288] ss:$12 sps:$4 sm:$0xff]  }
 0x7b4   : > { %6326 = vmatpush1.bf16.msra.mxu1 %v13444_v34  ;;  %7254 = vmatprep.subr.bf16.mxu0 %v13461_v1  ;;  %v13491_v34 = vld [vmem:[#allocation20 + $0x3f4] ss:$12 sps:$4 sm:$0xff]   ;;  %v13500_v1 = vld [vmem:[#allocation20 + $0x2a4] ss:$12 sps:$4 sm:$0xff]  }
 0x7b5   : > { %6327 = vmatprep.subr.bf16.mxu1 %v13452_v51  ;;  %v13489_v51 = vld [vmem:[#allocation20 + $0x3f0] ss:$12 sps:$4 sm:$0xff]  }
 0x7b7   : > { %7255 = vmatpush1.bf16.msra.mxu0 %v13459_v32  ;;  %v13498_v32 = vld [vmem:[#allocation20 + $0x2a0] ss:$12 sps:$4 sm:$0xff]  }
 0x7b8   : > { %6328 = vmatpush1.bf16.msra.mxu1 %v13450_v2  ;;  %7256 = vmatprep.subr.bf16.mxu0 %v13467_v63  ;;  %v13497_v2 = vld [vmem:[#allocation20 + $0x40c] ss:$12 sps:$4 sm:$0xff]   ;;  %v13506_v63 = vld [vmem:[#allocation20 + $0x2bc] ss:$12 sps:$4 sm:$0xff]  }
 0x7b9   : > { %6329 = vmatprep.subr.bf16.mxu1 %v13458_v36  ;;  %v13495_v36 = vld [vmem:[#allocation20 + $0x408] ss:$12 sps:$4 sm:$0xff]  }
 0x7bb   : > { %7257 = vmatpush1.bf16.msra.mxu0 %v13465_v42  ;;  %v13504_v42 = vld [vmem:[#allocation20 + $0x2b8] ss:$12 sps:$4 sm:$0xff]  }
 0x7bc   : > { %6330 = vmatpush1.bf16.msra.mxu1 %v13456_v60  ;;  %7258 = vmatprep.subr.bf16.mxu0 %v13473_v3  ;;  %v13503_v60 = vld [vmem:[#allocation20 + $0x424] ss:$12 sps:$4 sm:$0xff]   ;;  %v13512_v3 = vld [vmem:[#allocation20 + $0x2d4] ss:$12 sps:$4 sm:$0xff]  }
 0x7bd   : > { %6331 = vmatprep.subr.bf16.mxu1 %v13464_v54  ;;  %v13501_v54 = vld [vmem:[#allocation20 + $0x420] ss:$12 sps:$4 sm:$0xff]  }
 0x7bf   : > { %7259 = vmatpush1.bf16.msra.mxu0 %v13471_v50  ;;  %v13510_v50 = vld [vmem:[#allocation20 + $0x2d0] ss:$12 sps:$4 sm:$0xff]  }
 0x7c0   : > { %6332 = vmatpush1.bf16.msra.mxu1 %v13462_v9  ;;  %7260 = vmatprep.subr.bf16.mxu0 %v13479_v16  ;;  %v13509_v9 = vld [vmem:[#allocation20 + $0x43c] ss:$12 sps:$4 sm:$0xff]   ;;  %v13518_v16 = vld [vmem:[#allocation20 + $0x2ec] ss:$12 sps:$4 sm:$0xff]  }
 0x7c1   : > { %6333 = vmatprep.subr.bf16.mxu1 %v13470_v41  ;;  %v13507_v41 = vld [vmem:[#allocation20 + $0x438] ss:$12 sps:$4 sm:$0xff]  }
 0x7c3   : > { %7261 = vmatpush1.bf16.msra.mxu0 %v13477_v0  ;;  %v13516_v0 = vld [vmem:[#allocation20 + $0x2e8] ss:$12 sps:$4 sm:$0xff]  }
 0x7c4   : > { %6334 = vmatpush1.bf16.msra.mxu1 %v13468_v62  ;;  %7262 = vmatprep.subr.bf16.mxu0 %v13485_v27  ;;  %v13515_v62 = vld [vmem:[#allocation20 + $0x454] ss:$12 sps:$4 sm:$0xff]  }
 0x7c5   : > { %6335 = vmatprep.subr.bf16.mxu1 %v13476_v15  ;;  %v13513_v15 = vld [vmem:[#allocation20 + $0x450] ss:$12 sps:$4 sm:$0xff]  }
 0x7c7   : > { %7263 = vmatpush1.bf16.msra.mxu0 %v13483_v20  ;;  %v13524_v20 = vld [vmem:[#allocation20 + $0x484] ss:$12 sps:$4 sm:$0xff]  }
 0x7c8   : > { %6336 = vmatpush1.bf16.msra.mxu1 %v13474_v21  ;;  %7264 = vmatprep.subr.bf16.mxu0 %v13491_v34  ;;  %v13521_v21 = vld [vmem:[#allocation20 + $0x46c] ss:$12 sps:$4 sm:$0xff]  }
 0x7c9   : > { %6337 = vmatprep.subr.bf16.mxu1 %v13482_v44  ;;  %v13519_v44 = vld [vmem:[#allocation20 + $0x468] ss:$12 sps:$4 sm:$0xff]  }
 0x7cb   : > { %7265 = vmatpush1.bf16.msra.mxu0 %v13489_v51 }
 0x7cc   : > { %6338 = vmatpush1.bf16.msra.mxu1 %v13480_v38  ;;  %7266 = vmatprep.subr.bf16.mxu0 %v13497_v2 }
 0x7cd   : > { %6339 = vmatprep.subr.bf16.mxu1 %v13488_v39  ;;  %v14187_v39 = vpop.eup %14186 }
 0x7ce   : > { %v5086_v27 = vpop.xlane.xlu0 %5085 }
 0x7cf   : > { %7267 = vmatpush1.bf16.msra.mxu0 %v13495_v36  ;;  %14188 = vrcp.f32 %v5086_v27 }
 0x7d0   : > { %6340 = vmatpush1.bf16.msra.mxu1 %v13486_v11  ;;  %7268 = vmatprep.subr.bf16.mxu0 %v13503_v60 }
 0x7d1   : > { %6341 = vmatprep.subr.bf16.mxu1 %v13494_v53 }
 0x7d2   : > { %v5089_v38 = vpop.xlane.xlu1 %5088 }
 0x7d3   : > { %7269 = vmatpush1.bf16.msra.mxu0 %v13501_v54  ;;  %14190 = vrcp.f32 %v5089_v38  ;;  %v5102_v54 = vmul.f32 %v14187_v39, %v16156_v26 }
 0x7d4   : > { %6342 = vmatpush1.bf16.msra.mxu1 %v13492_v56  ;;  %7270 = vmatprep.subr.bf16.mxu0 %v13509_v9  ;;  %14192 = vrcp.f32 %v16190_v58 }
 0x7d5   : > { %6343 = vmatprep.subr.bf16.mxu1 %v13500_v1 }
 0x7d7   : > { %7271 = vmatpush1.bf16.msra.mxu0 %v13507_v41 }
 0x7d8   : > { %6344 = vmatpush1.bf16.msra.mxu1 %v13498_v32  ;;  %7272 = vmatprep.subr.bf16.mxu0 %v13515_v62 }
 0x7d9   : > { %6345 = vmatprep.subr.bf16.mxu1 %v13506_v63  ;;  %v14189_v34 = vpop.eup %14188 }
 0x7da   : > { %v5104_v1 = vmul.f32 %v14189_v34, %v16180_v7  ;;  %v16217_v7 = vld [vmem:[#allocation18] ss:$0 sm:$0xff]  ;;  %v5784_v34 = vld [vmem:[#allocation2 + $0x10] sm:$0x3] }
 0x7db   : > { %7273 = vmatpush1.bf16.msra.mxu0 %v13513_v15 }
 0x7dc   : > { %6346 = vmatpush1.bf16.msra.mxu1 %v13504_v42  ;;  %7274 = vmatprep.subr.bf16.mxu0 %v13521_v21 }
 0x7dd   : > { %6347 = vmatprep.subr.bf16.mxu1 %v13512_v3  ;;  %v14191_v51 = vpop.eup %14190 }
 0x7de   : > { %v14193_v53 = vpop.eup %14192  ;;  %v5105_v60 = vmul.f32 %v14191_v51, %v16182_v13  ;;  %v6852_v51 = vrot.slane %v5784_v34, 2 }
 0x7df   : > { %7275 = vmatpush1.bf16.msra.mxu0 %v13519_v44  ;;  %v5103_v58 = vmul.f32 %v14193_v53, %v16162_v17 }
 0x7e0   : > { %6348 = vmatpush1.bf16.msra.mxu1 %v13510_v50  ;;  %7735 = vmatprep.subr.bf16.mxu0 %v13524_v20 }
 0x7e1   : > { %6349 = vmatprep.subr.bf16.mxu1 %v13518_v16  ;;  %v13546_v16 = vld [vmem:[#allocation20 + $0x248] ss:$12 sps:$4 sm:$0xff]  }
 0x7e4   : > { %6350 = vmatpush1.bf16.msra.mxu1 %v13516_v0 }
 0x7e5   : > { %11845 = vmatprep.subr.bf16.mxu1 %v13546_v16  ;;  %v16242_v16 = vpack.c.bf16 %v15835_v5, %v15804_v19 }
 0x81b   : > { %v12910_v11 = vpop.permute.xlu1 %12909 }
 0x81c   : > { %v12912_v2 = vunpack.i.h.bf16 %v12910_v11  ;;  %v12911_v56 = vunpack.i.l.bf16 %v12910_v11  ;;  %v5927_v11 = vrot.slane %v5784_v34, 1  ;;  %v13525_v34 = vld [vmem:[#allocation20 + $0x498] ss:$12 sps:$4 sm:$0xff]  }
 0x81e   : > { %v5575_v63 = vsel %vm5017_vm2, %v5104_v1, %v12911_v56  ;;  %v5576_v9 = vsel %vm5017_vm2, %v5105_v60, %v12912_v2  ;;  %v5928_v56 = vsel %vm819_vm0, %v15773_v8, %v5927_v11  ;;  %v13555_v11 = vld [vmem:[#allocation20 + $0x1a0] ss:$12 sps:$4 sm:$0xff]  }
 0x81f   : > { %v12905_v36 = vpop.permute.xlu0 %12904  ;;  %v5580_v62 = vpack.c.bf16 %v5576_v9, %v5575_v63 }
 0x820   : > { %v12907_v32 = vunpack.i.h.bf16 %v12905_v36  ;;  %v12906_v49 = vunpack.i.l.bf16 %v12905_v36  ;;  %v17001_v36 = vrot.slane %v16014_v46, 2 }
 0x822   : > { %v5573_v42 = vsel %vm5017_vm2, %v5102_v54, %v12906_v49  ;;  %v5574_v41 = vsel %vm5017_vm2, %v5103_v58, %v12907_v32  ;;  %v6853_v1 = vsel %vm1501_vm1, %v17001_v36, %v6852_v51  ;;  %v13556_v36 = vld [vmem:[#allocation20 + $0x278] ss:$12 sps:$4 sm:$0xff]  }
 0x823   : > { %v5579_v3 = vpack.c.bf16 %v5574_v41, %v5573_v42 }
 0x825   : > { %12329 = vmatprep.mubr.bf16.mxu1 %v5579_v3 }
 0x826   : > { %12330 = vmatmul.mubr.bf16.gmra.mrb[44].mxu1 %v5580_v62  ;;  %v13522_v62 = vld [vmem:[#allocation20 + $0x480] ss:$12 sps:$4 sm:$0xff]  }
 0x827   : > { %6351 = vmatprep.mubr.bf16.mxu1 %v15798_v43 }
 0x87a   : > { %v12327_v13 = vpop.f32.mrb[40].mxu1 }
 0x87b   : > { %v5639_v26 = vadd.f32 %v12327_v13, %v16217_v7  ;;  %v5630_v17 = vpop.f32.mrb[41].mxu1 }
 0x87c   : > { %v5631_v50 = vadd.f32 %v16217_v7, %v5630_v17  ;;  %v12328_v15 = vpop.f32.mrb[42].mxu1 }
 0x87d   : > { %v5711_v21 = vrot.slane %v5639_v26, 7  ;;  %v5642_v0 = vadd.f32 %v12328_v15, %v16217_v7  ;;  %v5633_v44 = vpop.f32.mrb[43].mxu1  ;;  %v13550_v15 = vld [vmem:[#allocation20 + $0x188] ss:$12 sps:$4 sm:$0xff]  }
 0x87e   : > { %v5709_v27 = vrot.slane %v5631_v50, 7  ;;  %v5634_v38 = vadd.f32 %v16217_v7, %v5633_v44  ;;  %v13527_v44 = vld [vmem:[#allocation20 + $0x49c] ss:$12 sps:$4 sm:$0xff]  }
 0x87f   : > { %5730 = vst [vmem:[#allocation2 + $0x60] sm:$0xfe] %v5711_v21  ;;  %5731 = vst [vmem:[#allocation2 + $0x70] sm:$0x1] %v5711_v21  ;;  %v5712_v20 = vrot.slane %v5642_v0, 7  ;;  %v16246_v21 = vpack.c.bf16 %v15841_v6, %v15810_v45 }
 0x880   : > { %5726 = vst [vmem:[#allocation2 + $0x20] sm:$0xfe] %v5709_v27  ;;  %5727 = vst [vmem:[#allocation2 + $0x30] sm:$0x1] %v5709_v27  ;;  %v5710_v39 = vrot.slane %v5634_v38, 7 }
 0x881   : > { %5732 = vst [vmem:[#allocation2 + $0x80] sm:$0xfe] %v5712_v20  ;;  %5733 = vst [vmem:[#allocation2 + $0x90] sm:$0x1] %v5712_v20  ;;  %v13551_v27 = vld [vmem:[#allocation20 + $0x260] ss:$12 sps:$4 sm:$0xff]  }
 0x882   : > { %5728 = vst [vmem:[#allocation2 + $0x40] sm:$0xfe] %v5710_v39  ;;  %5729 = vst [vmem:[#allocation2 + $0x50] sm:$0x1] %v5710_v39 }
 0x886   : > { %v16234_v41 = vld [vmem:[#allocation2 + $0x60] sm:$0xff]  ;;  %v5796_v26 = vld [vmem:[#allocation2 + $0x70] sm:$0x3] }
 0x887   : > { %v16223_v53 = vld [vmem:[#allocation2 + $0x20] sm:$0xff]  ;;  %v5788_v2 = vld [vmem:[#allocation2 + $0x30] sm:$0x3]  ;;  %v5944_v38 = vrot.slane %v16234_v41, 1  ;;  %v5945_v19 = vrot.slane %v5796_v26, 1  ;;  %v6869_v45 = vrot.slane %v16234_v41, 2 }
 0x888   : > { %v5932_v60 = vrot.slane %v16223_v53, 1  ;;  %v5933_v32 = vrot.slane %v5788_v2, 1  ;;  %v6857_v49 = vrot.slane %v16223_v53, 2  ;;  %v6858_v54 = vrot.slane %v5788_v2, 2 }
 0x889   : > { %v5790_v58 = vld [vmem:[#allocation2 + $0x40] sm:$0xff]  ;;  %v5792_v63 = vld [vmem:[#allocation2 + $0x50] sm:$0x3]  ;;  %v6870_v5 = vrot.slane %v5796_v26, 2  ;;  %v13539_v26 = vld [vmem:[#allocation20 + $0x4fc] ss:$12 sps:$4 sm:$0xff]  }
 0x88a   : > { %v5934_v9 = vsel %vm819_vm0, %v5932_v60, %v5933_v32  ;;  %v6859_v42 = vsel %vm1501_vm1, %v6857_v49, %v6858_v54  ;;  %v5938_v3 = vrot.slane %v5790_v58, 1  ;;  %v5939_v8 = vrot.slane %v5792_v63, 1  ;;  %v13528_v54 = vld [vmem:[#allocation20 + $0x4b0] ss:$12 sps:$4 sm:$0xff]  }
 0x88b   : > { %v16236_v46 = vpack.c.bf16 %v5934_v9, %v5928_v56  ;;  %v16238_v13 = vpack.c.bf16 %v6859_v42, %v6853_v1  ;;  %v6863_v17 = vrot.slane %v5790_v58, 2  ;;  %v6864_v50 = vrot.slane %v5792_v63, 2  ;;  %v13530_v56 = vld [vmem:[#allocation20 + $0x4b4] ss:$12 sps:$4 sm:$0xff]  }
 0x88c   : > { %v5940_v0 = vsel %vm819_vm0, %v5938_v3, %v5939_v8  ;;  %v16261_v51 = vpack.c.bf16 %v5790_v58, %v16223_v53  ;;  %v16264_v2 = vpack.c.bf16 %v16234_v41, %v5790_v58  ;;  %v16267_v1 = vsel %vm819_vm0, %v5944_v38, %v5945_v19  ;;  %v13560_v58 = vld [vmem:[#allocation20 + $0x1b8] ss:$12 sps:$4 sm:$0xff]   ;;  %v13561_v3 = vld [vmem:[#allocation20 + $0x290] ss:$12 sps:$4 sm:$0xff]   ;;  %v13531_v8 = vld [vmem:[#allocation20 + $0x4c8] ss:$12 sps:$4 sm:$0xff]  }
 0x88d   : > { %6352 = vmatmul.mubr.bf16.vlgmr.msra.gmra.mrb[48].mxu1 %v16236_v46  ;;  %7277 = vmatmul.mubr.bf16.vlgmr.msra.gmra.mrb[64].mxu0 %v16238_v13  ;;  %v16252_v20 = vpack.c.bf16 %v5940_v0, %v5934_v9  ;;  %v6865_v39 = vsel %vm1501_vm1, %v6863_v17, %v6864_v50  ;;  %v16270_v60 = vsel %vm1501_vm1, %v6869_v45, %v6870_v5  ;;  %v13571_v17 = vld [vmem:[#allocation20 + $0x2c0] ss:$12 sps:$4 sm:$0xff]   ;;  %v13537_v50 = vld [vmem:[#allocation20 + $0x4f8] ss:$12 sps:$4 sm:$0xff]   ;;  %v13581_v19 = vld [vmem:[#allocation20 + $0x2f0] ss:$12 sps:$4 sm:$0xff]  }
 0x88e   : > { %6361 = vmatprep.mubr.bf16.mxu1 %v16242_v16  ;;  %7286 = vmatprep.mubr.bf16.mxu0 %v16246_v21  ;;  %v16258_v6 = vpack.c.bf16 %v6865_v39, %v6859_v42  ;;  %v16273_v32 = vpack.c.bf16 %v16267_v1, %v5940_v0  ;;  %v16276_v49 = vpack.c.bf16 %v16270_v60, %v6865_v39  ;;  %v13533_v42 = vld [vmem:[#allocation20 + $0x4cc] ss:$12 sps:$4 sm:$0xff]   ;;  %v13542_v0 = vld [vmem:[#allocation20 + $0x514] ss:$12 sps:$4 sm:$0xff]   ;;  %v13585_v5 = vld [vmem:[#allocation20 + $0x230] ss:$12 sps:$4 sm:$0xff]  }
 0x88f   : > { %7736 = vmatpush1.bf16.msra.mxu0 %v13522_v62  ;;  %11846 = vmatpush3.bf16.msra.mxu1 %v13550_v15  ;;  %v16280_v63 = vpack.c.bf16 %v15860_v59, %v15838_v10  ;;  %v16284_v9 = vpack.c.bf16 %v15863_v35, %v15844_v14  ;;  %v13565_v10 = vld [vmem:[#allocation20 + $0x1d0] ss:$12 sps:$4 sm:$0xff]   ;;  %v13566_v14 = vld [vmem:[#allocation20 + $0x2a8] ss:$12 sps:$4 sm:$0xff]   ;;  %v13534_v35 = vld [vmem:[#allocation20 + $0x4e0] ss:$12 sps:$4 sm:$0xff]  }
 0x890   : > { %7737 = vmatprep.subr.bf16.mxu0 %v13527_v44  ;;  %11847 = vmatprep.subr.bf16.mxu1 %v13551_v27  ;;  %v13536_v59 = vld [vmem:[#allocation20 + $0x4e4] ss:$12 sps:$4 sm:$0xff]   ;;  %v13570_v62 = vld [vmem:[#allocation20 + $0x1e8] ss:$12 sps:$4 sm:$0xff]   ;;  %v13575_v15 = vld [vmem:[#allocation20 + $0x200] ss:$12 sps:$4 sm:$0xff]  }
 0x891   : > { %v13576_v44 = vld [vmem:[#allocation20 + $0x2d8] ss:$12 sps:$4 sm:$0xff]   ;;  %v13540_v27 = vld [vmem:[#allocation20 + $0x510] ss:$12 sps:$4 sm:$0xff]   ;;  %v13543_v45 = vld [vmem:[#allocation20 + $0x528] ss:$12 sps:$4 sm:$0xff]  }
 0x892   : > { %v13580_v38 = vld [vmem:[#allocation20 + $0x218] ss:$12 sps:$4 sm:$0xff]  }
 0x893   : > { %7738 = vmatpush1.bf16.msra.mxu0 %v13525_v34  ;;  %11848 = vmatpush3.bf16.msra.mxu1 %v13555_v11  ;;  %v13545_v39 = vld [vmem:[#allocation20 + $0x52c] ss:$12 sps:$4 sm:$0xff]   ;;  %v13549_v34 = vld [vmem:[#allocation20 + $0x544] ss:$12 sps:$4 sm:$0xff]  }
 0x894   : > { %7739 = vmatprep.subr.bf16.mxu0 %v13530_v56  ;;  %11849 = vmatprep.subr.bf16.mxu1 %v13556_v36  ;;  %v13588_v11 = vld [vmem:[#allocation20 + $0x4] ss:$12 sps:$4 sm:$0xff]   ;;  %v13547_v56 = vld [vmem:[#allocation20 + $0x540] ss:$12 sps:$4 sm:$0xff]   ;;  %v13554_v36 = vld [vmem:[#allocation20 + $0x55c] ss:$12 sps:$4 sm:$0xff]  }
 0x895   : > { %6362 = vmatmul.mubr.bf16.gmra.mrb[52].mxu1 %v16273_v32  ;;  %7287 = vmatmul.mubr.bf16.gmra.mrb[68].mxu0 %v16276_v49 }
 0x896   : > { %6371 = vmatprep.mubr.bf16.mxu1 %v16280_v63  ;;  %7296 = vmatprep.mubr.bf16.mxu0 %v16284_v9 }
 0x897   : > { %7740 = vmatpush1.bf16.msra.mxu0 %v13528_v54  ;;  %11850 = vmatpush3.bf16.msra.mxu1 %v13560_v58  ;;  %v13552_v54 = vld [vmem:[#allocation20 + $0x558] ss:$12 sps:$4 sm:$0xff]   ;;  %v13559_v58 = vld [vmem:[#allocation20 + $0x574] ss:$12 sps:$4 sm:$0xff]  }
 0x898   : > { %7741 = vmatprep.subr.bf16.mxu0 %v13533_v42  ;;  %11851 = vmatprep.subr.bf16.mxu1 %v13561_v3  ;;  %v13557_v42 = vld [vmem:[#allocation20 + $0x570] ss:$12 sps:$4 sm:$0xff]   ;;  %v13564_v3 = vld [vmem:[#allocation20 + $0x58c] ss:$12 sps:$4 sm:$0xff]  }
 0x89b   : > { %7742 = vmatpush1.bf16.msra.mxu0 %v13531_v8  ;;  %11852 = vmatpush3.bf16.msra.mxu1 %v13565_v10  ;;  %v13562_v8 = vld [vmem:[#allocation20 + $0x588] ss:$12 sps:$4 sm:$0xff]   ;;  %v13569_v10 = vld [vmem:[#allocation20 + $0x5a4] ss:$12 sps:$4 sm:$0xff]  }
 0x89c   : > { %7743 = vmatprep.subr.bf16.mxu0 %v13536_v59  ;;  %11853 = vmatprep.subr.bf16.mxu1 %v13566_v14  ;;  %v13567_v59 = vld [vmem:[#allocation20 + $0x5a0] ss:$12 sps:$4 sm:$0xff]   ;;  %v13574_v14 = vld [vmem:[#allocation20 + $0x5bc] ss:$12 sps:$4 sm:$0xff]  }
 0x89f   : > { %7744 = vmatpush1.bf16.msra.mxu0 %v13534_v35  ;;  %11854 = vmatpush3.bf16.msra.mxu1 %v13570_v62  ;;  %v13572_v35 = vld [vmem:[#allocation20 + $0x5b8] ss:$12 sps:$4 sm:$0xff]   ;;  %v13579_v62 = vld [vmem:[#allocation20 + $0x5d4] ss:$12 sps:$4 sm:$0xff]  }
 0x8a0   : > { %7745 = vmatprep.subr.bf16.mxu0 %v13539_v26  ;;  %11855 = vmatprep.subr.bf16.mxu1 %v13571_v17  ;;  %v13577_v26 = vld [vmem:[#allocation20 + $0x5d0] ss:$12 sps:$4 sm:$0xff]   ;;  %v13584_v17 = vld [vmem:[#allocation20 + $0x5ec] ss:$12 sps:$4 sm:$0xff]  }
 0x8a3   : > { %7746 = vmatpush1.bf16.msra.mxu0 %v13537_v50  ;;  %11856 = vmatpush3.bf16.msra.mxu1 %v13575_v15  ;;  %v13582_v50 = vld [vmem:[#allocation20 + $0x5e8] ss:$12 sps:$4 sm:$0xff]   ;;  %v13591_v15 = vld [vmem:[#allocation20 + $0x604] ss:$12 sps:$4 sm:$0xff]  }
 0x8a4   : > { %7747 = vmatprep.subr.bf16.mxu0 %v13542_v0  ;;  %11857 = vmatprep.subr.bf16.mxu1 %v13576_v44 }
 0x8a7   : > { %7748 = vmatpush1.bf16.msra.mxu0 %v13540_v27  ;;  %11858 = vmatpush3.bf16.msra.mxu1 %v13580_v38 }
 0x8a8   : > { %7749 = vmatprep.subr.bf16.mxu0 %v13545_v39  ;;  %11859 = vmatprep.subr.bf16.mxu1 %v13581_v19 }
 0x8ab   : > { %7750 = vmatpush1.bf16.msra.mxu0 %v13543_v45  ;;  %11860 = vmatpush3.bf16.msra.mxu1 %v13585_v5 }
 0x8ac   : > { %7751 = vmatprep.subr.bf16.mxu0 %v13549_v34  ;;  %6713 = vmatprep.subr.bf16.mxu1 %v13588_v11 }
 0x8af   : > { %7752 = vmatpush1.bf16.msra.mxu0 %v13547_v56 }
 0x8b0   : > { %7753 = vmatprep.subr.bf16.mxu0 %v13554_v36 }
 0x8b3   : > { %7754 = vmatpush1.bf16.msra.mxu0 %v13552_v54  ;;  %v16294_v54 = vld [vmem:[#allocation2 + $0x80] sm:$0xff] }
 0x8b4   : > { %7755 = vmatprep.subr.bf16.mxu0 %v13559_v58  ;;  %v5800_v58 = vld [vmem:[#allocation2 + $0x90] sm:$0x3] }
 0x8b7   : > { %7756 = vmatpush1.bf16.msra.mxu0 %v13557_v42  ;;  %v16296_v42 = vld [vmem:[#allocation2 + $0xe8] sm:$0xff] }
 0x8b8   : > { %7757 = vmatprep.subr.bf16.mxu0 %v13564_v3  ;;  %v5971_v3 = vrot.slane %v16296_v42, 1 }
 0x8bb   : > { %7758 = vmatpush1.bf16.msra.mxu0 %v13562_v8  ;;  %v14276_v8 = vld [vmem:[#allocation2 + $0xf8] sm:$0x3] }
 0x8bc   : > { %7759 = vmatprep.subr.bf16.mxu0 %v13569_v10  ;;  %v5972_v10 = vrot.slane %v14276_v8, 1 }
 0x8bf   : > { %7760 = vmatpush1.bf16.msra.mxu0 %v13567_v59  ;;  %v5951_v59 = vrot.slane %v5800_v58, 1 }
 0x8c0   : > { %7761 = vmatprep.subr.bf16.mxu0 %v13574_v14  ;;  %v6875_v14 = vrot.slane %v16294_v54, 2 }
 0x8c3   : > { %7762 = vmatpush1.bf16.msra.mxu0 %v13572_v35  ;;  %v6876_v35 = vrot.slane %v5800_v58, 2 }
 0x8c4   : > { %7763 = vmatprep.subr.bf16.mxu0 %v13579_v62  ;;  %v16302_v62 = vsel %vm819_vm0, %v5971_v3, %v5972_v10 }
 0x8c7   : > { %7764 = vmatpush1.bf16.msra.mxu0 %v13577_v26 }
 0x8c8   : > { %7765 = vmatprep.subr.bf16.mxu0 %v13584_v17 }
 0x8cb   : > { %7766 = vmatpush1.bf16.msra.mxu0 %v13582_v50 }
 0x8cc   : > { %8238 = vmatprep.subr.bf16.mxu0 %v13591_v15 }
 0x8f9   : > { %v12331_v0 = vpop.f32.mrb[44].mxu1 }
 0x8fa   : > { %v5655_v44 = vadd.f32 %v12331_v0, %v16217_v7  ;;  %v5646_v27 = vpop.f32.mrb[45].mxu1 }
 0x8fb   : > { %v5647_v38 = vadd.f32 %v16217_v7, %v5646_v27  ;;  %v12332_v39 = vpop.f32.mrb[46].mxu1 }
 0x8fc   : > { %v5715_v19 = vrot.slane %v5655_v44, 7  ;;  %v5658_v45 = vadd.f32 %v12332_v39, %v16217_v7  ;;  %v5649_v5 = vpop.f32.mrb[47].mxu1  ;;  %v16316_v39 = vpack.c.bf16 %v16302_v62, %v15866_v25 }
 0x8fd   : > { %v5713_v34 = vrot.slane %v5647_v38, 7  ;;  %v5650_v11 = vadd.f32 %v16217_v7, %v5649_v5  ;;  %v5950_v7 = vrot.slane %v16294_v54, 1  ;;  %v16312_v38 = vsel %vm1501_vm1, %v6875_v14, %v6876_v35  ;;  %v5820_v5 = vld [vmem:[#allocation2 + $0x130] sm:$0x3] }
 0x8fe   : > { %5738 = vst [vmem:[#allocation2 + $0xe0] sm:$0xfe] %v5715_v19  ;;  %5739 = vst [vmem:[#allocation2 + $0xf0] sm:$0x1] %v5715_v19  ;;  %v5716_v56 = vrot.slane %v5658_v45, 7  ;;  %v16336_v14 = vpack.c.bf16 %v15893_v28, %v15869_v52 }
 0x8ff   : > { %5734 = vst [vmem:[#allocation2 + $0xa0] sm:$0xfe] %v5713_v34  ;;  %5735 = vst [vmem:[#allocation2 + $0xb0] sm:$0x1] %v5713_v34  ;;  %v5714_v36 = vrot.slane %v5650_v11, 7  ;;  %v16309_v27 = vsel %vm819_vm0, %v5950_v7, %v5951_v59 }
 0x900   : > { %5740 = vst [vmem:[#allocation2 + $0x100] sm:$0xfe] %v5716_v56  ;;  %5741 = vst [vmem:[#allocation2 + $0x110] sm:$0x1] %v5716_v56 }
 0x901   : > { %5736 = vst [vmem:[#allocation2 + $0xc0] sm:$0xfe] %v5714_v36  ;;  %5737 = vst [vmem:[#allocation2 + $0xd0] sm:$0x1] %v5714_v36 }
 0x902   : > { %17002 = vst [vmem:[#allocation43_spill] sm:$0xff] %v16316_v39 }
 0x905   : > { %v16322_v56 = vld [vmem:[#allocation2 + $0xe0] sm:$0xff]  ;;  %v5812_v36 = vld [vmem:[#allocation2 + $0xf0] sm:$0x3] }
 0x906   : > { %v16304_v26 = vld [vmem:[#allocation2 + $0xa0] sm:$0xff]  ;;  %v5804_v17 = vld [vmem:[#allocation2 + $0xb0] sm:$0x3]  ;;  %v6893_v28 = vrot.slane %v16322_v56, 2 }
 0x907   : > { %v5956_v50 = vrot.slane %v16304_v26, 1  ;;  %v5957_v15 = vrot.slane %v5804_v17, 1  ;;  %v6881_v0 = vrot.slane %v16304_v26, 2  ;;  %v6882_v44 = vrot.slane %v5804_v17, 2  ;;  %v16332_v59 = vld [vmem:[#allocation2 + $0x100] sm:$0xff] }
 0x908   : > { %v16318_v19 = vld [vmem:[#allocation2 + $0xc0] sm:$0xff]  ;;  %v5808_v45 = vld [vmem:[#allocation2 + $0xd0] sm:$0x3] }
 0x909   : > { %v5958_v34 = vsel %vm819_vm0, %v5956_v50, %v5957_v15  ;;  %v6883_v11 = vsel %vm1501_vm1, %v6881_v0, %v6882_v44  ;;  %v5962_v58 = vrot.slane %v16318_v19, 1  ;;  %v5963_v3 = vrot.slane %v5808_v45, 1  ;;  %v16349_v52 = vld [vmem:[#allocation2 + $0x110] sm:$0x3] }
 0x90a   : > { %v16326_v8 = vpack.c.bf16 %v5958_v34, %v16309_v27  ;;  %v16329_v25 = vpack.c.bf16 %v6883_v11, %v16312_v38  ;;  %v6887_v10 = vrot.slane %v16318_v19, 2  ;;  %v6888_v7 = vrot.slane %v5808_v45, 2 }
 0x90b   : > { %v5964_v35 = vsel %vm819_vm0, %v5962_v58, %v5963_v3  ;;  %v16341_v17 = vpack.c.bf16 %v16322_v56, %v16318_v19  ;;  %v9882_v50 = vrot.slane %v5820_v5, 2  ;;  %v5968_v15 = vrot.slane %v16322_v56, 1 }
 0x90c   : > { %6372 = vmatmul.mubr.bf16.gmra.mrb[56].mxu1 %v16326_v8  ;;  %7297 = vmatmul.mubr.bf16.gmra.mrb[72].mxu0 %v16329_v25  ;;  %v5969_v0 = vrot.slane %v5812_v36, 1  ;;  %v6889_v44 = vsel %vm1501_vm1, %v6887_v10, %v6888_v7  ;;  %v16347_v45 = vpack.c.bf16 %v5964_v35, %v5958_v34  ;;  %v6894_v5 = vrot.slane %v5812_v36, 2 }
 0x90d   : > { %6381 = vmatprep.mubr.bf16.mxu1 %v16316_v39  ;;  %7306 = vmatprep.mubr.bf16.mxu0 %v16336_v14  ;;  %v16354_v58 = vpack.c.bf16 %v6889_v44, %v6883_v11  ;;  %v8400_v3 = vrot.slane %v16332_v59, 2  ;;  %v8401_v29 = vrot.slane %v16349_v52, 2  ;;  %v9883_v10 = vsel %vm1501_vm1, %v15885_v55, %v9882_v50  ;;  %v13586_v55 = vld [vmem:[#allocation20] ss:$12 sps:$4 sm:$0xff]  }
 0x90e   : > { %v16361_v34 = vsel %vm819_vm0, %v5968_v15, %v5969_v0  ;;  %v6895_v7 = vsel %vm1501_vm1, %v6893_v28, %v6894_v5  ;;  %v13589_v50 = vld [vmem:[#allocation20 + $0x600] ss:$12 sps:$4 sm:$0xff]   ;;  %v13597_v15 = vld [vmem:[#allocation20 + $0x61c] ss:$12 sps:$4 sm:$0xff]  }
 0x90f   : > { %v8402_v24 = vsel %vm1501_vm1, %v8400_v3, %v8401_v29  ;;  %v16366_v18 = vpack.c.bf16 %v16361_v34, %v5964_v35  ;;  %v16368_v36 = vpack.c.bf16 %v6895_v7, %v6889_v44  ;;  %v13594_v29 = vld [vmem:[#allocation20 + $0x1c] ss:$12 sps:$4 sm:$0xff]   ;;  %v13595_v35 = vld [vmem:[#allocation20 + $0x618] ss:$12 sps:$4 sm:$0xff]   ;;  %v13600_v0 = vld [vmem:[#allocation20 + $0x34] ss:$12 sps:$4 sm:$0xff]  }
 0x910   : > { %v16370_v11 = vpack.c.bf16 %v8402_v24, %v6895_v7  ;;  %v16372_v33 = vpack.c.bf16 %v9883_v10, %v8402_v24  ;;  %v13592_v24 = vld [vmem:[#allocation20 + $0x18] ss:$12 sps:$4 sm:$0xff]   ;;  %v13598_v44 = vld [vmem:[#allocation20 + $0x30] ss:$12 sps:$4 sm:$0xff]  }
 0x911   : > { %17003 = vst [vmem:[#allocation44_spill] sm:$0xff] %v16366_v18  ;;  %v13601_v28 = vld [vmem:[#allocation20 + $0x630] ss:$12 sps:$4 sm:$0xff]   ;;  %v13606_v5 = vld [vmem:[#allocation20 + $0x4c] ss:$12 sps:$4 sm:$0xff]  }
 0x912   : > { %17004 = vst [vmem:[#allocation45_spill] sm:$0xff] %v16372_v33  ;;  %v13609_v3 = vld [vmem:[#allocation20 + $0x64c] ss:$12 sps:$4 sm:$0xff]   ;;  %v14277_v10 = vld [vmem:[#allocation2 + $0xa8] sm:$0xff] }
 0x913   : > { %v14278_v7 = vld [vmem:[#allocation2 + $0xc8] sm:$0xff] }
 0x914   : > { %6382 = vmatmul.mubr.bf16.gmra.mrb[60].mxu1 %v16366_v18  ;;  %7307 = vmatmul.mubr.bf16.gmra.mrb[76].mxu0 %v16368_v36  ;;  %v13645_v33 = vld [vmem:[#allocation20 + $0x6dc] ss:$12 sps:$4 sm:$0xff]  }
 0x915   : > { %6424 = vmatprep.mubr.bf16.mxu1 %v15798_v43  ;;  %7767 = vmatprep.mubr.bf16.mxu0 %v15801_v4  ;;  %v13603_v43 = vld [vmem:[#allocation20 + $0x634] ss:$12 sps:$4 sm:$0xff]  }
 0x91c   : > { %6425 = vmatmul.mubr.bf16.vlgmr.msra.gmra.mrb[64].mxu1 %v16236_v46  ;;  %7768 = vmatmul.mubr.bf16.vlgmr.msra.gmra.mrb[64].mxu0 %v16261_v51  ;;  %v16384_v46 = vpack.c.bf16 %v16294_v54, %v16234_v41  ;;  %v13612_v41 = vld [vmem:[#allocation20 + $0x64] ss:$12 sps:$4 sm:$0xff]  }
 0x91d   : > { %6714 = vmatpush1.bf16.msra.mxu1 %v13586_v55  ;;  %8239 = vmatpush1.bf16.msra.mxu0 %v13589_v50  ;;  %v16388_v55 = vpack.c.bf16 %v14278_v7, %v14277_v10  ;;  %v13604_v50 = vld [vmem:[#allocation20 + $0x48] ss:$12 sps:$4 sm:$0xff]   ;;  %v13619_v10 = vld [vmem:[#allocation20 + $0x678] ss:$12 sps:$4 sm:$0xff]  }
 0x91e   : > { %6432 = vmatprep.mubr.bf16.mxu1 %v16242_v16  ;;  %7777 = vmatprep.mubr.bf16.mxu0 %v15831_v31  ;;  %v13627_v7 = vld [vmem:[#allocation20 + $0x694] ss:$12 sps:$4 sm:$0xff]  }
 0x91f   : > { %6715 = vmatprep.subr.bf16.mxu1 %v13594_v29  ;;  %8240 = vmatprep.subr.bf16.mxu0 %v13597_v15  ;;  %v13607_v29 = vld [vmem:[#allocation20 + $0x648] ss:$12 sps:$4 sm:$0xff]   ;;  %v13615_v15 = vld [vmem:[#allocation20 + $0x664] ss:$12 sps:$4 sm:$0xff]  }
 0x921   : > { %6716 = vmatpush1.bf16.msra.mxu1 %v13592_v24  ;;  %8241 = vmatpush1.bf16.msra.mxu0 %v13595_v35  ;;  %v13610_v24 = vld [vmem:[#allocation20 + $0x60] ss:$12 sps:$4 sm:$0xff]  }
 0x922   : > { %6717 = vmatprep.subr.bf16.mxu1 %v13600_v0  ;;  %8242 = vmatprep.subr.bf16.mxu0 %v13603_v43  ;;  %v13613_v35 = vld [vmem:[#allocation20 + $0x660] ss:$12 sps:$4 sm:$0xff]   ;;  %v16394_v0 = vpack.c.bf16 %v16318_v19, %v16304_v26  ;;  %v13618_v43 = vld [vmem:[#allocation20 + $0x7c] ss:$12 sps:$4 sm:$0xff]  }
 0x923   : > { %v13624_v19 = vld [vmem:[#allocation20 + $0x94] ss:$12 sps:$4 sm:$0xff]  }
 0x924   : > { %6433 = vmatmul.mubr.bf16.gmra.mrb[68].mxu1 %v16273_v32  ;;  %7778 = vmatmul.mubr.bf16.gmra.mrb[68].mxu0 %v16384_v46 }
 0x925   : > { %6718 = vmatpush1.bf16.msra.mxu1 %v13598_v44  ;;  %8243 = vmatpush1.bf16.msra.mxu0 %v13601_v28  ;;  %v13621_v44 = vld [vmem:[#allocation20 + $0x67c] ss:$12 sps:$4 sm:$0xff]  }
 0x926   : > { %6440 = vmatprep.mubr.bf16.mxu1 %v16280_v63  ;;  %7787 = vmatprep.mubr.bf16.mxu0 %v16388_v55  ;;  %v16398_v28 = vld [vmem:[#allocation2 + $0x108] sm:$0xff] }
 0x927   : > { %6719 = vmatprep.subr.bf16.mxu1 %v13606_v5  ;;  %8244 = vmatprep.subr.bf16.mxu0 %v13609_v3  ;;  %v16402_v5 = vpack.c.bf16 %v16398_v28, %v16296_v42  ;;  %v13616_v3 = vld [vmem:[#allocation20 + $0x78] ss:$12 sps:$4 sm:$0xff]   ;;  %v16408_v42 = vpack.c.bf16 %v16332_v59, %v16322_v56 }
 0x928   : > { %v13636_v56 = vld [vmem:[#allocation20 + $0xc4] ss:$12 sps:$4 sm:$0xff]  }
 0x929   : > { %6720 = vmatpush1.bf16.msra.mxu1 %v13604_v50  ;;  %8245 = vmatpush1.bf16.msra.mxu0 %v13607_v29  ;;  %v13622_v50 = vld [vmem:[#allocation20 + $0x90] ss:$12 sps:$4 sm:$0xff]  }
 0x92a   : > { %6721 = vmatprep.subr.bf16.mxu1 %v13612_v41  ;;  %8246 = vmatprep.subr.bf16.mxu0 %v13615_v15  ;;  %v13625_v29 = vld [vmem:[#allocation20 + $0x690] ss:$12 sps:$4 sm:$0xff]   ;;  %v13630_v41 = vld [vmem:[#allocation20 + $0xac] ss:$12 sps:$4 sm:$0xff]  }
 0x92b   : > { %v13633_v15 = vld [vmem:[#allocation20 + $0x6ac] ss:$12 sps:$4 sm:$0xff]  }
 0x92c   : > { %6441 = vmatmul.mubr.bf16.gmra.mrb[72].mxu1 %v16326_v8  ;;  %7788 = vmatmul.mubr.bf16.gmra.mrb[72].mxu0 %v16394_v0 }
 0x92d   : > { %6722 = vmatpush1.bf16.msra.mxu1 %v13610_v24  ;;  %8247 = vmatpush1.bf16.msra.mxu0 %v13613_v35  ;;  %v16412_v24 = vld [vmem:[#allocation2] sm:$0xff]  ;;  %v14281_v35 = vld [vmem:[#allocation2 + $0x28] sm:$0xff] }
 0x92e   : > { %6448 = vmatprep.mubr.bf16.mxu1 %v16316_v39  ;;  %7797 = vmatprep.mubr.bf16.mxu0 %v16402_v5  ;;  %v13651_v39 = vld [vmem:[#allocation20 + $0x6f4] ss:$12 sps:$4 sm:$0xff]  }
 0x92f   : > { %6723 = vmatprep.subr.bf16.mxu1 %v13618_v43  ;;  %8248 = vmatprep.subr.bf16.mxu0 %v13621_v44  ;;  %v16415_v43 = vpack.c.bf16 %v14281_v35, %v16412_v24  ;;  %v13628_v44 = vld [vmem:[#allocation20 + $0xa8] ss:$12 sps:$4 sm:$0xff]  }
 0x930   : > { %v13642_v35 = vld [vmem:[#allocation20 + $0xdc] ss:$12 sps:$4 sm:$0xff]  }
 0x931   : > { %6724 = vmatpush1.bf16.msra.mxu1 %v13616_v3  ;;  %8249 = vmatpush1.bf16.msra.mxu0 %v13619_v10  ;;  %v13631_v3 = vld [vmem:[#allocation20 + $0x6a8] ss:$12 sps:$4 sm:$0xff]   ;;  %v13639_v10 = vld [vmem:[#allocation20 + $0x6c4] ss:$12 sps:$4 sm:$0xff]  }
 0x932   : > { %6725 = vmatprep.subr.bf16.mxu1 %v13624_v19  ;;  %8250 = vmatprep.subr.bf16.mxu0 %v13627_v7  ;;  %v13634_v19 = vld [vmem:[#allocation20 + $0xc0] ss:$12 sps:$4 sm:$0xff]  }
 0x933   : > { %v13637_v7 = vld [vmem:[#allocation20 + $0x6c0] ss:$12 sps:$4 sm:$0xff]  }
 0x934   : > { %6449 = vmatmul.mubr.bf16.gmra.mrb[76].mxu1 %v16366_v18  ;;  %7798 = vmatmul.mubr.bf16.gmra.mrb[76].mxu0 %v16408_v42  ;;  %v13648_v18 = vld [vmem:[#allocation20 + $0xf4] ss:$12 sps:$4 sm:$0xff]  }
 0x935   : > { %6726 = vmatpush1.bf16.msra.mxu1 %v13622_v50  ;;  %8251 = vmatpush1.bf16.msra.mxu0 %v13625_v29  ;;  %v13640_v50 = vld [vmem:[#allocation20 + $0xd8] ss:$12 sps:$4 sm:$0xff]  }
 0x936   : > { %6745 = vmatprep.mubr.bf16.mxu1 %v16415_v43  ;;  %8270 = vmatprep.mubr.bf16.mxu0 %v15816_v12  ;;  %v13643_v29 = vld [vmem:[#allocation20 + $0x6d8] ss:$12 sps:$4 sm:$0xff]  }
 0x937   : > { %6727 = vmatprep.subr.bf16.mxu1 %v13630_v41  ;;  %8252 = vmatprep.subr.bf16.mxu0 %v13633_v15  ;;  %v13646_v41 = vld [vmem:[#allocation20 + $0xf0] ss:$12 sps:$4 sm:$0xff]  }
 0x938   : > { %v13649_v15 = vld [vmem:[#allocation20 + $0x6f0] ss:$12 sps:$4 sm:$0xff]  }
 0x939   : > { %6728 = vmatpush1.bf16.msra.mxu1 %v13628_v44  ;;  %8253 = vmatpush1.bf16.msra.mxu0 %v13631_v3  ;;  %v13654_v44 = vld [vmem:[#allocation20 + $0x10c] ss:$12 sps:$4 sm:$0xff]  }
 0x93a   : > { %6729 = vmatprep.subr.bf16.mxu1 %v13636_v56  ;;  %8254 = vmatprep.subr.bf16.mxu0 %v13639_v10  ;;  %v13657_v3 = vld [vmem:[#allocation20 + $0x70c] ss:$12 sps:$4 sm:$0xff]   ;;  %v13652_v56 = vld [vmem:[#allocation20 + $0x108] ss:$12 sps:$4 sm:$0xff]  }
 0x93b   : > { %v13655_v10 = vld [vmem:[#allocation20 + $0x708] ss:$12 sps:$4 sm:$0xff]  }
 0x93d   : > { %6730 = vmatpush1.bf16.msra.mxu1 %v13634_v19  ;;  %8255 = vmatpush1.bf16.msra.mxu0 %v13637_v7  ;;  %v13660_v19 = vld [vmem:[#allocation20 + $0x124] ss:$12 sps:$4 sm:$0xff]  }
 0x93e   : > { %6731 = vmatprep.subr.bf16.mxu1 %v13642_v35  ;;  %8256 = vmatprep.subr.bf16.mxu0 %v13645_v33  ;;  %v13663_v7 = vld [vmem:[#allocation20 + $0x724] ss:$12 sps:$4 sm:$0xff]   ;;  %v13658_v33 = vld [vmem:[#allocation20 + $0x120] ss:$12 sps:$4 sm:$0xff]  }
 0x93f   : > { %v13661_v35 = vld [vmem:[#allocation20 + $0x720] ss:$12 sps:$4 sm:$0xff]  }
 0x941   : > { %6732 = vmatpush1.bf16.msra.mxu1 %v13640_v50  ;;  %8257 = vmatpush1.bf16.msra.mxu0 %v13643_v29  ;;  %v13666_v50 = vld [vmem:[#allocation20 + $0x13c] ss:$12 sps:$4 sm:$0xff]  }
 0x942   : > { %6733 = vmatprep.subr.bf16.mxu1 %v13648_v18  ;;  %8258 = vmatprep.subr.bf16.mxu0 %v13651_v39  ;;  %v13669_v29 = vld [vmem:[#allocation20 + $0x73c] ss:$12 sps:$4 sm:$0xff]   ;;  %v13664_v18 = vld [vmem:[#allocation20 + $0x138] ss:$12 sps:$4 sm:$0xff]  }
 0x943   : > { %v13667_v39 = vld [vmem:[#allocation20 + $0x738] ss:$12 sps:$4 sm:$0xff]  }
 0x945   : > { %6734 = vmatpush1.bf16.msra.mxu1 %v13646_v41  ;;  %8259 = vmatpush1.bf16.msra.mxu0 %v13649_v15  ;;  %v13672_v41 = vld [vmem:[#allocation20 + $0x154] ss:$12 sps:$4 sm:$0xff]  }
 0x946   : > { %6735 = vmatprep.subr.bf16.mxu1 %v13654_v44  ;;  %8260 = vmatprep.subr.bf16.mxu0 %v13657_v3  ;;  %v13675_v15 = vld [vmem:[#allocation20 + $0x754] ss:$12 sps:$4 sm:$0xff]   ;;  %v13670_v44 = vld [vmem:[#allocation20 + $0x150] ss:$12 sps:$4 sm:$0xff]  }
 0x947   : > { %v13673_v3 = vld [vmem:[#allocation20 + $0x750] ss:$12 sps:$4 sm:$0xff]  }
 0x949   : > { %6736 = vmatpush1.bf16.msra.mxu1 %v13652_v56  ;;  %8261 = vmatpush1.bf16.msra.mxu0 %v13655_v10  ;;  %v13678_v56 = vld [vmem:[#allocation20 + $0x16c] ss:$12 sps:$4 sm:$0xff]  }
 0x94a   : > { %6737 = vmatprep.subr.bf16.mxu1 %v13660_v19  ;;  %8262 = vmatprep.subr.bf16.mxu0 %v13663_v7  ;;  %v13681_v10 = vld [vmem:[#allocation20 + $0x76c] ss:$12 sps:$4 sm:$0xff]   ;;  %v13676_v19 = vld [vmem:[#allocation20 + $0x168] ss:$12 sps:$4 sm:$0xff]  }
 0x94b   : > { %v13679_v7 = vld [vmem:[#allocation20 + $0x768] ss:$12 sps:$4 sm:$0xff]  }
 0x94d   : > { %6738 = vmatpush1.bf16.msra.mxu1 %v13658_v33  ;;  %8263 = vmatpush1.bf16.msra.mxu0 %v13661_v35  ;;  %v13682_v33 = vld [vmem:[#allocation20 + $0xc8] ss:$12 sps:$4 sm:$0xff]   ;;  %v13685_v35 = vld [vmem:[#allocation20 + $0x784] ss:$12 sps:$4 sm:$0xff]  }
 0x94e   : > { %6739 = vmatprep.subr.bf16.mxu1 %v13666_v50  ;;  %8264 = vmatprep.subr.bf16.mxu0 %v13669_v29  ;;  %v13686_v50 = vld [vmem:[#allocation20 + $0x8] ss:$12 sps:$4 sm:$0xff]   ;;  %v16421_v29 = vpack.c.bf16 %v16223_v53, %v16412_v24 }
 0x94f   : > { %v13695_v53 = vld [vmem:[#allocation20 + $0x7b4] ss:$12 sps:$4 sm:$0xff]  }
 0x951   : > { %6740 = vmatpush1.bf16.msra.mxu1 %v13664_v18  ;;  %8265 = vmatpush1.bf16.msra.mxu0 %v13667_v39  ;;  %v13683_v18 = vld [vmem:[#allocation20 + $0x780] ss:$12 sps:$4 sm:$0xff]  }
 0x952   : > { %6741 = vmatprep.subr.bf16.mxu1 %v13672_v41  ;;  %8266 = vmatprep.subr.bf16.mxu0 %v13675_v15  ;;  %v13687_v39 = vld [vmem:[#allocation20 + $0xe0] ss:$12 sps:$4 sm:$0xff]   ;;  %v13690_v41 = vld [vmem:[#allocation20 + $0x79c] ss:$12 sps:$4 sm:$0xff]  }
 0x953   : > { %v13691_v15 = vld [vmem:[#allocation20 + $0x20] ss:$12 sps:$4 sm:$0xff]  }
 0x955   : > { %6742 = vmatpush1.bf16.msra.mxu1 %v13670_v44  ;;  %8267 = vmatpush1.bf16.msra.mxu0 %v13673_v3  ;;  %v13688_v44 = vld [vmem:[#allocation20 + $0x798] ss:$12 sps:$4 sm:$0xff]  }
 0x956   : > { %6743 = vmatprep.subr.bf16.mxu1 %v13678_v56  ;;  %8268 = vmatprep.subr.bf16.mxu0 %v13681_v10  ;;  %v13692_v3 = vld [vmem:[#allocation20 + $0xf8] ss:$12 sps:$4 sm:$0xff]   ;;  %v16429_v10 = vpack.c.bf16 %v16309_v27, %v16267_v1  ;;  %v13698_v1 = vld [vmem:[#allocation20 + $0x7c8] ss:$12 sps:$4 sm:$0xff]  }
 0x957   : > { %v13696_v56 = vld [vmem:[#allocation20 + $0x38] ss:$12 sps:$4 sm:$0xff]   ;;  %v13702_v27 = vld [vmem:[#allocation20 + $0x128] ss:$12 sps:$4 sm:$0xff]  }
 0x959   : > { %6744 = vmatpush1.bf16.msra.mxu1 %v13676_v19  ;;  %8269 = vmatpush1.bf16.msra.mxu0 %v13679_v7  ;;  %v13693_v19 = vld [vmem:[#allocation20 + $0x7b0] ss:$12 sps:$4 sm:$0xff]  }
 0x95a   : > { %11885 = vmatprep.subr.bf16.mxu1 %v13682_v33  ;;  %8737 = vmatprep.subr.bf16.mxu0 %v13685_v35  ;;  %v13697_v7 = vld [vmem:[#allocation20 + $0x110] ss:$12 sps:$4 sm:$0xff]   ;;  %v13700_v33 = vld [vmem:[#allocation20 + $0x7cc] ss:$12 sps:$4 sm:$0xff]  }
 0x95b   : > { %v13701_v35 = vld [vmem:[#allocation20 + $0x50] ss:$12 sps:$4 sm:$0xff]  }
 0x95c   : > { %6746 = vmatmul.mubr.bf16.vlgmr.msra.gmra.mrb[48].mxu1 %v16421_v29  ;;  %8271 = vmatmul.mubr.bf16.vlgmr.msra.gmra.mrb[64].mxu0 %v16252_v20 }
 0x95d   : > { %6755 = vmatprep.mubr.bf16.mxu1 %v15820_v47  ;;  %11886 = vmatpush3.bf16.msra.mxu1 %v13686_v50  ;;  %v7904_v50 = vrot.slane %v16398_v28, 1 }
 0x95e   : > { %8280 = vmatprep.mubr.bf16.mxu0 %v15848_v57  ;;  %8738 = vmatpush1.bf16.msra.mxu0 %v13683_v18  ;;  %v14282_v18 = vld [vmem:[#allocation2 + $0x118] sm:$0x3] }
 0x95f   : > { %11887 = vmatprep.subr.bf16.mxu1 %v13687_v39  ;;  %8739 = vmatprep.subr.bf16.mxu0 %v13690_v41  ;;  %v7905_v39 = vrot.slane %v14282_v18, 1  ;;  %v13705_v41 = vld [vmem:[#allocation20 + $0x7e4] ss:$12 sps:$4 sm:$0xff]   ;;  %v7901_v18 = vrot.slane %v16332_v59, 1 }
 0x961   : > { %11888 = vmatpush3.bf16.msra.mxu1 %v13691_v15  ;;  %v13706_v15 = vld [vmem:[#allocation20 + $0x68] ss:$12 sps:$4 sm:$0xff]  }
 0x962   : > { %8740 = vmatpush1.bf16.msra.mxu0 %v13688_v44  ;;  %11889 = vmatprep.subr.bf16.mxu1 %v13692_v3  ;;  %v16437_v44 = vsel %vm819_vm0, %v7904_v50, %v7905_v39  ;;  %v16441_v3 = vpack.c.bf16 %v16304_v26, %v16294_v54  ;;  %v13711_v54 = vld [vmem:[#allocation20 + $0x80] ss:$12 sps:$4 sm:$0xff]   ;;  %v13708_v26 = vld [vmem:[#allocation20 + $0x7f8] ss:$12 sps:$4 sm:$0xff]   ;;  %v13713_v39 = vld [vmem:[#allocation20 + $0x810] ss:$12 sps:$4 sm:$0xff]  }
 0x963   : > { %8741 = vmatprep.subr.bf16.mxu0 %v13695_v53  ;;  %v13703_v53 = vld [vmem:[#allocation20 + $0x7e0] ss:$12 sps:$4 sm:$0xff]   ;;  %v13716_v50 = vld [vmem:[#allocation20 + $0x98] ss:$12 sps:$4 sm:$0xff]  }
 0x964   : > { %6756 = vmatmul.mubr.bf16.gmra.mrb[52].mxu1 %v16264_v2  ;;  %8281 = vmatmul.mubr.bf16.gmra.mrb[68].mxu0 %v16429_v10 }
 0x965   : > { %6765 = vmatprep.mubr.bf16.mxu1 %v15856_v40  ;;  %11890 = vmatpush3.bf16.msra.mxu1 %v13696_v56  ;;  %v13707_v56 = vld [vmem:[#allocation20 + $0x140] ss:$12 sps:$4 sm:$0xff]  }
 0x966   : > { %8290 = vmatprep.mubr.bf16.mxu0 %v15873_v61  ;;  %8742 = vmatpush1.bf16.msra.mxu0 %v13693_v19  ;;  %v13710_v19 = vld [vmem:[#allocation20 + $0x7fc] ss:$12 sps:$4 sm:$0xff]  }
 0x967   : > { %11891 = vmatprep.subr.bf16.mxu1 %v13697_v7  ;;  %8743 = vmatprep.subr.bf16.mxu0 %v13700_v33  ;;  %v7902_v7 = vrot.slane %v16349_v52, 1  ;;  %v16449_v33 = vpack.c.bf16 %v16437_v44, %v16302_v62  ;;  %v13715_v52 = vld [vmem:[#allocation20 + $0x814] ss:$12 sps:$4 sm:$0xff]  }
 0x969   : > { %11892 = vmatpush3.bf16.msra.mxu1 %v13701_v35  ;;  %v13712_v35 = vld [vmem:[#allocation20 + $0x158] ss:$12 sps:$4 sm:$0xff]   ;;  %v16454_v59 = vsel %vm819_vm0, %v7901_v18, %v7902_v7  ;;  %v13727_v18 = vld [vmem:[#allocation20 + $0x3e0] ss:$12 sps:$4 sm:$0xff]   ;;  %v13730_v7 = vld [vmem:[#allocation20 + $0x85c] ss:$12 sps:$4 sm:$0xff]  }
 0x96a   : > { %8744 = vmatpush1.bf16.msra.mxu0 %v13698_v1  ;;  %11893 = vmatprep.subr.bf16.mxu1 %v13702_v27  ;;  %v16458_v62 = vpack.c.bf16 %v16454_v59, %v16361_v34  ;;  %v13717_v1 = vld [vmem:[#allocation20 + $0x170] ss:$12 sps:$4 sm:$0xff]   ;;  %v13720_v27 = vld [vmem:[#allocation20 + $0x82c] ss:$12 sps:$4 sm:$0xff]  }
 0x96b   : > { %8745 = vmatprep.subr.bf16.mxu0 %v13705_v41  ;;  %v13721_v41 = vld [vmem:[#allocation20 + $0xb0] ss:$12 sps:$4 sm:$0xff]  }
 0x96c   : > { %6766 = vmatmul.mubr.bf16.gmra.mrb[56].mxu1 %v16441_v3  ;;  %8291 = vmatmul.mubr.bf16.gmra.mrb[72].mxu0 %v16347_v45  ;;  %v13725_v34 = vld [vmem:[#allocation20 + $0x844] ss:$12 sps:$4 sm:$0xff]  }
 0x96d   : > { %6775 = vmatprep.mubr.bf16.mxu1 %v15879_v22  ;;  %11894 = vmatpush3.bf16.msra.mxu1 %v13706_v15  ;;  %v13718_v15 = vld [vmem:[#allocation20 + $0x828] ss:$12 sps:$4 sm:$0xff]  }
 0x96e   : > { %8300 = vmatprep.mubr.bf16.mxu0 %v16449_v33  ;;  %8746 = vmatpush1.bf16.msra.mxu0 %v13703_v53  ;;  %v13722_v53 = vld [vmem:[#allocation20 + $0x3c8] ss:$12 sps:$4 sm:$0xff]  }
 0x96f   : > { %11895 = vmatprep.subr.bf16.mxu1 %v13707_v56  ;;  %8747 = vmatprep.subr.bf16.mxu0 %v13710_v19  ;;  %v13726_v56 = vld [vmem:[#allocation20 + $0x308] ss:$12 sps:$4 sm:$0xff]   ;;  %v13723_v19 = vld [vmem:[#allocation20 + $0x840] ss:$12 sps:$4 sm:$0xff]  }
 0x971   : > { %11896 = vmatpush3.bf16.msra.mxu1 %v13711_v54  ;;  %v13728_v54 = vld [vmem:[#allocation20 + $0x858] ss:$12 sps:$4 sm:$0xff]  }
 0x972   : > { %8748 = vmatpush1.bf16.msra.mxu0 %v13708_v26  ;;  %11897 = vmatprep.subr.bf16.mxu1 %v13712_v35  ;;  %v13732_v26 = vld [vmem:[#allocation20 + $0x3f8] ss:$12 sps:$4 sm:$0xff]   ;;  %v13735_v35 = vld [vmem:[#allocation20 + $0x874] ss:$12 sps:$4 sm:$0xff]  }
 0x973   : > { %8749 = vmatprep.subr.bf16.mxu0 %v13715_v52  ;;  %v13736_v52 = vld [vmem:[#allocation20 + $0x338] ss:$12 sps:$4 sm:$0xff]  }
 0x974   : > { %6776 = vmatmul.mubr.bf16.gmra.mrb[60].mxu1 %v16341_v17  ;;  %8301 = vmatmul.mubr.bf16.gmra.mrb[76].mxu0 %v16458_v62 }
 0x975   : > { %11898 = vmatpush3.bf16.msra.mxu1 %v13716_v50  ;;  %6818 = vmatprep.mubr.bf16.mxu1 %v16415_v43  ;;  %v13731_v43 = vld [vmem:[#allocation20 + $0x320] ss:$12 sps:$4 sm:$0xff]   ;;  %v13733_v50 = vld [vmem:[#allocation20 + $0x870] ss:$12 sps:$4 sm:$0xff]  }
 0x976   : > { %8750 = vmatpush1.bf16.msra.mxu0 %v13713_v39  ;;  %8769 = vmatprep.mubr.bf16.mxu0 %v15824_v48  ;;  %v13737_v39 = vld [vmem:[#allocation20 + $0x410] ss:$12 sps:$4 sm:$0xff]  }
 0x977   : > { %11899 = vmatprep.subr.bf16.mxu1 %v13717_v1  ;;  %8751 = vmatprep.subr.bf16.mxu0 %v13720_v27  ;;  %v13740_v1 = vld [vmem:[#allocation20 + $0x88c] ss:$12 sps:$4 sm:$0xff]   ;;  %v13738_v27 = vld [vmem:[#allocation20 + $0x888] ss:$12 sps:$4 sm:$0xff]  }
 0x979   : > { %11900 = vmatpush3.bf16.msra.mxu1 %v13721_v41  ;;  %v13742_v41 = vld [vmem:[#allocation20 + $0x428] ss:$12 sps:$4 sm:$0xff]  }
 0x97a   : > { %8752 = vmatpush1.bf16.msra.mxu0 %v13718_v15  ;;  %11925 = vmatprep.subr.bf16.mxu1 %v13722_v53  ;;  %v13745_v15 = vld [vmem:[#allocation20 + $0x8a4] ss:$12 sps:$4 sm:$0xff]   ;;  %v13746_v53 = vld [vmem:[#allocation20 + $0x368] ss:$12 sps:$4 sm:$0xff]  }
 0x97b   : > { %8753 = vmatprep.subr.bf16.mxu0 %v13725_v34  ;;  %v13743_v34 = vld [vmem:[#allocation20 + $0x8a0] ss:$12 sps:$4 sm:$0xff]  }
 0x97c   : > { %6819 = vmatmul.mubr.bf16.vlgmr.msra.gmra.mrb[80].mxu1 %v16421_v29  ;;  %v13741_v29 = vld [vmem:[#allocation20 + $0x350] ss:$12 sps:$4 sm:$0xff]  }
 0x97d   : > { %6826 = vmatprep.mubr.bf16.mxu1 %v15820_v47  ;;  %11926 = vmatpush3.bf16.msra.mxu1 %v13726_v56  ;;  %v13747_v56 = vld [vmem:[#allocation20 + $0x440] ss:$12 sps:$4 sm:$0xff]  }
 0x97e   : > { %8754 = vmatpush1.bf16.msra.mxu0 %v13723_v19  ;;  %11927 = vmatprep.subr.bf16.mxu1 %v13727_v18  ;;  %v13750_v19 = vld [vmem:[#allocation20 + $0x8bc] ss:$12 sps:$4 sm:$0xff]   ;;  %v13751_v18 = vld [vmem:[#allocation20 + $0x380] ss:$12 sps:$4 sm:$0xff]  }
 0x97f   : > { %8755 = vmatprep.subr.bf16.mxu0 %v13730_v7  ;;  %v13748_v7 = vld [vmem:[#allocation20 + $0x8b8] ss:$12 sps:$4 sm:$0xff]  }
 0x981   : > { %11928 = vmatpush3.bf16.msra.mxu1 %v13731_v43  ;;  %v13752_v43 = vld [vmem:[#allocation20 + $0x458] ss:$12 sps:$4 sm:$0xff]  }
 0x982   : > { %8756 = vmatpush1.bf16.msra.mxu0 %v13728_v54  ;;  %11929 = vmatprep.subr.bf16.mxu1 %v13732_v26  ;;  %v13755_v54 = vld [vmem:[#allocation20 + $0x8d4] ss:$12 sps:$4 sm:$0xff]   ;;  %v13756_v26 = vld [vmem:[#allocation20 + $0x398] ss:$12 sps:$4 sm:$0xff]  }
 0x983   : > { %8757 = vmatprep.subr.bf16.mxu0 %v13735_v35  ;;  %v13753_v35 = vld [vmem:[#allocation20 + $0x8d0] ss:$12 sps:$4 sm:$0xff]  }
 0x984   : > { %6827 = vmatmul.mubr.bf16.gmra.mrb[84].mxu1 %v16264_v2 }
 0x985   : > { %6834 = vmatprep.mubr.bf16.mxu1 %v15856_v40  ;;  %11930 = vmatpush3.bf16.msra.mxu1 %v13736_v52  ;;  %v13757_v52 = vld [vmem:[#allocation20 + $0x470] ss:$12 sps:$4 sm:$0xff]  }
 0x986   : > { %8758 = vmatpush1.bf16.msra.mxu0 %v13733_v50  ;;  %11931 = vmatprep.subr.bf16.mxu1 %v13737_v39  ;;  %v13760_v50 = vld [vmem:[#allocation20 + $0x8ec] ss:$12 sps:$4 sm:$0xff]   ;;  %v13761_v39 = vld [vmem:[#allocation20 + $0x3b0] ss:$12 sps:$4 sm:$0xff]  }
 0x987   : > { %8759 = vmatprep.subr.bf16.mxu0 %v13740_v1  ;;  %v13758_v1 = vld [vmem:[#allocation20 + $0x8e8] ss:$12 sps:$4 sm:$0xff]  }
 0x989   : > { %11932 = vmatpush3.bf16.msra.mxu1 %v13741_v29  ;;  %v13762_v29 = vld [vmem:[#allocation20 + $0x548] ss:$12 sps:$4 sm:$0xff]  }
 0x98a   : > { %8760 = vmatpush1.bf16.msra.mxu0 %v13738_v27  ;;  %11933 = vmatprep.subr.bf16.mxu1 %v13742_v41  ;;  %v13765_v27 = vld [vmem:[#allocation20 + $0x904] ss:$12 sps:$4 sm:$0xff]   ;;  %v13766_v41 = vld [vmem:[#allocation20 + $0x488] ss:$12 sps:$4 sm:$0xff]  }
 0x98b   : > { %8761 = vmatprep.subr.bf16.mxu0 %v13745_v15  ;;  %v13763_v15 = vld [vmem:[#allocation20 + $0x900] ss:$12 sps:$4 sm:$0xff]  }
 0x98c   : > { %6835 = vmatmul.mubr.bf16.gmra.mrb[88].mxu1 %v16441_v3 }
 0x98d   : > { %6842 = vmatprep.mubr.bf16.mxu1 %v15879_v22  ;;  %11934 = vmatpush3.bf16.msra.mxu1 %v13746_v53  ;;  %v13767_v53 = vld [vmem:[#allocation20 + $0x560] ss:$12 sps:$4 sm:$0xff]  }
 0x98e   : > { %8762 = vmatpush1.bf16.msra.mxu0 %v13743_v34  ;;  %11935 = vmatprep.subr.bf16.mxu1 %v13747_v56  ;;  %v13770_v34 = vld [vmem:[#allocation20 + $0x91c] ss:$12 sps:$4 sm:$0xff]   ;;  %v13768_v56 = vld [vmem:[#allocation20 + $0x918] ss:$12 sps:$4 sm:$0xff]  }
 0x98f   : > { %8763 = vmatprep.subr.bf16.mxu0 %v13750_v19  ;;  %v13772_v19 = vld [vmem:[#allocation20 + $0x578] ss:$12 sps:$4 sm:$0xff]  }
 0x991   : > { %11936 = vmatpush3.bf16.msra.mxu1 %v13751_v18  ;;  %v13775_v18 = vld [vmem:[#allocation20 + $0x934] ss:$12 sps:$4 sm:$0xff]  }
 0x992   : > { %8764 = vmatpush1.bf16.msra.mxu0 %v13748_v7  ;;  %11937 = vmatprep.subr.bf16.mxu1 %v13752_v43  ;;  %v13776_v7 = vld [vmem:[#allocation20 + $0x4b8] ss:$12 sps:$4 sm:$0xff]   ;;  %v13773_v43 = vld [vmem:[#allocation20 + $0x930] ss:$12 sps:$4 sm:$0xff]  }
 0x993   : > { %8765 = vmatprep.subr.bf16.mxu0 %v13755_v54  ;;  %v13777_v54 = vld [vmem:[#allocation20 + $0x590] ss:$12 sps:$4 sm:$0xff]  }
 0x994   : > { %6843 = vmatmul.mubr.bf16.gmra.mrb[92].mxu1 %v16341_v17 }
 0x995   : > { %11938 = vmatpush3.bf16.msra.mxu1 %v13756_v26  ;;  %7349 = vmatprep.mubr.bf16.mxu1 %v16022_v37  ;;  %v13771_v37 = vld [vmem:[#allocation20 + $0x4a0] ss:$12 sps:$4 sm:$0xff]  }
 0x996   : > { %8766 = vmatpush1.bf16.msra.mxu0 %v13753_v35  ;;  %11939 = vmatprep.subr.bf16.mxu1 %v13757_v52  ;;  %v13780_v26 = vld [vmem:[#allocation20 + $0x94c] ss:$12 sps:$4 sm:$0xff]   ;;  %v13781_v35 = vld [vmem:[#allocation20 + $0x4d0] ss:$12 sps:$4 sm:$0xff]   ;;  %v13778_v52 = vld [vmem:[#allocation20 + $0x948] ss:$12 sps:$4 sm:$0xff]  }
 0x997   : > { %8767 = vmatprep.subr.bf16.mxu0 %v13760_v50  ;;  %v13782_v50 = vld [vmem:[#allocation20 + $0x5a8] ss:$12 sps:$4 sm:$0xff]  }
 0x999   : > { %11940 = vmatpush3.bf16.msra.mxu1 %v13761_v39  ;;  %v13783_v39 = vld [vmem:[#allocation20 + $0x960] ss:$12 sps:$4 sm:$0xff]  }
 0x99a   : > { %8768 = vmatpush1.bf16.msra.mxu0 %v13758_v1  ;;  %11965 = vmatprep.subr.bf16.mxu1 %v13762_v29  ;;  %v13787_v1 = vld [vmem:[#allocation20 + $0x5c0] ss:$12 sps:$4 sm:$0xff]   ;;  %v13790_v29 = vld [vmem:[#allocation20 + $0x97c] ss:$12 sps:$4 sm:$0xff]  }
 0x99b   : > { %9222 = vmatprep.subr.bf16.mxu0 %v13765_v27  ;;  %v17005_v27 = vld [vmem:[#allocation41_spill] sm:$0xff] }
 0x99c   : > { %7350 = vmatmul.mubr.bf16.vlgmr.msra.gmra.mrb[96].mxu1 %v16238_v13  ;;  %v16478_v13 = vpack.c.bf16 %v16312_v38, %v16270_v60  ;;  %v13785_v60 = vld [vmem:[#allocation20 + $0x964] ss:$12 sps:$4 sm:$0xff]   ;;  %v13786_v38 = vld [vmem:[#allocation20 + $0x4e8] ss:$12 sps:$4 sm:$0xff]  }
 0x99d   : > { %8770 = vmatmul.mubr.bf16.vlgmr.msra.gmra.mrb[64].mxu0 %v16258_v6  ;;  %7357 = vmatprep.mubr.bf16.mxu1 %v16246_v21 }
 0x99e   : > { %11966 = vmatpush3.bf16.msra.mxu1 %v13766_v41  ;;  %8779 = vmatprep.mubr.bf16.mxu0 %v15853_v23  ;;  %v13791_v41 = vld [vmem:[#allocation20 + $0x500] ss:$12 sps:$4 sm:$0xff]  }
 0x99f   : > { %9223 = vmatpush1.bf16.msra.mxu0 %v13763_v15  ;;  %11967 = vmatprep.subr.bf16.mxu1 %v13767_v53  ;;  %v13788_v15 = vld [vmem:[#allocation20 + $0x978] ss:$12 sps:$4 sm:$0xff]  }
 0x9a0   : > { %9224 = vmatprep.subr.bf16.mxu0 %v13770_v34  ;;  %v13792_v53 = vld [vmem:[#allocation20 + $0x5d8] ss:$12 sps:$4 sm:$0xff]   ;;  %v13795_v34 = vld [vmem:[#allocation20 + $0x994] ss:$12 sps:$4 sm:$0xff]  }
 0x9a2   : > { %11968 = vmatpush3.bf16.msra.mxu1 %v13771_v37  ;;  %v13796_v37 = vld [vmem:[#allocation20 + $0x518] ss:$12 sps:$4 sm:$0xff]  }
 0x9a3   : > { %9225 = vmatpush1.bf16.msra.mxu0 %v13768_v56  ;;  %11969 = vmatprep.subr.bf16.mxu1 %v13772_v19  ;;  %v13793_v56 = vld [vmem:[#allocation20 + $0x990] ss:$12 sps:$4 sm:$0xff]  }
 0x9a4   : > { %7358 = vmatmul.mubr.bf16.gmra.mrb[100].mxu1 %v16276_v49  ;;  %9226 = vmatprep.subr.bf16.mxu0 %v13775_v18  ;;  %v13797_v19 = vld [vmem:[#allocation20 + $0x5f0] ss:$12 sps:$4 sm:$0xff]   ;;  %v13800_v18 = vld [vmem:[#allocation20 + $0x9ac] ss:$12 sps:$4 sm:$0xff]  }
 0x9a5   : > { %8780 = vmatmul.mubr.bf16.gmra.mrb[68].mxu0 %v16478_v13  ;;  %7365 = vmatprep.mubr.bf16.mxu1 %v16284_v9 }
 0x9a6   : > { %11970 = vmatpush3.bf16.msra.mxu1 %v13776_v7  ;;  %8789 = vmatprep.mubr.bf16.mxu0 %v15877_v30  ;;  %v13801_v7 = vld [vmem:[#allocation20 + $0x530] ss:$12 sps:$4 sm:$0xff]  }
 0x9a7   : > { %9227 = vmatpush1.bf16.msra.mxu0 %v13773_v43  ;;  %11971 = vmatprep.subr.bf16.mxu1 %v13777_v54  ;;  %v13798_v43 = vld [vmem:[#allocation20 + $0x9a8] ss:$12 sps:$4 sm:$0xff]  }
 0x9a8   : > { %9228 = vmatprep.subr.bf16.mxu0 %v13780_v26  ;;  %v13802_v54 = vld [vmem:[#allocation20 + $0x6c8] ss:$12 sps:$4 sm:$0xff]   ;;  %v13805_v26 = vld [vmem:[#allocation20 + $0x9c4] ss:$12 sps:$4 sm:$0xff]  }
 0x9aa   : > { %11972 = vmatpush3.bf16.msra.mxu1 %v13781_v35  ;;  %v13806_v35 = vld [vmem:[#allocation20 + $0x608] ss:$12 sps:$4 sm:$0xff]  }
 0x9ab   : > { %9229 = vmatpush1.bf16.msra.mxu0 %v13778_v52  ;;  %11973 = vmatprep.subr.bf16.mxu1 %v13782_v50  ;;  %v13803_v52 = vld [vmem:[#allocation20 + $0x9c0] ss:$12 sps:$4 sm:$0xff]  }
 0x9ac   : > { %7366 = vmatmul.mubr.bf16.gmra.mrb[104].mxu1 %v16329_v25  ;;  %9230 = vmatprep.subr.bf16.mxu0 %v13785_v60  ;;  %v13807_v50 = vld [vmem:[#allocation20 + $0x6e0] ss:$12 sps:$4 sm:$0xff]   ;;  %v13810_v60 = vld [vmem:[#allocation20 + $0x9dc] ss:$12 sps:$4 sm:$0xff]  }
 0x9ad   : > { %8790 = vmatmul.mubr.bf16.gmra.mrb[72].mxu0 %v16354_v58  ;;  %7373 = vmatprep.mubr.bf16.mxu1 %v16336_v14 }
 0x9ae   : > { %11974 = vmatpush3.bf16.msra.mxu1 %v13786_v38  ;;  %8799 = vmatprep.mubr.bf16.mxu0 %v17005_v27  ;;  %v13808_v38 = vld [vmem:[#allocation20 + $0x9d8] ss:$12 sps:$4 sm:$0xff]  }
 0x9af   : > { %9231 = vmatpush1.bf16.msra.mxu0 %v13783_v39  ;;  %11975 = vmatprep.subr.bf16.mxu1 %v13787_v1  ;;  %v13812_v39 = vld [vmem:[#allocation20 + $0x6f8] ss:$12 sps:$4 sm:$0xff]   ;;  %v13815_v1 = vld [vmem:[#allocation20 + $0x9f4] ss:$12 sps:$4 sm:$0xff]  }
 0x9b0   : > { %9232 = vmatprep.subr.bf16.mxu0 %v13790_v29  ;;  %v13816_v29 = vld [vmem:[#allocation20 + $0x638] ss:$12 sps:$4 sm:$0xff]  }
 0x9b2   : > { %11976 = vmatpush3.bf16.msra.mxu1 %v13791_v41  ;;  %v13813_v41 = vld [vmem:[#allocation20 + $0x9f0] ss:$12 sps:$4 sm:$0xff]  }
 0x9b3   : > { %9233 = vmatpush1.bf16.msra.mxu0 %v13788_v15  ;;  %11977 = vmatprep.subr.bf16.mxu1 %v13792_v53  ;;  %v13817_v15 = vld [vmem:[#allocation20 + $0x710] ss:$12 sps:$4 sm:$0xff]   ;;  %v13820_v53 = vld [vmem:[#allocation20 + $0xa0c] ss:$12 sps:$4 sm:$0xff]  }
 0x9b4   : > { %7374 = vmatmul.mubr.bf16.gmra.mrb[108].mxu1 %v16368_v36  ;;  %9234 = vmatprep.subr.bf16.mxu0 %v13795_v34  ;;  %v13822_v34 = vld [vmem:[#allocation20 + $0x728] ss:$12 sps:$4 sm:$0xff]  }
 0x9b5   : > { %8800 = vmatmul.mubr.bf16.gmra.mrb[76].mxu0 %v16370_v11  ;;  %7840 = vmatprep.mubr.bf16.mxu1 %v15801_v4  ;;  %v13811_v4 = vld [vmem:[#allocation20 + $0x620] ss:$12 sps:$4 sm:$0xff]  }
 0x9b6   : > { %11978 = vmatpush3.bf16.msra.mxu1 %v13796_v37  ;;  %9254 = vmatprep.mubr.bf16.mxu0 %v15820_v47  ;;  %v13825_v37 = vld [vmem:[#allocation20 + $0xa24] ss:$12 sps:$4 sm:$0xff]  }
 0x9b7   : > { %9235 = vmatpush1.bf16.msra.mxu0 %v13793_v56  ;;  %11979 = vmatprep.subr.bf16.mxu1 %v13797_v19  ;;  %v13826_v56 = vld [vmem:[#allocation20 + $0x668] ss:$12 sps:$4 sm:$0xff]   ;;  %v13823_v19 = vld [vmem:[#allocation20 + $0xa20] ss:$12 sps:$4 sm:$0xff]  }
 0x9b8   : > { %9236 = vmatprep.subr.bf16.mxu0 %v13800_v18  ;;  %v13827_v18 = vld [vmem:[#allocation20 + $0x740] ss:$12 sps:$4 sm:$0xff]  }
 0x9ba   : > { %11980 = vmatpush3.bf16.msra.mxu1 %v13801_v7  ;;  %v13830_v7 = vld [vmem:[#allocation20 + $0xa3c] ss:$12 sps:$4 sm:$0xff]  }
 0x9bb   : > { %9237 = vmatpush1.bf16.msra.mxu0 %v13798_v43  ;;  %12005 = vmatprep.subr.bf16.mxu1 %v13802_v54  ;;  %v13832_v43 = vld [vmem:[#allocation20 + $0x758] ss:$12 sps:$4 sm:$0xff]   ;;  %v13835_v54 = vld [vmem:[#allocation20 + $0xa54] ss:$12 sps:$4 sm:$0xff]  }
 0x9bc   : > { %9238 = vmatprep.subr.bf16.mxu0 %v13805_v26  ;;  %v13836_v26 = vld [vmem:[#allocation20 + $0x698] ss:$12 sps:$4 sm:$0xff]  }
 0x9bd   : > { %7841 = vmatmul.mubr.bf16.vlgmr.msra.gmra.mrb[112].mxu1 %v16261_v51  ;;  %v13818_v51 = vld [vmem:[#allocation20 + $0xa08] ss:$12 sps:$4 sm:$0xff]  }
 0x9be   : > { %7848 = vmatprep.mubr.bf16.mxu1 %v15831_v31  ;;  %12006 = vmatpush3.bf16.msra.mxu1 %v13806_v35  ;;  %v13821_v31 = vld [vmem:[#allocation20 + $0x650] ss:$12 sps:$4 sm:$0xff]  }
 0x9bf   : > { %9239 = vmatpush1.bf16.msra.mxu0 %v13803_v52  ;;  %12007 = vmatprep.subr.bf16.mxu1 %v13807_v50  ;;  %v13833_v35 = vld [vmem:[#allocation20 + $0xa50] ss:$12 sps:$4 sm:$0xff]   ;;  %v13840_v50 = vld [vmem:[#allocation20 + $0xa6c] ss:$12 sps:$4 sm:$0xff]  }
 0x9c0   : > { %9240 = vmatprep.subr.bf16.mxu0 %v13810_v60  ;;  %v13837_v52 = vld [vmem:[#allocation20 + $0x770] ss:$12 sps:$4 sm:$0xff]   ;;  %v13842_v60 = vld [vmem:[#allocation20 + $0x848] ss:$12 sps:$4 sm:$0xff]  }
 0x9c2   : > { %12008 = vmatpush3.bf16.msra.mxu1 %v13811_v4  ;;  %v13845_v4 = vld [vmem:[#allocation20 + $0xa84] ss:$12 sps:$4 sm:$0xff]  }
 0x9c3   : > { %9241 = vmatpush1.bf16.msra.mxu0 %v13808_v38  ;;  %12009 = vmatprep.subr.bf16.mxu1 %v13812_v39  ;;  %v13846_v38 = vld [vmem:[#allocation20 + $0x788] ss:$12 sps:$4 sm:$0xff]   ;;  %v13843_v39 = vld [vmem:[#allocation20 + $0xa80] ss:$12 sps:$4 sm:$0xff]  }
 0x9c4   : > { %9242 = vmatprep.subr.bf16.mxu0 %v13815_v1  ;;  %v13847_v1 = vld [vmem:[#allocation20 + $0x860] ss:$12 sps:$4 sm:$0xff]  }
 0x9c5   : > { %7849 = vmatmul.mubr.bf16.gmra.mrb[116].mxu1 %v16384_v46  ;;  %v13831_v46 = vld [vmem:[#allocation20 + $0x680] ss:$12 sps:$4 sm:$0xff]  }
 0x9c6   : > { %7856 = vmatprep.mubr.bf16.mxu1 %v16388_v55  ;;  %12010 = vmatpush3.bf16.msra.mxu1 %v13816_v29  ;;  %v13828_v55 = vld [vmem:[#allocation20 + $0xa38] ss:$12 sps:$4 sm:$0xff]  }
 0x9c7   : > { %9243 = vmatpush1.bf16.msra.mxu0 %v13813_v41  ;;  %12011 = vmatprep.subr.bf16.mxu1 %v13817_v15  ;;  %v13848_v29 = vld [vmem:[#allocation20 + $0xa98] ss:$12 sps:$4 sm:$0xff]   ;;  %v13855_v15 = vld [vmem:[#allocation20 + $0xab4] ss:$12 sps:$4 sm:$0xff]  }
 0x9c8   : > { %9244 = vmatprep.subr.bf16.mxu0 %v13820_v53  ;;  %v13852_v41 = vld [vmem:[#allocation20 + $0x878] ss:$12 sps:$4 sm:$0xff]  }
 0x9c9   : > { %v13856_v53 = vld [vmem:[#allocation20 + $0x7b8] ss:$12 sps:$4 sm:$0xff]  }
 0x9ca   : > { %12012 = vmatpush3.bf16.msra.mxu1 %v13821_v31  ;;  %v13857_v31 = vld [vmem:[#allocation20 + $0x890] ss:$12 sps:$4 sm:$0xff]  }
 0x9cb   : > { %9245 = vmatpush1.bf16.msra.mxu0 %v13818_v51  ;;  %12013 = vmatprep.subr.bf16.mxu1 %v13822_v34  ;;  %v13861_v51 = vld [vmem:[#allocation20 + $0x7d0] ss:$12 sps:$4 sm:$0xff]   ;;  %v13858_v34 = vld [vmem:[#allocation20 + $0xac8] ss:$12 sps:$4 sm:$0xff]  }
 0x9cc   : > { %9246 = vmatprep.subr.bf16.mxu0 %v13825_v37  ;;  %v13862_v37 = vld [vmem:[#allocation20 + $0x8a8] ss:$12 sps:$4 sm:$0xff]  }
 0x9cd   : > { %7857 = vmatmul.mubr.bf16.gmra.mrb[120].mxu1 %v16394_v0  ;;  %v13841_v0 = vld [vmem:[#allocation20 + $0x6b0] ss:$12 sps:$4 sm:$0xff]  }
 0x9ce   : > { %7864 = vmatprep.mubr.bf16.mxu1 %v16402_v5  ;;  %12014 = vmatpush3.bf16.msra.mxu1 %v13826_v56  ;;  %v13838_v5 = vld [vmem:[#allocation20 + $0xa68] ss:$12 sps:$4 sm:$0xff]   ;;  %v13865_v56 = vld [vmem:[#allocation20 + $0xae4] ss:$12 sps:$4 sm:$0xff]  }
 0x9cf   : > { %9247 = vmatpush1.bf16.msra.mxu0 %v13823_v19  ;;  %12015 = vmatprep.subr.bf16.mxu1 %v13827_v18  ;;  %v13866_v19 = vld [vmem:[#allocation20 + $0x7e8] ss:$12 sps:$4 sm:$0xff]   ;;  %v13867_v18 = vld [vmem:[#allocation20 + $0x8c0] ss:$12 sps:$4 sm:$0xff]  }
 0x9d0   : > { %9248 = vmatprep.subr.bf16.mxu0 %v13830_v7  ;;  %v13870_v7 = vld [vmem:[#allocation20 + $0xafc] ss:$12 sps:$4 sm:$0xff]  }
 0x9d2   : > { %12016 = vmatpush3.bf16.msra.mxu1 %v13831_v46 }
 0x9d3   : > { %9249 = vmatpush1.bf16.msra.mxu0 %v13828_v55  ;;  %12017 = vmatprep.subr.bf16.mxu1 %v13832_v43  ;;  %v13871_v55 = vld [vmem:[#allocation20 + $0x800] ss:$12 sps:$4 sm:$0xff]   ;;  %v13868_v43 = vld [vmem:[#allocation20 + $0xaf8] ss:$12 sps:$4 sm:$0xff]  }
 0x9d4   : > { %9250 = vmatprep.subr.bf16.mxu0 %v13835_v54 }
 0x9d5   : > { %7865 = vmatmul.mubr.bf16.gmra.mrb[124].mxu1 %v16408_v42  ;;  %v13850_v42 = vld [vmem:[#allocation20 + $0xa9c] ss:$12 sps:$4 sm:$0xff]  }
 0x9d6   : > { %12018 = vmatpush3.bf16.msra.mxu1 %v13836_v26  ;;  %8343 = vmatprep.mubr.bf16.mxu1 %v15816_v12  ;;  %v13851_v12 = vld [vmem:[#allocation20 + $0x7a0] ss:$12 sps:$4 sm:$0xff]  }
 0x9d7   : > { %9251 = vmatpush1.bf16.msra.mxu0 %v13833_v35  ;;  %12019 = vmatprep.subr.bf16.mxu1 %v13837_v52  ;;  %v13875_v35 = vld [vmem:[#allocation20 + $0xb14] ss:$12 sps:$4 sm:$0xff]  }
 0x9d8   : > { %9252 = vmatprep.subr.bf16.mxu0 %v13840_v50 }
 0x9da   : > { %12020 = vmatpush3.bf16.msra.mxu1 %v13841_v0  ;;  %v14283_v0 = vld [vmem:[#allocation2 + $0x100] sm:$0xff] }
 0x9db   : > { %9253 = vmatpush1.bf16.msra.mxu0 %v13838_v5  ;;  %12045 = vmatprep.subr.bf16.mxu1 %v13842_v60  ;;  %v16521_v5 = vpack.c.bf16 %v16412_v24, %v14283_v0  ;;  %v13873_v60 = vld [vmem:[#allocation20 + $0xb10] ss:$12 sps:$4 sm:$0xff]  }
 0x9dc   : > { %9719 = vmatprep.subr.bf16.mxu0 %v13845_v4  ;;  %v13877_v4 = vld [vmem:[#allocation20 + $0x8f0] ss:$12 sps:$4 sm:$0xff]  }
 0x9dd   : > { %8344 = vmatmul.mubr.bf16.vlgmr.msra.gmra.mrb[128].mxu1 %v16252_v20  ;;  %v13853_v20 = vld [vmem:[#allocation20 + $0xab0] ss:$12 sps:$4 sm:$0xff]  }
 0x9de   : > { %9255 = vmatmul.mubr.bf16.vlgmr.msra.gmra.mrb[64].mxu0 %v16264_v2  ;;  %8351 = vmatprep.mubr.bf16.mxu1 %v15848_v57  ;;  %v13860_v57 = vld [vmem:[#allocation20 + $0xacc] ss:$12 sps:$4 sm:$0xff]  }
 0x9df   : > { %12046 = vmatpush3.bf16.msra.mxu1 %v13846_v38  ;;  %9264 = vmatprep.mubr.bf16.mxu0 %v15856_v40  ;;  %v13880_v38 = vld [vmem:[#allocation20 + $0xb2c] ss:$12 sps:$4 sm:$0xff]  }
 0x9e0   : > { %9720 = vmatpush1.bf16.msra.mxu0 %v13843_v39  ;;  %12047 = vmatprep.subr.bf16.mxu1 %v13847_v1  ;;  %v13881_v1 = vld [vmem:[#allocation20 + $0x830] ss:$12 sps:$4 sm:$0xff]  }
 0x9e1   : > { %9721 = vmatprep.subr.bf16.mxu0 %v13850_v42  ;;  %v13878_v42 = vld [vmem:[#allocation20 + $0xb28] ss:$12 sps:$4 sm:$0xff]  }
 0x9e3   : > { %12048 = vmatpush3.bf16.msra.mxu1 %v13851_v12  ;;  %v13882_v12 = vld [vmem:[#allocation20 + $0x9c8] ss:$12 sps:$4 sm:$0xff]  }
 0x9e4   : > { %9722 = vmatpush1.bf16.msra.mxu0 %v13848_v29  ;;  %12049 = vmatprep.subr.bf16.mxu1 %v13852_v41  ;;  %v13885_v41 = vld [vmem:[#allocation20 + $0xb44] ss:$12 sps:$4 sm:$0xff]  }
 0x9e5   : > { %8352 = vmatmul.mubr.bf16.gmra.mrb[132].mxu1 %v16429_v10  ;;  %9723 = vmatprep.subr.bf16.mxu0 %v13855_v15  ;;  %v13863_v10 = vld [vmem:[#allocation20 + $0xae0] ss:$12 sps:$4 sm:$0xff]  }
 0x9e6   : > { %9265 = vmatmul.mubr.bf16.gmra.mrb[68].mxu0 %v16441_v3  ;;  %8359 = vmatprep.mubr.bf16.mxu1 %v15873_v61  ;;  %v16511_v61 = vpack.c.bf16 %v16412_v24, %v16398_v28 }
 0x9e7   : > { %12050 = vmatpush3.bf16.msra.mxu1 %v13856_v53  ;;  %9274 = vmatprep.mubr.bf16.mxu0 %v15879_v22 }
 0x9e8   : > { %9724 = vmatpush1.bf16.msra.mxu0 %v13853_v20  ;;  %12051 = vmatprep.subr.bf16.mxu1 %v13857_v31  ;;  %v13883_v20 = vld [vmem:[#allocation20 + $0xb40] ss:$12 sps:$4 sm:$0xff]  }
 0x9e9   : > { %9725 = vmatprep.subr.bf16.mxu0 %v13860_v57  ;;  %v13887_v31 = vld [vmem:[#allocation20 + $0x9e0] ss:$12 sps:$4 sm:$0xff]   ;;  %v13890_v57 = vld [vmem:[#allocation20 + $0xb5c] ss:$12 sps:$4 sm:$0xff]  }
 0x9eb   : > { %12052 = vmatpush3.bf16.msra.mxu1 %v13861_v51 }
 0x9ec   : > { %9726 = vmatpush1.bf16.msra.mxu0 %v13858_v34  ;;  %12053 = vmatprep.subr.bf16.mxu1 %v13862_v37  ;;  %v13891_v34 = vld [vmem:[#allocation20 + $0x920] ss:$12 sps:$4 sm:$0xff]   ;;  %v13888_v37 = vld [vmem:[#allocation20 + $0xb58] ss:$12 sps:$4 sm:$0xff]  }
 0x9ed   : > { %8360 = vmatmul.mubr.bf16.gmra.mrb[136].mxu1 %v16347_v45  ;;  %9727 = vmatprep.subr.bf16.mxu0 %v13865_v56  ;;  %v13872_v45 = vld [vmem:[#allocation20 + $0x8d8] ss:$12 sps:$4 sm:$0xff]  }
 0x9ee   : > { %9275 = vmatmul.mubr.bf16.gmra.mrb[72].mxu0 %v16341_v17  ;;  %8367 = vmatprep.mubr.bf16.mxu1 %v16449_v33  ;;  %v13876_v33 = vld [vmem:[#allocation20 + $0x818] ss:$12 sps:$4 sm:$0xff]  }
 0x9ef   : > { %12054 = vmatpush3.bf16.msra.mxu1 %v13866_v19  ;;  %9284 = vmatprep.mubr.bf16.mxu0 %v16511_v61  ;;  %v11861_v46 = vpop.f32.mrb[64].mxu1  ;;  %v13892_v19 = vld [vmem:[#allocation20 + $0x9f8] ss:$12 sps:$4 sm:$0xff]  }
 0x9f0   : > { %9728 = vmatpush1.bf16.msra.mxu0 %v13863_v10  ;;  %12055 = vmatprep.subr.bf16.mxu1 %v13867_v18  ;;  %v11862_v54 = vpop.f32.mrb[65].mxu1 }
 0x9f1   : > { %9729 = vmatprep.subr.bf16.mxu0 %v13870_v7  ;;  %v16516_v26 = vadd.f32 %v11862_v54, %v11861_v46  ;;  %v11864_v28 = vpop.f32.mrb[66].mxu1  ;;  %v13895_v7 = vld [vmem:[#allocation20 + $0xb74] ss:$12 sps:$4 sm:$0xff]   ;;  %v13900_v54 = vld [vmem:[#allocation20 + $0xb8c] ss:$12 sps:$4 sm:$0xff]  }
 0x9f2   : > { %v11865_v52 = vpop.f32.mrb[67].mxu1 }
 0x9f3   : > { %12056 = vmatpush3.bf16.msra.mxu1 %v13871_v55  ;;  %v16518_v50 = vadd.f32 %v11865_v52, %v11864_v28  ;;  %v13901_v28 = vld [vmem:[#allocation20 + $0x950] ss:$12 sps:$4 sm:$0xff]  }
 0x9f4   : > { %9730 = vmatpush1.bf16.msra.mxu0 %v13868_v43  ;;  %12057 = vmatprep.subr.bf16.mxu1 %v13872_v45  ;;  %v13897_v43 = vld [vmem:[#allocation20 + $0xa10] ss:$12 sps:$4 sm:$0xff]  }
 0x9f5   : > { %8368 = vmatmul.mubr.bf16.gmra.mrb[140].mxu1 %v16458_v62  ;;  %9731 = vmatprep.subr.bf16.mxu0 %v13875_v35  ;;  %v13898_v35 = vld [vmem:[#allocation20 + $0xb88] ss:$12 sps:$4 sm:$0xff]  }
 0x9f6   : > { %9285 = vmatmul.mubr.bf16.gmra.mrb[76].mxu0 %v16521_v5  ;;  %8842 = vmatprep.mubr.bf16.mxu1 %v15824_v48  ;;  %v13886_v48 = vld [vmem:[#allocation20 + $0x908] ss:$12 sps:$4 sm:$0xff]  }
 0x9f7   : > { %12058 = vmatpush3.bf16.msra.mxu1 %v13876_v33  ;;  %9751 = vmatprep.mubr.bf16.mxu0 %v16242_v16  ;;  %v11867_v39 = vpop.f32.mrb[68].mxu1  ;;  %v13902_v33 = vld [vmem:[#allocation20 + $0xa28] ss:$12 sps:$4 sm:$0xff]  }
 0x9f8   : > { %9732 = vmatpush1.bf16.msra.mxu0 %v13873_v60  ;;  %12059 = vmatprep.subr.bf16.mxu1 %v13877_v4  ;;  %v11868_v24 = vpop.f32.mrb[69].mxu1  ;;  %v13905_v4 = vld [vmem:[#allocation20 + $0xba4] ss:$12 sps:$4 sm:$0xff]  }
 0x9f9   : > { %9733 = vmatprep.subr.bf16.mxu0 %v13880_v38  ;;  %v16527_v29 = vadd.f32 %v11868_v24, %v11867_v39  ;;  %v11870_v62 = vpop.f32.mrb[70].mxu1  ;;  %v13911_v24 = vld [vmem:[#allocation20 + $0x980] ss:$12 sps:$4 sm:$0xff]  }
 0x9fa   : > { %v11871_v15 = vpop.f32.mrb[71].mxu1 }
 0x9fb   : > { %12060 = vmatpush3.bf16.msra.mxu1 %v13881_v1  ;;  %v16529_v53 = vadd.f32 %v11871_v15, %v11870_v62  ;;  %v13907_v1 = vld [vmem:[#allocation20 + $0xa40] ss:$12 sps:$4 sm:$0xff]   ;;  %v13912_v62 = vld [vmem:[#allocation20 + $0xa58] ss:$12 sps:$4 sm:$0xff]  }
 0x9fc   : > { %9734 = vmatpush1.bf16.msra.mxu0 %v13878_v42  ;;  %12085 = vmatprep.subr.bf16.mxu1 %v13882_v12  ;;  %v13910_v42 = vld [vmem:[#allocation20 + $0xbbc] ss:$12 sps:$4 sm:$0xff]   ;;  %v13908_v12 = vld [vmem:[#allocation20 + $0xbb8] ss:$12 sps:$4 sm:$0xff]  }
 0x9fd   : > { %9735 = vmatprep.subr.bf16.mxu0 %v13885_v41  ;;  %v13915_v41 = vld [vmem:[#allocation20 + $0xbd4] ss:$12 sps:$4 sm:$0xff]   ;;  %v13916_v15 = vld [vmem:[#allocation20 + $0x998] ss:$12 sps:$4 sm:$0xff]  }
 0x9fe   : > { %8843 = vmatmul.mubr.bf16.vlgmr.msra.gmra.mrb[144].mxu1 %v16258_v6  ;;  %v13896_v6 = vld [vmem:[#allocation20 + $0x938] ss:$12 sps:$4 sm:$0xff]  }
 0x9ff   : > { %8850 = vmatprep.mubr.bf16.mxu1 %v15853_v23  ;;  %12086 = vmatpush3.bf16.msra.mxu1 %v13886_v48  ;;  %v11873_v51 = vpop.f32.mrb[72].mxu1  ;;  %v13893_v23 = vld [vmem:[#allocation20 + $0xb70] ss:$12 sps:$4 sm:$0xff]  }
 0xa00   : > { %9736 = vmatpush1.bf16.msra.mxu0 %v13883_v20  ;;  %12087 = vmatprep.subr.bf16.mxu1 %v13887_v31  ;;  %v11874_v56 = vpop.f32.mrb[73].mxu1  ;;  %v13913_v48 = vld [vmem:[#allocation20 + $0xbd0] ss:$12 sps:$4 sm:$0xff]   ;;  %v13920_v31 = vld [vmem:[#allocation20 + $0xbec] ss:$12 sps:$4 sm:$0xff]  }
 0xa01   : > { %9737 = vmatprep.subr.bf16.mxu0 %v13890_v57  ;;  %v16533_v10 = vadd.f32 %v11874_v56, %v11873_v51  ;;  %v11876_v18 = vpop.f32.mrb[74].mxu1  ;;  %v13917_v20 = vld [vmem:[#allocation20 + $0xa70] ss:$12 sps:$4 sm:$0xff]   ;;  %v13922_v57 = vld [vmem:[#allocation20 + $0xb48] ss:$12 sps:$4 sm:$0xff]  }
 0xa02   : > { %v11877_v46 = vpop.f32.mrb[75].mxu1  ;;  %v13925_v51 = vld [vmem:[#allocation20 + $0xc04] ss:$12 sps:$4 sm:$0xff]   ;;  %v13927_v56 = vld [vmem:[#allocation20 + $0xb60] ss:$12 sps:$4 sm:$0xff]  }
 0xa03   : > { %12088 = vmatpush3.bf16.msra.mxu1 %v13891_v34  ;;  %v16535_v55 = vadd.f32 %v11877_v46, %v11876_v18  ;;  %v13926_v34 = vld [vmem:[#allocation20 + $0xa88] ss:$12 sps:$4 sm:$0xff]   ;;  %v13932_v18 = vld [vmem:[#allocation20 + $0xb78] ss:$12 sps:$4 sm:$0xff]  }
 0xa04   : > { %9738 = vmatpush1.bf16.msra.mxu0 %v13888_v37  ;;  %12089 = vmatprep.subr.bf16.mxu1 %v13892_v19  ;;  %v13923_v37 = vld [vmem:[#allocation20 + $0xc00] ss:$12 sps:$4 sm:$0xff]   ;;  %v13928_v19 = vld [vmem:[#allocation20 + $0xc18] ss:$12 sps:$4 sm:$0xff]  }
 0xa05   : > { %9739 = vmatprep.subr.bf16.mxu0 %v13895_v7  ;;  %v13935_v7 = vld [vmem:[#allocation20 + $0xc34] ss:$12 sps:$4 sm:$0xff]   ;;  %v13936_v46 = vld [vmem:[#allocation20 + $0xab8] ss:$12 sps:$4 sm:$0xff]  }
 0xa06   : > { %8851 = vmatmul.mubr.bf16.gmra.mrb[148].mxu1 %v16478_v13  ;;  %v13906_v13 = vld [vmem:[#allocation20 + $0x968] ss:$12 sps:$4 sm:$0xff]  }
 0xa07   : > { %8858 = vmatprep.mubr.bf16.mxu1 %v15877_v30  ;;  %12090 = vmatpush3.bf16.msra.mxu1 %v13896_v6  ;;  %v11879_v45 = vpop.f32.mrb[76].mxu1  ;;  %v13903_v30 = vld [vmem:[#allocation20 + $0xba0] ss:$12 sps:$4 sm:$0xff]   ;;  %v13937_v6 = vld [vmem:[#allocation20 + $0xb90] ss:$12 sps:$4 sm:$0xff]  }
 0xa08   : > { %9740 = vmatpush1.bf16.msra.mxu0 %v13893_v23  ;;  %12091 = vmatprep.subr.bf16.mxu1 %v13897_v43  ;;  %v11880_v52 = vpop.f32.mrb[77].mxu1  ;;  %v14284_v23 = vld [vmem:[#allocation2] sm:$0xff] }
 0xa09   : > { %9741 = vmatprep.subr.bf16.mxu0 %v13900_v54  ;;  %v16539_v0 = vadd.f32 %v11880_v52, %v11879_v45  ;;  %v11882_v60 = vpop.f32.mrb[78].mxu1  ;;  %v9391_v43 = vrot.slane %v14284_v23, 1  ;;  %v14285_v54 = vld [vmem:[#allocation2 + $0x138] sm:$0x3]  ;;  %v13938_v52 = vld [vmem:[#allocation20 + $0xc48] ss:$12 sps:$4 sm:$0xff]  }
 0xa0a   : > { %v11883_v38 = vpop.f32.mrb[79].mxu1  ;;  %v9392_v45 = vrot.slane %v14285_v54, 1  ;;  %v13967_v23 = vld [vmem:[#allocation20 + $0xcd8] ss:$12 sps:$4 sm:$0xff]  }
 0xa0b   : > { %12092 = vmatpush3.bf16.msra.mxu1 %v13901_v28  ;;  %v16541_v39 = vadd.f32 %v11883_v38, %v11882_v60  ;;  %v17006_v28 = vld [vmem:[#allocation43_spill] sm:$0xff]  ;;  %v13975_v54 = vld [vmem:[#allocation20 + $0xcf8] ss:$12 sps:$4 sm:$0xff]  }
 0xa0c   : > { %9742 = vmatpush1.bf16.msra.mxu0 %v13898_v35  ;;  %12093 = vmatprep.subr.bf16.mxu1 %v13902_v33  ;;  %v13941_v35 = vld [vmem:[#allocation20 + $0xad0] ss:$12 sps:$4 sm:$0xff]   ;;  %v13942_v33 = vld [vmem:[#allocation20 + $0xba8] ss:$12 sps:$4 sm:$0xff]   ;;  %v9393_v60 = vsel %vm819_vm0, %v9391_v43, %v9392_v45  ;;  %v13943_v38 = vld [vmem:[#allocation20 + $0xc60] ss:$12 sps:$4 sm:$0xff]  }
 0xa0d   : > { %9743 = vmatprep.subr.bf16.mxu0 %v13905_v4  ;;  %v13946_v4 = vld [vmem:[#allocation20 + $0xae8] ss:$12 sps:$4 sm:$0xff]  }
 0xa0e   : > { %8859 = vmatmul.mubr.bf16.gmra.mrb[152].mxu1 %v16354_v58  ;;  %v13921_v58 = vld [vmem:[#allocation20 + $0x9b0] ss:$12 sps:$4 sm:$0xff]  }
 0xa0f   : > { %8866 = vmatprep.mubr.bf16.mxu1 %v17005_v27  ;;  %12094 = vmatpush3.bf16.msra.mxu1 %v13906_v13  ;;  %v13918_v27 = vld [vmem:[#allocation20 + $0xbe8] ss:$12 sps:$4 sm:$0xff]   ;;  %v16558_v13 = vpack.c.bf16 %v9393_v60, %v16437_v44 }
 0xa10   : > { %9744 = vmatpush1.bf16.msra.mxu0 %v13903_v30  ;;  %12095 = vmatprep.subr.bf16.mxu1 %v13907_v1  ;;  %v13950_v30 = vld [vmem:[#allocation20 + $0xc7c] ss:$12 sps:$4 sm:$0xff]   ;;  %v14286_v1 = vld [vmem:[#allocation2 + $0x130] sm:$0x3] }
 0xa11   : > { %9745 = vmatprep.subr.bf16.mxu0 %v13910_v42  ;;  %v9389_v42 = vrot.slane %v14286_v1, 1 }
 0xa13   : > { %12096 = vmatpush3.bf16.msra.mxu1 %v13911_v24  ;;  %v17007_v24 = vld [vmem:[#allocation44_spill] sm:$0xff] }
 0xa14   : > { %9746 = vmatpush1.bf16.msra.mxu0 %v13908_v12  ;;  %12097 = vmatprep.subr.bf16.mxu1 %v13912_v62 }
 0xa15   : > { %9747 = vmatprep.subr.bf16.mxu0 %v13915_v41  ;;  %v13951_v41 = vld [vmem:[#allocation20 + $0xb00] ss:$12 sps:$4 sm:$0xff]  }
 0xa16   : > { %8867 = vmatmul.mubr.bf16.gmra.mrb[156].mxu1 %v16370_v11  ;;  %v13930_v11 = vld [vmem:[#allocation20 + $0xc1c] ss:$12 sps:$4 sm:$0xff]  }
 0xa17   : > { %12098 = vmatpush3.bf16.msra.mxu1 %v13916_v15  ;;  %9327 = vmatprep.mubr.bf16.mxu1 %v15820_v47  ;;  %v13931_v47 = vld [vmem:[#allocation20 + $0xaa0] ss:$12 sps:$4 sm:$0xff]   ;;  %v13952_v15 = vld [vmem:[#allocation20 + $0xbd8] ss:$12 sps:$4 sm:$0xff]  }
 0xa18   : > { %9748 = vmatpush1.bf16.msra.mxu0 %v13913_v48  ;;  %12099 = vmatprep.subr.bf16.mxu1 %v13917_v20  ;;  %v9390_v20 = vsel %vm819_vm0, %v9391_v43, %v9389_v42  ;;  %v13984_v42 = vld [vmem:[#allocation20 + $0xd24] ss:$12 sps:$4 sm:$0xff]  }
 0xa19   : > { %9749 = vmatprep.subr.bf16.mxu0 %v13920_v31  ;;  %v13956_v31 = vld [vmem:[#allocation20 + $0xb18] ss:$12 sps:$4 sm:$0xff]  }
 0xa1b   : > { %12100 = vmatpush3.bf16.msra.mxu1 %v13921_v58  ;;  %v16573_v58 = vpack.c.bf16 %v9390_v20, %v16454_v59  ;;  %v13961_v59 = vld [vmem:[#allocation20 + $0xb30] ss:$12 sps:$4 sm:$0xff]  }
 0xa1c   : > { %9750 = vmatpush1.bf16.msra.mxu0 %v13918_v27  ;;  %12125 = vmatprep.subr.bf16.mxu1 %v13922_v57  ;;  %v13953_v27 = vld [vmem:[#allocation20 + $0xc90] ss:$12 sps:$4 sm:$0xff]  }
 0xa1d   : > { %10212 = vmatprep.subr.bf16.mxu0 %v13925_v51  ;;  %v13957_v57 = vld [vmem:[#allocation20 + $0xbf0] ss:$12 sps:$4 sm:$0xff]   ;;  %v13960_v51 = vld [vmem:[#allocation20 + $0xcac] ss:$12 sps:$4 sm:$0xff]  }
 0xa1e   : > { %9328 = vmatmul.mubr.bf16.vlgmr.msra.gmra.mrb[160].mxu1 %v16264_v2  ;;  %v13933_v2 = vld [vmem:[#allocation20 + $0xc30] ss:$12 sps:$4 sm:$0xff]  }
 0xa1f   : > { %9752 = vmatmul.mubr.bf16.vlgmr.msra.gmra.mrb[64].mxu0 %v16273_v32  ;;  %9335 = vmatprep.mubr.bf16.mxu1 %v15856_v40  ;;  %v13940_v40 = vld [vmem:[#allocation20 + $0xc4c] ss:$12 sps:$4 sm:$0xff]  }
 0xa20   : > { %9761 = vmatprep.mubr.bf16.mxu0 %v16280_v63  ;;  %12126 = vmatpush3.bf16.msra.mxu1 %v13926_v34 }
 0xa21   : > { %10213 = vmatpush1.bf16.msra.mxu0 %v13923_v37  ;;  %12127 = vmatprep.subr.bf16.mxu1 %v13927_v56  ;;  %v13958_v56 = vld [vmem:[#allocation20 + $0xca8] ss:$12 sps:$4 sm:$0xff]  }
 0xa22   : > { %10214 = vmatprep.subr.bf16.mxu0 %v13930_v11 }
 0xa24   : > { %12128 = vmatpush3.bf16.msra.mxu1 %v13931_v47 }
 0xa25   : > { %10215 = vmatpush1.bf16.msra.mxu0 %v13928_v19  ;;  %12129 = vmatprep.subr.bf16.mxu1 %v13932_v18  ;;  %v13964_v19 = vld [vmem:[#allocation20 + $0xcc4] ss:$12 sps:$4 sm:$0xff]   ;;  %v13962_v18 = vld [vmem:[#allocation20 + $0xcc0] ss:$12 sps:$4 sm:$0xff]  }
 0xa26   : > { %9336 = vmatmul.mubr.bf16.gmra.mrb[164].mxu1 %v16441_v3  ;;  %10216 = vmatprep.subr.bf16.mxu0 %v13935_v7  ;;  %v13945_v3 = vld [vmem:[#allocation20 + $0xc64] ss:$12 sps:$4 sm:$0xff]   ;;  %v13970_v7 = vld [vmem:[#allocation20 + $0xce0] ss:$12 sps:$4 sm:$0xff]  }
 0xa27   : > { %9762 = vmatmul.mubr.bf16.gmra.mrb[68].mxu0 %v16326_v8  ;;  %9343 = vmatprep.mubr.bf16.mxu1 %v15879_v22  ;;  %v13947_v22 = vld [vmem:[#allocation20 + $0xbc0] ss:$12 sps:$4 sm:$0xff]  }
 0xa28   : > { %9771 = vmatprep.mubr.bf16.mxu0 %v17006_v28  ;;  %12130 = vmatpush3.bf16.msra.mxu1 %v13936_v46  ;;  %v13969_v46 = vld [vmem:[#allocation20 + $0xcdc] ss:$12 sps:$4 sm:$0xff]  }
 0xa29   : > { %10217 = vmatpush1.bf16.msra.mxu0 %v13933_v2  ;;  %12131 = vmatprep.subr.bf16.mxu1 %v13937_v6 }
 0xa2a   : > { %10218 = vmatprep.subr.bf16.mxu0 %v13940_v40  ;;  %v13971_v40 = vld [vmem:[#allocation20 + $0xc20] ss:$12 sps:$4 sm:$0xff]  }
 0xa2c   : > { %12132 = vmatpush3.bf16.msra.mxu1 %v13941_v35  ;;  %v13974_v35 = vld [vmem:[#allocation20 + $0xcf4] ss:$12 sps:$4 sm:$0xff]  }
 0xa2d   : > { %10219 = vmatpush1.bf16.msra.mxu0 %v13938_v52  ;;  %12133 = vmatprep.subr.bf16.mxu1 %v13942_v33  ;;  %v13972_v52 = vld [vmem:[#allocation20 + $0xcf0] ss:$12 sps:$4 sm:$0xff]   ;;  %v13979_v33 = vld [vmem:[#allocation20 + $0xd0c] ss:$12 sps:$4 sm:$0xff]  }
 0xa2e   : > { %9344 = vmatmul.mubr.bf16.gmra.mrb[168].mxu1 %v16341_v17  ;;  %10220 = vmatprep.subr.bf16.mxu0 %v13945_v3  ;;  %v13948_v17 = vld [vmem:[#allocation20 + $0xc78] ss:$12 sps:$4 sm:$0xff]  }
 0xa2f   : > { %9772 = vmatmul.mubr.bf16.gmra.mrb[72].mxu0 %v17007_v24  ;;  %9351 = vmatprep.mubr.bf16.mxu1 %v16511_v61  ;;  %v16562_v12 = vpop.f32.mrb[48].mxu1  ;;  %v13955_v61 = vld [vmem:[#allocation20 + $0xc94] ss:$12 sps:$4 sm:$0xff]  }
 0xa30   : > { %9781 = vmatprep.mubr.bf16.mxu0 %v16558_v13  ;;  %12134 = vmatpush3.bf16.msra.mxu1 %v13946_v4  ;;  %v16565_v62 = vpop.f32.mrb[49].mxu1  ;;  %v13981_v4 = vld [vmem:[#allocation20 + $0xc50] ss:$12 sps:$4 sm:$0xff]  }
 0xa31   : > { %10221 = vmatpush1.bf16.msra.mxu0 %v13943_v38  ;;  %12135 = vmatprep.subr.bf16.mxu1 %v13947_v22  ;;  %v16567_v44 = vpop.f32.mrb[50].mxu1  ;;  %v13977_v38 = vld [vmem:[#allocation20 + $0xd08] ss:$12 sps:$4 sm:$0xff]  }
 0xa32   : > { %10222 = vmatprep.subr.bf16.mxu0 %v13950_v30  ;;  %v16569_v48 = vpop.f32.mrb[51].mxu1  ;;  %v13985_v30 = vld [vmem:[#allocation20 + $0xd28] ss:$12 sps:$4 sm:$0xff]  }
 0xa34   : > { %12136 = vmatpush3.bf16.msra.mxu1 %v13951_v41  ;;  %v13982_v41 = vld [vmem:[#allocation20 + $0xd20] ss:$12 sps:$4 sm:$0xff]  }
 0xa35   : > { %10223 = vmatpush1.bf16.msra.mxu0 %v13948_v17  ;;  %12137 = vmatprep.subr.bf16.mxu1 %v13952_v15  ;;  %v13989_v17 = vld [vmem:[#allocation20 + $0xd3c] ss:$12 sps:$4 sm:$0xff]  }
 0xa36   : > { %9352 = vmatmul.mubr.bf16.gmra.mrb[172].mxu1 %v16521_v5  ;;  %10224 = vmatprep.subr.bf16.mxu0 %v13955_v61  ;;  %v13965_v5 = vld [vmem:[#allocation20 + $0xcc8] ss:$12 sps:$4 sm:$0xff]   ;;  %v13991_v61 = vld [vmem:[#allocation20 + $0xc80] ss:$12 sps:$4 sm:$0xff]  }
 0xa37   : > { %9782 = vmatmul.mubr.bf16.gmra.mrb[76].mxu0 %v16573_v58  ;;  %9824 = vmatprep.mubr.bf16.mxu1 %v16242_v16  ;;  %v16578_v34 = vpop.f32.mrb[52].mxu1  ;;  %v13966_v16 = vld [vmem:[#allocation20 + $0xc08] ss:$12 sps:$4 sm:$0xff]  }
 0xa38   : > { %12138 = vmatpush3.bf16.msra.mxu1 %v13956_v31  ;;  %10244 = vmatprep.mubr.bf16.mxu0 %v16246_v21  ;;  %v16581_v37 = vpop.f32.mrb[53].mxu1 }
 0xa39   : > { %10225 = vmatpush1.bf16.msra.mxu0 %v13953_v27  ;;  %12139 = vmatprep.subr.bf16.mxu1 %v13957_v57  ;;  %v16583_v11 = vpop.f32.mrb[54].mxu1  ;;  %v13987_v27 = vld [vmem:[#allocation20 + $0xd38] ss:$12 sps:$4 sm:$0xff]  }
 0xa3a   : > { %10226 = vmatprep.subr.bf16.mxu0 %v13960_v51  ;;  %v16585_v47 = vpop.f32.mrb[55].mxu1  ;;  %v13995_v51 = vld [vmem:[#allocation20 + $0xd58] ss:$12 sps:$4 sm:$0xff]  }
 0xa3c   : > { %12140 = vmatpush3.bf16.msra.mxu1 %v13961_v59 }
 0xa3d   : > { %10227 = vmatpush1.bf16.msra.mxu0 %v13958_v56  ;;  %12165 = vmatprep.subr.bf16.mxu1 %v13965_v5  ;;  %v13994_v56 = vld [vmem:[#allocation20 + $0xd54] ss:$12 sps:$4 sm:$0xff]  }
 0xa3e   : > { %10228 = vmatprep.subr.bf16.mxu0 %v13964_v19 }
 0xa3f   : > { %9825 = vmatmul.mubr.bf16.vlgmr.msra.gmra.mrb[176].mxu1 %v16273_v32  ;;  %v16588_v2 = vpop.f32.mrb[56].mxu1  ;;  %v13976_v32 = vld [vmem:[#allocation20 + $0xc38] ss:$12 sps:$4 sm:$0xff]  }
 0xa40   : > { %9832 = vmatprep.mubr.bf16.mxu1 %v16280_v63  ;;  %12166 = vmatpush3.bf16.msra.mxu1 %v13966_v16  ;;  %v16591_v6 = vpop.f32.mrb[57].mxu1  ;;  %v13980_v63 = vld [vmem:[#allocation20 + $0xd10] ss:$12 sps:$4 sm:$0xff]  }
 0xa41   : > { %10229 = vmatpush1.bf16.msra.mxu0 %v13962_v18  ;;  %12167 = vmatprep.subr.bf16.mxu1 %v13970_v7  ;;  %v16593_v43 = vpop.f32.mrb[58].mxu1  ;;  %v13992_v16 = vld [vmem:[#allocation20 + $0xd50] ss:$12 sps:$4 sm:$0xff]   ;;  %v13999_v7 = vld [vmem:[#allocation20 + $0xd6c] ss:$12 sps:$4 sm:$0xff]  }
 0xa42   : > { %10230 = vmatprep.subr.bf16.mxu0 %v13969_v46  ;;  %v16595_v45 = vpop.f32.mrb[59].mxu1  ;;  %v14000_v18 = vld [vmem:[#allocation20 + $0xd70] ss:$12 sps:$4 sm:$0xff]  }
 0xa44   : > { %12168 = vmatpush3.bf16.msra.mxu1 %v13971_v40 }
 0xa45   : > { %10231 = vmatpush1.bf16.msra.mxu0 %v13967_v23  ;;  %12169 = vmatprep.subr.bf16.mxu1 %v13975_v54  ;;  %v14001_v23 = vld [vmem:[#allocation20 + $0xcb0] ss:$12 sps:$4 sm:$0xff]   ;;  %v13997_v54 = vld [vmem:[#allocation20 + $0xd68] ss:$12 sps:$4 sm:$0xff]  }
 0xa46   : > { %10232 = vmatprep.subr.bf16.mxu0 %v13974_v35 }
 0xa47   : > { %9833 = vmatmul.mubr.bf16.gmra.mrb[180].mxu1 %v16326_v8  ;;  %v16598_v3 = vpop.f32.mrb[60].mxu1  ;;  %v13986_v8 = vld [vmem:[#allocation20 + $0xc68] ss:$12 sps:$4 sm:$0xff]  }
 0xa48   : > { %9840 = vmatprep.mubr.bf16.mxu1 %v17006_v28  ;;  %12170 = vmatpush3.bf16.msra.mxu1 %v13976_v32  ;;  %v16601_v60 = vpop.f32.mrb[61].mxu1  ;;  %v13990_v28 = vld [vmem:[#allocation20 + $0xd40] ss:$12 sps:$4 sm:$0xff]  }
 0xa49   : > { %10233 = vmatpush1.bf16.msra.mxu0 %v13972_v52  ;;  %12171 = vmatprep.subr.bf16.mxu1 %v13980_v63  ;;  %v16603_v22 = vpop.f32.mrb[62].mxu1 }
 0xa4a   : > { %10234 = vmatprep.subr.bf16.mxu0 %v13979_v33  ;;  %v16605_v1 = vpop.f32.mrb[63].mxu1 }
 0xa4c   : > { %12172 = vmatpush3.bf16.msra.mxu1 %v13981_v4 }
 0xa4d   : > { %10235 = vmatpush1.bf16.msra.mxu0 %v13977_v38  ;;  %12173 = vmatprep.subr.bf16.mxu1 %v13985_v30 }
 0xa4e   : > { %10236 = vmatprep.subr.bf16.mxu0 %v13984_v42 }
 0xa4f   : > { %9841 = vmatmul.mubr.bf16.gmra.mrb[184].mxu1 %v17007_v24  ;;  %v11901_v15 = vpop.f32.mrb[80].mxu1  ;;  %v13996_v24 = vld [vmem:[#allocation20 + $0xc98] ss:$12 sps:$4 sm:$0xff]  }
 0xa50   : > { %9848 = vmatprep.mubr.bf16.mxu1 %v16558_v13  ;;  %12174 = vmatpush3.bf16.msra.mxu1 %v13986_v8  ;;  %v11902_v20 = vpop.f32.mrb[81].mxu1 }
 0xa51   : > { %10237 = vmatpush1.bf16.msra.mxu0 %v13982_v41  ;;  %v11903_v31 = vadd.f32 %v11902_v20, %v11901_v15  ;;  %12175 = vmatprep.subr.bf16.mxu1 %v13990_v28  ;;  %v11904_v57 = vpop.f32.mrb[82].mxu1  ;;  %v17008_v15 = vld [vmem:[#allocation42_spill] sm:$0xff] }
 0xa52   : > { %10238 = vmatprep.subr.bf16.mxu0 %v13989_v17  ;;  %v11905_v59 = vpop.f32.mrb[83].mxu1 }
 0xa53   : > { %v6821_v5 = vadd.f32 %v11903_v31, %v16516_v26  ;;  %v11906_v19 = vadd.f32 %v11905_v59, %v11904_v57 }
 0xa54   : > { %12176 = vmatpush3.bf16.msra.mxu1 %v13991_v61 }
 0xa55   : > { %10239 = vmatpush1.bf16.msra.mxu0 %v13987_v27  ;;  %v6824_v13 = vadd.f32 %v11906_v19, %v16518_v50  ;;  %12177 = vmatprep.subr.bf16.mxu1 %v13995_v51 }
 0xa56   : > { %10240 = vmatprep.subr.bf16.mxu0 %v13994_v56 }
 0xa57   : > { %9849 = vmatmul.mubr.bf16.gmra.mrb[188].mxu1 %v16573_v58  ;;  %v11907_v46 = vpop.f32.mrb[84].mxu1 }
 0xa58   : > { %12178 = vmatpush3.bf16.msra.mxu1 %v13996_v24  ;;  %10317 = vmatprep.mubr.bf16.mxu1 %v16246_v21  ;;  %v11908_v40 = vpop.f32.mrb[85].mxu1 }
 0xa59   : > { %10241 = vmatpush1.bf16.msra.mxu0 %v13992_v16  ;;  %v11909_v26 = vadd.f32 %v11908_v40, %v11907_v46  ;;  %12179 = vmatprep.subr.bf16.mxu1 %v14000_v18  ;;  %v11910_v35 = vpop.f32.mrb[86].mxu1 }
 0xa5a   : > { %10242 = vmatprep.subr.bf16.mxu0 %v13999_v7  ;;  %v11911_v50 = vpop.f32.mrb[87].mxu1 }
 0xa5b   : > { %v6829_v32 = vadd.f32 %v11909_v26, %v16527_v29  ;;  %v11912_v52 = vadd.f32 %v11911_v50, %v11910_v35 }
 0xa5c   : > { %12180 = vmatpush3.bf16.msra.mxu1 %v14001_v23 }
 0xa5d   : > { %10243 = vmatpush1.bf16.msra.mxu0 %v13997_v54  ;;  %v6832_v58 = vadd.f32 %v11912_v52, %v16529_v53 }
 0xa5f   : > { %10318 = vmatmul.mubr.bf16.vlgmr.msra.gmra.mrb[192].mxu1 %v16276_v49  ;;  %v11913_v63 = vpop.f32.mrb[88].mxu1 }
 0xa60   : > { %10245 = vmatmul.mubr.bf16.vlgmr.msra.gmra.mrb[64].mxu0 %v16276_v49  ;;  %10325 = vmatprep.mubr.bf16.mxu1 %v16284_v9  ;;  %v11914_v21 = vpop.f32.mrb[89].mxu1 }
 0xa61   : > { %10254 = vmatprep.mubr.bf16.mxu0 %v16284_v9  ;;  %v11915_v33 = vadd.f32 %v11914_v21, %v11913_v63  ;;  %v11916_v4 = vpop.f32.mrb[90].mxu1 }
 0xa62   : > { %v11917_v38 = vpop.f32.mrb[91].mxu1 }
 0xa63   : > { %v6837_v29 = vadd.f32 %v11915_v33, %v16533_v10  ;;  %v11918_v30 = vadd.f32 %v11917_v38, %v11916_v4 }
 0xa65   : > { %v6840_v42 = vadd.f32 %v11918_v30, %v16535_v55 }
 0xa67   : > { %10326 = vmatmul.mubr.bf16.gmra.mrb[196].mxu1 %v16329_v25  ;;  %v11919_v53 = vpop.f32.mrb[92].mxu1 }
 0xa68   : > { %10255 = vmatmul.mubr.bf16.gmra.mrb[68].mxu0 %v16329_v25  ;;  %10333 = vmatprep.mubr.bf16.mxu1 %v16336_v14  ;;  %v11920_v49 = vpop.f32.mrb[93].mxu1 }
 0xa69   : > { %10264 = vmatprep.mubr.bf16.mxu0 %v16336_v14  ;;  %v11921_v8 = vadd.f32 %v11920_v49, %v11919_v53  ;;  %v11922_v9 = vpop.f32.mrb[94].mxu1 }
 0xa6a   : > { %v11923_v41 = vpop.f32.mrb[95].mxu1 }
 0xa6b   : > { %v6845_v28 = vadd.f32 %v11921_v8, %v16539_v0  ;;  %v11924_v17 = vadd.f32 %v11923_v41, %v11922_v9  ;;  %v17009_v0 = vld [vmem:[#allocation45_spill] sm:$0xff] }
 0xa6d   : > { %v6848_v10 = vadd.f32 %v11924_v17, %v16541_v39 }
 0xa6f   : > { %10334 = vmatmul.mubr.bf16.gmra.mrb[200].mxu1 %v16368_v36  ;;  %v11941_v55 = vpop.f32.mrb[96].mxu1 }
 0xa70   : > { %10265 = vmatmul.mubr.bf16.gmra.mrb[72].mxu0 %v16368_v36  ;;  %10341 = vmatprep.mubr.bf16.mxu1 %v17008_v15  ;;  %v11942_v25 = vpop.f32.mrb[97].mxu1 }
 0xa71   : > { %10274 = vmatprep.mubr.bf16.mxu0 %v17008_v15  ;;  %v11943_v20 = vadd.f32 %v11942_v25, %v11941_v55  ;;  %v11944_v14 = vpop.f32.mrb[98].mxu1 }
 0xa72   : > { %v11945_v61 = vpop.f32.mrb[99].mxu1 }
 0xa73   : > { %v7384_v31 = vadd.f32 %v11943_v20, %v6821_v5  ;;  %v11946_v27 = vadd.f32 %v11945_v61, %v11944_v14 }
 0xa75   : > { %v7387_v57 = vadd.f32 %v11946_v27, %v6824_v13 }
 0xa77   : > { %10342 = vmatmul.mubr.bf16.gmra.mrb[204].mxu1 %v17009_v0  ;;  %v11947_v51 = vpop.f32.mrb[100].mxu1 }
 0xa78   : > { %10275 = vmatmul.mubr.bf16.gmra.mrb[76].mxu0 %v17009_v0  ;;  %v11948_v39 = vpop.f32.mrb[101].mxu1 }
 0xa79   : > { %v11949_v59 = vadd.f32 %v11948_v39, %v11947_v51  ;;  %v11950_v56 = vpop.f32.mrb[102].mxu1 }
 0xa7a   : > { %v11951_v36 = vpop.f32.mrb[103].mxu1 }
 0xa7b   : > { %v7390_v19 = vadd.f32 %v11949_v59, %v6829_v32  ;;  %v11952_v24 = vadd.f32 %v11951_v36, %v11950_v56 }
 0xa7d   : > { %v7393_v16 = vadd.f32 %v11952_v24, %v6832_v58 }
 0xa7f   : > { %v11953_v18 = vpop.f32.mrb[104].mxu1 }
 0xa80   : > { %v11954_v7 = vpop.f32.mrb[105].mxu1 }
 0xa81   : > { %v11955_v46 = vadd.f32 %v11954_v7, %v11953_v18  ;;  %v11956_v40 = vpop.f32.mrb[106].mxu1 }
 0xa82   : > { %v11957_v23 = vpop.f32.mrb[107].mxu1 }
 0xa83   : > { %v7396_v5 = vadd.f32 %v11955_v46, %v6837_v29  ;;  %v11958_v26 = vadd.f32 %v11957_v23, %v11956_v40 }
 0xa85   : > { %v7399_v13 = vadd.f32 %v11958_v26, %v6840_v42 }
 0xa87   : > { %v11959_v54 = vpop.f32.mrb[108].mxu1 }
 0xa88   : > { %v11960_v35 = vpop.f32.mrb[109].mxu1 }
 0xa89   : > { %v11961_v50 = vadd.f32 %v11960_v35, %v11959_v54  ;;  %v11962_v52 = vpop.f32.mrb[110].mxu1 }
 0xa8a   : > { %v11963_v63 = vpop.f32.mrb[111].mxu1 }
 0xa8b   : > { %v7402_v21 = vadd.f32 %v11961_v50, %v6845_v28  ;;  %v11964_v33 = vadd.f32 %v11963_v63, %v11962_v52 }
 0xa8d   : > { %v7405_v4 = vadd.f32 %v11964_v33, %v6848_v10 }
 0xa90   : > { %v11981_v38 = vpop.f32.mrb[112].mxu1 }
 0xa91   : > { %v11982_v32 = vpop.f32.mrb[113].mxu1 }
 0xa92   : > { %v11983_v30 = vadd.f32 %v11982_v32, %v11981_v38  ;;  %v11984_v58 = vpop.f32.mrb[114].mxu1 }
 0xa93   : > { %v11985_v53 = vpop.f32.mrb[115].mxu1 }
 0xa94   : > { %v7875_v49 = vadd.f32 %v11983_v30, %v7384_v31  ;;  %v11986_v8 = vadd.f32 %v11985_v53, %v11984_v58 }
 0xa96   : > { %v7878_v9 = vadd.f32 %v11986_v8, %v7387_v57 }
 0xa98   : > { %v11987_v41 = vpop.f32.mrb[116].mxu1 }
 0xa99   : > { %v11988_v29 = vpop.f32.mrb[117].mxu1 }
 0xa9a   : > { %v11989_v17 = vadd.f32 %v11988_v29, %v11987_v41  ;;  %v11990_v42 = vpop.f32.mrb[118].mxu1 }
 0xa9b   : > { %v11991_v55 = vpop.f32.mrb[119].mxu1 }
 0xa9c   : > { %v7881_v15 = vadd.f32 %v11989_v17, %v7390_v19  ;;  %v11992_v25 = vadd.f32 %v11991_v55, %v11990_v42 }
 0xa9e   : > { %v7884_v20 = vadd.f32 %v11992_v25, %v7393_v16 }
 0xaa0   : > { %v11993_v14 = vpop.f32.mrb[120].mxu1 }
 0xaa1   : > { %v11994_v28 = vpop.f32.mrb[121].mxu1 }
 0xaa2   : > { %v11995_v61 = vadd.f32 %v11994_v28, %v11993_v14  ;;  %v11996_v10 = vpop.f32.mrb[122].mxu1 }
 0xaa3   : > { %v11997_v27 = vpop.f32.mrb[123].mxu1 }
 0xaa4   : > { %v7887_v0 = vadd.f32 %v11995_v61, %v7396_v5  ;;  %v11998_v51 = vadd.f32 %v11997_v27, %v11996_v10 }
 0xaa6   : > { %v7890_v39 = vadd.f32 %v11998_v51, %v7399_v13 }
 0xaa8   : > { %v11999_v59 = vpop.f32.mrb[124].mxu1 }
 0xaa9   : > { %v12000_v31 = vpop.f32.mrb[125].mxu1 }
 0xaaa   : > { %v12001_v56 = vadd.f32 %v12000_v31, %v11999_v59  ;;  %v12002_v57 = vpop.f32.mrb[126].mxu1 }
 0xaab   : > { %v12003_v36 = vpop.f32.mrb[127].mxu1 }
 0xaac   : > { %v7893_v24 = vadd.f32 %v12001_v56, %v7402_v21  ;;  %v12004_v18 = vadd.f32 %v12003_v36, %v12002_v57 }
 0xaae   : > { %v7896_v7 = vadd.f32 %v12004_v18, %v7405_v4 }
 0xab0   : > { %v12021_v46 = vpop.f32.mrb[128].mxu1 }
 0xab1   : > { %v12022_v19 = vpop.f32.mrb[129].mxu1 }
 0xab2   : > { %v12023_v40 = vadd.f32 %v12022_v19, %v12021_v46  ;;  %v12024_v16 = vpop.f32.mrb[130].mxu1 }
 0xab3   : > { %v12025_v23 = vpop.f32.mrb[131].mxu1 }
 0xab4   : > { %v8378_v26 = vadd.f32 %v12023_v40, %v7875_v49  ;;  %v12026_v54 = vadd.f32 %v12025_v23, %v12024_v16 }
 0xab6   : > { %v8381_v35 = vadd.f32 %v12026_v54, %v7878_v9 }
 0xab8   : > { %v12027_v50 = vpop.f32.mrb[132].mxu1 }
 0xab9   : > { %v12028_v5 = vpop.f32.mrb[133].mxu1 }
 0xaba   : > { %v12029_v52 = vadd.f32 %v12028_v5, %v12027_v50  ;;  %v12030_v13 = vpop.f32.mrb[134].mxu1 }
 0xabb   : > { %v12031_v63 = vpop.f32.mrb[135].mxu1 }
 0xabc   : > { %v8384_v33 = vadd.f32 %v12029_v52, %v7881_v15  ;;  %v12032_v38 = vadd.f32 %v12031_v63, %v12030_v13 }
 0xabe   : > { %v8387_v32 = vadd.f32 %v12032_v38, %v7884_v20 }
 0xac0   : > { %v12033_v30 = vpop.f32.mrb[136].mxu1 }
 0xac1   : > { %v12034_v21 = vpop.f32.mrb[137].mxu1 }
 0xac2   : > { %v12035_v58 = vadd.f32 %v12034_v21, %v12033_v30  ;;  %v12036_v4 = vpop.f32.mrb[138].mxu1 }
 0xac3   : > { %v12037_v53 = vpop.f32.mrb[139].mxu1 }
 0xac4   : > { %v8390_v8 = vadd.f32 %v12035_v58, %v7887_v0  ;;  %v12038_v41 = vadd.f32 %v12037_v53, %v12036_v4 }
 0xac6   : > { %v8393_v29 = vadd.f32 %v12038_v41, %v7890_v39 }
 0xac8   : > { %v12039_v17 = vpop.f32.mrb[140].mxu1 }
 0xac9   : > { %v12040_v49 = vpop.f32.mrb[141].mxu1 }
 0xaca   : > { %v12041_v42 = vadd.f32 %v12040_v49, %v12039_v17  ;;  %v12042_v9 = vpop.f32.mrb[142].mxu1 }
 0xacb   : > { %v12043_v55 = vpop.f32.mrb[143].mxu1 }
 0xacc   : > { %v8396_v25 = vadd.f32 %v12041_v42, %v7893_v24  ;;  %v12044_v14 = vadd.f32 %v12043_v55, %v12042_v9 }
 0xace   : > { %v8399_v28 = vadd.f32 %v12044_v14, %v7896_v7 }
 0xad1   : > { %v12061_v61 = vpop.f32.mrb[144].mxu1 }
 0xad2   : > { %v12062_v15 = vpop.f32.mrb[145].mxu1 }
 0xad3   : > { %v12063_v10 = vadd.f32 %v12062_v15, %v12061_v61  ;;  %v12064_v20 = vpop.f32.mrb[146].mxu1 }
 0xad4   : > { %v12065_v27 = vpop.f32.mrb[147].mxu1 }
 0xad5   : > { %v8877_v51 = vadd.f32 %v12063_v10, %v8378_v26  ;;  %v12066_v59 = vadd.f32 %v12065_v27, %v12064_v20 }
 0xad7   : > { %v8880_v31 = vadd.f32 %v12066_v59, %v8381_v35 }
 0xad9   : > { %v12067_v56 = vpop.f32.mrb[148].mxu1 }
 0xada   : > { %v12068_v0 = vpop.f32.mrb[149].mxu1 }
 0xadb   : > { %v12069_v57 = vadd.f32 %v12068_v0, %v12067_v56  ;;  %v12070_v39 = vpop.f32.mrb[150].mxu1 }
 0xadc   : > { %v12071_v36 = vpop.f32.mrb[151].mxu1 }
 0xadd   : > { %v8883_v18 = vadd.f32 %v12069_v57, %v8384_v33  ;;  %v12072_v46 = vadd.f32 %v12071_v36, %v12070_v39 }
 0xadf   : > { %v16633_v19 = vadd.f32 %v12072_v46, %v8387_v32 }
 0xae1   : > { %v12073_v24 = vpop.f32.mrb[152].mxu1 }
 0xae2   : > { %v12074_v40 = vpop.f32.mrb[153].mxu1 }
 0xae3   : > { %v12075_v7 = vadd.f32 %v12074_v40, %v12073_v24  ;;  %v12076_v16 = vpop.f32.mrb[154].mxu1 }
 0xae4   : > { %v12077_v23 = vpop.f32.mrb[155].mxu1 }
 0xae5   : > { %v16635_v54 = vadd.f32 %v12075_v7, %v8390_v8  ;;  %v12078_v50 = vadd.f32 %v12077_v23, %v12076_v16 }
 0xae7   : > { %v16637_v26 = vadd.f32 %v12078_v50, %v8393_v29 }
 0xae9   : > { %v12079_v35 = vpop.f32.mrb[156].mxu1 }
 0xaea   : > { %v12080_v5 = vpop.f32.mrb[157].mxu1 }
 0xaeb   : > { %v12081_v52 = vadd.f32 %v12080_v5, %v12079_v35  ;;  %v12082_v13 = vpop.f32.mrb[158].mxu1 }
 0xaec   : > { %v12083_v63 = vpop.f32.mrb[159].mxu1 }
 0xaed   : > { %v16639_v33 = vadd.f32 %v12081_v52, %v8396_v25  ;;  %v12084_v38 = vadd.f32 %v12083_v63, %v12082_v13 }
 0xaef   : > { %v16641_v32 = vadd.f32 %v12084_v38, %v8399_v28 }
 0xaf1   : > { %v12101_v30 = vpop.f32.mrb[160].mxu1 }
 0xaf2   : > { %v12102_v21 = vpop.f32.mrb[161].mxu1 }
 0xaf3   : > { %v12103_v58 = vadd.f32 %v12102_v21, %v12101_v30  ;;  %v12104_v4 = vpop.f32.mrb[162].mxu1 }
 0xaf4   : > { %v12105_v53 = vpop.f32.mrb[163].mxu1 }
 0xaf5   : > { %v16643_v8 = vadd.f32 %v12103_v58, %v8877_v51  ;;  %v12106_v41 = vadd.f32 %v12105_v53, %v12104_v4 }
 0xaf7   : > { %v16645_v29 = vadd.f32 %v12106_v41, %v8880_v31 }
 0xaf9   : > { %v12107_v17 = vpop.f32.mrb[164].mxu1 }
 0xafa   : > { %v12108_v49 = vpop.f32.mrb[165].mxu1 }
 0xafb   : > { %v12109_v42 = vadd.f32 %v12108_v49, %v12107_v17  ;;  %v12110_v9 = vpop.f32.mrb[166].mxu1 }
 0xafc   : > { %v12111_v55 = vpop.f32.mrb[167].mxu1 }
 0xafd   : > { %v9368_v25 = vadd.f32 %v12109_v42, %v8883_v18  ;;  %v12112_v14 = vadd.f32 %v12111_v55, %v12110_v9 }
 0xafe   : > { %14648 = shalt.err (!%p14645_p6)
}
 0xaff   : > { %s14649_s24 = scalar_lea.hbm %s16654_s16, 1024  ;;  %s14653_s1 = scalar_lea.hbm %s17010_s8, 2048 }
 0xb00   : > { %p14650_p2 = scmp.ne.s32.totalorder %s16654_s16, %s14649_s24  ;;  %p14654_p5 = scmp.lt.u32.totalorder %s16654_s16, %s17010_s8 }
 0xb01   : > { %p14655_p7 = scmp.lt.u32.totalorder %s14653_s1, %s14649_s24  ;;  %p14657_p8 = scmp.lt.u32.totalorder %s14649_s24, %s16654_s16 }
 0xb02   : > { %p14651_p4 = pnand %p14650_p2, %p17011_p11 }
 0xb03   : > { %p14656_p9 = por %p14655_p7, %p14654_p5 }
 0xb04   : > { %p14652_p10 = pneg %p14651_p4 }
 0xb05   : > { %p14658_p0 = por %p14657_p8, %p14656_p9 }
 0xb07   : > { %p14659_p12 = pnand %p14658_p0, %p14652_p10 }
 0xb09   : > { %14662 = shalt.err (!%p14659_p12)
}
 0xb0a   : > { %s16937_s4 = smov 128   ;;  %s16939_s27 = smov 8   ;;  %v9371_v28 = vadd.f32 %v12112_v14, %v16633_v19  ;;  %v12113_v61 = vpop.f32.mrb[168].mxu1 }
 0xb0b   : > { %12763 = dma.vmem_to_hbm [thread:$0]  (%p17011_p11), %s16657_s22, 1024, %s16654_s16, %s16661_s17, %s16937_s4, %s16937_s4, %s16939_s27   ;;  %v12114_v15 = vpop.f32.mrb[169].mxu1 }
 0xb0c   : > { %v12115_v10 = vadd.f32 %v12114_v15, %v12113_v61  ;;  %v12116_v20 = vpop.f32.mrb[170].mxu1  ;;  %v17012_v15 = vld [vmem:[#allocation38_spill] sm:$0xff]  ;;  %s16770_s16 = scalar_lea.vmem [#allocation26], %s15292_s25  ;;  %s16776_s22 = scalar_lea.vmem [#allocation23], %s15292_s25 }
 0xb0d   : > { %v12117_v27 = vpop.f32.mrb[171].mxu1  ;;  %s10639_s25 = sshll.u32 %s16770_s16, 4  ;;  %s10607_s13 = sshll.u32 %s16776_s22, 4  ;;  %s16810_s25 = int_to_ptr.vmem [resolvable:$true] %s10639_s25  ;;  %s16819_s13 = int_to_ptr.vmem [resolvable:$true] %s10607_s13 }
 0xb0e   : > { %v9374_v51 = vadd.f32 %v12115_v10, %v16635_v54  ;;  %v12118_v59 = vadd.f32 %v12117_v27, %v12116_v20  ;;  %v12119_v56 = vpop.f32.mrb[172].mxu1  ;;  %s17015_s6 = sld [smem:[#allocation58_spill]]  ;;  %s14663_s4 = scalar_lea.vmem %s16810_s25, 1024 }
 0xb0f   : > { %v12120_v0 = vpop.f32.mrb[173].mxu1  ;;  %p14664_p13 = scmp.ne.s32.totalorder %s16810_s25, %s14663_s4  ;;  %s14817_s7 = smov [#allocation26]  }
 0xb10   : > { %v9377_v31 = vadd.f32 %v12118_v59, %v16637_v26  ;;  %v12121_v57 = vadd.f32 %v12120_v0, %v12119_v56  ;;  %v12122_v39 = vpop.f32.mrb[174].mxu1  ;;  %v17013_v0 = vld [vmem:[#allocation40_spill] sm:$0xff]  ;;  %s14667_s24 = sshll.u32 %s14817_s7, 4  ;;  %s14668_s24 = int_to_ptr.vmem [resolvable:$false] %s14667_s24 }
 0xb11   : > { %v12123_v36 = vpop.f32.mrb[175].mxu1  ;;  %p14665_p1 = pnand %p14664_p13, %p17011_p11  ;;  %s14669_s27 = scalar_lea.vmem %s14668_s24, 2048 }
 0xb12   : > { %v9380_v18 = vadd.f32 %v12121_v57, %v16639_v33  ;;  %v12124_v46 = vadd.f32 %v12123_v36, %v12122_v39  ;;  %v12141_v24 = vpop.f32.mrb[176].mxu1  ;;  %p14670_p6 = scmp.lt.s32.totalorder %s16810_s25, %s14668_s24  ;;  %p14671_p2 = scmp.lt.s32.totalorder %s14669_s27, %s14663_s4 }
 0xb13   : > { %v12142_v40 = vpop.f32.mrb[177].mxu1  ;;  %p14666_p3 = pneg %p14665_p1 }
 0xb14   : > { %v9383_v19 = vadd.f32 %v12124_v46, %v16641_v32  ;;  %v12143_v7 = vadd.f32 %v12142_v40, %v12141_v24  ;;  %v12144_v16 = vpop.f32.mrb[178].mxu1  ;;  %s16808_s30 = scalar_lea.hbm %s17015_s6, %s16648_s9  ;;  %p14672_p4 = por %p14671_p2, %p14670_p6 }
 0xb15   : > { %v12145_v23 = vpop.f32.mrb[179].mxu1 }
 0xb16   : > { %v9859_v54 = vadd.f32 %v12143_v7, %v16643_v8  ;;  %v12146_v50 = vadd.f32 %v12145_v23, %v12144_v16  ;;  %v17014_v23 = vld [vmem:[#allocation39_spill] sm:$0xff]  ;;  %p14673_p10 = pnand %p14672_p4, %p14666_p3 }
 0xb18   : > { %v9862_v26 = vadd.f32 %v12146_v50, %v16645_v29 }
 0xb1a   : > { %v12147_v35 = vpop.f32.mrb[180].mxu1 }
 0xb1b   : > { %v12148_v5 = vpop.f32.mrb[181].mxu1 }
 0xb1c   : > { %v12149_v52 = vadd.f32 %v12148_v5, %v12147_v35  ;;  %v12150_v13 = vpop.f32.mrb[182].mxu1 }
 0xb1d   : > { %v12151_v63 = vpop.f32.mrb[183].mxu1 }
 0xb1e   : > { %v16695_v38 = vadd.f32 %v12149_v52, %v9368_v25  ;;  %v12152_v33 = vadd.f32 %v12151_v63, %v12150_v13 }
 0xb20   : > { %v16697_v30 = vadd.f32 %v12152_v33, %v9371_v28  ;;  %v10374_v28 = vld [vmem:[#allocation21] sm:$0x7] }
 0xb21   : > { %v16708_v10 = vrot.slane %v10374_v28, %v17012_v15  ;;  %v16712_v57 = vrot.slane %v10374_v28, %v17013_v0  ;;  %v16718_v50 = vrot.slane %v10374_v28, %v17014_v23 }
 0xb22   : > { %v12153_v32 = vpop.f32.mrb[184].mxu1 }
 0xb23   : > { %v12154_v21 = vpop.f32.mrb[185].mxu1 }
 0xb24   : > { %v12155_v58 = vadd.f32 %v12154_v21, %v12153_v32  ;;  %v12156_v4 = vpop.f32.mrb[186].mxu1 }
 0xb25   : > { %v12157_v53 = vpop.f32.mrb[187].mxu1 }
 0xb26   : > { %v16699_v41 = vadd.f32 %v12155_v58, %v9374_v51  ;;  %v12158_v8 = vadd.f32 %v12157_v53, %v12156_v4 }
 0xb28   : > { %v16701_v17 = vadd.f32 %v12158_v8, %v9377_v31 }
 0xb2a   : > { %v12159_v29 = vpop.f32.mrb[188].mxu1 }
 0xb2b   : > { %v12160_v49 = vpop.f32.mrb[189].mxu1 }
 0xb2c   : > { %v12161_v42 = vadd.f32 %v12160_v49, %v12159_v29  ;;  %v12162_v9 = vpop.f32.mrb[190].mxu1 }
 0xb2d   : > { %v12163_v55 = vpop.f32.mrb[191].mxu1 }
 0xb2e   : > { %v16703_v25 = vadd.f32 %v12161_v42, %v9380_v18  ;;  %v12164_v14 = vadd.f32 %v12163_v55, %v12162_v9 }
 0xb30   : > { %v16705_v61 = vadd.f32 %v12164_v14, %v9383_v19 }
 0xb32   : > { %v12181_v20 = vpop.f32.mrb[192].mxu1 }
 0xb33   : > { %v10246_v27 = vpop.f32.mrb[64].mxu0  ;;  %v12182_v51 = vpop.f32.mrb[193].mxu1 }
 0xb34   : > { %v12333_v59 = vadd.f32 %v10246_v27, %v16562_v12  ;;  %v10248_v31 = vpop.f32.mrb[65].mxu0  ;;  %v12183_v56 = vadd.f32 %v12182_v51, %v12181_v20  ;;  %v12184_v39 = vpop.f32.mrb[194].mxu1 }
 0xb35   : > { %v12334_v36 = vadd.f32 %v10248_v31, %v16565_v62  ;;  %v10250_v18 = vpop.f32.mrb[66].mxu0  ;;  %v12185_v46 = vpop.f32.mrb[195].mxu1 }
 0xb36   : > { %v10391_v19 = vadd.f32 %v12333_v59, %v16708_v10  ;;  %v10352_v24 = vadd.f32 %v12183_v56, %v9859_v54  ;;  %v12335_v40 = vadd.f32 %v10250_v18, %v16567_v44  ;;  %v10252_v7 = vpop.f32.mrb[67].mxu0  ;;  %v12186_v16 = vadd.f32 %v12185_v46, %v12184_v39 }
 0xb37   : > { %v12336_v12 = vadd.f32 %v10252_v7, %v16569_v48  ;;  %v10392_v44 = vadd.f32 %v12334_v36, %v16718_v50 }
 0xb38   : > { %v11749_v35 = vmul.f32 -1.442695, %v10391_v19  ;;  %v10393_v5 = vadd.f32 %v16712_v57, %v10352_v24  ;;  %v10394_v52 = vadd.f32 %v12335_v40, %v16708_v10  ;;  %v10355_v62 = vadd.f32 %v12186_v16, %v9862_v26 }
 0xb39   : > { %v10395_v26 = vadd.f32 %v12336_v12, %v16718_v50 }
 0xb3a   : > { %14194 = vpow2.f32 %v11749_v35  ;;  %v11757_v13 = vmul.f32 -1.442695, %v10393_v5  ;;  %v11750_v63 = vmul.f32 -1.442695, %v10394_v52  ;;  %v10396_v54 = vadd.f32 %v16712_v57, %v10355_v62  ;;  %v12187_v33 = vpop.f32.mrb[196].mxu1 }
 0xb3b   : > { %v10256_v32 = vpop.f32.mrb[68].mxu0  ;;  %v12188_v21 = vpop.f32.mrb[197].mxu1 }
 0xb3c   : > { %14196 = vpow2.f32 %v11757_v13  ;;  %v11758_v58 = vmul.f32 -1.442695, %v10396_v54  ;;  %v12337_v48 = vadd.f32 %v10256_v32, %v16578_v34  ;;  %v10258_v4 = vpop.f32.mrb[69].mxu0  ;;  %v12189_v53 = vadd.f32 %v12188_v21, %v12187_v33  ;;  %v12190_v8 = vpop.f32.mrb[198].mxu1 }
 0xb3d   : > { %14198 = vpow2.f32 %v11750_v63  ;;  %v12338_v29 = vadd.f32 %v10258_v4, %v16581_v37  ;;  %v10260_v49 = vpop.f32.mrb[70].mxu0  ;;  %v12191_v42 = vpop.f32.mrb[199].mxu1 }
 0xb3e   : > { %14200 = vpow2.f32 %v11758_v58  ;;  %v10397_v9 = vadd.f32 %v12337_v48, %v16708_v10  ;;  %v10358_v55 = vadd.f32 %v12189_v53, %v16695_v38  ;;  %v12339_v14 = vadd.f32 %v10260_v49, %v16583_v11  ;;  %v10262_v28 = vpop.f32.mrb[71].mxu0 }
 0xb3f   : > { %v10398_v34 = vadd.f32 %v12338_v29, %v16718_v50  ;;  %v12340_v15 = vadd.f32 %v10262_v28, %v16585_v47  ;;  %v12192_v20 = vadd.f32 %v12191_v42, %v12190_v8  ;;  %14202 = vtanh.f32 %v10392_v44 }
 0xb40   : > { %v11751_v27 = vmul.f32 -1.442695, %v10397_v9  ;;  %v10399_v51 = vadd.f32 %v16712_v57, %v10358_v55  ;;  %v10400_v37 = vadd.f32 %v12339_v14, %v16708_v10  ;;  %14204 = vtanh.f32 %v10395_v26 }
 0xb41   : > { %v10361_v59 = vadd.f32 %v12192_v20, %v16697_v30  ;;  %v10401_v36 = vadd.f32 %v12340_v15, %v16718_v50 }
 0xb42   : > { %14206 = vpow2.f32 %v11751_v27  ;;  %v11759_v31 = vmul.f32 -1.442695, %v10399_v51  ;;  %v11752_v38 = vmul.f32 -1.442695, %v10400_v37  ;;  %v12193_v56 = vpop.f32.mrb[200].mxu1 }
 0xb43   : > { %14208 = vtanh.f32 %v10398_v34  ;;  %v10402_v11 = vadd.f32 %v16712_v57, %v10361_v59  ;;  %v10266_v0 = vpop.f32.mrb[72].mxu0  ;;  %v12194_v39 = vpop.f32.mrb[201].mxu1 }
 0xb44   : > { %v14195_v47 = vpop.eup %14194  ;;  %14210 = vpow2.f32 %v11759_v31  ;;  %v12341_v18 = vadd.f32 %v10266_v0, %v16588_v2  ;;  %v10268_v46 = vpop.f32.mrb[73].mxu0  ;;  %v12195_v19 = vadd.f32 %v12194_v39, %v12193_v56 }
 0xb45   : > { %v12196_v24 = vpop.f32.mrb[202].mxu1  ;;  %v10439_v40 = vadd.f32 1.0, %v14195_v47  ;;  %14212 = vpow2.f32 %v11752_v38  ;;  %v11760_v30 = vmul.f32 -1.442695, %v10402_v11  ;;  %v12342_v7 = vadd.f32 %v10268_v46, %v16591_v6  ;;  %v10270_v16 = vpop.f32.mrb[74].mxu0 }
 0xb46   : > { %v12197_v23 = vpop.f32.mrb[203].mxu1  ;;  %v14197_v12 = vpop.eup %14196  ;;  %v10403_v35 = vadd.f32 %v12341_v18, %v16708_v10  ;;  %v10364_v5 = vadd.f32 %v12195_v19, %v16699_v41  ;;  %v12343_v52 = vadd.f32 %v10270_v16, %v16593_v43 }
 0xb47   : > { %v10272_v62 = vpop.f32.mrb[75].mxu0  ;;  %v12198_v13 = vadd.f32 %v12197_v23, %v12196_v24  ;;  %v14199_v2 = vpop.eup %14198  ;;  %14214 = vrcp.f32 %v10439_v40  ;;  %v10495_v63 = vadd.f32 1.0, %v14197_v12  ;;  %v10404_v31 = vadd.f32 %v12342_v7, %v16718_v50  ;;  %v14287_v7 = vld [vmem:[%s15306_s2] sm:$0xff] }
 0xb48   : > { %v16744_v54 = vadd.f32 %v10272_v62, %v16595_v45  ;;  %v14201_v33 = vpop.eup %14200  ;;  %v10440_v44 = vadd.f32 1.0, %v14199_v2  ;;  %14216 = vpow2.f32 %v11760_v30  ;;  %v11753_v6 = vmul.f32 -1.442695, %v10403_v35 }
 0xb49   : > { %v10405_v32 = vadd.f32 %v16712_v57, %v10364_v5  ;;  %v10496_v21 = vadd.f32 1.0, %v14201_v33  ;;  %14218 = vtanh.f32 %v10401_v36  ;;  %v10406_v41 = vadd.f32 %v12343_v52, %v16708_v10  ;;  %v14203_v58 = vpop.eup %14202 }
 0xb4a   : > { %14220 = vrcp.f32 %v10440_v44  ;;  %v10367_v48 = vadd.f32 %v12198_v13, %v16701_v17  ;;  %v12199_v4 = vpop.f32.mrb[204].mxu1  ;;  %v14205_v53 = vpop.eup %14204 }
 0xb4b   : > { %v11761_v43 = vmul.f32 -1.442695, %v10405_v32  ;;  %14222 = vrcp.f32 %v10495_v63  ;;  %v11754_v45 = vmul.f32 -1.442695, %v10406_v41  ;;  %v10276_v8 = vpop.f32.mrb[76].mxu0  ;;  %v12200_v26 = vpop.f32.mrb[205].mxu1  ;;  %v10407_v32 = vadd.f32 %v16744_v54, %v16718_v50 }
 0xb4c   : > { %v14207_v29 = vpop.eup %14206  ;;  %14224 = vpow2.f32 %v11753_v6  ;;  %v10408_v49 = vadd.f32 %v16712_v57, %v10367_v48  ;;  %v12345_v42 = vadd.f32 %v10276_v8, %v16598_v3  ;;  %v10278_v9 = vpop.f32.mrb[77].mxu0  ;;  %v12201_v55 = vadd.f32 %v12200_v26, %v12199_v4  ;;  %v14288_v63 = vld [vmem:[%s15306_s2 + $0x8] sm:$0xff]  ;;  %v14289_v8 = vld [vmem:[%s15306_s2 + $0x10] sm:$0xff] }
 0xb4d   : > { %v12202_v14 = vpop.f32.mrb[206].mxu1  ;;  %v16751_v28 = vpop.eup %14208  ;;  %14226 = vrcp.f32 %v10496_v21  ;;  %v10441_v34 = vadd.f32 1.0, %v14207_v29  ;;  %v16754_v17 = vadd.f32 %v10278_v9, %v16601_v60 }
 0xb4e   : > { %v10280_v15 = vpop.f32.mrb[78].mxu0  ;;  %v12203_v20 = vpop.f32.mrb[207].mxu1  ;;  %14228 = vpow2.f32 %v11761_v43  ;;  %v10409_v51 = vadd.f32 %v12345_v42, %v16708_v10  ;;  %v10370_v37 = vadd.f32 %v12201_v55, %v16703_v25  ;;  %v11762_v11 = vmul.f32 -1.442695, %v10408_v49 }
 0xb4f   : > { %v14211_v27 = vpop.eup %14210  ;;  %v10282_v59 = vpop.f32.mrb[79].mxu0  ;;  %14230 = vrcp.f32 %v10441_v34  ;;  %v12347_v38 = vadd.f32 %v10280_v15, %v16603_v22  ;;  %v12204_v25 = vadd.f32 %v12203_v20, %v12202_v14  ;;  %v10410_v9 = vadd.f32 %v16754_v17, %v16718_v50  ;;  %v14290_v34 = vld [vmem:[%s15306_s2 + $0x18] sm:$0xff] }
 0xb50   : > { %v14213_v3 = vpop.eup %14212  ;;  %14232 = vpow2.f32 %v11754_v45  ;;  %v10411_v60 = vadd.f32 %v16712_v57, %v10370_v37  ;;  %v10497_v39 = vadd.f32 1.0, %v14211_v27  ;;  %v11755_v47 = vmul.f32 -1.442695, %v10409_v51 }
 0xb51   : > { %v10442_v56 = vadd.f32 1.0, %v14213_v3  ;;  %v14215_v0 = vpop.eup %14214  ;;  %v16762_v36 = vadd.f32 %v10282_v59, %v16605_v1  ;;  %v10412_v24 = vadd.f32 %v12347_v38, %v16708_v10  ;;  %v10373_v12 = vadd.f32 %v12204_v25, %v16705_v61 }
 0xb52   : > { %v14217_v18 = vpop.eup %14216  ;;  %v10527_v46 = vsub.f32 1.0, %v14215_v0  ;;  %v10519_v19 = vmul.f32 %v14215_v0, %v14203_v58  ;;  %v11763_v23 = vmul.f32 -1.442695, %v10411_v60 }
 0xb53   : > { %14234 = vrcp.f32 %v10442_v56  ;;  %v14219_v22 = vpop.eup %14218  ;;  %v10498_v40 = vadd.f32 1.0, %v14217_v18  ;;  %v11756_v10 = vmul.f32 -1.442695, %v10412_v24  ;;  %v10414_v13 = vadd.f32 %v16712_v57, %v10373_v12  ;;  %v14291_v18 = vld [vmem:[%s15306_s2 + $0x20] sm:$0xff] }
 0xb54   : > { %14236 = vtanh.f32 %v10404_v31  ;;  %v14221_v30 = vpop.eup %14220  ;;  %v10535_v16 = vmul.f32 %v14287_v7, %v10527_v46  ;;  %v10413_v31 = vadd.f32 %v16762_v36, %v16718_v50 }
 0xb55   : > { %14238 = vpow2.f32 %v11762_v11  ;;  %v14223_v1 = vpop.eup %14222  ;;  %v10528_v35 = vsub.f32 1.0, %v14221_v30  ;;  %v10520_v5 = vmul.f32 %v14221_v30, %v14205_v53  ;;  %v11764_v48 = vmul.f32 -1.442695, %v10414_v13 }
 0xb56   : > { %14240 = vrcp.f32 %v10497_v39  ;;  %v14225_v52 = vpop.eup %14224  ;;  %v10543_v62 = vadd.f32 %v10535_v16, %v10519_v19  ;;  %v14292_v16 = vld [vmem:[%s15306_s2 + $0x28] sm:$0xff] }
 0xb57   : > { %14242 = vpow2.f32 %v11755_v47  ;;  %v14227_v2 = vpop.eup %14226  ;;  %v10536_v33 = vmul.f32 %v14288_v63, %v10528_v35  ;;  %v10443_v44 = vadd.f32 1.0, %v14225_v52 }
 0xb58   : > { %14244 = vrcp.f32 %v10498_v40  ;;  %v14229_v6 = vpop.eup %14228  ;;  %10575 = vst [vmem:[%s16770_s16] sm:$0xff] %v10543_v62  ;;  %v10551_v61 = vmul.f32 %v14223_v1, %v10543_v62 }
 0xb59   : > { %14246 = vpow2.f32 %v11763_v23  ;;  %v14231_v21 = vpop.eup %14230  ;;  %v10544_v57 = vadd.f32 %v10536_v33, %v10520_v5  ;;  %v10499_v53 = vadd.f32 1.0, %v14229_v6 }
 0xb5a   : > { %14248 = vrcp.f32 %v10443_v44  ;;  %v14233_v41 = vpop.eup %14232  ;;  %10559 = vst [vmem:[%s16776_s22] sm:$0xff] %v10551_v61  ;;  %v10529_v58 = vsub.f32 1.0, %v14231_v21  ;;  %v10521_v43 = vmul.f32 %v14231_v21, %v16751_v28 }
 0xb5b   : > { %14250 = vpow2.f32 %v11756_v10  ;;  %10576 = vst [vmem:[%s16770_s16 + $0x8] sm:$0xff] %v10544_v57  ;;  %v10552_v4 = vmul.f32 %v14227_v2, %v10544_v57  ;;  %v10444_v54 = vadd.f32 1.0, %v14233_v41  ;;  %v14293_v2 = vld [vmem:[%s15306_s2 + $0x30] sm:$0xff]  ;;  %v14294_v57 = vld [vmem:[%s15306_s2 + $0x38] sm:$0xff]  ;;  %s17016_s2 = sld [smem:[#allocation56_spill]] }
 0xb5c   : > { %v10537_v26 = vmul.f32 %v14289_v8, %v10529_v58  ;;  %14252 = vtanh.f32 %v10407_v32 }
 0xb5d   : > { %v14235_v45 = vpop.eup %14234  ;;  %10560 = vst [vmem:[%s16776_s22 + $0x8] sm:$0xff] %v10552_v4  ;;  %14254 = vrcp.f32 %v10444_v54 }
 0xb5e   : > { %v14237_v29 = vpop.eup %14236  ;;  %v10530_v49 = vsub.f32 1.0, %v14235_v45  ;;  %v10522_v42 = vmul.f32 %v14235_v45, %v14219_v22  ;;  %v10545_v14 = vadd.f32 %v10537_v26, %v10521_v43  ;;  %14256 = vpow2.f32 %v11764_v48 }
 0xb5f   : > { %v14239_v55 = vpop.eup %14238  ;;  %14258 = vrcp.f32 %v10499_v53 }
 0xb60   : > { %v14241_v28 = vpop.eup %14240  ;;  %v10538_v15 = vmul.f32 %v14290_v34, %v10530_v49  ;;  %v10500_v20 = vadd.f32 1.0, %v14239_v55  ;;  %10577 = vst [vmem:[%s16770_s16 + $0x10] sm:$0xff] %v10545_v14  ;;  %14260 = vtanh.f32 %v10410_v9 }
 0xb61   : > { %v14243_v27 = vpop.eup %14242  ;;  %v10553_v51 = vmul.f32 %v14241_v28, %v10545_v14  ;;  %s16817_s28 = scalar_lea.hbm %s17016_s2, %s16648_s9 }
 0xb62   : > { %v14245_v37 = vpop.eup %14244  ;;  %v10546_v59 = vadd.f32 %v10538_v15, %v10522_v42  ;;  %v10445_v3 = vadd.f32 1.0, %v14243_v27  ;;  %14262 = vrcp.f32 %v10500_v20 }
 0xb63   : > { %v14247_v17 = vpop.eup %14246  ;;  %10561 = vst [vmem:[%s16776_s22 + $0x10] sm:$0xff] %v10553_v51 }
 0xb64   : > { %v14249_v38 = vpop.eup %14248  ;;  %10578 = vst [vmem:[%s16770_s16 + $0x18] sm:$0xff] %v10546_v59  ;;  %v10554_v56 = vmul.f32 %v14245_v37, %v10546_v59  ;;  %14264 = vrcp.f32 %v10445_v3  ;;  %v10501_v39 = vadd.f32 1.0, %v14247_v17 }
 0xb65   : > { %v14251_v11 = vpop.eup %14250  ;;  %v10531_v60 = vsub.f32 1.0, %v14249_v38  ;;  %v10523_v0 = vmul.f32 %v14249_v38, %v14237_v29  ;;  %14266 = vtanh.f32 %v10413_v31 }
 0xb66   : > { %10562 = vst [vmem:[%s16776_s22 + $0x18] sm:$0xff] %v10554_v56  ;;  %v10446_v47 = vadd.f32 1.0, %v14251_v11  ;;  %v14253_v25 = vpop.eup %14252 }
 0xb67   : > { %v10539_v46 = vmul.f32 %v14291_v18, %v10531_v60  ;;  %v14255_v19 = vpop.eup %14254 }
 0xb68   : > { %14268 = vrcp.f32 %v10446_v47  ;;  %v14257_v50 = vpop.eup %14256  ;;  %v10532_v24 = vsub.f32 1.0, %v14255_v19  ;;  %v10524_v22 = vmul.f32 %v14255_v19, %v14253_v25 }
 0xb69   : > { %v10547_v36 = vadd.f32 %v10539_v46, %v10523_v0  ;;  %v14259_v40 = vpop.eup %14258  ;;  %14270 = vrcp.f32 %v10501_v39  ;;  %v10502_v30 = vadd.f32 1.0, %v14257_v50 }
 0xb6a   : > { %v10540_v23 = vmul.f32 %v14292_v16, %v10532_v24  ;;  %v14261_v12 = vpop.eup %14260 }
 0xb6b   : > { %10579 = vst [vmem:[%s16770_s16 + $0x20] sm:$0xff] %v10547_v36  ;;  %v10555_v7 = vmul.f32 %v14259_v40, %v10547_v36  ;;  %14272 = vrcp.f32 %v10502_v30 }
 0xb6c   : > { %v14263_v1 = vpop.eup %14262  ;;  %v10548_v35 = vadd.f32 %v10540_v23, %v10524_v22 }
 0xb6d   : > { %10563 = vst [vmem:[%s16776_s22 + $0x20] sm:$0xff] %v10555_v7 }
 0xb6e   : > { %v14265_v5 = vpop.eup %14264  ;;  %10580 = vst [vmem:[%s16770_s16 + $0x28] sm:$0xff] %v10548_v35  ;;  %v10556_v52 = vmul.f32 %v14263_v1, %v10548_v35 }
 0xb6f   : > { %v10533_v62 = vsub.f32 1.0, %v14265_v5  ;;  %v10525_v10 = vmul.f32 %v14265_v5, %v14261_v12  ;;  %v14267_v13 = vpop.eup %14266 }
 0xb70   : > { %10564 = vst [vmem:[%s16776_s22 + $0x28] sm:$0xff] %v10556_v52 }
 0xb71   : > { %v10541_v63 = vmul.f32 %v14293_v2, %v10533_v62 }
 0xb72   : > { %v14269_v33 = vpop.eup %14268 }
 0xb73   : > { %v10549_v44 = vadd.f32 %v10541_v63, %v10525_v10  ;;  %v10534_v6 = vsub.f32 1.0, %v14269_v33  ;;  %v10526_v61 = vmul.f32 %v14269_v33, %v14267_v13  ;;  %v14271_v32 = vpop.eup %14270 }
 0xb75   : > { %10581 = vst [vmem:[%s16770_s16 + $0x30] sm:$0xff] %v10549_v44  ;;  %v10557_v21 = vmul.f32 %v14271_v32, %v10549_v44  ;;  %v10542_v41 = vmul.f32 %v14294_v57, %v10534_v6  ;;  %v14273_v43 = vpop.eup %14272 }
 0xb77   : > { %10565 = vst [vmem:[%s16776_s22 + $0x30] sm:$0xff] %v10557_v21  ;;  %v10550_v58 = vadd.f32 %v10542_v41, %v10526_v61 }
 0xb79   : > { %10582 = vst [vmem:[%s16770_s16 + $0x38] sm:$0xff] %v10550_v58  ;;  %v10558_v48 = vmul.f32 %v14273_v43, %v10550_v58 }
 0xb7a   : > { %14676 = shalt.err (!%p14673_p10)
}
 0xb7b   : > { %s14677_s9 = scalar_lea.hbm %s16808_s30, 1024  ;;  %s14681_s3 = scalar_lea.hbm %s17015_s6, 2048 }
 0xb7c   : > { %p14678_p5 = scmp.ne.s32.totalorder %s16808_s30, %s14677_s9  ;;  %p14682_p8 = scmp.lt.u32.totalorder %s16808_s30, %s17015_s6 }
 0xb7d   : > { %p14683_p0 = scmp.lt.u32.totalorder %s14681_s3, %s14677_s9  ;;  %p14685_p13 = scmp.lt.u32.totalorder %s14677_s9, %s16808_s30 }
 0xb7e   : > { %p14679_p7 = pnand %p14678_p5, %p17011_p11 }
 0xb7f   : > { %p14684_p12 = por %p14683_p0, %p14682_p8 }
 0xb80   : > { %p14680_p9 = pneg %p14679_p7 }
 0xb81   : > { %p14686_p1 = por %p14685_p13, %p14684_p12 }
 0xb83   : > { %p14687_p3 = pnand %p14686_p1, %p14680_p9 }
 0xb85   : > { %14690 = shalt.err (!%p14687_p3)
}
 0xb86   : > { %s17017_s4 = smov 8   ;;  %s17018_s27 = smov 128   ;;  %10566 = vst [vmem:[%s16776_s22 + $0x38] sm:$0xff] %v10558_v48 }
 0xb87   : > { %12764 = dma.vmem_to_hbm [thread:$0]  (%p17011_p11), %s16810_s25, 1024, %s16808_s30, %s16661_s17, %s17018_s27, %s17018_s27, %s17017_s4  }
 0xb88   : > { %s10584_s9 = scalar_lea.sflag [#allocation5], %s15289_s14  ;;  %s14691_s16 = scalar_lea.vmem %s16819_s13, 1024 }
 0xb89   : > { %p14692_p6 = scmp.ne.s32.totalorder %s16819_s13, %s14691_s16  ;;  %s14818_s1 = smov [#allocation23]  }
 0xb8a   : > { %s14695_s3 = sshll.u32 %s14818_s1, 4  ;;  %s14696_s3 = int_to_ptr.vmem [resolvable:$false] %s14695_s3 }
 0xb8b   : > { %p14693_p2 = pnand %p14692_p6, %p17011_p11  ;;  %s14697_s7 = scalar_lea.vmem %s14696_s3, 2048 }
 0xb8c   : > { %p14698_p10 = scmp.lt.s32.totalorder %s16819_s13, %s14696_s3  ;;  %p14699_p5 = scmp.lt.s32.totalorder %s14697_s7, %s14691_s16 }
 0xb8d   : > { %p14694_p4 = pneg %p14693_p2 }
 0xb8e   : > { %p14700_p7 = por %p14699_p5, %p14698_p10 }
 0xb90   : > { %p14701_p9 = pnand %p14700_p7, %p14694_p4 }
 0xb92   : > { %14704 = shalt.err (!%p14701_p9)
}
 0xb93   : > { %s14705_s17 = scalar_lea.hbm %s16817_s28, 1024  ;;  %s14709_s30 = scalar_lea.hbm %s17016_s2, 2048 }
 0xb94   : > { %p14706_p8 = scmp.ne.s32.totalorder %s16817_s28, %s14705_s17  ;;  %p14710_p13 = scmp.lt.u32.totalorder %s16817_s28, %s17016_s2 }
 0xb95   : > { %p14711_p1 = scmp.lt.u32.totalorder %s14709_s30, %s14705_s17  ;;  %p14713_p6 = scmp.lt.u32.totalorder %s14705_s17, %s16817_s28 }
 0xb96   : > { %p14707_p0 = pnand %p14706_p8, %p17011_p11 }
 0xb97   : > { %p14712_p3 = por %p14711_p1, %p14710_p13 }
 0xb98   : > { %p14708_p12 = pneg %p14707_p0 }
 0xb99   : > { %p14714_p2 = por %p14713_p6, %p14712_p3 }
 0xb9b   : > { %p14715_p4 = pnand %p14714_p2, %p14708_p12 }
 0xb9d   : > { %14718 = shalt.err (!%p14715_p4)
}
 0xb9e   : > { %12762 = dma.vmem_to_hbm [thread:$0]  (%p17011_p11), %s16819_s13, 1024, %s16817_s28, %s10584_s9, %s17018_s27, %s17018_s27, %s17017_s4  }
 0xb9f PF: > { %s10654_s16 = sand.u32 1, %s14777_s18   ;;  %p17019_p10 = scmp.ne.s32.totalorder %s16971_s0, 0 }
 0xba0   : > { %p17020_p5 = scmp.ge.s32.totalorder %s14789_s21, 2  ;;  %s10655_s3 = scalar_lea.sflag [#allocation5], %s10654_s16 }
 0xba2   : > { %p12807_p7 = pnand %p17020_p5, %p17019_p10 }
 0xba4   : > { %14768 = dma.done.wait (!%p12807_p7), %s10655_s3, 1024  }
 0xba5   : > { %14770 = vsyncadd (!%p12807_p7), %s10655_s3, 4294966272  ;;  %s17021_s23 = sadd.s32 4294967294, %s14789_s21  }
 0xba6   : > { %s10663_s7 = sand.u32 1, %s17021_s23  }
 0xba7   : > { %s10664_s17 = scalar_lea.sflag [#allocation25], %s10663_s7 }
 0xba8   : > { %14772 = dma.done.wait (!%p12807_p7), %s10664_s17, 2048  }
 0xba9   : > { %14774 = vsyncadd (!%p12807_p7), %s10664_s17, 4294965248  ;;  %p40_p11 = scmp.ge.s32.totalorder %s15165_s26, 4   ;;  %s17022_s18 = smov %s14781_s19 }
 0xbaa   : > { %s17023_s19 = smov %s14785_s20  ;;  %s17024_s20 = smov %s15176_s15 }
 0xbab   : > { %s17025_s21 = smov %s15165_s26  ;;  %42 = sbr.rel (!%p40_p11) target bundleno = 28 (0x1c), region = 222 }
 0xbb2   :  { %10678 = vsyncpa [#allocation4], 1 }
 0xbb3   :  { %10680 = vsyncpa [#allocation4 + $0x1], 1 }
 0xbb4   :  { %10681 = vsyncpa [#allocation7], 1 }
 0xbb5   :  { %10683 = vsyncpa [#allocation7 + $0x1], 1 }
 0xbb6   :  { %10684 = vsyncpa [#allocation10], 1 }
 0xbb7   :  { %10685 = vsyncpa [#allocation13], 1 }
 0xbb8   :  { %10686 = vsyncpa [#allocation16], 1 }
 0xbb9   :  { %10687 = vsyncpa [#allocation19], 1 }
 0xbba   :  { %10688 = vsyncpa [#allocation22], 1 }
 0xbbb   :  { %10689 = vsyncpa [#allocation5], 1 }
 0xbbc   :  { %10691 = vsyncpa [#allocation5 + $0x1], 1 }
 0xbbd   :  { %10692 = vsyncpa [#allocation25], 1 }
 0xbbe   :  { %10694 = vsyncpa [#allocation25 + $0x1], 1 }

</bundles_post_ra>
